<compile_context>
chip_gen: v7x
topology: tpu7x:2x2x1
jax: 0.10.0
libtpu: 0.0.40
codegen_flags: <defaults>
</compile_context>

<pallas_src>
import functools

import jax
import jax.numpy as jnp
from jax.experimental import pallas as pl
from jax.experimental.pallas import tpu as pltpu


# --------------------------------------------------------------------------
# shared math helpers
# --------------------------------------------------------------------------

def _layernorm(x, g, b, eps=1e-5):
    # torch.nn.LayerNorm: biased variance over last dim, eps=1e-5, affine.
    mu = jnp.mean(x, axis=-1, keepdims=True)
    var = jnp.mean((x - mu) ** 2, axis=-1, keepdims=True)
    return (x - mu) * jax.lax.rsqrt(var + eps) * g + b


def _im2col_3d(x_cl, ksize):
    """Valid-rows im2col: (b,T,H,W,C) -> (b, T*H*W, K^3*C), taps ordered (dt,dh,dw,c)."""
    b, T, H, W, c = x_cl.shape
    pad = ksize // 2
    xp = jnp.pad(x_cl, ((0, 0), (pad, pad), (pad, pad), (pad, pad), (0, 0)))
    cols = [xp[:, dt:dt + T, dh:dh + H, dw:dw + W, :]
            for dt in range(ksize) for dh in range(ksize) for dw in range(ksize)]
    col = jnp.stack(cols, axis=-2)                       # (b, T, H, W, K^3, C)
    return col.reshape(b, T * H * W, ksize ** 3 * c)


def _row_tile(rows, target=512):
    for t in (target, 256, 128, 64, 32, 16, 8):
        if t <= rows and rows % t == 0:
            return t
    return rows


def _pick_block_batch(bf, n, cap_rows=128):
    """Largest divisor of bf with block rows = cand*n <= cap and (if possible) >=2 blocks."""
    best = None
    for cand in range(1, bf + 1):
        if bf % cand:
            continue
        m = cand * n
        if (m % 8 != 0) and (cand != bf):        # keep BlockSpec (8,128)-friendly
            continue
        if m <= cap_rows and (cand <= max(bf // 2, 1) or bf == 1):
            best = cand
    return best if best is not None else bf


# --------------------------------------------------------------------------
# Kernel 1: conv1 (3x3x3 im2col) + BN + SiLU  fused with  conv2 (1x1) + BN + SiLU
# --------------------------------------------------------------------------

def _conv12_kernel(xc_ref, w1_ref, s1_ref, b1_ref, w2_ref, s2_ref, b2_ref, o_ref):
    a = jnp.dot(xc_ref[0], w1_ref[...], preferred_element_type=jnp.float32)
    a = a * s1_ref[...] + b1_ref[...]                     # folded BatchNorm
    a = a * jax.nn.sigmoid(a)                             # SiLU (f32)
    h = jnp.dot(a.astype(jnp.bfloat16), w2_ref[...], preferred_element_type=jnp.float32)
    h = h * s2_ref[...] + b2_ref[...]
    o_ref[0] = (h * jax.nn.sigmoid(h)).astype(o_ref.dtype)


def conv12_forward(x_cl, p1, p2, ksize):
    b, T, H, W, cin = x_cl.shape
    col = _im2col_3d(x_cl, ksize).astype(jnp.bfloat16)    # (b, R, K^3*cin)
    R = T * H * W
    kd = ksize ** 3 * cin
    c1 = p1["w"].shape[0]
    dim = p2["w"].shape[0]
    w1 = jnp.transpose(p1["w"], (2, 3, 4, 1, 0)).reshape(kd, c1).astype(jnp.bfloat16)
    w2 = p2["w"].reshape(dim, c1).T.astype(jnp.bfloat16)  # (c1, dim)
    rt = _row_tile(R)
    nt = R // rt

    out = pl.pallas_call(
        _conv12_kernel,
        out_shape=jax.ShapeDtypeStruct((b, R, dim), x_cl.dtype),
        grid=(b, nt),
        in_specs=[
            pl.BlockSpec((1, rt, kd), lambda i, r: (i, r, 0)),
            pl.BlockSpec((kd, c1), lambda i, r: (0, 0)),
            pl.BlockSpec((1, c1), lambda i, r: (0, 0)),
            pl.BlockSpec((1, c1), lambda i, r: (0, 0)),
            pl.BlockSpec((c1, dim), lambda i, r: (0, 0)),
            pl.BlockSpec((1, dim), lambda i, r: (0, 0)),
            pl.BlockSpec((1, dim), lambda i, r: (0, 0)),
        ],
        out_specs=pl.BlockSpec((1, rt, dim), lambda i, r: (i, r, 0)),
        compiler_params=pltpu.CompilerParams(
            dimension_semantics=("parallel", "parallel")),
    )(col, w1, p1["scale"].reshape(1, c1), p1["shift"].reshape(1, c1),
      w2, p2["scale"].reshape(1, dim), p2["shift"].reshape(1, dim))
    return out.reshape(b, T, H, W, dim)


# --------------------------------------------------------------------------
# Kernel 2: fused Transformer stack (all depth layers) + conv3 (1x1) epilogue
# --------------------------------------------------------------------------

def _transformer_conv3_kernel(x_ref, bias_ref, ln1g_ref, ln1b_ref, wqkv_ref, wo_ref,
                              bo_ref, ln2g_ref, ln2b_ref, w1_ref, b1_ref, w2_ref,
                              b2_ref, w3_ref, s3_ref, b3_ref, o_ref, acc_ref,
                              *, heads, dim_head):
    dd = pl.program_id(1)

    @pl.when(dd == 0)
    def _init():
        acc_ref[...] = x_ref[...].astype(jnp.float32)

    x = acc_ref[...]                                      # (m, D) resident across depth
    bias = bias_ref[...]                                  # block-diagonal mask, DMA'd once
    inner = heads * dim_head
    scale = dim_head ** -0.5

    # ---- PreNorm + multi-head attention (fused QKV projection) ----
    xn = _layernorm(x, ln1g_ref[dd], ln1b_ref[dd]).astype(jnp.bfloat16)
    qkv = jnp.dot(xn, wqkv_ref[dd], preferred_element_type=jnp.float32)   # (m, 3*inner)
    head_outs = []
    for h in range(heads):                                # static unroll, 8-lane sub-slices
        q0 = h * dim_head
        qh = (qkv[:, q0:q0 + dim_head] * scale).astype(jnp.bfloat16)
        kh = qkv[:, inner + q0:inner + q0 + dim_head].astype(jnp.bfloat16)
        vh = qkv[:, 2 * inner + q0:2 * inner + q0 + dim_head].astype(jnp.bfloat16)
        s = jnp.dot(qh, kh.T, preferred_element_type=jnp.float32) + bias
        s = s - jnp.max(s, axis=-1, keepdims=True)        # stable softmax (f32)
        e = jnp.exp(s)
        pr = (e / jnp.sum(e, axis=-1, keepdims=True)).astype(jnp.bfloat16)
        head_outs.append(jnp.dot(pr, vh, preferred_element_type=jnp.float32))
    o_cat = jnp.concatenate(head_outs, axis=-1).astype(jnp.bfloat16)      # (m, inner)
    x = x + jnp.dot(o_cat, wo_ref[dd], preferred_element_type=jnp.float32) + bo_ref[dd]

    # ---- PreNorm + FeedForward (SiLU) ----
    xn2 = _layernorm(x, ln2g_ref[dd], ln2b_ref[dd]).astype(jnp.bfloat16)
    hh = jnp.dot(xn2, w1_ref[dd], preferred_element_type=jnp.float32) + b1_ref[dd]
    hh = (hh * jax.nn.sigmoid(hh)).astype(jnp.bfloat16)
    x = x + jnp.dot(hh, w2_ref[dd], preferred_element_type=jnp.float32) + b2_ref[dd]

    acc_ref[...] = x

    @pl.when(dd == pl.num_programs(1) - 1)
    def _final():
        # conv3 (1x1x1 Conv + folded BN + SiLU) commutes with the spatial rearrange,
        # so it is applied here directly on the (m, dim) sequence layout.
        y3 = jnp.dot(x.astype(jnp.bfloat16), w3_ref[...],
                     preferred_element_type=jnp.float32) * s3_ref[...] + b3_ref[...]
        o_ref[...] = (y3 * jax.nn.sigmoid(y3)).astype(o_ref.dtype)


def transformer_conv3_forward(x_seq, packed, *, heads, dim_head, block_batch):
    """x_seq: (Bf, N, D). One pallas_call for the full depth stack + conv3."""
    bf, n, d = x_seq.shape
    depth = packed[2].shape[0]                            # wqkv stack
    cout = packed[11].shape[-1]                           # w3: (dim, channel)
    m = block_batch * n
    nb = bf // block_batch
    x2 = x_seq.reshape(bf * n, d)

    # Block-diagonal mask (tokens attend only within their own length-n sequence),
    # built once in the wrapper and DMA'd once (constant index_map).
    seq_id = jnp.arange(m, dtype=jnp.int32) // n
    bias = jnp.where(seq_id[:, None] == seq_id[None, :], 0.0, -1e30).astype(jnp.float32)

    def const_spec(arr):
        nd = arr.ndim
        return pl.BlockSpec(arr.shape, lambda i, dd, _nd=nd: (0,) * _nd)

    kernel = functools.partial(_transformer_conv3_kernel, heads=heads, dim_head=dim_head)
    out = pl.pallas_call(
        kernel,
        out_shape=jax.ShapeDtypeStruct((bf * n, cout), x_seq.dtype),
        grid=(nb, depth),                                 # depth innermost -> resident acc
        in_specs=[pl.BlockSpec((m, d), lambda i, dd: (i, 0)),
                  pl.BlockSpec((m, m), lambda i, dd: (0, 0))]
                 + [const_spec(a) for a in packed],       # weights VMEM-resident, DMA'd once
        out_specs=pl.BlockSpec((m, cout), lambda i, dd: (i, 0)),
        scratch_shapes=[pltpu.VMEM((m, d), jnp.float32)],
        compiler_params=pltpu.CompilerParams(
            dimension_semantics=("parallel", "arbitrary")),
    )(x2, bias, *packed)
    return out.reshape(bf, n, cout)


# --------------------------------------------------------------------------
# Kernel 3: conv4 (3x3x3) over the concat(conv3_out, skip) without materializing it
# --------------------------------------------------------------------------

def _conv4_kernel(xa_ref, xb_ref, wa_ref, wb_ref, s_ref, b_ref, o_ref):
    acc = jnp.dot(xa_ref[0], wa_ref[...], preferred_element_type=jnp.float32)
    acc = acc + jnp.dot(xb_ref[0], wb_ref[...], preferred_element_type=jnp.float32)
    y = acc * s_ref[...] + b_ref[...]
    o_ref[0] = (y * jax.nn.sigmoid(y)).astype(o_ref.dtype)


def conv4_forward(x3_cl, y_cl, p4, ksize):
    b, T, H, W, c = x3_cl.shape
    cola = _im2col_3d(x3_cl, ksize).astype(jnp.bfloat16)  # conv3-output slab
    colb = _im2col_3d(y_cl, ksize).astype(jnp.bfloat16)   # skip-connection slab
    R = T * H * W
    kd = ksize ** 3 * c
    w = p4["w"]                                           # (cout, 2c, K, K, K)
    cout = w.shape[0]
    wa = jnp.transpose(w[:, :c], (2, 3, 4, 1, 0)).reshape(kd, cout).astype(jnp.bfloat16)
    wb = jnp.transpose(w[:, c:], (2, 3, 4, 1, 0)).reshape(kd, cout).astype(jnp.bfloat16)
    rt = _row_tile(R)
    nt = R // rt

    out = pl.pallas_call(
        _conv4_kernel,
        out_shape=jax.ShapeDtypeStruct((b, R, cout), x3_cl.dtype),
        grid=(b, nt),
        in_specs=[
            pl.BlockSpec((1, rt, kd), lambda i, r: (i, r, 0)),
            pl.BlockSpec((1, rt, kd), lambda i, r: (i, r, 0)),
            pl.BlockSpec((kd, cout), lambda i, r: (0, 0)),
            pl.BlockSpec((kd, cout), lambda i, r: (0, 0)),
            pl.BlockSpec((1, cout), lambda i, r: (0, 0)),
            pl.BlockSpec((1, cout), lambda i, r: (0, 0)),
        ],
        out_specs=pl.BlockSpec((1, rt, cout), lambda i, r: (i, r, 0)),
        compiler_params=pltpu.CompilerParams(
            dimension_semantics=("parallel", "parallel")),
    )(cola, colb, wa, wb, p4["scale"].reshape(1, cout), p4["shift"].reshape(1, cout))
    return out.reshape(b, T, H, W, cout)


# --------------------------------------------------------------------------
# Full MobileViTBlock forward (Pallas kernels + layout plumbing in the wrapper)
# --------------------------------------------------------------------------

def mobilevit_block_forward(x, params, *, patch_size, kernel_size, heads, dim_head):
    b, c, T, H, W = x.shape
    ph, pw = patch_size
    x_cl = jnp.transpose(x, (0, 2, 3, 4, 1))              # (b, T, H, W, C) channels-last
    y_cl = x_cl                                           # skip connection (x.clone())

    x2 = conv12_forward(x_cl, params["conv1"], params["conv2"], kernel_size)  # (b,T,H,W,dim)
    dim = x2.shape[-1]

    # 'b d t (h ph) (w pw) -> b t (ph pw) (h w) d'
    h_, w_ = H // ph, W // pw
    xt = x2.reshape(b, T, h_, ph, w_, pw, dim)
    xt = jnp.transpose(xt, (0, 1, 3, 5, 2, 4, 6))         # (b, t, ph, pw, h, w, d)
    bf, n = b * T * ph * pw, h_ * w_
    xt = xt.reshape(bf, n, dim)

    block_batch = _pick_block_batch(bf, n)
    x3 = transformer_conv3_forward(xt, params["transformer"], heads=heads,
                                   dim_head=dim_head, block_batch=block_batch)  # (bf,n,C)

    # 'b t (ph pw) (h w) d -> b d t (h ph) (w pw)' (channels-last here, d == channel now)
    x3 = x3.reshape(b, T, ph, pw, h_, w_, c)
    x3 = jnp.transpose(x3, (0, 1, 4, 2, 5, 3, 6)).reshape(b, T, H, W, c)

    x6 = conv4_forward(x3, y_cl, params["conv4"], kernel_size)                  # (b,T,H,W,C)
    return jnp.transpose(x6, (0, 4, 1, 2, 3))             # back to (b, C, T, H, W)


# --------------------------------------------------------------------------
# Parameters (torch layouts) + packing into kernel layouts
# --------------------------------------------------------------------------

def _pack_transformer_params(layers, conv3p, heads, dim_head):
    dim = layers[0]["wo"].shape[0]
    bf16 = jnp.bfloat16
    ln1g = jnp.stack([lp["ln1_g"].reshape(1, dim) for lp in layers])
    ln1b = jnp.stack([lp["ln1_b"].reshape(1, dim) for lp in layers])
    wqkv = jnp.stack([lp["wqkv"].T for lp in layers]).astype(bf16)      # (depth, dim, 3*inner)
    wo = jnp.stack([lp["wo"].T for lp in layers]).astype(bf16)          # (depth, inner, dim)
    bo = jnp.stack([lp["bo"].reshape(1, dim) for lp in layers])
    ln2g = jnp.stack([lp["ln2_g"].reshape(1, dim) for lp in layers])
    ln2b = jnp.stack([lp["ln2_b"].reshape(1, dim) for lp in layers])
    w1 = jnp.stack([lp["w1"].T for lp in layers]).astype(bf16)          # (depth, dim, mlp)
    b1 = jnp.stack([lp["b1"].reshape(1, -1) for lp in layers])
    w2 = jnp.stack([lp["w2"].T for lp in layers]).astype(bf16)          # (depth, mlp, dim)
    b2 = jnp.stack([lp["b2"].reshape(1, dim) for lp in layers])
    cout = conv3p["w"].shape[0]
    w3 = conv3p["w"].reshape(cout, dim).T.astype(bf16)                  # (dim, channel)
    s3 = conv3p["scale"].reshape(1, cout)
    b3 = conv3p["shift"].reshape(1, cout)
    return (ln1g, ln1b, wqkv, wo, bo, ln2g, ln2b, w1, b1, w2, b2, w3, s3, b3)


def init_params(key, *, channel, dim, depth, heads, dim_head, mlp_dim, kernel_size):
    inner = heads * dim_head
    keys = jax.random.split(key, 4 + depth)

    def conv_p(k, cin, cout, ksz):
        k1, k2, k3 = jax.random.split(k, 3)
        return dict(
            w=0.05 * jax.random.normal(k1, (cout, cin, ksz, ksz, ksz), jnp.float32),
            # BatchNorm3d folded to its inference-time per-channel affine.
            scale=1.0 + 0.1 * jax.random.normal(k2, (cout,), jnp.float32),
            shift=0.1 * jax.random.normal(k3, (cout,), jnp.float32),
        )

    def tlayer_p(k):
        ks = jax.random.split(k, 11)
        return dict(
            ln1_g=1.0 + 0.1 * jax.random.normal(ks[0], (dim,), jnp.float32),
            ln1_b=0.1 * jax.random.normal(ks[1], (dim,), jnp.float32),
            wqkv=0.08 * jax.random.normal(ks[2], (3 * inner, dim), jnp.float32),
            wo=0.08 * jax.random.normal(ks[3], (dim, inner), jnp.float32),
            bo=0.05 * jax.random.normal(ks[4], (dim,), jnp.float32),
            ln2_g=1.0 + 0.1 * jax.random.normal(ks[5], (dim,), jnp.float32),
            ln2_b=0.1 * jax.random.normal(ks[6], (dim,), jnp.float32),
            w1=0.08 * jax.random.normal(ks[7], (mlp_dim, dim), jnp.float32),
            b1=0.05 * jax.random.normal(ks[8], (mlp_dim,), jnp.float32),
            w2=0.08 * jax.random.normal(ks[9], (dim, mlp_dim), jnp.float32),
            b2=0.05 * jax.random.normal(ks[10], (dim,), jnp.float32),
        )

    layers = [tlayer_p(keys[4 + i]) for i in range(depth)]
    conv3 = conv_p(keys[2], dim, channel, 1)
    return dict(
        conv1=conv_p(keys[0], channel, channel, kernel_size),
        conv2=conv_p(keys[1], channel, dim, 1),
        conv3=conv3,
        conv4=conv_p(keys[3], 2 * channel, channel, kernel_size),
        transformer_torch=layers,
        transformer=_pack_transformer_params(layers, conv3, heads, dim_head),
    )


# --------------------------------------------------------------------------
# Pure-JAX reference (torch semantics)
# --------------------------------------------------------------------------

def reference_forward(x, params, *, patch_size, kernel_size, heads, dim_head):
    ph, pw = patch_size

    def conv(xx, p, pad):
        yv = jax.lax.conv_general_dilated(
            xx, p["w"], (1, 1, 1), [(pad, pad)] * 3,
            dimension_numbers=("NCDHW", "OIDHW", "NCDHW"))
        yv = yv * p["scale"].reshape(1, -1, 1, 1, 1) + p["shift"].reshape(1, -1, 1, 1, 1)
        return yv * jax.nn.sigmoid(yv)

    y = x
    x = conv(x, params["conv1"], kernel_size // 2)
    x = conv(x, params["conv2"], 0)
    b, d, T, H, W = x.shape
    h_, w_ = H // ph, W // pw

    # 'b d t (h ph) (w pw) -> b t (ph pw) (h w) d'
    x = x.reshape(b, d, T, h_, ph, w_, pw)
    x = jnp.transpose(x, (0, 2, 4, 6, 3, 5, 1)).reshape(b, T, ph * pw, h_ * w_, d)

    inner = heads * dim_head
    xf = x.reshape(b * T * ph * pw, h_ * w_, d)
    for lp in params["transformer_torch"]:
        xn = _layernorm(xf, lp["ln1_g"], lp["ln1_b"])
        qkv = xn @ lp["wqkv"].T
        q, k, v = jnp.split(qkv, 3, axis=-1)

        def sh(a):
            bb, nn, _ = a.shape
            return a.reshape(bb, nn, heads, dim_head).transpose(0, 2, 1, 3)

        qh, kh, vh = sh(q), sh(k), sh(v)
        dots = jnp.einsum("bhnd,bhmd->bhnm", qh, kh) * (dim_head ** -0.5)
        attn = jax.nn.softmax(dots, axis=-1)
        out = jnp.einsum("bhnm,bhmd->bhnd", attn, vh)
        out = out.transpose(0, 2, 1, 3).reshape(xf.shape[0], xf.shape[1], inner)
        xf = xf + (out @ lp["wo"].T + lp["bo"])
        xn2 = _layernorm(xf, lp["ln2_g"], lp["ln2_b"])
        hh = xn2 @ lp["w1"].T + lp["b1"]
        hh = hh * jax.nn.sigmoid(hh)
        xf = xf + (hh @ lp["w2"].T + lp["b2"])
    x = xf.reshape(b, T, ph * pw, h_ * w_, d)

    # 'b t (ph pw) (h w) d -> b d t (h ph) (w pw)'
    x = x.reshape(b, T, ph, pw, h_, w_, d)
    x = jnp.transpose(x, (0, 6, 1, 4, 2, 5, 3)).reshape(b, d, T, H, W)

    x = conv(x, params["conv3"], 0)
    x = jnp.concatenate([x, y], axis=1)
    x = conv(x, params["conv4"], kernel_size // 2)
    return x


# --------------------------------------------------------------------------
# main
# --------------------------------------------------------------------------

if __name__ == "__main__":
    # MobileViTBlock(dim=32, depth=2, channel=8, kernel_size=3, patch_size=(2,2), mlp_dim=64)
    b, channel, t, H, W = 2, 8, 2, 8, 8
    dim, depth, mlp_dim = 32, 2, 64
    heads, dim_head = 4, 8            # fixed inside MobileViTBlock: Transformer(dim, depth, 4, 8, ...)
    kernel_size, patch_size = 3, (2, 2)

    key = jax.random.PRNGKey(0)
    kx, kp = jax.random.split(key)
    x = jax.random.normal(kx, (b, channel, t, H, W), jnp.float32)
    params = init_params(kp, channel=channel, dim=dim, depth=depth, heads=heads,
                         dim_head=dim_head, mlp_dim=mlp_dim, kernel_size=kernel_size)

    fwd = jax.jit(functools.partial(mobilevit_block_forward, patch_size=patch_size,
                                    kernel_size=kernel_size, heads=heads,
                                    dim_head=dim_head))
    out = jax.block_until_ready(fwd(x, params))

    ref = reference_forward(x, params, patch_size=patch_size, kernel_size=kernel_size,
                            heads=heads, dim_head=dim_head)
    assert out.shape == ref.shape == (b, channel, t, H, W)
    # Kernels use bf16 MXU operands (f32 accumulation) per the perf review; the pure-JAX
    # reference runs at XLA's default TPU matmul precision, hence a bf16-level tolerance.
    assert jnp.allclose(out, ref, atol=3e-2, rtol=3e-2), "mismatch vs reference"
    print("KERNEL_OK")
</pallas_src>

<mosaic_0001>
module attributes {stable_mosaic.version = 11 : i64} {
  func.func @_conv12_kernel(%arg0: i32, %arg1: i32, %arg2: memref<1x128x216xbf16, #tpu.memory_space<vmem>>, %arg3: memref<216x8xbf16, #tpu.memory_space<vmem>>, %arg4: memref<1x8xf32, #tpu.memory_space<vmem>>, %arg5: memref<1x8xf32, #tpu.memory_space<vmem>>, %arg6: memref<8x32xbf16, #tpu.memory_space<vmem>>, %arg7: memref<1x32xf32, #tpu.memory_space<vmem>>, %arg8: memref<1x32xf32, #tpu.memory_space<vmem>>, %arg9: memref<1x128x32xf32, #tpu.memory_space<vmem>>) attributes {dimension_semantics = [#tpu.dimension_semantics<parallel>, #tpu.dimension_semantics<parallel>], iteration_bounds = array<i64: 2, 1>, scalar_prefetch = 0 : i64, scratch_operands = 0 : i64, tpu.core_type = #tpu.core_type<tc>, window_params = [{transform_indices = @transform_0, window_bounds = array<i64: 1, 128, 216>}, {pipeline_mode = #tpu.pipeline_mode<synchronous>, transform_indices = @transform_1, window_bounds = array<i64: 216, 8>}, {pipeline_mode = #tpu.pipeline_mode<synchronous>, transform_indices = @transform_2, window_bounds = array<i64: 1, 8>}, {pipeline_mode = #tpu.pipeline_mode<synchronous>, transform_indices = @transform_3, window_bounds = array<i64: 1, 8>}, {pipeline_mode = #tpu.pipeline_mode<synchronous>, transform_indices = @transform_4, window_bounds = array<i64: 8, 32>}, {pipeline_mode = #tpu.pipeline_mode<synchronous>, transform_indices = @transform_5, window_bounds = array<i64: 1, 32>}, {pipeline_mode = #tpu.pipeline_mode<synchronous>, transform_indices = @transform_6, window_bounds = array<i64: 1, 32>}, {transform_indices = @transform_7, window_bounds = array<i64: 1, 128, 32>}]} {
    %c0 = arith.constant 0 : index
    %c0_0 = arith.constant 0 : index
    %c0_1 = arith.constant 0 : index
    %0 = vector.load %arg2[%c0, %c0_0, %c0_1] : memref<1x128x216xbf16, #tpu.memory_space<vmem>>, vector<1x128x216xbf16>
    %1 = vector.shape_cast %0 : vector<1x128x216xbf16> to vector<128x216xbf16>
    %c0_2 = arith.constant 0 : index
    %c0_3 = arith.constant 0 : index
    %2 = vector.load %arg3[%c0_2, %c0_3] : memref<216x8xbf16, #tpu.memory_space<vmem>>, vector<216x8xbf16>
    %cst = arith.constant dense<0.000000e+00> : vector<128x8xf32>
    %3 = tpu.matmul %1, %2, %cst {dimension_numbers = #tpu.dot_dimension_numbers<[1], [0], [0], [1], [0, 0, 1, 1], [], []>} : vector<128x216xbf16>, vector<216x8xbf16>, vector<128x8xf32> -> vector<128x8xf32>
    %c0_4 = arith.constant 0 : index
    %c0_5 = arith.constant 0 : index
    %4 = vector.load %arg4[%c0_4, %c0_5] : memref<1x8xf32, #tpu.memory_space<vmem>>, vector<1x8xf32>
    %5 = vector.broadcast %4 : vector<1x8xf32> to vector<128x8xf32>
    %6 = arith.mulf %3, %5 : vector<128x8xf32>
    %c0_6 = arith.constant 0 : index
    %c0_7 = arith.constant 0 : index
    %7 = vector.load %arg5[%c0_6, %c0_7] : memref<1x8xf32, #tpu.memory_space<vmem>>, vector<1x8xf32>
    %8 = vector.broadcast %7 : vector<1x8xf32> to vector<128x8xf32>
    %9 = arith.addf %6, %8 : vector<128x8xf32>
    %10 = arith.negf %9 : vector<128x8xf32>
    %11 = math.exp %10 : vector<128x8xf32>
    %cst_8 = arith.constant 1.000000e+00 : f32
    %12 = vector.broadcast %cst_8 : f32 to vector<128x8xf32>
    %13 = arith.addf %12, %11 : vector<128x8xf32>
    %14 = arith.divf %12, %13 : vector<128x8xf32>
    %15 = arith.mulf %9, %14 : vector<128x8xf32>
    %16 = arith.truncf %15 : vector<128x8xf32> to vector<128x8xbf16>
    %c0_9 = arith.constant 0 : index
    %c0_10 = arith.constant 0 : index
    %17 = vector.load %arg6[%c0_9, %c0_10] : memref<8x32xbf16, #tpu.memory_space<vmem>>, vector<8x32xbf16>
    %cst_11 = arith.constant dense<0.000000e+00> : vector<128x32xf32>
    %18 = tpu.matmul %16, %17, %cst_11 {dimension_numbers = #tpu.dot_dimension_numbers<[1], [0], [0], [1], [0, 0, 1, 1], [], []>} : vector<128x8xbf16>, vector<8x32xbf16>, vector<128x32xf32> -> vector<128x32xf32>
    %c0_12 = arith.constant 0 : index
    %c0_13 = arith.constant 0 : index
    %19 = vector.load %arg7[%c0_12, %c0_13] : memref<1x32xf32, #tpu.memory_space<vmem>>, vector<1x32xf32>
    %20 = vector.broadcast %19 : vector<1x32xf32> to vector<128x32xf32>
    %21 = arith.mulf %18, %20 : vector<128x32xf32>
    %c0_14 = arith.constant 0 : index
    %c0_15 = arith.constant 0 : index
    %22 = vector.load %arg8[%c0_14, %c0_15] : memref<1x32xf32, #tpu.memory_space<vmem>>, vector<1x32xf32>
    %23 = vector.broadcast %22 : vector<1x32xf32> to vector<128x32xf32>
    %24 = arith.addf %21, %23 : vector<128x32xf32>
    %25 = arith.negf %24 : vector<128x32xf32>
    %26 = math.exp %25 : vector<128x32xf32>
    %cst_16 = arith.constant 1.000000e+00 : f32
    %27 = vector.broadcast %cst_16 : f32 to vector<128x32xf32>
    %28 = arith.addf %27, %26 : vector<128x32xf32>
    %29 = arith.divf %27, %28 : vector<128x32xf32>
    %30 = arith.mulf %24, %29 : vector<128x32xf32>
    %c0_17 = arith.constant 0 : index
    %c0_18 = arith.constant 0 : index
    %c0_19 = arith.constant 0 : index
    %31 = vector.load %arg9[%c0_17, %c0_18, %c0_19] : memref<1x128x32xf32, #tpu.memory_space<vmem>>, vector<1x128x32xf32>
    %32 = vector.shape_cast %31 : vector<1x128x32xf32> to vector<128x32xf32>
    %33 = vector.shape_cast %30 : vector<128x32xf32> to vector<1x128x32xf32>
    tpu.vector_store %arg9[%c0_17, %c0_18, %c0_19], %33 {strides = array<i32>} : memref<1x128x32xf32, #tpu.memory_space<vmem>>, vector<1x128x32xf32>,
    return
  }
  func.func @transform_0(%arg0: i32, %arg1: i32) -> (i32, i32, i32) {
    %c0_i32 = arith.constant 0 : i32
    %c0_i32_0 = arith.constant 0 : i32
    return %arg0, %arg1, %c0_i32 : i32, i32, i32
  }
  func.func @transform_1(%arg0: i32, %arg1: i32) -> (i32, i32) {
    %c0_i32 = arith.constant 0 : i32
    %c0_i32_0 = arith.constant 0 : i32
    %c0_i32_1 = arith.constant 0 : i32
    return %c0_i32, %c0_i32_0 : i32, i32
  }
  func.func @transform_2(%arg0: i32, %arg1: i32) -> (i32, i32) {
    %c0_i32 = arith.constant 0 : i32
    %c0_i32_0 = arith.constant 0 : i32
    %c0_i32_1 = arith.constant 0 : i32
    return %c0_i32, %c0_i32_0 : i32, i32
  }
  func.func @transform_3(%arg0: i32, %arg1: i32) -> (i32, i32) {
    %c0_i32 = arith.constant 0 : i32
    %c0_i32_0 = arith.constant 0 : i32
    %c0_i32_1 = arith.constant 0 : i32
    return %c0_i32, %c0_i32_0 : i32, i32
  }
  func.func @transform_4(%arg0: i32, %arg1: i32) -> (i32, i32) {
    %c0_i32 = arith.constant 0 : i32
    %c0_i32_0 = arith.constant 0 : i32
    %c0_i32_1 = arith.constant 0 : i32
    return %c0_i32, %c0_i32_0 : i32, i32
  }
  func.func @transform_5(%arg0: i32, %arg1: i32) -> (i32, i32) {
    %c0_i32 = arith.constant 0 : i32
    %c0_i32_0 = arith.constant 0 : i32
    %c0_i32_1 = arith.constant 0 : i32
    return %c0_i32, %c0_i32_0 : i32, i32
  }
  func.func @transform_6(%arg0: i32, %arg1: i32) -> (i32, i32) {
    %c0_i32 = arith.constant 0 : i32
    %c0_i32_0 = arith.constant 0 : i32
    %c0_i32_1 = arith.constant 0 : i32
    return %c0_i32, %c0_i32_0 : i32, i32
  }
  func.func @transform_7(%arg0: i32, %arg1: i32) -> (i32, i32, i32) {
    %c0_i32 = arith.constant 0 : i32
    %c0_i32_0 = arith.constant 0 : i32
    return %arg0, %arg1, %c0_i32 : i32, i32, i32
  }
}

module attributes {stable_mosaic.version = 11 : i64} {
  func.func @_transformer_conv3_kernel(%arg0: i32, %arg1: i32, %arg2: memref<128x32xf32, #tpu.memory_space<vmem>>, %arg3: memref<128x128xf32, #tpu.memory_space<vmem>>, %arg4: memref<2x1x32xf32, #tpu.memory_space<vmem>>, %arg5: memref<2x1x32xf32, #tpu.memory_space<vmem>>, %arg6: memref<2x32x96xbf16, #tpu.memory_space<vmem>>, %arg7: memref<2x32x32xbf16, #tpu.memory_space<vmem>>, %arg8: memref<2x1x32xf32, #tpu.memory_space<vmem>>, %arg9: memref<2x1x32xf32, #tpu.memory_space<vmem>>, %arg10: memref<2x1x32xf32, #tpu.memory_space<vmem>>, %arg11: memref<2x32x64xbf16, #tpu.memory_space<vmem>>, %arg12: memref<2x1x64xf32, #tpu.memory_space<vmem>>, %arg13: memref<2x64x32xbf16, #tpu.memory_space<vmem>>, %arg14: memref<2x1x32xf32, #tpu.memory_space<vmem>>, %arg15: memref<32x8xbf16, #tpu.memory_space<vmem>>, %arg16: memref<1x8xf32, #tpu.memory_space<vmem>>, %arg17: memref<1x8xf32, #tpu.memory_space<vmem>>, %arg18: memref<128x8xf32, #tpu.memory_space<vmem>>, %arg19: memref<128x32xf32, #tpu.memory_space<vmem>>) attributes {dimension_semantics = [#tpu.dimension_semantics<parallel>, #tpu.dimension_semantics<arbitrary>], iteration_bounds = array<i64: 2, 2>, scalar_prefetch = 0 : i64, scratch_operands = 1 : i64, tpu.core_type = #tpu.core_type<tc>, window_params = [{transform_indices = @transform_0, window_bounds = array<i64: 128, 32>}, {pipeline_mode = #tpu.pipeline_mode<synchronous>, transform_indices = @transform_1, window_bounds = array<i64: 128, 128>}, {pipeline_mode = #tpu.pipeline_mode<synchronous>, transform_indices = @transform_2, window_bounds = array<i64: 2, 1, 32>}, {pipeline_mode = #tpu.pipeline_mode<synchronous>, transform_indices = @transform_3, window_bounds = array<i64: 2, 1, 32>}, {pipeline_mode = #tpu.pipeline_mode<synchronous>, transform_indices = @transform_4, window_bounds = array<i64: 2, 32, 96>}, {pipeline_mode = #tpu.pipeline_mode<synchronous>, transform_indices = @transform_5, window_bounds = array<i64: 2, 32, 32>}, {pipeline_mode = #tpu.pipeline_mode<synchronous>, transform_indices = @transform_6, window_bounds = array<i64: 2, 1, 32>}, {pipeline_mode = #tpu.pipeline_mode<synchronous>, transform_indices = @transform_7, window_bounds = array<i64: 2, 1, 32>}, {pipeline_mode = #tpu.pipeline_mode<synchronous>, transform_indices = @transform_8, window_bounds = array<i64: 2, 1, 32>}, {pipeline_mode = #tpu.pipeline_mode<synchronous>, transform_indices = @transform_9, window_bounds = array<i64: 2, 32, 64>}, {pipeline_mode = #tpu.pipeline_mode<synchronous>, transform_indices = @transform_10, window_bounds = array<i64: 2, 1, 64>}, {pipeline_mode = #tpu.pipeline_mode<synchronous>, transform_indices = @transform_11, window_bounds = array<i64: 2, 64, 32>}, {pipeline_mode = #tpu.pipeline_mode<synchronous>, transform_indices = @transform_12, window_bounds = array<i64: 2, 1, 32>}, {pipeline_mode = #tpu.pipeline_mode<synchronous>, transform_indices = @transform_13, window_bounds = array<i64: 32, 8>}, {pipeline_mode = #tpu.pipeline_mode<synchronous>, transform_indices = @transform_14, window_bounds = array<i64: 1, 8>}, {pipeline_mode = #tpu.pipeline_mode<synchronous>, transform_indices = @transform_15, window_bounds = array<i64: 1, 8>}, {transform_indices = @transform_16, window_bounds = array<i64: 128, 8>}]} {
    %c0_i32 = arith.constant 0 : i32
    %0 = arith.cmpi eq, %arg1, %c0_i32 : i32
    %1 = arith.extui %0 : i1 to i32
    %c0_i32_0 = arith.constant 0 : i32
    %2 = arith.cmpi ne, %1, %c0_i32_0 : i32
    scf.if %2 {
      %c0_63 = arith.constant 0 : index
      %c0_64 = arith.constant 0 : index
      %197 = vector.load %arg2[%c0_63, %c0_64] : memref<128x32xf32, #tpu.memory_space<vmem>>, vector<128x32xf32>
      %c0_65 = arith.constant 0 : index
      %c0_66 = arith.constant 0 : index
      %198 = vector.load %arg19[%c0_65, %c0_66] : memref<128x32xf32, #tpu.memory_space<vmem>>, vector<128x32xf32>
      tpu.vector_store %arg19[%c0_65, %c0_66], %197 {strides = array<i32>} : memref<128x32xf32, #tpu.memory_space<vmem>>, vector<128x32xf32>,
    } else {
    }
    %c0 = arith.constant 0 : index
    %c0_1 = arith.constant 0 : index
    %3 = vector.load %arg19[%c0, %c0_1] : memref<128x32xf32, #tpu.memory_space<vmem>>, vector<128x32xf32>
    %c0_2 = arith.constant 0 : index
    %c0_3 = arith.constant 0 : index
    %4 = vector.load %arg3[%c0_2, %c0_3] : memref<128x128xf32, #tpu.memory_space<vmem>>, vector<128x128xf32>
    %5 = arith.index_cast %arg1 : i32 to index
    %c0_4 = arith.constant 0 : index
    %c0_5 = arith.constant 0 : index
    %6 = vector.load %arg4[%5, %c0_4, %c0_5] : memref<2x1x32xf32, #tpu.memory_space<vmem>>, vector<1x1x32xf32>
    %7 = vector.shape_cast %6 : vector<1x1x32xf32> to vector<1x32xf32>
    %8 = arith.index_cast %arg1 : i32 to index
    %c0_6 = arith.constant 0 : index
    %c0_7 = arith.constant 0 : index
    %9 = vector.load %arg5[%8, %c0_6, %c0_7] : memref<2x1x32xf32, #tpu.memory_space<vmem>>, vector<1x1x32xf32>
    %10 = vector.shape_cast %9 : vector<1x1x32xf32> to vector<1x32xf32>
    %cst = arith.constant dense<0.000000e+00> : vector<128xf32>
    %11 = vector.multi_reduction <add>, %3, %cst [1] : vector<128x32xf32> to vector<128xf32>
    %12 = vector.shape_cast %11 : vector<128xf32> to vector<128x1xf32>
    %cst_8 = arith.constant 3.200000e+01 : f32
    %13 = vector.broadcast %cst_8 : f32 to vector<128x1xf32>
    %14 = arith.divf %12, %13 : vector<128x1xf32>
    %15 = vector.broadcast %14 : vector<128x1xf32> to vector<128x32xf32>
    %16 = arith.subf %3, %15 : vector<128x32xf32>
    %17 = arith.mulf %16, %16 : vector<128x32xf32>
    %cst_9 = arith.constant dense<0.000000e+00> : vector<128xf32>
    %18 = vector.multi_reduction <add>, %17, %cst_9 [1] : vector<128x32xf32> to vector<128xf32>
    %19 = vector.shape_cast %18 : vector<128xf32> to vector<128x1xf32>
    %cst_10 = arith.constant 3.200000e+01 : f32
    %20 = vector.broadcast %cst_10 : f32 to vector<128x1xf32>
    %21 = arith.divf %19, %20 : vector<128x1xf32>
    %22 = vector.broadcast %14 : vector<128x1xf32> to vector<128x32xf32>
    %23 = arith.subf %3, %22 : vector<128x32xf32>
    %cst_11 = arith.constant 9.99999974E-6 : f32
    %24 = vector.broadcast %cst_11 : f32 to vector<128x1xf32>
    %25 = arith.addf %21, %24 : vector<128x1xf32>
    %26 = math.rsqrt %25 : vector<128x1xf32>
    %27 = vector.broadcast %26 : vector<128x1xf32> to vector<128x32xf32>
    %28 = arith.mulf %23, %27 : vector<128x32xf32>
    %29 = vector.broadcast %7 : vector<1x32xf32> to vector<128x32xf32>
    %30 = arith.mulf %28, %29 : vector<128x32xf32>
    %31 = vector.broadcast %10 : vector<1x32xf32> to vector<128x32xf32>
    %32 = arith.addf %30, %31 : vector<128x32xf32>
    %33 = arith.truncf %32 : vector<128x32xf32> to vector<128x32xbf16>
    %34 = arith.index_cast %arg1 : i32 to index
    %c0_12 = arith.constant 0 : index
    %c0_13 = arith.constant 0 : index
    %35 = vector.load %arg6[%34, %c0_12, %c0_13] : memref<2x32x96xbf16, #tpu.memory_space<vmem>>, vector<1x32x96xbf16>
    %36 = vector.shape_cast %35 : vector<1x32x96xbf16> to vector<32x96xbf16>
    %cst_14 = arith.constant dense<0.000000e+00> : vector<128x96xf32>
    %37 = tpu.matmul %33, %36, %cst_14 {dimension_numbers = #tpu.dot_dimension_numbers<[1], [0], [0], [1], [0, 0, 1, 1], [], []>} : vector<128x32xbf16>, vector<32x96xbf16>, vector<128x96xf32> -> vector<128x96xf32>
    %38 = vector.extract_strided_slice %37 {offsets = [0, 0], sizes = [128, 8], strides = [1, 1]} : vector<128x96xf32> to vector<128x8xf32>
    %cst_15 = arith.constant 0.353553385 : f32
    %39 = vector.broadcast %cst_15 : f32 to vector<128x8xf32>
    %40 = arith.mulf %38, %39 : vector<128x8xf32>
    %41 = arith.truncf %40 : vector<128x8xf32> to vector<128x8xbf16>
    %42 = vector.extract_strided_slice %37 {offsets = [0, 32], sizes = [128, 8], strides = [1, 1]} : vector<128x96xf32> to vector<128x8xf32>
    %43 = arith.truncf %42 : vector<128x8xf32> to vector<128x8xbf16>
    %44 = vector.extract_strided_slice %37 {offsets = [0, 64], sizes = [128, 8], strides = [1, 1]} : vector<128x96xf32> to vector<128x8xf32>
    %45 = arith.truncf %44 : vector<128x8xf32> to vector<128x8xbf16>
    %46 = tpu.transpose %43, [1, 0] : vector<128x8xbf16> -> vector<8x128xbf16>
    %cst_16 = arith.constant dense<0.000000e+00> : vector<128x128xf32>
    %47 = tpu.matmul %41, %46, %cst_16 {dimension_numbers = #tpu.dot_dimension_numbers<[1], [0], [0], [1], [0, 0, 1, 1], [], []>} : vector<128x8xbf16>, vector<8x128xbf16>, vector<128x128xf32> -> vector<128x128xf32>
    %48 = arith.addf %47, %4 : vector<128x128xf32>
    %cst_17 = arith.constant dense<0xFF800000> : vector<128xf32>
    %49 = vector.multi_reduction <maximumf>, %48, %cst_17 [1] : vector<128x128xf32> to vector<128xf32>
    %50 = vector.shape_cast %49 : vector<128xf32> to vector<128x1xf32>
    %51 = vector.broadcast %50 : vector<128x1xf32> to vector<128x128xf32>
    %52 = arith.subf %48, %51 : vector<128x128xf32>
    %53 = math.exp %52 : vector<128x128xf32>
    %cst_18 = arith.constant dense<0.000000e+00> : vector<128xf32>
    %54 = vector.multi_reduction <add>, %53, %cst_18 [1] : vector<128x128xf32> to vector<128xf32>
    %55 = vector.shape_cast %54 : vector<128xf32> to vector<128x1xf32>
    %56 = vector.broadcast %55 : vector<128x1xf32> to vector<128x128xf32>
    %57 = arith.divf %53, %56 : vector<128x128xf32>
    %58 = arith.truncf %57 : vector<128x128xf32> to vector<128x128xbf16>
    %cst_19 = arith.constant dense<0.000000e+00> : vector<128x8xf32>
    %59 = tpu.matmul %58, %45, %cst_19 {dimension_numbers = #tpu.dot_dimension_numbers<[1], [0], [0], [1], [0, 0, 1, 1], [], []>} : vector<128x128xbf16>, vector<128x8xbf16>, vector<128x8xf32> -> vector<128x8xf32>
    %60 = vector.extract_strided_slice %37 {offsets = [0, 8], sizes = [128, 8], strides = [1, 1]} : vector<128x96xf32> to vector<128x8xf32>
    %cst_20 = arith.constant 0.353553385 : f32
    %61 = vector.broadcast %cst_20 : f32 to vector<128x8xf32>
    %62 = arith.mulf %60, %61 : vector<128x8xf32>
    %63 = arith.truncf %62 : vector<128x8xf32> to vector<128x8xbf16>
    %64 = vector.extract_strided_slice %37 {offsets = [0, 40], sizes = [128, 8], strides = [1, 1]} : vector<128x96xf32> to vector<128x8xf32>
    %65 = arith.truncf %64 : vector<128x8xf32> to vector<128x8xbf16>
    %66 = vector.extract_strided_slice %37 {offsets = [0, 72], sizes = [128, 8], strides = [1, 1]} : vector<128x96xf32> to vector<128x8xf32>
    %67 = arith.truncf %66 : vector<128x8xf32> to vector<128x8xbf16>
    %68 = tpu.transpose %65, [1, 0] : vector<128x8xbf16> -> vector<8x128xbf16>
    %cst_21 = arith.constant dense<0.000000e+00> : vector<128x128xf32>
    %69 = tpu.matmul %63, %68, %cst_21 {dimension_numbers = #tpu.dot_dimension_numbers<[1], [0], [0], [1], [0, 0, 1, 1], [], []>} : vector<128x8xbf16>, vector<8x128xbf16>, vector<128x128xf32> -> vector<128x128xf32>
    %70 = arith.addf %69, %4 : vector<128x128xf32>
    %cst_22 = arith.constant dense<0xFF800000> : vector<128xf32>
    %71 = vector.multi_reduction <maximumf>, %70, %cst_22 [1] : vector<128x128xf32> to vector<128xf32>
    %72 = vector.shape_cast %71 : vector<128xf32> to vector<128x1xf32>
    %73 = vector.broadcast %72 : vector<128x1xf32> to vector<128x128xf32>
    %74 = arith.subf %70, %73 : vector<128x128xf32>
    %75 = math.exp %74 : vector<128x128xf32>
    %cst_23 = arith.constant dense<0.000000e+00> : vector<128xf32>
    %76 = vector.multi_reduction <add>, %75, %cst_23 [1] : vector<128x128xf32> to vector<128xf32>
    %77 = vector.shape_cast %76 : vector<128xf32> to vector<128x1xf32>
    %78 = vector.broadcast %77 : vector<128x1xf32> to vector<128x128xf32>
    %79 = arith.divf %75, %78 : vector<128x128xf32>
    %80 = arith.truncf %79 : vector<128x128xf32> to vector<128x128xbf16>
    %cst_24 = arith.constant dense<0.000000e+00> : vector<128x8xf32>
    %81 = tpu.matmul %80, %67, %cst_24 {dimension_numbers = #tpu.dot_dimension_numbers<[1], [0], [0], [1], [0, 0, 1, 1], [], []>} : vector<128x128xbf16>, vector<128x8xbf16>, vector<128x8xf32> -> vector<128x8xf32>
    %82 = vector.extract_strided_slice %37 {offsets = [0, 16], sizes = [128, 8], strides = [1, 1]} : vector<128x96xf32> to vector<128x8xf32>
    %cst_25 = arith.constant 0.353553385 : f32
    %83 = vector.broadcast %cst_25 : f32 to vector<128x8xf32>
    %84 = arith.mulf %82, %83 : vector<128x8xf32>
    %85 = arith.truncf %84 : vector<128x8xf32> to vector<128x8xbf16>
    %86 = vector.extract_strided_slice %37 {offsets = [0, 48], sizes = [128, 8], strides = [1, 1]} : vector<128x96xf32> to vector<128x8xf32>
    %87 = arith.truncf %86 : vector<128x8xf32> to vector<128x8xbf16>
    %88 = vector.extract_strided_slice %37 {offsets = [0, 80], sizes = [128, 8], strides = [1, 1]} : vector<128x96xf32> to vector<128x8xf32>
    %89 = arith.truncf %88 : vector<128x8xf32> to vector<128x8xbf16>
    %90 = tpu.transpose %87, [1, 0] : vector<128x8xbf16> -> vector<8x128xbf16>
    %cst_26 = arith.constant dense<0.000000e+00> : vector<128x128xf32>
    %91 = tpu.matmul %85, %90, %cst_26 {dimension_numbers = #tpu.dot_dimension_numbers<[1], [0], [0], [1], [0, 0, 1, 1], [], []>} : vector<128x8xbf16>, vector<8x128xbf16>, vector<128x128xf32> -> vector<128x128xf32>
    %92 = arith.addf %91, %4 : vector<128x128xf32>
    %cst_27 = arith.constant dense<0xFF800000> : vector<128xf32>
    %93 = vector.multi_reduction <maximumf>, %92, %cst_27 [1] : vector<128x128xf32> to vector<128xf32>
    %94 = vector.shape_cast %93 : vector<128xf32> to vector<128x1xf32>
    %95 = vector.broadcast %94 : vector<128x1xf32> to vector<128x128xf32>
    %96 = arith.subf %92, %95 : vector<128x128xf32>
    %97 = math.exp %96 : vector<128x128xf32>
    %cst_28 = arith.constant dense<0.000000e+00> : vector<128xf32>
    %98 = vector.multi_reduction <add>, %97, %cst_28 [1] : vector<128x128xf32> to vector<128xf32>
    %99 = vector.shape_cast %98 : vector<128xf32> to vector<128x1xf32>
    %100 = vector.broadcast %99 : vector<128x1xf32> to vector<128x128xf32>
    %101 = arith.divf %97, %100 : vector<128x128xf32>
    %102 = arith.truncf %101 : vector<128x128xf32> to vector<128x128xbf16>
    %cst_29 = arith.constant dense<0.000000e+00> : vector<128x8xf32>
    %103 = tpu.matmul %102, %89, %cst_29 {dimension_numbers = #tpu.dot_dimension_numbers<[1], [0], [0], [1], [0, 0, 1, 1], [], []>} : vector<128x128xbf16>, vector<128x8xbf16>, vector<128x8xf32> -> vector<128x8xf32>
    %104 = vector.extract_strided_slice %37 {offsets = [0, 24], sizes = [128, 8], strides = [1, 1]} : vector<128x96xf32> to vector<128x8xf32>
    %cst_30 = arith.constant 0.353553385 : f32
    %105 = vector.broadcast %cst_30 : f32 to vector<128x8xf32>
    %106 = arith.mulf %104, %105 : vector<128x8xf32>
    %107 = arith.truncf %106 : vector<128x8xf32> to vector<128x8xbf16>
    %108 = vector.extract_strided_slice %37 {offsets = [0, 56], sizes = [128, 8], strides = [1, 1]} : vector<128x96xf32> to vector<128x8xf32>
    %109 = arith.truncf %108 : vector<128x8xf32> to vector<128x8xbf16>
    %110 = vector.extract_strided_slice %37 {offsets = [0, 88], sizes = [128, 8], strides = [1, 1]} : vector<128x96xf32> to vector<128x8xf32>
    %111 = arith.truncf %110 : vector<128x8xf32> to vector<128x8xbf16>
    %112 = tpu.transpose %109, [1, 0] : vector<128x8xbf16> -> vector<8x128xbf16>
    %cst_31 = arith.constant dense<0.000000e+00> : vector<128x128xf32>
    %113 = tpu.matmul %107, %112, %cst_31 {dimension_numbers = #tpu.dot_dimension_numbers<[1], [0], [0], [1], [0, 0, 1, 1], [], []>} : vector<128x8xbf16>, vector<8x128xbf16>, vector<128x128xf32> -> vector<128x128xf32>
    %114 = arith.addf %113, %4 : vector<128x128xf32>
    %cst_32 = arith.constant dense<0xFF800000> : vector<128xf32>
    %115 = vector.multi_reduction <maximumf>, %114, %cst_32 [1] : vector<128x128xf32> to vector<128xf32>
    %116 = vector.shape_cast %115 : vector<128xf32> to vector<128x1xf32>
    %117 = vector.broadcast %116 : vector<128x1xf32> to vector<128x128xf32>
    %118 = arith.subf %114, %117 : vector<128x128xf32>
    %119 = math.exp %118 : vector<128x128xf32>
    %cst_33 = arith.constant dense<0.000000e+00> : vector<128xf32>
    %120 = vector.multi_reduction <add>, %119, %cst_33 [1] : vector<128x128xf32> to vector<128xf32>
    %121 = vector.shape_cast %120 : vector<128xf32> to vector<128x1xf32>
    %122 = vector.broadcast %121 : vector<128x1xf32> to vector<128x128xf32>
    %123 = arith.divf %119, %122 : vector<128x128xf32>
    %124 = arith.truncf %123 : vector<128x128xf32> to vector<128x128xbf16>
    %cst_34 = arith.constant dense<0.000000e+00> : vector<128x8xf32>
    %125 = tpu.matmul %124, %111, %cst_34 {dimension_numbers = #tpu.dot_dimension_numbers<[1], [0], [0], [1], [0, 0, 1, 1], [], []>} : vector<128x128xbf16>, vector<128x8xbf16>, vector<128x8xf32> -> vector<128x8xf32>
    %126 = tpu.concatenate %59, %81, %103, %125 in 1 : vector<128x8xf32>, vector<128x8xf32>, vector<128x8xf32>, vector<128x8xf32> -> vector<128x32xf32>
    %127 = arith.truncf %126 : vector<128x32xf32> to vector<128x32xbf16>
    %128 = arith.index_cast %arg1 : i32 to index
    %c0_35 = arith.constant 0 : index
    %c0_36 = arith.constant 0 : index
    %129 = vector.load %arg7[%128, %c0_35, %c0_36] : memref<2x32x32xbf16, #tpu.memory_space<vmem>>, vector<1x32x32xbf16>
    %130 = vector.shape_cast %129 : vector<1x32x32xbf16> to vector<32x32xbf16>
    %cst_37 = arith.constant dense<0.000000e+00> : vector<128x32xf32>
    %131 = tpu.matmul %127, %130, %cst_37 {dimension_numbers = #tpu.dot_dimension_numbers<[1], [0], [0], [1], [0, 0, 1, 1], [], []>} : vector<128x32xbf16>, vector<32x32xbf16>, vector<128x32xf32> -> vector<128x32xf32>
    %132 = arith.addf %3, %131 : vector<128x32xf32>
    %133 = arith.index_cast %arg1 : i32 to index
    %c0_38 = arith.constant 0 : index
    %c0_39 = arith.constant 0 : index
    %134 = vector.load %arg8[%133, %c0_38, %c0_39] : memref<2x1x32xf32, #tpu.memory_space<vmem>>, vector<1x1x32xf32>
    %135 = vector.shape_cast %134 : vector<1x1x32xf32> to vector<1x32xf32>
    %136 = vector.broadcast %135 : vector<1x32xf32> to vector<128x32xf32>
    %137 = arith.addf %132, %136 : vector<128x32xf32>
    %138 = arith.index_cast %arg1 : i32 to index
    %c0_40 = arith.constant 0 : index
    %c0_41 = arith.constant 0 : index
    %139 = vector.load %arg9[%138, %c0_40, %c0_41] : memref<2x1x32xf32, #tpu.memory_space<vmem>>, vector<1x1x32xf32>
    %140 = vector.shape_cast %139 : vector<1x1x32xf32> to vector<1x32xf32>
    %141 = arith.index_cast %arg1 : i32 to index
    %c0_42 = arith.constant 0 : index
    %c0_43 = arith.constant 0 : index
    %142 = vector.load %arg10[%141, %c0_42, %c0_43] : memref<2x1x32xf32, #tpu.memory_space<vmem>>, vector<1x1x32xf32>
    %143 = vector.shape_cast %142 : vector<1x1x32xf32> to vector<1x32xf32>
    %cst_44 = arith.constant dense<0.000000e+00> : vector<128xf32>
    %144 = vector.multi_reduction <add>, %137, %cst_44 [1] : vector<128x32xf32> to vector<128xf32>
    %145 = vector.shape_cast %144 : vector<128xf32> to vector<128x1xf32>
    %cst_45 = arith.constant 3.200000e+01 : f32
    %146 = vector.broadcast %cst_45 : f32 to vector<128x1xf32>
    %147 = arith.divf %145, %146 : vector<128x1xf32>
    %148 = vector.broadcast %147 : vector<128x1xf32> to vector<128x32xf32>
    %149 = arith.subf %137, %148 : vector<128x32xf32>
    %150 = arith.mulf %149, %149 : vector<128x32xf32>
    %cst_46 = arith.constant dense<0.000000e+00> : vector<128xf32>
    %151 = vector.multi_reduction <add>, %150, %cst_46 [1] : vector<128x32xf32> to vector<128xf32>
    %152 = vector.shape_cast %151 : vector<128xf32> to vector<128x1xf32>
    %cst_47 = arith.constant 3.200000e+01 : f32
    %153 = vector.broadcast %cst_47 : f32 to vector<128x1xf32>
    %154 = arith.divf %152, %153 : vector<128x1xf32>
    %155 = vector.broadcast %147 : vector<128x1xf32> to vector<128x32xf32>
    %156 = arith.subf %137, %155 : vector<128x32xf32>
    %cst_48 = arith.constant 9.99999974E-6 : f32
    %157 = vector.broadcast %cst_48 : f32 to vector<128x1xf32>
    %158 = arith.addf %154, %157 : vector<128x1xf32>
    %159 = math.rsqrt %158 : vector<128x1xf32>
    %160 = vector.broadcast %159 : vector<128x1xf32> to vector<128x32xf32>
    %161 = arith.mulf %156, %160 : vector<128x32xf32>
    %162 = vector.broadcast %140 : vector<1x32xf32> to vector<128x32xf32>
    %163 = arith.mulf %161, %162 : vector<128x32xf32>
    %164 = vector.broadcast %143 : vector<1x32xf32> to vector<128x32xf32>
    %165 = arith.addf %163, %164 : vector<128x32xf32>
    %166 = arith.truncf %165 : vector<128x32xf32> to vector<128x32xbf16>
    %167 = arith.index_cast %arg1 : i32 to index
    %c0_49 = arith.constant 0 : index
    %c0_50 = arith.constant 0 : index
    %168 = vector.load %arg11[%167, %c0_49, %c0_50] : memref<2x32x64xbf16, #tpu.memory_space<vmem>>, vector<1x32x64xbf16>
    %169 = vector.shape_cast %168 : vector<1x32x64xbf16> to vector<32x64xbf16>
    %cst_51 = arith.constant dense<0.000000e+00> : vector<128x64xf32>
    %170 = tpu.matmul %166, %169, %cst_51 {dimension_numbers = #tpu.dot_dimension_numbers<[1], [0], [0], [1], [0, 0, 1, 1], [], []>} : vector<128x32xbf16>, vector<32x64xbf16>, vector<128x64xf32> -> vector<128x64xf32>
    %171 = arith.index_cast %arg1 : i32 to index
    %c0_52 = arith.constant 0 : index
    %c0_53 = arith.constant 0 : index
    %172 = vector.load %arg12[%171, %c0_52, %c0_53] : memref<2x1x64xf32, #tpu.memory_space<vmem>>, vector<1x1x64xf32>
    %173 = vector.shape_cast %172 : vector<1x1x64xf32> to vector<1x64xf32>
    %174 = vector.broadcast %173 : vector<1x64xf32> to vector<128x64xf32>
    %175 = arith.addf %170, %174 : vector<128x64xf32>
    %176 = arith.negf %175 : vector<128x64xf32>
    %177 = math.exp %176 : vector<128x64xf32>
    %cst_54 = arith.constant 1.000000e+00 : f32
    %178 = vector.broadcast %cst_54 : f32 to vector<128x64xf32>
    %179 = arith.addf %178, %177 : vector<128x64xf32>
    %180 = arith.divf %178, %179 : vector<128x64xf32>
    %181 = arith.mulf %175, %180 : vector<128x64xf32>
    %182 = arith.truncf %181 : vector<128x64xf32> to vector<128x64xbf16>
    %183 = arith.index_cast %arg1 : i32 to index
    %c0_55 = arith.constant 0 : index
    %c0_56 = arith.constant 0 : index
    %184 = vector.load %arg13[%183, %c0_55, %c0_56] : memref<2x64x32xbf16, #tpu.memory_space<vmem>>, vector<1x64x32xbf16>
    %185 = vector.shape_cast %184 : vector<1x64x32xbf16> to vector<64x32xbf16>
    %cst_57 = arith.constant dense<0.000000e+00> : vector<128x32xf32>
    %186 = tpu.matmul %182, %185, %cst_57 {dimension_numbers = #tpu.dot_dimension_numbers<[1], [0], [0], [1], [0, 0, 1, 1], [], []>} : vector<128x64xbf16>, vector<64x32xbf16>, vector<128x32xf32> -> vector<128x32xf32>
    %187 = arith.addf %137, %186 : vector<128x32xf32>
    %188 = arith.index_cast %arg1 : i32 to index
    %c0_58 = arith.constant 0 : index
    %c0_59 = arith.constant 0 : index
    %189 = vector.load %arg14[%188, %c0_58, %c0_59] : memref<2x1x32xf32, #tpu.memory_space<vmem>>, vector<1x1x32xf32>
    %190 = vector.shape_cast %189 : vector<1x1x32xf32> to vector<1x32xf32>
    %191 = vector.broadcast %190 : vector<1x32xf32> to vector<128x32xf32>
    %192 = arith.addf %187, %191 : vector<128x32xf32>
    %c0_60 = arith.constant 0 : index
    %c0_61 = arith.constant 0 : index
    %193 = vector.load %arg19[%c0_60, %c0_61] : memref<128x32xf32, #tpu.memory_space<vmem>>, vector<128x32xf32>
    tpu.vector_store %arg19[%c0_60, %c0_61], %192 {strides = array<i32>} : memref<128x32xf32, #tpu.memory_space<vmem>>, vector<128x32xf32>,
    %c1_i32 = arith.constant 1 : i32
    %194 = arith.cmpi eq, %arg1, %c1_i32 : i32
    %195 = arith.extui %194 : i1 to i32
    %c0_i32_62 = arith.constant 0 : i32
    %196 = arith.cmpi ne, %195, %c0_i32_62 : i32
    scf.if %196 {
      %197 = arith.truncf %192 : vector<128x32xf32> to vector<128x32xbf16>
      %c0_63 = arith.constant 0 : index
      %c0_64 = arith.constant 0 : index
      %198 = vector.load %arg15[%c0_63, %c0_64] : memref<32x8xbf16, #tpu.memory_space<vmem>>, vector<32x8xbf16>
      %cst_65 = arith.constant dense<0.000000e+00> : vector<128x8xf32>
      %199 = tpu.matmul %197, %198, %cst_65 {dimension_numbers = #tpu.dot_dimension_numbers<[1], [0], [0], [1], [0, 0, 1, 1], [], []>} : vector<128x32xbf16>, vector<32x8xbf16>, vector<128x8xf32> -> vector<128x8xf32>
      %c0_66 = arith.constant 0 : index
      %c0_67 = arith.constant 0 : index
      %200 = vector.load %arg16[%c0_66, %c0_67] : memref<1x8xf32, #tpu.memory_space<vmem>>, vector<1x8xf32>
      %201 = vector.broadcast %200 : vector<1x8xf32> to vector<128x8xf32>
      %202 = arith.mulf %199, %201 : vector<128x8xf32>
      %c0_68 = arith.constant 0 : index
      %c0_69 = arith.constant 0 : index
      %203 = vector.load %arg17[%c0_68, %c0_69] : memref<1x8xf32, #tpu.memory_space<vmem>>, vector<1x8xf32>
      %204 = vector.broadcast %203 : vector<1x8xf32> to vector<128x8xf32>
      %205 = arith.addf %202, %204 : vector<128x8xf32>
      %206 = arith.negf %205 : vector<128x8xf32>
      %207 = math.exp %206 : vector<128x8xf32>
      %cst_70 = arith.constant 1.000000e+00 : f32
      %208 = vector.broadcast %cst_70 : f32 to vector<128x8xf32>
      %209 = arith.addf %208, %207 : vector<128x8xf32>
      %210 = arith.divf %208, %209 : vector<128x8xf32>
      %211 = arith.mulf %205, %210 : vector<128x8xf32>
      %c0_71 = arith.constant 0 : index
      %c0_72 = arith.constant 0 : index
      %212 = vector.load %arg18[%c0_71, %c0_72] : memref<128x8xf32, #tpu.memory_space<vmem>>, vector<128x8xf32>
      tpu.vector_store %arg18[%c0_71, %c0_72], %211 {strides = array<i32>} : memref<128x8xf32, #tpu.memory_space<vmem>>, vector<128x8xf32>,
    } else {
    }
    return
  }
  func.func @transform_0(%arg0: i32, %arg1: i32) -> (i32, i32) {
    %c0_i32 = arith.constant 0 : i32
    %c0_i32_0 = arith.constant 0 : i32
    return %arg0, %c0_i32 : i32, i32
  }
  func.func @transform_1(%arg0: i32, %arg1: i32) -> (i32, i32) {
    %c0_i32 = arith.constant 0 : i32
    %c0_i32_0 = arith.constant 0 : i32
    %c0_i32_1 = arith.constant 0 : i32
    return %c0_i32, %c0_i32_0 : i32, i32
  }
  func.func @transform_2(%arg0: i32, %arg1: i32) -> (i32, i32, i32) {
    %c0_i32 = arith.constant 0 : i32
    %c0_i32_0 = arith.constant 0 : i32
    %c0_i32_1 = arith.constant 0 : i32
    %c0_i32_2 = arith.constant 0 : i32
    return %c0_i32, %c0_i32_0, %c0_i32_1 : i32, i32, i32
  }
  func.func @transform_3(%arg0: i32, %arg1: i32) -> (i32, i32, i32) {
    %c0_i32 = arith.constant 0 : i32
    %c0_i32_0 = arith.constant 0 : i32
    %c0_i32_1 = arith.constant 0 : i32
    %c0_i32_2 = arith.constant 0 : i32
    return %c0_i32, %c0_i32_0, %c0_i32_1 : i32, i32, i32
  }
  func.func @transform_4(%arg0: i32, %arg1: i32) -> (i32, i32, i32) {
    %c0_i32 = arith.constant 0 : i32
    %c0_i32_0 = arith.constant 0 : i32
    %c0_i32_1 = arith.constant 0 : i32
    %c0_i32_2 = arith.constant 0 : i32
    return %c0_i32, %c0_i32_0, %c0_i32_1 : i32, i32, i32
  }
  func.func @transform_5(%arg0: i32, %arg1: i32) -> (i32, i32, i32) {
    %c0_i32 = arith.constant 0 : i32
    %c0_i32_0 = arith.constant 0 : i32
    %c0_i32_1 = arith.constant 0 : i32
    %c0_i32_2 = arith.constant 0 : i32
    return %c0_i32, %c0_i32_0, %c0_i32_1 : i32, i32, i32
  }
  func.func @transform_6(%arg0: i32, %arg1: i32) -> (i32, i32, i32) {
    %c0_i32 = arith.constant 0 : i32
    %c0_i32_0 = arith.constant 0 : i32
    %c0_i32_1 = arith.constant 0 : i32
    %c0_i32_2 = arith.constant 0 : i32
    return %c0_i32, %c0_i32_0, %c0_i32_1 : i32, i32, i32
  }
  func.func @transform_7(%arg0: i32, %arg1: i32) -> (i32, i32, i32) {
    %c0_i32 = arith.constant 0 : i32
    %c0_i32_0 = arith.constant 0 : i32
    %c0_i32_1 = arith.constant 0 : i32
    %c0_i32_2 = arith.constant 0 : i32
    return %c0_i32, %c0_i32_0, %c0_i32_1 : i32, i32, i32
  }
  func.func @transform_8(%arg0: i32, %arg1: i32) -> (i32, i32, i32) {
    %c0_i32 = arith.constant 0 : i32
    %c0_i32_0 = arith.constant 0 : i32
    %c0_i32_1 = arith.constant 0 : i32
    %c0_i32_2 = arith.constant 0 : i32
    return %c0_i32, %c0_i32_0, %c0_i32_1 : i32, i32, i32
  }
  func.func @transform_9(%arg0: i32, %arg1: i32) -> (i32, i32, i32) {
    %c0_i32 = arith.constant 0 : i32
    %c0_i32_0 = arith.constant 0 : i32
    %c0_i32_1 = arith.constant 0 : i32
    %c0_i32_2 = arith.constant 0 : i32
    return %c0_i32, %c0_i32_0, %c0_i32_1 : i32, i32, i32
  }
  func.func @transform_10(%arg0: i32, %arg1: i32) -> (i32, i32, i32) {
    %c0_i32 = arith.constant 0 : i32
    %c0_i32_0 = arith.constant 0 : i32
    %c0_i32_1 = arith.constant 0 : i32
    %c0_i32_2 = arith.constant 0 : i32
    return %c0_i32, %c0_i32_0, %c0_i32_1 : i32, i32, i32
  }
  func.func @transform_11(%arg0: i32, %arg1: i32) -> (i32, i32, i32) {
    %c0_i32 = arith.constant 0 : i32
    %c0_i32_0 = arith.constant 0 : i32
    %c0_i32_1 = arith.constant 0 : i32
    %c0_i32_2 = arith.constant 0 : i32
    return %c0_i32, %c0_i32_0, %c0_i32_1 : i32, i32, i32
  }
  func.func @transform_12(%arg0: i32, %arg1: i32) -> (i32, i32, i32) {
    %c0_i32 = arith.constant 0 : i32
    %c0_i32_0 = arith.constant 0 : i32
    %c0_i32_1 = arith.constant 0 : i32
    %c0_i32_2 = arith.constant 0 : i32
    return %c0_i32, %c0_i32_0, %c0_i32_1 : i32, i32, i32
  }
  func.func @transform_13(%arg0: i32, %arg1: i32) -> (i32, i32) {
    %c0_i32 = arith.constant 0 : i32
    %c0_i32_0 = arith.constant 0 : i32
    %c0_i32_1 = arith.constant 0 : i32
    return %c0_i32, %c0_i32_0 : i32, i32
  }
  func.func @transform_14(%arg0: i32, %arg1: i32) -> (i32, i32) {
    %c0_i32 = arith.constant 0 : i32
    %c0_i32_0 = arith.constant 0 : i32
    %c0_i32_1 = arith.constant 0 : i32
    return %c0_i32, %c0_i32_0 : i32, i32
  }
  func.func @transform_15(%arg0: i32, %arg1: i32) -> (i32, i32) {
    %c0_i32 = arith.constant 0 : i32
    %c0_i32_0 = arith.constant 0 : i32
    %c0_i32_1 = arith.constant 0 : i32
    return %c0_i32, %c0_i32_0 : i32, i32
  }
  func.func @transform_16(%arg0: i32, %arg1: i32) -> (i32, i32) {
    %c0_i32 = arith.constant 0 : i32
    %c0_i32_0 = arith.constant 0 : i32
    return %arg0, %c0_i32 : i32, i32
  }
}

module attributes {stable_mosaic.version = 11 : i64} {
  func.func @_conv4_kernel(%arg0: i32, %arg1: i32, %arg2: memref<1x128x216xbf16, #tpu.memory_space<vmem>>, %arg3: memref<1x128x216xbf16, #tpu.memory_space<vmem>>, %arg4: memref<216x8xbf16, #tpu.memory_space<vmem>>, %arg5: memref<216x8xbf16, #tpu.memory_space<vmem>>, %arg6: memref<1x8xf32, #tpu.memory_space<vmem>>, %arg7: memref<1x8xf32, #tpu.memory_space<vmem>>, %arg8: memref<1x128x8xf32, #tpu.memory_space<vmem>>) attributes {dimension_semantics = [#tpu.dimension_semantics<parallel>, #tpu.dimension_semantics<parallel>], iteration_bounds = array<i64: 2, 1>, scalar_prefetch = 0 : i64, scratch_operands = 0 : i64, tpu.core_type = #tpu.core_type<tc>, window_params = [{transform_indices = @transform_0, window_bounds = array<i64: 1, 128, 216>}, {transform_indices = @transform_1, window_bounds = array<i64: 1, 128, 216>}, {pipeline_mode = #tpu.pipeline_mode<synchronous>, transform_indices = @transform_2, window_bounds = array<i64: 216, 8>}, {pipeline_mode = #tpu.pipeline_mode<synchronous>, transform_indices = @transform_3, window_bounds = array<i64: 216, 8>}, {pipeline_mode = #tpu.pipeline_mode<synchronous>, transform_indices = @transform_4, window_bounds = array<i64: 1, 8>}, {pipeline_mode = #tpu.pipeline_mode<synchronous>, transform_indices = @transform_5, window_bounds = array<i64: 1, 8>}, {transform_indices = @transform_6, window_bounds = array<i64: 1, 128, 8>}]} {
    %c0 = arith.constant 0 : index
    %c0_0 = arith.constant 0 : index
    %c0_1 = arith.constant 0 : index
    %0 = vector.load %arg2[%c0, %c0_0, %c0_1] : memref<1x128x216xbf16, #tpu.memory_space<vmem>>, vector<1x128x216xbf16>
    %1 = vector.shape_cast %0 : vector<1x128x216xbf16> to vector<128x216xbf16>
    %c0_2 = arith.constant 0 : index
    %c0_3 = arith.constant 0 : index
    %2 = vector.load %arg4[%c0_2, %c0_3] : memref<216x8xbf16, #tpu.memory_space<vmem>>, vector<216x8xbf16>
    %cst = arith.constant dense<0.000000e+00> : vector<128x8xf32>
    %3 = tpu.matmul %1, %2, %cst {dimension_numbers = #tpu.dot_dimension_numbers<[1], [0], [0], [1], [0, 0, 1, 1], [], []>} : vector<128x216xbf16>, vector<216x8xbf16>, vector<128x8xf32> -> vector<128x8xf32>
    %c0_4 = arith.constant 0 : index
    %c0_5 = arith.constant 0 : index
    %c0_6 = arith.constant 0 : index
    %4 = vector.load %arg3[%c0_4, %c0_5, %c0_6] : memref<1x128x216xbf16, #tpu.memory_space<vmem>>, vector<1x128x216xbf16>
    %5 = vector.shape_cast %4 : vector<1x128x216xbf16> to vector<128x216xbf16>
    %c0_7 = arith.constant 0 : index
    %c0_8 = arith.constant 0 : index
    %6 = vector.load %arg5[%c0_7, %c0_8] : memref<216x8xbf16, #tpu.memory_space<vmem>>, vector<216x8xbf16>
    %cst_9 = arith.constant dense<0.000000e+00> : vector<128x8xf32>
    %7 = tpu.matmul %5, %6, %cst_9 {dimension_numbers = #tpu.dot_dimension_numbers<[1], [0], [0], [1], [0, 0, 1, 1], [], []>} : vector<128x216xbf16>, vector<216x8xbf16>, vector<128x8xf32> -> vector<128x8xf32>
    %8 = arith.addf %3, %7 : vector<128x8xf32>
    %c0_10 = arith.constant 0 : index
    %c0_11 = arith.constant 0 : index
    %9 = vector.load %arg6[%c0_10, %c0_11] : memref<1x8xf32, #tpu.memory_space<vmem>>, vector<1x8xf32>
    %10 = vector.broadcast %9 : vector<1x8xf32> to vector<128x8xf32>
    %11 = arith.mulf %8, %10 : vector<128x8xf32>
    %c0_12 = arith.constant 0 : index
    %c0_13 = arith.constant 0 : index
    %12 = vector.load %arg7[%c0_12, %c0_13] : memref<1x8xf32, #tpu.memory_space<vmem>>, vector<1x8xf32>
    %13 = vector.broadcast %12 : vector<1x8xf32> to vector<128x8xf32>
    %14 = arith.addf %11, %13 : vector<128x8xf32>
    %15 = arith.negf %14 : vector<128x8xf32>
    %16 = math.exp %15 : vector<128x8xf32>
    %cst_14 = arith.constant 1.000000e+00 : f32
    %17 = vector.broadcast %cst_14 : f32 to vector<128x8xf32>
    %18 = arith.addf %17, %16 : vector<128x8xf32>
    %19 = arith.divf %17, %18 : vector<128x8xf32>
    %20 = arith.mulf %14, %19 : vector<128x8xf32>
    %c0_15 = arith.constant 0 : index
    %c0_16 = arith.constant 0 : index
    %c0_17 = arith.constant 0 : index
    %21 = vector.load %arg8[%c0_15, %c0_16, %c0_17] : memref<1x128x8xf32, #tpu.memory_space<vmem>>, vector<1x128x8xf32>
    %22 = vector.shape_cast %21 : vector<1x128x8xf32> to vector<128x8xf32>
    %23 = vector.shape_cast %20 : vector<128x8xf32> to vector<1x128x8xf32>
    tpu.vector_store %arg8[%c0_15, %c0_16, %c0_17], %23 {strides = array<i32>} : memref<1x128x8xf32, #tpu.memory_space<vmem>>, vector<1x128x8xf32>,
    return
  }
  func.func @transform_0(%arg0: i32, %arg1: i32) -> (i32, i32, i32) {
    %c0_i32 = arith.constant 0 : i32
    %c0_i32_0 = arith.constant 0 : i32
    return %arg0, %arg1, %c0_i32 : i32, i32, i32
  }
  func.func @transform_1(%arg0: i32, %arg1: i32) -> (i32, i32, i32) {
    %c0_i32 = arith.constant 0 : i32
    %c0_i32_0 = arith.constant 0 : i32
    return %arg0, %arg1, %c0_i32 : i32, i32, i32
  }
  func.func @transform_2(%arg0: i32, %arg1: i32) -> (i32, i32) {
    %c0_i32 = arith.constant 0 : i32
    %c0_i32_0 = arith.constant 0 : i32
    %c0_i32_1 = arith.constant 0 : i32
    return %c0_i32, %c0_i32_0 : i32, i32
  }
  func.func @transform_3(%arg0: i32, %arg1: i32) -> (i32, i32) {
    %c0_i32 = arith.constant 0 : i32
    %c0_i32_0 = arith.constant 0 : i32
    %c0_i32_1 = arith.constant 0 : i32
    return %c0_i32, %c0_i32_0 : i32, i32
  }
  func.func @transform_4(%arg0: i32, %arg1: i32) -> (i32, i32) {
    %c0_i32 = arith.constant 0 : i32
    %c0_i32_0 = arith.constant 0 : i32
    %c0_i32_1 = arith.constant 0 : i32
    return %c0_i32, %c0_i32_0 : i32, i32
  }
  func.func @transform_5(%arg0: i32, %arg1: i32) -> (i32, i32) {
    %c0_i32 = arith.constant 0 : i32
    %c0_i32_0 = arith.constant 0 : i32
    %c0_i32_1 = arith.constant 0 : i32
    return %c0_i32, %c0_i32_0 : i32, i32
  }
  func.func @transform_6(%arg0: i32, %arg1: i32) -> (i32, i32, i32) {
    %c0_i32 = arith.constant 0 : i32
    %c0_i32_0 = arith.constant 0 : i32
    return %arg0, %arg1, %c0_i32 : i32, i32, i32
  }
}

</mosaic_0001>

<bundles_post_ra>
// kernel: mobilevit_block_forward.3
= control target key start
LH: loop header
LB: loop body
LE: loop exit
PB: predicated region body
PF: predicated region fallthrough
CT: control target
= control target key end

     0   :  { %s1608_s24 = smov 0   ;;  %s1610_s25 = smov 0   ;;  %s1988_s0 = inlined_call_operand.vmem [shape: bf16[2,128,216], index: 0, kind: input, shape index: {}]   ;;  %s1989_s1 = inlined_call_operand.vmem [shape: bf16[216,8], index: 1, kind: input, shape index: {}]   ;;  %s1990_s2 = inlined_call_operand.vmem [shape: f32[1,8], index: 2, kind: input, shape index: {}]   ;;  %s1991_s3 = inlined_call_operand.vmem [shape: f32[1,8], index: 3, kind: input, shape index: {}]   ;;  %s1992_s4 = inlined_call_operand.vmem [shape: bf16[8,32], index: 4, kind: input, shape index: {}]   ;;  %s1993_s5 = inlined_call_operand.vmem [shape: f32[1,32], index: 5, kind: input, shape index: {}]   ;;  %s1994_s6 = inlined_call_operand.vmem [shape: f32[1,32], index: 6, kind: input, shape index: {}]   ;;  %s1995_s7 = inlined_call_operand.vmem [shape: f32[2,128,32], index: 7, kind: output, shape index: {}]  }
   0x1   :  { %s1612_s26 = smov 0  }
   0x2 LB: > { %s29_s27 = sadd.s32 1, %s1561_s25  ;;  %p1205_p0 = scmp.ge.s32.totalorder %s1565_s26, 1  ;;  %s1565_s26 = sphi %s1612_s26, %s17_s26   ;;  %s1561_s25 = sphi %s1610_s25, %s1997_s25   ;;  %s1557_s24 = sphi %s1608_s24, %s1996_s24  }
   0x3   : > { %p31_p1 = scmp.ge.s32.totalorder %s29_s27, 2  ;;  %p259_p2 = scmp.lt.s32.totalorder %s1565_s26, 3 }
   0x5   : > { %s1999_s27 = smov (%p31_p1, %s29_s27), 0  ;;  %p260_p3 = pnand %p1205_p0, %p259_p2 }
   0x6   : > { %v1377_v0 = vld [vmem:[%s1989_s1] sm:$0xff] (!%p260_p3)   ;;  %v1567_v1 = vmov (!%p260_p3), 0   ;;  %v1378_v2 = vld [vmem:[%s1989_s1 + $0x8] sm:$0xff] (!%p260_p3)   ;;  %p301_p4 = scmp.lt.s32.totalorder (!%p260_p3), %s1557_s24, 1  ;;  %v1379_v3 = vld [vmem:[%s1989_s1 + $0x10] sm:$0xff] (!%p260_p3)   ;;  %vm518_vm0 = vcmask (!%p260_p3), 719872  }
   0x7   : > { %263 = sbr.rel (%p260_p3) target bundleno = 607 (0x25f), region = 48  ;;  %547 = vmatprep.subr.bf16.mxu0 (!%p260_p3), %v1567_v1  ;;  %1323 = vmatprep.subr.bf16.mxu1 (!%p260_p3), %v1567_v1  ;;  %v1380_v4 = vld [vmem:[%s1989_s1 + $0x18] sm:$0xff] (!%p260_p3)   ;;  %v1381_v5 = vld [vmem:[%s1989_s1 + $0x20] sm:$0xff] (!%p260_p3)   ;;  %v1382_v8 = vld [vmem:[%s1989_s1 + $0x28] sm:$0xff] (!%p260_p3)   ;;  %vm543_vm1 = vcmask (!%p260_p3), 1043456   ;;  %vm811_vm2 = vcmask (!%p260_p3), 64512  }
   0x8   : > { %548 = vmatpush1.bf16.msra.mxu0 (!%p260_p3), %v1377_v0  ;;  %1337 = vmatpush1.bf16.msra.mxu1 (!%p260_p3), %v1377_v0  ;;  %v1383_v9 = vld [vmem:[%s1989_s1 + $0x30] sm:$0xff] (!%p260_p3)   ;;  %v1384_v10 = vld [vmem:[%s1989_s1 + $0x38] sm:$0xff] (!%p260_p3)   ;;  %v1385_v11 = vld [vmem:[%s1989_s1 + $0x40] sm:$0xff] (!%p260_p3)   ;;  %vm1094_vm3 = vcmask (!%p260_p3), 261120  }
   0x9   : > { %549 = vmatprep.subr.bf16.mxu0 (!%p260_p3), %v1567_v1  ;;  %1324 = vmatprep.subr.bf16.mxu1 (!%p260_p3), %v1567_v1  ;;  %v1386_v12 = vld [vmem:[%s1989_s1 + $0x48] sm:$0xff] (!%p260_p3)   ;;  %v1387_v13 = vld [vmem:[%s1989_s1 + $0x50] sm:$0xff] (!%p260_p3)   ;;  %v1388_v14 = vld [vmem:[%s1989_s1 + $0x58] sm:$0xff] (!%p260_p3)  }
   0xa   : > { %v1389_v15 = vld [vmem:[%s1989_s1 + $0x60] sm:$0xff] (!%p260_p3)   ;;  %v1390_v16 = vld [vmem:[%s1989_s1 + $0x68] ss:$0 sps:$4 sm:$0xff] (!%p260_p3)  }
   0xb   : > { %v545_v17 = vsel (!%p260_p3), %vm543_vm1, %v1390_v16, 0  ;;  %v810_v32 = vld [vmem:[%s1992_s4] sm:$0xf] (!%p260_p3) }
   0xc   : > { %550 = vmatpush1.bf16.msra.mxu0 (!%p260_p3), %v1378_v2  ;;  %1338 = vmatpush1.bf16.msra.mxu1 (!%p260_p3), %v1378_v2  ;;  %v837_v33 = vsel (!%p260_p3), %vm543_vm1, %v810_v32, 0  ;;  %v1739_v34 = vld [vmem:[%s1990_s2] ss:$0 sm:$0xff] (!%p260_p3) }
   0xd   : > { %551 = vmatprep.subr.bf16.mxu0 (!%p260_p3), %v1567_v1  ;;  %1325 = vmatprep.subr.bf16.mxu1 (!%p260_p3), %v1567_v1  ;;  %v1744_v36 = vld [vmem:[%s1991_s3] ss:$0 sm:$0xff] (!%p260_p3) }
   0xe   : > { %s2001_s24 = smov (!%p301_p4, %s1557_s24), 1 }
   0xf   : > { %s1294_s11 = sshll.u32 %s2001_s24, 7 }
  0x10   : > { %552 = vmatpush1.bf16.msra.mxu0 %v1379_v3  ;;  %1339 = vmatpush1.bf16.msra.mxu1 %v1379_v3  ;;  %s1654_s16 = scalar_lea.vmem %s1988_s0, %s1294_s11  ;;  %s1893_s13 = scalar_lea.vmem %s1995_s7, %s1294_s11 }
  0x11   : > { %553 = vmatprep.subr.bf16.mxu0 %v1567_v1  ;;  %1326 = vmatprep.subr.bf16.mxu1 %v1567_v1  ;;  %v1393_v6 = vld [vmem:[%s1654_s16 + $0x4] ss:$8 sps:$4 sm:$0xff]   ;;  %v1391_v18 = vld [vmem:[%s1654_s16] ss:$8 sps:$4 sm:$0xff]   ;;  %v1394_v20 = vld [vmem:[%s1654_s16 + $0x14] ss:$8 sps:$4 sm:$0xff]  }
  0x12   : > { %1240 = vmatprep.mubr.msk.bf16.mxu0 %vm518_vm0, %v1393_v6  ;;  %v1399_v7 = vld [vmem:[%s1654_s16 + $0x64] ss:$8 sps:$4 sm:$0xff]   ;;  %v1397_v19 = vld [vmem:[%s1654_s16 + $0x60] ss:$8 sps:$4 sm:$0xff]   ;;  %v1403_v21 = vld [vmem:[%s1654_s16 + $0x74] ss:$8 sps:$4 sm:$0xff]  }
  0x13   : > { %1246 = vmatprep.mubr.msk.bf16.mxu1 %vm518_vm0, %v1399_v7  ;;  %v1396_v22 = vld [vmem:[%s1654_s16 + $0x10] ss:$8 sps:$4 sm:$0xff]   ;;  %v1400_v24 = vld [vmem:[%s1654_s16 + $0x24] ss:$8 sps:$4 sm:$0xff]   ;;  %v1402_v25 = vld [vmem:[%s1654_s16 + $0x20] ss:$8 sps:$4 sm:$0xff]  }
  0x14   : > { %554 = vmatpush1.bf16.msra.mxu0 %v1380_v4  ;;  %1340 = vmatpush1.bf16.msra.mxu1 %v1380_v4  ;;  %v1405_v23 = vld [vmem:[%s1654_s16 + $0x70] ss:$8 sps:$4 sm:$0xff]   ;;  %v1406_v26 = vld [vmem:[%s1654_s16 + $0x34] ss:$8 sps:$4 sm:$0xff]   ;;  %v1409_v28 = vld [vmem:[%s1654_s16 + $0x44] ss:$8 sps:$4 sm:$0xff]  }
  0x15   : > { %555 = vmatprep.subr.bf16.mxu0 %v1567_v1  ;;  %1327 = vmatprep.subr.bf16.mxu1 %v1567_v1  ;;  %v1408_v27 = vld [vmem:[%s1654_s16 + $0x30] ss:$8 sps:$4 sm:$0xff]   ;;  %v1411_v29 = vld [vmem:[%s1654_s16 + $0x40] ss:$8 sps:$4 sm:$0xff]   ;;  %v1412_v30 = vld [vmem:[%s1654_s16 + $0x54] ss:$8 sps:$4 sm:$0xff]  }
  0x16   : > { %v1414_v31 = vld [vmem:[%s1654_s16 + $0x50] ss:$8 sps:$4 sm:$0xff]  }
  0x18   : > { %556 = vmatpush1.bf16.msra.mxu0 %v1381_v5  ;;  %1341 = vmatpush1.bf16.msra.mxu1 %v1381_v5 }
  0x19   : > { %557 = vmatprep.subr.bf16.mxu0 %v1567_v1  ;;  %1328 = vmatprep.subr.bf16.mxu1 %v1567_v1 }
  0x1c   : > { %558 = vmatpush1.bf16.msra.mxu0 %v1382_v8  ;;  %1342 = vmatpush1.bf16.msra.mxu1 %v1382_v8 }
  0x1d   : > { %559 = vmatprep.subr.bf16.mxu0 %v1567_v1  ;;  %1329 = vmatprep.subr.bf16.mxu1 %v1567_v1 }
  0x20   : > { %560 = vmatpush1.bf16.msra.mxu0 %v1383_v9  ;;  %1343 = vmatpush1.bf16.msra.mxu1 %v1383_v9 }
  0x21   : > { %561 = vmatprep.subr.bf16.mxu0 %v1567_v1  ;;  %1330 = vmatprep.subr.bf16.mxu1 %v1567_v1 }
  0x24   : > { %562 = vmatpush1.bf16.msra.mxu0 %v1384_v10  ;;  %1344 = vmatpush1.bf16.msra.mxu1 %v1384_v10 }
  0x25   : > { %563 = vmatprep.subr.bf16.mxu0 %v1567_v1  ;;  %1331 = vmatprep.subr.bf16.mxu1 %v1567_v1 }
  0x28   : > { %564 = vmatpush1.bf16.msra.mxu0 %v1385_v11  ;;  %1345 = vmatpush1.bf16.msra.mxu1 %v1385_v11 }
  0x29   : > { %565 = vmatprep.subr.bf16.mxu0 %v1567_v1  ;;  %1332 = vmatprep.subr.bf16.mxu1 %v1567_v1 }
  0x2c   : > { %566 = vmatpush1.bf16.msra.mxu0 %v1386_v12  ;;  %1346 = vmatpush1.bf16.msra.mxu1 %v1386_v12 }
  0x2d   : > { %567 = vmatprep.subr.bf16.mxu0 %v1567_v1  ;;  %1333 = vmatprep.subr.bf16.mxu1 %v1567_v1 }
  0x30   : > { %568 = vmatpush1.bf16.msra.mxu0 %v1387_v13  ;;  %1347 = vmatpush1.bf16.msra.mxu1 %v1387_v13 }
  0x31   : > { %569 = vmatprep.subr.bf16.mxu0 %v1567_v1  ;;  %1334 = vmatprep.subr.bf16.mxu1 %v1567_v1 }
  0x34   : > { %570 = vmatpush1.bf16.msra.mxu0 %v1388_v14  ;;  %1348 = vmatpush1.bf16.msra.mxu1 %v1388_v14 }
  0x35   : > { %571 = vmatprep.subr.bf16.mxu0 %v1567_v1  ;;  %1335 = vmatprep.subr.bf16.mxu1 %v1567_v1 }
  0x38   : > { %572 = vmatpush1.bf16.msra.mxu0 %v1389_v15  ;;  %1349 = vmatpush1.bf16.msra.mxu1 %v1389_v15 }
  0x39   : > { %573 = vmatprep.subr.bf16.mxu0 %v1567_v1  ;;  %1336 = vmatprep.subr.bf16.mxu1 %v1567_v1 }
  0x3c   : > { %574 = vmatpush1.bf16.msra.mxu0 %v545_v17  ;;  %1350 = vmatpush1.bf16.msra.mxu1 %v545_v17 }
  0x3d   : > { %1351 = vmatprep.subr.msk.bf16.mxu1 %vm543_vm1, %v810_v32 }
  0x3f   : > { %580 = vmatmul.mubr.bf16.vlgmr.msra.gmra.mrb[0].mxu0 %v1391_v18  ;;  %628 = vmatmul.mubr.bf16.vlgmr.msra.gmra.mrb[0].mxu1 %v1397_v19 }
  0x40   : > { %1241 = vmatprep.mubr.msk.bf16.mxu0 %vm518_vm0, %v1394_v20  ;;  %1247 = vmatprep.mubr.msk.bf16.mxu1 %vm518_vm0, %v1403_v21 }
  0x41   : > { %1306 = vmatpush3.bf16.msra.mxu1 %v837_v33 }
  0x47   : > { %588 = vmatmul.mubr.bf16.gmra.mrb[4].mxu0 %v1396_v22  ;;  %636 = vmatmul.mubr.bf16.gmra.mrb[4].mxu1 %v1405_v23 }
  0x48   : > { %1242 = vmatprep.mubr.msk.bf16.mxu0 %vm518_vm0, %v1400_v24 }
  0x4f   : > { %596 = vmatmul.mubr.bf16.gmra.mrb[8].mxu0 %v1402_v25 }
  0x50   : > { %1243 = vmatprep.mubr.msk.bf16.mxu0 %vm518_vm0, %v1406_v26 }
  0x57   : > { %604 = vmatmul.mubr.bf16.gmra.mrb[12].mxu0 %v1408_v27 }
  0x58   : > { %1244 = vmatprep.mubr.msk.bf16.mxu0 %vm518_vm0, %v1409_v28 }
  0x5f   : > { %612 = vmatmul.mubr.bf16.gmra.mrb[16].mxu0 %v1411_v29 }
  0x60   : > { %1245 = vmatprep.mubr.msk.bf16.mxu0 %vm518_vm0, %v1412_v30 }
  0x67   : > { %620 = vmatmul.mubr.bf16.gmra.mrb[20].mxu0 %v1414_v31 }
 0x112   : > { %v581_v35 = vpop.f32.mrb[0].mxu0  ;;  %v629_v37 = vpop.f32.mrb[0].mxu1 }
 0x113   : > { %v651_v38 = vmul.f32 %v1739_v34, %v581_v35  ;;  %v583_v39 = vpop.f32.mrb[1].mxu0  ;;  %v663_v40 = vmul.f32 %v1739_v34, %v629_v37  ;;  %v631_v41 = vpop.f32.mrb[1].mxu1 }
 0x114   : > { %v584_v42 = vpop.f32.mrb[2].mxu0  ;;  %v632_v43 = vpop.f32.mrb[2].mxu1 }
 0x115   : > { %v1749_v44 = vadd.f32 %v1744_v36, %v651_v38  ;;  %v652_v45 = vmul.f32 %v1739_v34, %v584_v42  ;;  %v586_v46 = vpop.f32.mrb[3].mxu0  ;;  %v1753_v47 = vadd.f32 %v1744_v36, %v663_v40  ;;  %v664_v48 = vmul.f32 %v1739_v34, %v632_v43  ;;  %v634_v49 = vpop.f32.mrb[3].mxu1 }
 0x117   : > { %v1250_v50 = vmul.f32 -1.442695, %v1749_v44  ;;  %v1758_v51 = vadd.f32 %v1744_v36, %v652_v45  ;;  %v1262_v52 = vmul.f32 -1.442695, %v1753_v47  ;;  %v1762_v53 = vadd.f32 %v1744_v36, %v664_v48 }
 0x119   : > { %1415 = vpow2.f32 %v1250_v50  ;;  %v1251_v54 = vmul.f32 -1.442695, %v1758_v51  ;;  %v1263_v55 = vmul.f32 -1.442695, %v1762_v53 }
 0x11a   : > { %v589_v56 = vpop.f32.mrb[4].mxu0  ;;  %1417 = vpow2.f32 %v1262_v52  ;;  %v637_v57 = vpop.f32.mrb[4].mxu1 }
 0x11b   : > { %1419 = vpow2.f32 %v1251_v54  ;;  %v653_v58 = vmul.f32 %v1739_v34, %v589_v56  ;;  %v591_v59 = vpop.f32.mrb[5].mxu0  ;;  %v665_v60 = vmul.f32 %v1739_v34, %v637_v57  ;;  %v639_v61 = vpop.f32.mrb[5].mxu1 }
 0x11c   : > { %v592_v62 = vpop.f32.mrb[6].mxu0  ;;  %1421 = vpow2.f32 %v1263_v55  ;;  %v640_v63 = vpop.f32.mrb[6].mxu1 }
 0x11d   : > { %v1769_v0 = vadd.f32 %v1744_v36, %v653_v58  ;;  %v654_v1 = vmul.f32 %v1739_v34, %v592_v62  ;;  %v594_v2 = vpop.f32.mrb[7].mxu0  ;;  %v1773_v3 = vadd.f32 %v1744_v36, %v665_v60  ;;  %v666_v4 = vmul.f32 %v1739_v34, %v640_v63  ;;  %v642_v5 = vpop.f32.mrb[7].mxu1 }
 0x11f   : > { %v1252_v6 = vmul.f32 -1.442695, %v1769_v0  ;;  %v1778_v7 = vadd.f32 %v1744_v36, %v654_v1  ;;  %v1264_v8 = vmul.f32 -1.442695, %v1773_v3  ;;  %v1782_v9 = vadd.f32 %v1744_v36, %v666_v4 }
 0x121   : > { %1423 = vpow2.f32 %v1252_v6  ;;  %v1253_v10 = vmul.f32 -1.442695, %v1778_v7  ;;  %v1265_v11 = vmul.f32 -1.442695, %v1782_v9 }
 0x122   : > { %v597_v12 = vpop.f32.mrb[8].mxu0  ;;  %1425 = vpow2.f32 %v1264_v8 }
 0x123   : > { %v1416_v13 = vpop.eup %1415  ;;  %1427 = vpow2.f32 %v1253_v10  ;;  %v655_v14 = vmul.f32 %v1739_v34, %v597_v12  ;;  %v599_v15 = vpop.f32.mrb[9].mxu0 }
 0x124   : > { %v1418_v16 = vpop.eup %1417  ;;  %v738_v17 = vadd.f32 1.0, %v1416_v13  ;;  %v600_v18 = vpop.f32.mrb[10].mxu0  ;;  %1429 = vpow2.f32 %v1265_v11 }
 0x125   : > { %v1420_v19 = vpop.eup %1419  ;;  %v750_v20 = vadd.f32 1.0, %v1418_v16  ;;  %v1788_v21 = vadd.f32 %v1744_v36, %v655_v14  ;;  %v656_v22 = vmul.f32 %v1739_v34, %v600_v18  ;;  %v602_v23 = vpop.f32.mrb[11].mxu0 }
 0x126   : > { %v1422_v24 = vpop.eup %1421  ;;  %1431 = vrcp.f32 %v738_v17  ;;  %v739_v25 = vadd.f32 1.0, %v1420_v19 }
 0x127   : > { %1433 = vrcp.f32 %v750_v20  ;;  %v751_v26 = vadd.f32 1.0, %v1422_v24  ;;  %v1254_v27 = vmul.f32 -1.442695, %v1788_v21  ;;  %v1793_v28 = vadd.f32 %v1744_v36, %v656_v22 }
 0x128   : > { %1435 = vrcp.f32 %v739_v25 }
 0x129   : > { %1437 = vrcp.f32 %v751_v26  ;;  %v1255_v29 = vmul.f32 -1.442695, %v1793_v28 }
 0x12a   : > { %1439 = vpow2.f32 %v1254_v27  ;;  %v605_v30 = vpop.f32.mrb[12].mxu0 }
 0x12b   : > { %v1424_v31 = vpop.eup %1423  ;;  %1441 = vpow2.f32 %v1255_v29  ;;  %v657_v32 = vmul.f32 %v1739_v34, %v605_v30  ;;  %v607_v33 = vpop.f32.mrb[13].mxu0 }
 0x12c   : > { %v1426_v35 = vpop.eup %1425  ;;  %v740_v37 = vadd.f32 1.0, %v1424_v31  ;;  %v608_v38 = vpop.f32.mrb[14].mxu0 }
 0x12d   : > { %v1428_v39 = vpop.eup %1427  ;;  %v752_v40 = vadd.f32 1.0, %v1426_v35  ;;  %v1798_v41 = vadd.f32 %v1744_v36, %v657_v32  ;;  %v658_v42 = vmul.f32 %v1739_v34, %v608_v38  ;;  %v610_v43 = vpop.f32.mrb[15].mxu0 }
 0x12e   : > { %v1430_v45 = vpop.eup %1429  ;;  %1443 = vrcp.f32 %v740_v37  ;;  %v741_v46 = vadd.f32 1.0, %v1428_v39 }
 0x12f   : > { %1445 = vrcp.f32 %v752_v40  ;;  %v753_v48 = vadd.f32 1.0, %v1430_v45  ;;  %v1256_v49 = vmul.f32 -1.442695, %v1798_v41  ;;  %v1803_v50 = vadd.f32 %v1744_v36, %v658_v42 }
 0x130   : > { %v1432_v52 = vpop.eup %1431  ;;  %1447 = vrcp.f32 %v741_v46 }
 0x131   : > { %v1434_v54 = vpop.eup %1433  ;;  %1449 = vrcp.f32 %v753_v48  ;;  %v1257_v55 = vmul.f32 -1.442695, %v1803_v50  ;;  %v786_v60 = vmul.f32 %v1432_v52, %v1749_v44 }
 0x132   : > { %v1436_v56 = vpop.eup %1435  ;;  %v1807_v57 = vmul.f32 %v1434_v54, %v1753_v47  ;;  %1451 = vpow2.f32 %v1256_v49  ;;  %v613_v58 = vpop.f32.mrb[16].mxu0 }
 0x133   : > { %v1438_v59 = vpop.eup %1437  ;;  %v787_v61 = vmul.f32 %v1436_v56, %v1758_v51  ;;  %1453 = vpow2.f32 %v1257_v55  ;;  %v659_v62 = vmul.f32 %v1739_v34, %v613_v58  ;;  %v615_v63 = vpop.f32.mrb[17].mxu0 }
 0x134   : > { %v1440_v1 = vpop.eup %1439  ;;  %v1813_v2 = vmul.f32 %v1438_v59, %v1762_v53  ;;  %v616_v4 = vpop.f32.mrb[18].mxu0 }
 0x135   : > { %v1442_v5 = vpop.eup %1441  ;;  %v802_v47 = vpack.c.bf16 %v787_v61, %v786_v60  ;;  %v742_v6 = vadd.f32 1.0, %v1440_v1  ;;  %v1816_v8 = vadd.f32 %v1744_v36, %v659_v62  ;;  %v660_v44 = vmul.f32 %v1739_v34, %v616_v4  ;;  %v618_v10 = vpop.f32.mrb[19].mxu0 }
 0x136   : > { %v808_v51 = vpack.c.bf16 %v1813_v2, %v1807_v57  ;;  %v743_v11 = vadd.f32 1.0, %v1442_v5 }
 0x137   : > { %1455 = vrcp.f32 %v742_v6  ;;  %v1258_v12 = vmul.f32 -1.442695, %v1816_v8  ;;  %v683_v53 = vadd.f32 %v1744_v36, %v660_v44  ;;  %1307 = vmatprep.mubr.msk.bf16.mxu1 %vm811_vm2, %v802_v47  ;;  %v1853_v47 = vld [vmem:[%s1993_s5] ss:$0 sm:$0xff] }
 0x138   : > { %v1444_v13 = vpop.eup %1443  ;;  %1457 = vrcp.f32 %v743_v11 }
 0x139   : > { %v1446_v14 = vpop.eup %1445  ;;  %1459 = vpow2.f32 %v1258_v12  ;;  %v1259_v15 = vmul.f32 -1.442695, %v683_v53  ;;  %v788_v20 = vmul.f32 %v1444_v13, %v1769_v0 }
 0x13a   : > { %v1448_v16 = vpop.eup %1447  ;;  %v1825_v17 = vmul.f32 %v1446_v14, %v1773_v3  ;;  %v621_v18 = vpop.f32.mrb[20].mxu0 }
 0x13b   : > { %v1450_v19 = vpop.eup %1449  ;;  %v789_v22 = vmul.f32 %v1448_v16, %v1778_v7  ;;  %1461 = vpow2.f32 %v1259_v15  ;;  %v661_v23 = vmul.f32 %v1739_v34, %v621_v18  ;;  %v623_v24 = vpop.f32.mrb[21].mxu0 }
 0x13c   : > { %v1452_v25 = vpop.eup %1451  ;;  %v801_v26 = vmul.f32 %v1450_v19, %v1782_v9  ;;  %v624_v27 = vpop.f32.mrb[22].mxu0 }
 0x13d   : > { %v1454_v29 = vpop.eup %1453  ;;  %v803_v30 = vpack.c.bf16 %v789_v22, %v788_v20  ;;  %v744_v31 = vadd.f32 1.0, %v1452_v25  ;;  %v684_v3 = vadd.f32 %v1744_v36, %v661_v23  ;;  %v662_v32 = vmul.f32 %v1739_v34, %v624_v27  ;;  %v626_v33 = vpop.f32.mrb[23].mxu0 }
 0x13e   : > { %v809_v0 = vpack.c.bf16 %v801_v26, %v1825_v17  ;;  %v745_v35 = vadd.f32 1.0, %v1454_v29 }
 0x13f   : > { %1463 = vrcp.f32 %v744_v31  ;;  %v1260_v7 = vmul.f32 -1.442695, %v684_v3  ;;  %v685_v37 = vadd.f32 %v1744_v36, %v662_v32  ;;  %1308 = vmatmul.mubr.msk.bf16.vlgmr.msra.gmra.mrb[8].mxu1 %vm811_vm2, %v803_v30 }
 0x140   : > { %1465 = vrcp.f32 %v745_v35 }
 0x141   : > { %v1456_v9 = vpop.eup %1455  ;;  %1467 = vpow2.f32 %v1260_v7  ;;  %v1261_v38 = vmul.f32 -1.442695, %v685_v37 }
 0x142   : > { %v1458_v39 = vpop.eup %1457  ;;  %v790_v42 = vmul.f32 %v1456_v9, %v1788_v21 }
 0x143   : > { %v1460_v40 = vpop.eup %1459  ;;  %v791_v34 = vmul.f32 %v1458_v39, %v1793_v28  ;;  %1469 = vpow2.f32 %v1261_v38 }
 0x144   : > { %v746_v43 = vadd.f32 1.0, %v1460_v40 }
 0x145   : > { %v1462_v45 = vpop.eup %1461  ;;  %v804_v46 = vpack.c.bf16 %v791_v34, %v790_v42 }
 0x146   : > { %1471 = vrcp.f32 %v746_v43  ;;  %v747_v48 = vadd.f32 1.0, %v1462_v45 }
 0x147   : > { %1311 = vmatprep.mubr.msk.bf16.mxu1 %vm811_vm2, %v804_v46 }
 0x148   : > { %1473 = vrcp.f32 %v747_v48 }
 0x149   : > { %v1464_v36 = vpop.eup %1463 }
 0x14a   : > { %v1466_v49 = vpop.eup %1465  ;;  %v792_v54 = vmul.f32 %v1464_v36, %v1798_v41 }
 0x14b   : > { %v1468_v52 = vpop.eup %1467  ;;  %v793_v55 = vmul.f32 %v1466_v49, %v1803_v50 }
 0x14c   : > { %v748_v56 = vadd.f32 1.0, %v1468_v52 }
 0x14d   : > { %v1470_v21 = vpop.eup %1469  ;;  %v805_v58 = vpack.c.bf16 %v793_v55, %v792_v54 }
 0x14e   : > { %1475 = vrcp.f32 %v748_v56  ;;  %v749_v28 = vadd.f32 1.0, %v1470_v21 }
 0x14f   : > { %1312 = vmatmul.mubr.msk.bf16.gmra.mrb[12].mxu1 %vm811_vm2, %v805_v58 }
 0x150   : > { %v1472_v59 = vpop.eup %1471  ;;  %1477 = vrcp.f32 %v749_v28 }
 0x151   : > { %v794_v61 = vmul.f32 %v1472_v59, %v1816_v8  ;;  %v1858_v8 = vld [vmem:[%s1994_s6] ss:$0 sm:$0xff] }
 0x152   : > { %v1474_v60 = vpop.eup %1473 }
 0x153   : > { %v795_v62 = vmul.f32 %v1474_v60, %v683_v53 }
 0x155   : > { %v806_v63 = vpack.c.bf16 %v795_v62, %v794_v61 }
 0x157   : > { %1315 = vmatprep.mubr.msk.bf16.mxu1 %vm811_vm2, %v806_v63 }
 0x158   : > { %v1476_v1 = vpop.eup %1475 }
 0x159   : > { %v796_v4 = vmul.f32 %v1476_v1, %v684_v3 }
 0x15a   : > { %v1478_v41 = vpop.eup %1477 }
 0x15b   : > { %v797_v50 = vmul.f32 %v1478_v41, %v685_v37 }
 0x15d   : > { %v807_v5 = vpack.c.bf16 %v797_v50, %v796_v4 }
 0x15f   : > { %1316 = vmatmul.mubr.msk.bf16.gmra.mrb[16].mxu1 %vm811_vm2, %v807_v5 }
 0x160   : > { %1319 = vmatprep.mubr.msk.bf16.mxu1 %vm811_vm2, %v808_v51 }
 0x167   : > { %1320 = vmatmul.mubr.msk.bf16.gmra.mrb[20].mxu1 %vm811_vm2, %v809_v0 }
 0x212   : > { %v1309_v6 = vpop.f32.mrb[8].mxu1 }
 0x213   : > { %v945_v44 = vmul.f32 %v1309_v6, %v1853_v47  ;;  %v873_v10 = vpop.f32.mrb[9].mxu1 }
 0x214   : > { %v943_v57 = vmul.f32 %v1853_v47, %v873_v10  ;;  %v1310_v2 = vpop.f32.mrb[10].mxu1 }
 0x215   : > { %v968_v51 = vadd.f32 %v1858_v8, %v945_v44  ;;  %v946_v11 = vmul.f32 %v1310_v2, %v1853_v47  ;;  %v876_v12 = vpop.f32.mrb[11].mxu1 }
 0x216   : > { %v966_v53 = vadd.f32 %v1858_v8, %v943_v57  ;;  %v944_v13 = vmul.f32 %v1853_v47, %v876_v12 }
 0x217   : > { %v1278_v14 = vmul.f32 -1.442695, %v968_v51  ;;  %v969_v15 = vadd.f32 %v1858_v8, %v946_v11 }
 0x218   : > { %v1276_v16 = vmul.f32 -1.442695, %v966_v53  ;;  %v967_v17 = vadd.f32 %v1858_v8, %v944_v13 }
 0x219   : > { %1479 = vpow2.f32 %v1278_v14  ;;  %v1279_v18 = vmul.f32 -1.442695, %v969_v15 }
 0x21a   : > { %1481 = vpow2.f32 %v1276_v16  ;;  %v1277_v19 = vmul.f32 -1.442695, %v967_v17 }
 0x21b   : > { %1483 = vpow2.f32 %v1279_v18 }
 0x21c   : > { %1485 = vpow2.f32 %v1277_v19 }
 0x222   : > { %v1313_v20 = vpop.f32.mrb[12].mxu1 }
 0x223   : > { %v1480_v22 = vpop.eup %1479  ;;  %v949_v23 = vmul.f32 %v1313_v20, %v1853_v47  ;;  %v889_v24 = vpop.f32.mrb[13].mxu1 }
 0x224   : > { %v1482_v25 = vpop.eup %1481  ;;  %v1032_v26 = vadd.f32 1.0, %v1480_v22  ;;  %v947_v27 = vmul.f32 %v1853_v47, %v889_v24  ;;  %v1314_v29 = vpop.f32.mrb[14].mxu1 }
 0x225   : > { %v1484_v30 = vpop.eup %1483  ;;  %v1030_v31 = vadd.f32 1.0, %v1482_v25  ;;  %v1871_v3 = vadd.f32 %v1858_v8, %v949_v23  ;;  %v950_v32 = vmul.f32 %v1314_v29, %v1853_v47  ;;  %v892_v33 = vpop.f32.mrb[15].mxu1 }
 0x226   : > { %v1486_v0 = vpop.eup %1485  ;;  %1487 = vrcp.f32 %v1032_v26  ;;  %v1033_v35 = vadd.f32 1.0, %v1484_v30  ;;  %v1875_v7 = vadd.f32 %v1858_v8, %v947_v27  ;;  %v948_v37 = vmul.f32 %v1853_v47, %v892_v33 }
 0x227   : > { %1489 = vrcp.f32 %v1030_v31  ;;  %v1031_v9 = vadd.f32 1.0, %v1486_v0  ;;  %v1282_v38 = vmul.f32 -1.442695, %v1871_v3  ;;  %v1880_v39 = vadd.f32 %v1858_v8, %v950_v32 }
 0x228   : > { %1491 = vrcp.f32 %v1033_v35  ;;  %v1280_v40 = vmul.f32 -1.442695, %v1875_v7  ;;  %v1884_v42 = vadd.f32 %v1858_v8, %v948_v37 }
 0x229   : > { %1493 = vrcp.f32 %v1031_v9  ;;  %v1283_v34 = vmul.f32 -1.442695, %v1880_v39 }
 0x22a   : > { %1495 = vpow2.f32 %v1282_v38  ;;  %v1281_v43 = vmul.f32 -1.442695, %v1884_v42 }
 0x22b   : > { %1497 = vpow2.f32 %v1280_v40 }
 0x22c   : > { %1499 = vpow2.f32 %v1283_v34 }
 0x22d   : > { %1501 = vpow2.f32 %v1281_v43 }
 0x230   : > { %v1488_v45 = vpop.eup %1487 }
 0x231   : > { %v1490_v46 = vpop.eup %1489  ;;  %v1080_v48 = vmul.f32 %v1488_v45, %v968_v51 }
 0x232   : > { %v1492_v36 = vpop.eup %1491  ;;  %v1078_v49 = vmul.f32 %v1490_v46, %v966_v53  ;;  %v1317_v52 = vpop.f32.mrb[16].mxu1 }
 0x233   : > { %v1494_v54 = vpop.eup %1493  ;;  %1097 = vst.msk [vmem:[%s1893_s13 + $0x10] sm:$0xff] %vm1094_vm3, %v1080_v48  ;;  %v1081_v55 = vmul.f32 %v1492_v36, %v969_v15  ;;  %v953_v56 = vmul.f32 %v1317_v52, %v1853_v47  ;;  %v905_v21 = vpop.f32.mrb[17].mxu1 }
 0x234   : > { %v1496_v58 = vpop.eup %1495  ;;  %1095 = vst.msk [vmem:[%s1893_s13] sm:$0xff] %vm1094_vm3, %v1078_v49  ;;  %v1079_v28 = vmul.f32 %v1494_v54, %v967_v17  ;;  %v951_v59 = vmul.f32 %v1853_v47, %v905_v21  ;;  %v1318_v60 = vpop.f32.mrb[18].mxu1 }
 0x235   : > { %v1498_v61 = vpop.eup %1497  ;;  %1098 = vst.msk [vmem:[%s1893_s13 + $0x18] sm:$0xff] %vm1094_vm3, %v1081_v55  ;;  %v1036_v62 = vadd.f32 1.0, %v1496_v58  ;;  %v1904_v63 = vadd.f32 %v1858_v8, %v953_v56  ;;  %v954_v1 = vmul.f32 %v1318_v60, %v1853_v47  ;;  %v908_v41 = vpop.f32.mrb[19].mxu1 }
 0x236   : > { %v1500_v4 = vpop.eup %1499  ;;  %1096 = vst.msk [vmem:[%s1893_s13 + $0x8] sm:$0xff] %vm1094_vm3, %v1079_v28  ;;  %v1034_v50 = vadd.f32 1.0, %v1498_v61  ;;  %v1910_v5 = vadd.f32 %v1858_v8, %v951_v59  ;;  %v952_v6 = vmul.f32 %v1853_v47, %v908_v41 }
 0x237   : > { %v1502_v44 = vpop.eup %1501  ;;  %1503 = vrcp.f32 %v1036_v62  ;;  %v1037_v10 = vadd.f32 1.0, %v1500_v4  ;;  %v1286_v57 = vmul.f32 -1.442695, %v1904_v63  ;;  %v1915_v2 = vadd.f32 %v1858_v8, %v954_v1 }
 0x238   : > { %1505 = vrcp.f32 %v1034_v50  ;;  %v1035_v51 = vadd.f32 1.0, %v1502_v44  ;;  %v1284_v11 = vmul.f32 -1.442695, %v1910_v5  ;;  %v1919_v12 = vadd.f32 %v1858_v8, %v952_v6 }
 0x239   : > { %1507 = vrcp.f32 %v1037_v10  ;;  %v1287_v53 = vmul.f32 -1.442695, %v1915_v2 }
 0x23a   : > { %1509 = vrcp.f32 %v1035_v51  ;;  %v1285_v13 = vmul.f32 -1.442695, %v1919_v12  ;;  %v1321_v14 = vpop.f32.mrb[20].mxu1 }
 0x23b   : > { %1511 = vpow2.f32 %v1286_v57  ;;  %v957_v15 = vmul.f32 %v1321_v14, %v1853_v47  ;;  %v921_v16 = vpop.f32.mrb[21].mxu1 }
 0x23c   : > { %1513 = vpow2.f32 %v1284_v11  ;;  %v955_v17 = vmul.f32 %v1853_v47, %v921_v16  ;;  %v1322_v18 = vpop.f32.mrb[22].mxu1 }
 0x23d   : > { %1515 = vpow2.f32 %v1287_v53  ;;  %v1926_v19 = vadd.f32 %v1858_v8, %v957_v15  ;;  %v958_v20 = vmul.f32 %v1322_v18, %v1853_v47  ;;  %v924_v22 = vpop.f32.mrb[23].mxu1 }
 0x23e   : > { %1517 = vpow2.f32 %v1285_v13  ;;  %v1930_v23 = vadd.f32 %v1858_v8, %v955_v17  ;;  %v956_v24 = vmul.f32 %v1853_v47, %v924_v22 }
 0x23f   : > { %v1290_v25 = vmul.f32 -1.442695, %v1926_v19  ;;  %v1935_v26 = vadd.f32 %v1858_v8, %v958_v20 }
 0x240   : > { %v1288_v27 = vmul.f32 -1.442695, %v1930_v23  ;;  %v1939_v29 = vadd.f32 %v1858_v8, %v956_v24 }
 0x241   : > { %v1504_v30 = vpop.eup %1503  ;;  %1519 = vpow2.f32 %v1290_v25  ;;  %v1291_v31 = vmul.f32 -1.442695, %v1935_v26 }
 0x242   : > { %v1506_v32 = vpop.eup %1505  ;;  %v1084_v47 = vmul.f32 %v1504_v30, %v1871_v3  ;;  %1521 = vpow2.f32 %v1288_v27  ;;  %v1289_v33 = vmul.f32 -1.442695, %v1939_v29 }
 0x243   : > { %v1508_v0 = vpop.eup %1507  ;;  %v1082_v35 = vmul.f32 %v1506_v32, %v1875_v7  ;;  %1523 = vpow2.f32 %v1291_v31 }
 0x244   : > { %v1510_v37 = vpop.eup %1509  ;;  %1101 = vst.msk [vmem:[%s1893_s13 + $0x30] sm:$0xff] %vm1094_vm3, %v1084_v47  ;;  %v1085_v8 = vmul.f32 %v1508_v0, %v1880_v39  ;;  %1525 = vpow2.f32 %v1289_v33 }
 0x245   : > { %v1512_v9 = vpop.eup %1511  ;;  %1099 = vst.msk [vmem:[%s1893_s13 + $0x20] sm:$0xff] %vm1094_vm3, %v1082_v35  ;;  %v1083_v38 = vmul.f32 %v1510_v37, %v1884_v42 }
 0x246   : > { %v1514_v3 = vpop.eup %1513  ;;  %1102 = vst.msk [vmem:[%s1893_s13 + $0x38] sm:$0xff] %vm1094_vm3, %v1085_v8  ;;  %v1040_v40 = vadd.f32 1.0, %v1512_v9 }
 0x247   : > { %v1516_v34 = vpop.eup %1515  ;;  %1100 = vst.msk [vmem:[%s1893_s13 + $0x28] sm:$0xff] %vm1094_vm3, %v1083_v38  ;;  %v1038_v7 = vadd.f32 1.0, %v1514_v3 }
 0x248   : > { %v1518_v43 = vpop.eup %1517  ;;  %1527 = vrcp.f32 %v1040_v40  ;;  %v1041_v45 = vadd.f32 1.0, %v1516_v34 }
 0x249   : > { %1529 = vrcp.f32 %v1038_v7  ;;  %v1039_v46 = vadd.f32 1.0, %v1518_v43 }
 0x24a   : > { %1531 = vrcp.f32 %v1041_v45 }
 0x24b   : > { %v1520_v39 = vpop.eup %1519  ;;  %1533 = vrcp.f32 %v1039_v46 }
 0x24c   : > { %v1522_v48 = vpop.eup %1521  ;;  %v1044_v36 = vadd.f32 1.0, %v1520_v39 }
 0x24d   : > { %v1524_v42 = vpop.eup %1523  ;;  %v1042_v49 = vadd.f32 1.0, %v1522_v48 }
 0x24e   : > { %v1526_v52 = vpop.eup %1525  ;;  %1535 = vrcp.f32 %v1044_v36  ;;  %v1045_v54 = vadd.f32 1.0, %v1524_v42 }
 0x24f   : > { %1537 = vrcp.f32 %v1042_v49  ;;  %v1043_v55 = vadd.f32 1.0, %v1526_v52 }
 0x250   : > { %1539 = vrcp.f32 %v1045_v54 }
 0x251   : > { %1541 = vrcp.f32 %v1043_v55 }
 0x252   : > { %v1528_v56 = vpop.eup %1527 }
 0x253   : > { %v1530_v21 = vpop.eup %1529  ;;  %v1088_v58 = vmul.f32 %v1528_v56, %v1904_v63 }
 0x254   : > { %v1532_v28 = vpop.eup %1531  ;;  %v1086_v59 = vmul.f32 %v1530_v21, %v1910_v5 }
 0x255   : > { %v1534_v60 = vpop.eup %1533  ;;  %1105 = vst.msk [vmem:[%s1893_s13 + $0x50] sm:$0xff] %vm1094_vm3, %v1088_v58  ;;  %v1089_v61 = vmul.f32 %v1532_v28, %v1915_v2 }
 0x256   : > { %1103 = vst.msk [vmem:[%s1893_s13 + $0x40] sm:$0xff] %vm1094_vm3, %v1086_v59  ;;  %v1087_v62 = vmul.f32 %v1534_v60, %v1919_v12 }
 0x257   : > { %1106 = vst.msk [vmem:[%s1893_s13 + $0x58] sm:$0xff] %vm1094_vm3, %v1089_v61 }
 0x258   : > { %v1536_v1 = vpop.eup %1535  ;;  %1104 = vst.msk [vmem:[%s1893_s13 + $0x48] sm:$0xff] %vm1094_vm3, %v1087_v62 }
 0x259   : > { %v1538_v63 = vpop.eup %1537  ;;  %v1092_v41 = vmul.f32 %v1536_v1, %v1926_v19 }
 0x25a   : > { %v1540_v4 = vpop.eup %1539  ;;  %v1090_v50 = vmul.f32 %v1538_v63, %v1930_v23 }
 0x25b   : > { %v1542_v5 = vpop.eup %1541  ;;  %1109 = vst.msk [vmem:[%s1893_s13 + $0x70] sm:$0xff] %vm1094_vm3, %v1092_v41  ;;  %v1093_v6 = vmul.f32 %v1540_v4, %v1935_v26 }
 0x25c   : > { %1107 = vst.msk [vmem:[%s1893_s13 + $0x60] sm:$0xff] %vm1094_vm3, %v1090_v50  ;;  %v1091_v44 = vmul.f32 %v1542_v5, %v1939_v29 }
 0x25d   : > { %1110 = vst.msk [vmem:[%s1893_s13 + $0x78] sm:$0xff] %vm1094_vm3, %v1093_v6 }
 0x25e   : > { %1108 = vst.msk [vmem:[%s1893_s13 + $0x68] sm:$0xff] %vm1094_vm3, %v1091_v44 }
 0x25f PF: > { %s17_s26 = sadd.s32 1, %s1565_s26   ;;  %s1996_s24 = smov %s1561_s25 }
 0x260   : > { %p14_p5 = scmp.ge.s32.totalorder %s17_s26, 4   ;;  %s1997_s25 = smov %s1999_s27 }
 0x262   :  { %16 = sbr.rel (!%p14_p5) target bundleno = 2 (0x2), region = 78 }

// kernel: mobilevit_block_forward.4
= control target key start
LH: loop header
LB: loop body
LE: loop exit
PB: predicated region body
PF: predicated region fallthrough
CT: control target
= control target key end

     0   :  { %s5970_s21 = smov 0   ;;  %s5972_s22 = smov 0   ;;  %s8088_s0 = inlined_call_operand.vmem [shape: f32[256,32], index: 0, kind: input, shape index: {}]   ;;  %s8089_s1 = inlined_call_operand.vmem [shape: f32[128,128], index: 1, kind: input, shape index: {}]   ;;  %s8090_s2 = inlined_call_operand.vmem [shape: f32[2,1,32], index: 2, kind: input, shape index: {}]   ;;  %s8091_s3 = inlined_call_operand.vmem [shape: f32[2,1,32], index: 3, kind: input, shape index: {}]   ;;  %s8092_s4 = inlined_call_operand.vmem [shape: bf16[2,32,96], index: 4, kind: input, shape index: {}]   ;;  %s8093_s5 = inlined_call_operand.vmem [shape: bf16[2,32,32], index: 5, kind: input, shape index: {}]   ;;  %s8094_s6 = inlined_call_operand.vmem [shape: f32[2,1,32], index: 6, kind: input, shape index: {}]   ;;  %s8095_s7 = inlined_call_operand.vmem [shape: f32[2,1,32], index: 7, kind: input, shape index: {}]   ;;  %s8096_s8 = inlined_call_operand.vmem [shape: f32[2,1,32], index: 8, kind: input, shape index: {}]   ;;  %s8097_s9 = inlined_call_operand.vmem [shape: bf16[2,32,64], index: 9, kind: input, shape index: {}]   ;;  %s8098_s10 = inlined_call_operand.vmem [shape: f32[2,1,64], index: 10, kind: input, shape index: {}]   ;;  %s8099_s11 = inlined_call_operand.vmem [shape: bf16[2,64,32], index: 11, kind: input, shape index: {}]   ;;  %s8100_s12 = inlined_call_operand.vmem [shape: f32[2,1,32], index: 12, kind: input, shape index: {}]   ;;  %s8101_s13 = inlined_call_operand.vmem [shape: bf16[32,8], index: 13, kind: input, shape index: {}]   ;;  %s8102_s14 = inlined_call_operand.vmem [shape: f32[1,8], index: 14, kind: input, shape index: {}]   ;;  %s8103_s15 = inlined_call_operand.vmem [shape: f32[1,8], index: 15, kind: input, shape index: {}]   ;;  %s8104_s16 = inlined_call_operand.vmem [shape: f32[256,8], index: 16, kind: output, shape index: {}]  }
   0x1   :  { %8130 = sst [smem:[#allocation40_spill]] %s8088_s0  ;;  %s5974_s23 = smov 0  }
   0x2   :  { %s5976_s24 = smov 0   ;;  %s5978_s25 = smov 0  }
   0x3 LB: > { %8131 = sst [smem:[#allocation3_spill]] %s5861_s23  ;;  %s35_s26 = sadd.s32 1, %s5861_s23  ;;  %s5869_s25 = sphi %s5978_s25, %s26_s25   ;;  %s5865_s24 = sphi %s5976_s24, %s8224_s24   ;;  %s5861_s23 = sphi %s5974_s23, %s8223_s23   ;;  %s5857_s22 = sphi %s5972_s22, %s8222_s22   ;;  %s5853_s21 = sphi %s5970_s21, %s8221_s21  }
   0x4   : > { %s38_s27 = sadd.s32 1, %s5865_s24  ;;  %p36_p0 = scmp.ge.s32.totalorder %s35_s26, 2 }
   0x5   : > { %p4429_p1 = scmp.ge.s32.totalorder %s5869_s25, 1  ;;  %p475_p2 = scmp.lt.s32.totalorder %s5869_s25, 5 }
   0x6   : > { %s8226_s26 = smov (%p36_p0, %s35_s26), 0  ;;  %s8228_s27 = smov (!%p36_p0, %s38_s27), %s5865_s24 }
   0x7   : > { %p476_p3 = pnand %p4429_p1, %p475_p2  ;;  %p40_p4 = scmp.ge.s32.totalorder %s8228_s27, 2 }
   0x9   : > { %s8230_s27 = smov (%p40_p4, %s8228_s27), 0  ;;  %479 = sbr.rel (%p476_p3) target bundleno = 4858 (0x12fa), region = 84 }
  0x10   : > { %s4430_s28 = sshll.u32 %s5857_s22, 4  ;;  %s8132_s17 = sld [smem:[#allocation40_spill]] }
  0x11   : > { %p526_p5 = scmp.lt.s32.totalorder %s4430_s28, 31  ;;  %p4434_p6 = scmp.ne.s32.totalorder %s5853_s21, 0 }
  0x12   : > { %vm558_vm0 = vcmask (!%p4434_p6), 261120  }
  0x13   : > { %s8232_s28 = smov (!%p526_p5, %s4430_s28), 31  ;;  %541 = sbr.rel (%p4434_p6) target bundleno = 32 (0x20), region = 88 }
  0x14   : > { %s4431_s29 = sshll.u32 %s8232_s28, 3 }
  0x15   : > { %s6010_s23 = scalar_lea.vmem %s8104_s16, %s4431_s29 }
  0x16   : > { %s6005_s18 = scalar_lea.vmem %s8132_s17, %s4431_s29 }
  0x17   : > { %v542_v0 = vld [vmem:[%s6005_s18] sm:$0xff] (!%p4434_p6)  ;;  %v543_v1 = vld [vmem:[%s6005_s18 + $0x8] sm:$0xff] (!%p4434_p6)  ;;  %v544_v2 = vld [vmem:[%s6005_s18 + $0x10] sm:$0xff] (!%p4434_p6) }
  0x18   : > { %559 = vst.msk [vmem:[#allocation2] sm:$0xff] (!%p4434_p6), %vm558_vm0, %v542_v0  ;;  %560 = vst.msk [vmem:[#allocation2 + $0x8] sm:$0xff] (!%p4434_p6), %vm558_vm0, %v543_v1  ;;  %v545_v3 = vld [vmem:[%s6005_s18 + $0x18] sm:$0xff] (!%p4434_p6)  ;;  %v546_v4 = vld [vmem:[%s6005_s18 + $0x20] sm:$0xff] (!%p4434_p6) }
  0x19   : > { %561 = vst.msk [vmem:[#allocation2 + $0x10] sm:$0xff] (!%p4434_p6), %vm558_vm0, %v544_v2  ;;  %v547_v5 = vld [vmem:[%s6005_s18 + $0x28] sm:$0xff] (!%p4434_p6)  ;;  %562 = vst.msk [vmem:[#allocation2 + $0x18] sm:$0xff] (!%p4434_p6), %vm558_vm0, %v545_v3  ;;  %v548_v6 = vld [vmem:[%s6005_s18 + $0x30] sm:$0xff] (!%p4434_p6) }
  0x1a   : > { %563 = vst.msk [vmem:[#allocation2 + $0x20] sm:$0xff] %vm558_vm0, %v546_v4  ;;  %564 = vst.msk [vmem:[#allocation2 + $0x28] sm:$0xff] %vm558_vm0, %v547_v5  ;;  %v549_v7 = vld [vmem:[%s6005_s18 + $0x38] sm:$0xff]  ;;  %v550_v8 = vld [vmem:[%s6005_s18 + $0x40] sm:$0xff] }
  0x1b   : > { %565 = vst.msk [vmem:[#allocation2 + $0x30] sm:$0xff] %vm558_vm0, %v548_v6  ;;  %566 = vst.msk [vmem:[#allocation2 + $0x38] sm:$0xff] %vm558_vm0, %v549_v7  ;;  %v551_v9 = vld [vmem:[%s6005_s18 + $0x48] sm:$0xff]  ;;  %v552_v10 = vld [vmem:[%s6005_s18 + $0x50] sm:$0xff] }
  0x1c   : > { %567 = vst.msk [vmem:[#allocation2 + $0x40] sm:$0xff] %vm558_vm0, %v550_v8  ;;  %v553_v11 = vld [vmem:[%s6005_s18 + $0x58] sm:$0xff]  ;;  %568 = vst.msk [vmem:[#allocation2 + $0x48] sm:$0xff] %vm558_vm0, %v551_v9  ;;  %v554_v12 = vld [vmem:[%s6005_s18 + $0x60] sm:$0xff] }
  0x1d   : > { %569 = vst.msk [vmem:[#allocation2 + $0x50] sm:$0xff] %vm558_vm0, %v552_v10  ;;  %570 = vst.msk [vmem:[#allocation2 + $0x58] sm:$0xff] %vm558_vm0, %v553_v11  ;;  %v555_v13 = vld [vmem:[%s6005_s18 + $0x68] sm:$0xff]  ;;  %v556_v14 = vld [vmem:[%s6005_s18 + $0x70] sm:$0xff] }
  0x1e   : > { %571 = vst.msk [vmem:[#allocation2 + $0x60] sm:$0xff] %vm558_vm0, %v554_v12  ;;  %572 = vst.msk [vmem:[#allocation2 + $0x68] sm:$0xff] %vm558_vm0, %v555_v13  ;;  %v557_v15 = vld [vmem:[%s6005_s18 + $0x78] sm:$0xff] }
  0x1f   : > { %573 = vst.msk [vmem:[#allocation2 + $0x70] sm:$0xff] %vm558_vm0, %v556_v14  ;;  %574 = vst.msk [vmem:[#allocation2 + $0x78] sm:$0xff] %vm558_vm0, %v557_v15 }
  0x20 PF: > { %vm611_vm1 = vcmask 261120   ;;  %s6182_s22 = sshll.u32 %s5853_s21, 4  ;;  %s607_s18 = scalar_lea.vmem %s8090_s2, %s5853_s21  ;;  %vm1069_vm2 = vcmask 64512   ;;  %vm3054_vm3 = vcmask 130048   ;;  %vm3071_vm4 = vcmask 195584  }
  0x21   : > { %s875_s30 = scalar_lea.vmem %s8092_s4, %s6182_s22  ;;  %s609_s28 = scalar_lea.vmem %s8091_s3, %s5853_s21  ;;  %vm3841_vm5 = vcmask 523264  }
  0x22   : > { %v6051_v28 = vld [vmem:[#allocation2 + $0x30] sm:$0xff]  ;;  %v6053_v29 = vld [vmem:[#allocation2 + $0x38] sm:$0xff]  ;;  %s5871_s29 = smov 96   ;;  %s5873_s0 = smov 88  }
  0x23   : > { %v630_v30 = vsel %vm611_vm1, %v6051_v28, 0.0  ;;  %v633_v31 = vsel %vm611_vm1, %v6053_v29, 0.0  ;;  %v6059_v32 = vld [vmem:[#allocation2 + $0x40] sm:$0xff]  ;;  %v6061_v33 = vld [vmem:[#allocation2 + $0x48] sm:$0xff]  ;;  %s5878_s17 = smov 48   ;;  %s3540_s20 = scalar_lea.vmem %s8097_s9, %s6182_s22 }
  0x24   : > { %v636_v34 = vsel %vm611_vm1, %v6059_v32, 0.0  ;;  %v639_v35 = vsel %vm611_vm1, %v6061_v33, 0.0  ;;  %v6067_v36 = vld [vmem:[#allocation2 + $0x50] sm:$0xff]  ;;  %v6069_v37 = vld [vmem:[#allocation2 + $0x58] sm:$0xff]  ;;  %p4538_p7 = scmp.ne.s32.totalorder %s5853_s21, 1 }
  0x25   : > { %v575_v16 = vld [vmem:[#allocation2] sm:$0xff]  ;;  %v576_v18 = vld [vmem:[#allocation2 + $0x8] sm:$0xff]  ;;  %v642_v38 = vsel %vm611_vm1, %v6067_v36, 0.0  ;;  %v645_v39 = vsel %vm611_vm1, %v6069_v37, 0.0 }
  0x26   : > { %v577_v17 = vld [vmem:[#allocation2 + $0x10] sm:$0xff]  ;;  %v612_v19 = vsel %vm611_vm1, %v575_v16, 0.0  ;;  %v578_v21 = vld [vmem:[#allocation2 + $0x18] sm:$0xff]  ;;  %v615_v22 = vsel %vm611_vm1, %v576_v18, 0.0  ;;  %v6075_v40 = vld [vmem:[#allocation2 + $0x60] sm:$0xff] }
  0x27   : > { %v618_v20 = vsel %vm611_vm1, %v577_v17, 0.0  ;;  %613 = vadd.xlane.f32.xlu0 %v612_v19  ;;  %v621_v23 = vsel %vm611_vm1, %v578_v21, 0.0  ;;  %v579_v24 = vld [vmem:[#allocation2 + $0x20] sm:$0xff]  ;;  %v580_v25 = vld [vmem:[#allocation2 + $0x28] sm:$0xff]  ;;  %v648_v42 = vsel %vm611_vm1, %v6075_v40, 0.0  ;;  %v6083_v44 = vld [vmem:[#allocation2 + $0x70] sm:$0xff] }
  0x28   : > { %619 = vadd.xlane.f32.xlu1 %v618_v20  ;;  %v624_v26 = vsel %vm611_vm1, %v579_v24, 0.0  ;;  %v627_v27 = vsel %vm611_vm1, %v580_v25, 0.0  ;;  %v6077_v41 = vld [vmem:[#allocation2 + $0x68] sm:$0xff]  ;;  %v6085_v45 = vld [vmem:[#allocation2 + $0x78] sm:$0xff]  ;;  %v654_v46 = vsel %vm611_vm1, %v6083_v44, 0.0 }
  0x29   : > { %v651_v43 = vsel %vm611_vm1, %v6077_v41, 0.0  ;;  %v657_v47 = vsel %vm611_vm1, %v6085_v45, 0.0 }
  0x2b   : > { %616 = vadd.xlane.f32.xlu0 %v615_v22 }
  0x2c   : > { %622 = vadd.xlane.f32.xlu1 %v621_v23 }
  0x2f   : > { %625 = vadd.xlane.f32.xlu0 %v624_v26 }
  0x30   : > { %628 = vadd.xlane.f32.xlu1 %v627_v27 }
  0x33   : > { %631 = vadd.xlane.f32.xlu0 %v630_v30 }
  0x34   : > { %634 = vadd.xlane.f32.xlu1 %v633_v31 }
  0x37   : > { %637 = vadd.xlane.f32.xlu0 %v636_v34 }
  0x38   : > { %640 = vadd.xlane.f32.xlu1 %v639_v35 }
  0x3b   : > { %643 = vadd.xlane.f32.xlu0 %v642_v38 }
  0x3c   : > { %646 = vadd.xlane.f32.xlu1 %v645_v39 }
  0x3f   : > { %649 = vadd.xlane.f32.xlu0 %v648_v42 }
  0x40   : > { %652 = vadd.xlane.f32.xlu1 %v651_v43 }
  0x43   : > { %655 = vadd.xlane.f32.xlu0 %v654_v46 }
  0x44   : > { %658 = vadd.xlane.f32.xlu1 %v657_v47 }
  0xb4   : > { %v614_v48 = vpop.xlane.xlu0 %613 }
  0xb5   : > { %v620_v49 = vpop.xlane.xlu1 %619  ;;  %v661_v50 = vmul.f32 0.03125, %v614_v48 }
  0xb6   : > { %v663_v51 = vmul.f32 0.03125, %v620_v49 }
  0xb7   : > { %v6091_v52 = vsub.f32 %v575_v16, %v661_v50 }
  0xb8   : > { %v6093_v53 = vsub.f32 %v577_v17, %v663_v51  ;;  %v617_v54 = vpop.xlane.xlu0 %616 }
  0xb9   : > { %v623_v55 = vpop.xlane.xlu1 %622  ;;  %v662_v56 = vmul.f32 0.03125, %v617_v54  ;;  %v693_v58 = vmul.f32 %v6091_v52, %v6091_v52 }
  0xba   : > { %v664_v57 = vmul.f32 0.03125, %v623_v55  ;;  %v695_v59 = vmul.f32 %v6093_v53, %v6093_v53 }
  0xbb   : > { %v6099_v60 = vsub.f32 %v576_v18, %v662_v56  ;;  %v709_v62 = vsel %vm611_vm1, %v693_v58, 0.0 }
  0xbc   : > { %v6101_v61 = vsub.f32 %v578_v21, %v664_v57  ;;  %710 = vadd.xlane.f32.xlu0 %v709_v62  ;;  %v626_v63 = vpop.xlane.xlu0 %625  ;;  %v715_v1 = vsel %vm611_vm1, %v695_v59, 0.0 }
  0xbd   : > { %v629_v0 = vpop.xlane.xlu1 %628  ;;  %v665_v2 = vmul.f32 0.03125, %v626_v63  ;;  %v694_v4 = vmul.f32 %v6099_v60, %v6099_v60 }
  0xbe   : > { %v666_v3 = vmul.f32 0.03125, %v629_v0  ;;  %v696_v5 = vmul.f32 %v6101_v61, %v6101_v61 }
  0xbf   : > { %v6109_v6 = vsub.f32 %v579_v24, %v665_v2  ;;  %v712_v8 = vsel %vm611_vm1, %v694_v4, 0.0 }
  0xc0   : > { %v6111_v7 = vsub.f32 %v580_v25, %v666_v3  ;;  %716 = vadd.xlane.f32.xlu0 %v715_v1  ;;  %713 = vadd.xlane.f32.xlu1 %v712_v8  ;;  %v632_v9 = vpop.xlane.xlu0 %631  ;;  %v718_v11 = vsel %vm611_vm1, %v696_v5, 0.0  ;;  %v5340_v5 = vld [vmem:[%s875_s30 + $0x8] sm:$0xff]  }
  0xc1   : > { %v635_v10 = vpop.xlane.xlu1 %634  ;;  %v667_v12 = vmul.f32 0.03125, %v632_v9  ;;  %v697_v14 = vmul.f32 %v6109_v6, %v6109_v6 }
  0xc2   : > { %v668_v13 = vmul.f32 0.03125, %v635_v10  ;;  %v698_v15 = vmul.f32 %v6111_v7, %v6111_v7 }
  0xc3   : > { %v6120_v16 = vsub.f32 %v6051_v28, %v667_v12  ;;  %v721_v18 = vsel %vm611_vm1, %v697_v14, 0.0 }
  0xc4   : > { %v6123_v17 = vsub.f32 %v6053_v29, %v668_v13  ;;  %719 = vadd.xlane.f32.xlu1 %v718_v11  ;;  %722 = vadd.xlane.f32.xlu0 %v721_v18  ;;  %v638_v19 = vpop.xlane.xlu0 %637  ;;  %v724_v21 = vsel %vm611_vm1, %v698_v15, 0.0 }
  0xc5   : > { %v641_v20 = vpop.xlane.xlu1 %640  ;;  %v669_v22 = vmul.f32 0.03125, %v638_v19  ;;  %v699_v24 = vmul.f32 %v6120_v16, %v6120_v16 }
  0xc6   : > { %v670_v23 = vmul.f32 0.03125, %v641_v20  ;;  %v700_v25 = vmul.f32 %v6123_v17, %v6123_v17 }
  0xc7   : > { %v6132_v26 = vsub.f32 %v6059_v32, %v669_v22  ;;  %v727_v28 = vsel %vm611_vm1, %v699_v24, 0.0 }
  0xc8   : > { %v6135_v27 = vsub.f32 %v6061_v33, %v670_v23  ;;  %725 = vadd.xlane.f32.xlu1 %v724_v21  ;;  %728 = vadd.xlane.f32.xlu0 %v727_v28  ;;  %v644_v29 = vpop.xlane.xlu0 %643  ;;  %v730_v31 = vsel %vm611_vm1, %v700_v25, 0.0 }
  0xc9   : > { %v647_v30 = vpop.xlane.xlu1 %646  ;;  %v671_v34 = vmul.f32 0.03125, %v644_v29  ;;  %v701_v38 = vmul.f32 %v6132_v26, %v6132_v26 }
  0xca   : > { %v672_v35 = vmul.f32 0.03125, %v647_v30  ;;  %v702_v32 = vmul.f32 %v6135_v27, %v6135_v27 }
  0xcb   : > { %v6144_v39 = vsub.f32 %v6067_v36, %v671_v34  ;;  %v733_v42 = vsel %vm611_vm1, %v701_v38, 0.0 }
  0xcc   : > { %v6147_v33 = vsub.f32 %v6069_v37, %v672_v35  ;;  %731 = vadd.xlane.f32.xlu1 %v730_v31  ;;  %734 = vadd.xlane.f32.xlu0 %v733_v42  ;;  %v650_v43 = vpop.xlane.xlu0 %649  ;;  %v736_v47 = vsel %vm611_vm1, %v702_v32, 0.0 }
  0xcd   : > { %v653_v46 = vpop.xlane.xlu1 %652  ;;  %v673_v48 = vmul.f32 0.03125, %v650_v43  ;;  %v703_v50 = vmul.f32 %v6144_v39, %v6144_v39 }
  0xce   : > { %v674_v49 = vmul.f32 0.03125, %v653_v46  ;;  %v704_v36 = vmul.f32 %v6147_v33, %v6147_v33 }
  0xcf   : > { %v6156_v51 = vsub.f32 %v6075_v40, %v673_v48  ;;  %v739_v54 = vsel %vm611_vm1, %v703_v50, 0.0 }
  0xd0   : > { %v6159_v37 = vsub.f32 %v6077_v41, %v674_v49  ;;  %737 = vadd.xlane.f32.xlu1 %v736_v47  ;;  %740 = vadd.xlane.f32.xlu0 %v739_v54  ;;  %v656_v55 = vpop.xlane.xlu0 %655  ;;  %v742_v57 = vsel %vm611_vm1, %v704_v36, 0.0  ;;  %v6193_v47 = vld [vmem:[%s607_s18] ss:$0 sm:$0xff]  ;;  %s5879_s18 = smov 72  }
  0xd1   : > { %v659_v56 = vpop.xlane.xlu1 %658  ;;  %v675_v58 = vmul.f32 0.03125, %v656_v55  ;;  %v705_v62 = vmul.f32 %v6156_v51, %v6156_v51 }
  0xd2   : > { %v676_v59 = vmul.f32 0.03125, %v659_v56  ;;  %v706_v40 = vmul.f32 %v6159_v37, %v6159_v37 }
  0xd3   : > { %v6168_v41 = vsub.f32 %v6083_v44, %v675_v58  ;;  %v745_v0 = vsel %vm611_vm1, %v705_v62, 0.0 }
  0xd4   : > { %v6171_v63 = vsub.f32 %v6085_v45, %v676_v59  ;;  %743 = vadd.xlane.f32.xlu1 %v742_v57  ;;  %746 = vadd.xlane.f32.xlu0 %v745_v0  ;;  %v748_v1 = vsel %vm611_vm1, %v706_v40, 0.0  ;;  %v5339_v45 = vld [vmem:[%s875_s30] sm:$0xff]   ;;  %s5872_s30 = smov 64  }
  0xd5   : > { %v707_v2 = vmul.f32 %v6168_v41, %v6168_v41  ;;  %4753 = vmatprep.subr.bf16.mxu0 %v5339_v45  ;;  %v6201_v59 = vld [vmem:[%s609_s28] ss:$0 sm:$0xff]  ;;  %s5874_s28 = smov 120  }
  0xd6   : > { %v708_v3 = vmul.f32 %v6171_v63, %v6171_v63  ;;  %4754 = vmatpush3.bf16.msra.mxu0 %v5339_v45 }
  0xd7   : > { %v751_v4 = vsel %vm611_vm1, %v707_v2, 0.0  ;;  %4755 = vmatprep.subr.bf16.mxu0 %v5340_v5 }
  0xd8   : > { %749 = vadd.xlane.f32.xlu1 %v748_v1  ;;  %752 = vadd.xlane.f32.xlu0 %v751_v4  ;;  %v754_v44 = vsel %vm611_vm1, %v708_v3, 0.0 }
  0xda   : > { %4756 = vmatpush3.bf16.msra.mxu0 %v5340_v5 }
  0xdc   : > { %755 = vadd.xlane.f32.xlu1 %v754_v44 }
 0x149   : > { %v711_v8 = vpop.xlane.xlu0 %710 }
 0x14a   : > { %v757_v9 = vmul.f32 0.03125, %v711_v8 }
 0x14c   : > { %v773_v10 = vadd.f32 1e-05, %v757_v9 }
 0x14d   : > { %v714_v11 = vpop.xlane.xlu1 %713  ;;  %v717_v12 = vpop.xlane.xlu0 %716 }
 0x14e   : > { %5349 = vrsqrt.f32 %v773_v10  ;;  %v758_v13 = vmul.f32 0.03125, %v714_v11  ;;  %v759_v14 = vmul.f32 0.03125, %v717_v12 }
 0x150   : > { %v774_v15 = vadd.f32 1e-05, %v758_v13  ;;  %v775_v18 = vadd.f32 1e-05, %v759_v14 }
 0x151   : > { %v720_v19 = vpop.xlane.xlu1 %719  ;;  %v723_v20 = vpop.xlane.xlu0 %722 }
 0x152   : > { %5351 = vrsqrt.f32 %v774_v15  ;;  %v760_v21 = vmul.f32 0.03125, %v720_v19  ;;  %v761_v22 = vmul.f32 0.03125, %v723_v20 }
 0x153   : > { %5353 = vrsqrt.f32 %v775_v18 }
 0x154   : > { %v776_v23 = vadd.f32 1e-05, %v760_v21  ;;  %v777_v24 = vadd.f32 1e-05, %v761_v22 }
 0x155   : > { %v726_v25 = vpop.xlane.xlu1 %725  ;;  %v729_v28 = vpop.xlane.xlu0 %728 }
 0x156   : > { %5355 = vrsqrt.f32 %v776_v23  ;;  %v762_v29 = vmul.f32 0.03125, %v726_v25  ;;  %v763_v30 = vmul.f32 0.03125, %v729_v28 }
 0x157   : > { %5357 = vrsqrt.f32 %v777_v24 }
 0x158   : > { %v5350_v31 = vpop.eup %5349  ;;  %v778_v34 = vadd.f32 1e-05, %v762_v29  ;;  %v779_v35 = vadd.f32 1e-05, %v763_v30 }
 0x159   : > { %v732_v38 = vpop.xlane.xlu1 %731  ;;  %v735_v32 = vpop.xlane.xlu0 %734  ;;  %v805_v42 = vmul.f32 %v5350_v31, %v6091_v52 }
 0x15a   : > { %5359 = vrsqrt.f32 %v778_v34  ;;  %v764_v43 = vmul.f32 0.03125, %v732_v38  ;;  %v765_v46 = vmul.f32 0.03125, %v735_v32 }
 0x15b   : > { %5361 = vrsqrt.f32 %v779_v35  ;;  %v827_v52 = vmul.f32 %v6193_v47, %v805_v42 }
 0x15c   : > { %v5352_v48 = vpop.eup %5351  ;;  %v780_v49 = vadd.f32 1e-05, %v764_v43  ;;  %v781_v50 = vadd.f32 1e-05, %v765_v46 }
 0x15d   : > { %v5354_v36 = vpop.eup %5353  ;;  %v738_v54 = vpop.xlane.xlu1 %737  ;;  %v806_v56 = vmul.f32 %v5352_v48, %v6099_v60  ;;  %v849_v60 = vadd.f32 %v6201_v59, %v827_v52 }
 0x15e   : > { %v741_v55 = vpop.xlane.xlu0 %740  ;;  %5363 = vrsqrt.f32 %v780_v49  ;;  %v766_v57 = vmul.f32 0.03125, %v738_v54  ;;  %v807_v62 = vmul.f32 %v5354_v36, %v6093_v53 }
 0x15f   : > { %v767_v58 = vmul.f32 0.03125, %v741_v55  ;;  %5365 = vrsqrt.f32 %v781_v50  ;;  %v828_v40 = vmul.f32 %v6193_v47, %v806_v56 }
 0x160   : > { %v5356_v0 = vpop.eup %5355  ;;  %v782_v1 = vadd.f32 1e-05, %v766_v57  ;;  %v829_v8 = vmul.f32 %v6193_v47, %v807_v62 }
 0x161   : > { %v783_v2 = vadd.f32 1e-05, %v767_v58  ;;  %v5358_v3 = vpop.eup %5357  ;;  %v744_v4 = vpop.xlane.xlu1 %743  ;;  %v850_v45 = vadd.f32 %v6201_v59, %v828_v40  ;;  %v808_v5 = vmul.f32 %v5356_v0, %v6101_v61 }
 0x162   : > { %v747_v44 = vpop.xlane.xlu0 %746  ;;  %5367 = vrsqrt.f32 %v782_v1  ;;  %v768_v9 = vmul.f32 0.03125, %v744_v4  ;;  %v809_v12 = vmul.f32 %v5358_v3, %v6109_v6  ;;  %v851_v61 = vadd.f32 %v6201_v59, %v829_v8 }
 0x163   : > { %v769_v53 = vmul.f32 0.03125, %v747_v44  ;;  %5369 = vrsqrt.f32 %v783_v2  ;;  %v865_v10 = vpack.c.bf16 %v850_v45, %v849_v60  ;;  %v830_v11 = vmul.f32 %v6193_v47, %v808_v5 }
 0x164   : > { %v5360_v13 = vpop.eup %5359  ;;  %v784_v14 = vadd.f32 1e-05, %v768_v9  ;;  %v831_v23 = vmul.f32 %v6193_v47, %v809_v12 }
 0x165   : > { %v785_v15 = vadd.f32 1e-05, %v769_v53  ;;  %v5362_v18 = vpop.eup %5361  ;;  %v750_v19 = vpop.xlane.xlu1 %749  ;;  %4757 = vmatprep.mubr.msk.bf16.mxu0 %vm611_vm1, %v865_v10  ;;  %v852_v21 = vadd.f32 %v6201_v59, %v830_v11  ;;  %v810_v22 = vmul.f32 %v5360_v13, %v6111_v7 }
 0x166   : > { %v753_v20 = vpop.xlane.xlu0 %752  ;;  %5371 = vrsqrt.f32 %v784_v14  ;;  %v770_v24 = vmul.f32 0.03125, %v750_v19  ;;  %v811_v6 = vmul.f32 %v5362_v18, %v6120_v16  ;;  %v853_v7 = vadd.f32 %v6201_v59, %v831_v23 }
 0x167   : > { %v771_v25 = vmul.f32 0.03125, %v753_v20  ;;  %5373 = vrsqrt.f32 %v785_v15  ;;  %v866_v28 = vpack.c.bf16 %v852_v21, %v851_v61  ;;  %v832_v29 = vmul.f32 %v6193_v47, %v810_v22 }
 0x168   : > { %v5364_v30 = vpop.eup %5363  ;;  %v786_v31 = vadd.f32 1e-05, %v770_v24  ;;  %v833_v43 = vmul.f32 %v6193_v47, %v811_v6 }
 0x169   : > { %v787_v34 = vadd.f32 1e-05, %v771_v25  ;;  %v5366_v35 = vpop.eup %5365  ;;  %v756_v38 = vpop.xlane.xlu1 %755  ;;  %4758 = vmatmul.mubr.msk.bf16.vlgmr.msra.gmra.mrb[0].mxu0 %vm611_vm1, %v866_v28  ;;  %v854_v32 = vadd.f32 %v6201_v59, %v832_v29  ;;  %v812_v42 = vmul.f32 %v5364_v30, %v6123_v17 }
 0x16a   : > { %5375 = vrsqrt.f32 %v786_v31  ;;  %v772_v16 = vmul.f32 0.03125, %v756_v38  ;;  %v813_v46 = vmul.f32 %v5366_v35, %v6132_v26  ;;  %v855_v55 = vadd.f32 %v6201_v59, %v833_v43 }
 0x16b   : > { %5377 = vrsqrt.f32 %v787_v34  ;;  %v867_v48 = vpack.c.bf16 %v854_v32, %v853_v7  ;;  %v834_v49 = vmul.f32 %v6193_v47, %v812_v42 }
 0x16c   : > { %v5368_v50 = vpop.eup %5367  ;;  %v788_v36 = vadd.f32 1e-05, %v772_v16  ;;  %v835_v52 = vmul.f32 %v6193_v47, %v813_v46 }
 0x16d   : > { %v5370_v54 = vpop.eup %5369  ;;  %4761 = vmatprep.mubr.msk.bf16.mxu0 %vm611_vm1, %v867_v48  ;;  %v856_v56 = vadd.f32 %v6201_v59, %v834_v49  ;;  %v814_v17 = vmul.f32 %v5368_v50, %v6135_v27 }
 0x16e   : > { %5379 = vrsqrt.f32 %v788_v36  ;;  %v815_v26 = vmul.f32 %v5370_v54, %v6144_v39  ;;  %v857_v0 = vadd.f32 %v6201_v59, %v835_v52 }
 0x16f   : > { %v868_v57 = vpack.c.bf16 %v856_v56, %v855_v55  ;;  %v836_v58 = vmul.f32 %v6193_v47, %v814_v17 }
 0x170   : > { %v5372_v62 = vpop.eup %5371  ;;  %v837_v27 = vmul.f32 %v6193_v47, %v815_v26 }
 0x171   : > { %v5374_v40 = vpop.eup %5373  ;;  %4762 = vmatmul.mubr.msk.bf16.gmra.mrb[4].mxu0 %vm611_vm1, %v868_v57  ;;  %v858_v1 = vadd.f32 %v6201_v59, %v836_v58  ;;  %v816_v2 = vmul.f32 %v5372_v62, %v6147_v33 }
 0x172   : > { %v817_v3 = vmul.f32 %v5374_v40, %v6156_v51  ;;  %v859_v45 = vadd.f32 %v6201_v59, %v837_v27 }
 0x173   : > { %v869_v4 = vpack.c.bf16 %v858_v1, %v857_v0  ;;  %v838_v39 = vmul.f32 %v6193_v47, %v816_v2 }
 0x174   : > { %v5376_v44 = vpop.eup %5375  ;;  %v839_v9 = vmul.f32 %v6193_v47, %v817_v3 }
 0x175   : > { %v5378_v60 = vpop.eup %5377  ;;  %4765 = vmatprep.mubr.msk.bf16.mxu0 %vm611_vm1, %v869_v4  ;;  %v860_v5 = vadd.f32 %v6201_v59, %v838_v39  ;;  %v818_v8 = vmul.f32 %v5376_v44, %v6159_v37 }
 0x176   : > { %v819_v33 = vmul.f32 %v5378_v60, %v6168_v41  ;;  %v861_v11 = vadd.f32 %v6201_v59, %v839_v9 }
 0x177   : > { %v870_v53 = vpack.c.bf16 %v860_v5, %v859_v45  ;;  %v840_v51 = vmul.f32 %v6193_v47, %v818_v8 }
 0x178   : > { %v5380_v10 = vpop.eup %5379  ;;  %v841_v14 = vmul.f32 %v6193_v47, %v819_v33 }
 0x179   : > { %4766 = vmatmul.mubr.msk.bf16.gmra.mrb[8].mxu0 %vm611_vm1, %v870_v53  ;;  %v862_v12 = vadd.f32 %v6201_v59, %v840_v51  ;;  %v820_v13 = vmul.f32 %v5380_v10, %v6171_v63 }
 0x17a   : > { %v863_v41 = vadd.f32 %v6201_v59, %v841_v14 }
 0x17b   : > { %v871_v15 = vpack.c.bf16 %v862_v12, %v861_v11  ;;  %v842_v37 = vmul.f32 %v6193_v47, %v820_v13 }
 0x17d   : > { %4769 = vmatprep.mubr.msk.bf16.mxu0 %vm611_vm1, %v871_v15  ;;  %v864_v18 = vadd.f32 %v6201_v59, %v842_v37 }
 0x17f   : > { %v872_v19 = vpack.c.bf16 %v864_v18, %v863_v41 }
 0x181   : > { %4770 = vmatmul.mubr.msk.bf16.gmra.mrb[12].mxu0 %vm611_vm1, %v872_v19 }
 0x23c   : > { %v4759_v20 = vpop.f32.mrb[0].mxu0 }
 0x23d   : > { %v950_v61 = vpop.f32.mrb[1].mxu0  ;;  %v1015_v22 = vmul.f32 0.35355338, %v4759_v20 }
 0x23e   : > { %v4760_v21 = vpop.f32.mrb[2].mxu0  ;;  %v1013_v25 = vmul.f32 0.35355338, %v950_v61 }
 0x23f   : > { %v1016_v23 = vmul.f32 0.35355338, %v4760_v21  ;;  %v6256_v63 = vpack.c.bf16 %v4760_v21, %v4759_v20  ;;  %v953_v24 = vpop.f32.mrb[3].mxu0 }
 0x240   : > { %v1014_v6 = vmul.f32 0.35355338, %v953_v24  ;;  %v6258_v47 = vpack.c.bf16 %v953_v24, %v950_v61 }
 0x241   : > { %v6260_v28 = vpack.c.bf16 %v1016_v23, %v1015_v22  ;;  %1055 = vrot.lane.b32.xlu1 %v6256_v63, %s5871_s29 }
 0x242   : > { %v6264_v59 = vpack.c.bf16 %v1014_v6, %v1013_v25  ;;  %1053 = vrot.lane.b32.xlu0 %v6258_v47, %s5871_s29 }
 0x244   : > { %v4763_v29 = vpop.f32.mrb[4].mxu0  ;;  %4789 = vmatprep.mubr.msk.bf16.mxu1 %vm1069_vm2, %v6264_v59 }
 0x245   : > { %v966_v30 = vpop.f32.mrb[5].mxu0  ;;  %v1019_v34 = vmul.f32 0.35355338, %v4763_v29 }
 0x246   : > { %v4764_v31 = vpop.f32.mrb[6].mxu0  ;;  %v1017_v32 = vmul.f32 0.35355338, %v966_v30 }
 0x247   : > { %v1020_v35 = vmul.f32 0.35355338, %v4764_v31  ;;  %v6270_v38 = vpack.c.bf16 %v4764_v31, %v4763_v29  ;;  %v969_v7 = vpop.f32.mrb[7].mxu0 }
 0x248   : > { %v1018_v42 = vmul.f32 0.35355338, %v969_v7  ;;  %v6272_v43 = vpack.c.bf16 %v969_v7, %v966_v30  ;;  %v6355_v30 = vld [vmem:[%s8089_s1 + $0x10] sm:$0xff]  ;;  %v6363_v7 = vld [vmem:[%s8089_s1 + $0x8] sm:$0xff] }
 0x249   : > { %8133 = vst [vmem:[#allocation4_spill] sm:$0xff] %v6270_v38  ;;  %v6274_v16 = vpack.c.bf16 %v1020_v35, %v1019_v34 }
 0x24a   : > { %v6276_v46 = vpack.c.bf16 %v1018_v42, %v1017_v32  ;;  %1057 = vrot.lane.b32.xlu1 %v6272_v43, %s5871_s29  ;;  %v6368_v32 = vld [vmem:[%s8089_s1] sm:$0xff] }
 0x24c   : > { %v4767_v48 = vpop.f32.mrb[8].mxu0 }
 0x24d   : > { %v982_v49 = vpop.f32.mrb[9].mxu0  ;;  %v1023_v36 = vmul.f32 0.35355338, %v4767_v48 }
 0x24e   : > { %1059 = vrot.lane.b32.xlu1 %v6270_v38, %s5871_s29  ;;  %v4768_v50 = vpop.f32.mrb[10].mxu0  ;;  %v1021_v17 = vmul.f32 0.35355338, %v982_v49 }
 0x24f   : > { %v1024_v54 = vmul.f32 0.35355338, %v4768_v50  ;;  %v6282_v55 = vpack.c.bf16 %v4768_v50, %v4767_v48  ;;  %v985_v56 = vpop.f32.mrb[11].mxu0 }
 0x250   : > { %v1022_v52 = vmul.f32 0.35355338, %v985_v56  ;;  %v6284_v26 = vpack.c.bf16 %v985_v56, %v982_v49  ;;  %v6387_v56 = vld [vmem:[%s8089_s1 + $0x38] sm:$0xff] }
 0x251   : > { %8134 = vst [vmem:[#allocation5_spill] sm:$0xff] %v6282_v55  ;;  %v6286_v57 = vpack.c.bf16 %v1024_v54, %v1023_v36  ;;  %v6380_v36 = vld [vmem:[%s8089_s1 + $0x18] sm:$0xff] }
 0x252   : > { %v6288_v58 = vpack.c.bf16 %v1022_v52, %v1021_v17  ;;  %1063 = vrot.lane.b32.xlu1 %v6282_v55, %s5871_s29  ;;  %1061 = vrot.lane.b32.xlu0 %v6284_v26, %s5871_s29 }
 0x254   : > { %v4771_v62 = vpop.f32.mrb[12].mxu0 }
 0x255   : > { %v998_v40 = vpop.f32.mrb[13].mxu0  ;;  %v1027_v1 = vmul.f32 0.35355338, %v4771_v62 }
 0x256   : > { %v4772_v0 = vpop.f32.mrb[14].mxu0  ;;  %v1025_v4 = vmul.f32 0.35355338, %v998_v40 }
 0x257   : > { %v1028_v2 = vmul.f32 0.35355338, %v4772_v0  ;;  %v6294_v27 = vpack.c.bf16 %v4772_v0, %v4771_v62  ;;  %v1001_v3 = vpop.f32.mrb[15].mxu0  ;;  %v6395_v62 = vld [vmem:[%s8089_s1 + $0x30] sm:$0xff] }
 0x258   : > { %v1026_v39 = vmul.f32 0.35355338, %v1001_v3  ;;  %v6296_v44 = vpack.c.bf16 %v1001_v3, %v998_v40 }
 0x259   : > { %v6298_v60 = vpack.c.bf16 %v1028_v2, %v1027_v1  ;;  %1067 = vrot.lane.b32.xlu1 %v6294_v27, %s5871_s29  ;;  %v6404_v2 = vld [vmem:[%s8089_s1 + $0x28] sm:$0xff] }
 0x25a   : > { %v6302_v45 = vpack.c.bf16 %v1026_v39, %v1025_v4  ;;  %1065 = vrot.lane.b32.xlu0 %v6296_v44, %s5871_s29  ;;  %v6413_v4 = vld [vmem:[%s8089_s1 + $0x20] sm:$0xff]  ;;  %s5875_s29 = smov 56  }
 0x25d   : > { %1369 = vrot.lane.b32.xlu1 %v6256_v63, %s5872_s30 }
 0x25e   : > { %1367 = vrot.lane.b32.xlu0 %v6258_v47, %s5872_s30 }
 0x261   : > { %1373 = vrot.lane.b32.xlu1 %v6270_v38, %s5872_s30 }
 0x262   : > { %1371 = vrot.lane.b32.xlu0 %v6272_v43, %s5872_s30 }
 0x265   : > { %1377 = vrot.lane.b32.xlu1 %v6282_v55, %s5872_s30 }
 0x266   : > { %1375 = vrot.lane.b32.xlu0 %v6284_v26, %s5872_s30 }
 0x269   : > { %1381 = vrot.lane.b32.xlu1 %v6294_v27, %s5872_s30 }
 0x26a   : > { %1512 = vrot.lane.b32.xlu0 %v6258_v47, %s5873_s0 }
 0x26d   : > { %1514 = vrot.lane.b32.xlu1 %v6256_v63, %s5873_s0 }
 0x26e   : > { %1379 = vrot.lane.b32.xlu0 %v6296_v44, %s5872_s30  ;;  %s5877_s30 = smov 112  }
 0x2b3   : > { %v1056_v9 = vpop.permute.xlu1 %1055 }
 0x2b4   : > { %v1054_v5 = vpop.permute.xlu0 %1053  ;;  %v1098_v53 = vsel %vm1069_vm2, %v1056_v9, 0 }
 0x2b5   : > { %5133 = vmatprep.subr.msk.bf16.mxu1 %vm1069_vm2, %v1054_v5  ;;  %v1095_v8 = vsel %vm1069_vm2, %v1054_v5, 0 }
 0x2b6   : > { %4774 = vmatpush3.bf16.xpose.msra.mxu1 %v1095_v8  ;;  %v6422_v8 = vld [vmem:[%s8089_s1 + $0x58] sm:$0xff] }
 0x2b7   : > { %5134 = vmatprep.subr.msk.bf16.mxu1 %vm1069_vm2, %v1056_v9 }
 0x2bc   : > { %v1058_v33 = vpop.permute.xlu1 %1057 }
 0x2bd   : > { %v1101_v10 = vsel %vm1069_vm2, %v1058_v33, 0 }
 0x2be   : > { %4776 = vmatpush3.bf16.xpose.msra.mxu1 %v1098_v53  ;;  %v6431_v53 = vld [vmem:[%s8089_s1 + $0x50] sm:$0xff] }
 0x2bf   : > { %5135 = vmatprep.subr.msk.bf16.mxu1 %vm1069_vm2, %v1058_v33 }
 0x2c0   : > { %v1060_v51 = vpop.permute.xlu1 %1059 }
 0x2c1   : > { %v1104_v15 = vsel %vm1069_vm2, %v1060_v51, 0 }
 0x2c4   : > { %v1064_v11 = vpop.permute.xlu1 %1063  ;;  %v1062_v12 = vpop.permute.xlu0 %1061 }
 0x2c5   : > { %v1107_v19 = vsel %vm1069_vm2, %v1062_v12, 0  ;;  %v1110_v21 = vsel %vm1069_vm2, %v1064_v11, 0 }
 0x2c6   : > { %4778 = vmatpush3.bf16.xpose.msra.mxu1 %v1101_v10 }
 0x2c7   : > { %5136 = vmatprep.subr.msk.bf16.mxu1 %vm1069_vm2, %v1060_v51 }
 0x2cb   : > { %v1068_v13 = vpop.permute.xlu1 %1067 }
 0x2cc   : > { %v1066_v14 = vpop.permute.xlu0 %1065  ;;  %v1116_v29 = vsel %vm1069_vm2, %v1068_v13, 0 }
 0x2cd   : > { %v1113_v24 = vsel %vm1069_vm2, %v1066_v14, 0 }
 0x2ce   : > { %4780 = vmatpush3.bf16.xpose.msra.mxu1 %v1104_v15 }
 0x2cf   : > { %5137 = vmatprep.subr.msk.bf16.mxu1 %vm1069_vm2, %v1062_v12  ;;  %v1370_v41 = vpop.permute.xlu1 %1369  ;;  %v6440_v12 = vld [vmem:[%s8089_s1 + $0x48] sm:$0xff] }
 0x2d0   : > { %v1368_v37 = vpop.permute.xlu0 %1367 }
 0x2d1   : > { %4805 = vmatprep.subr.bf16.mxu0 %v1368_v37 }
 0x2d2   : > { %4806 = vmatpush3.bf16.msra.mxu0 %v1368_v37 }
 0x2d3   : > { %4807 = vmatprep.subr.bf16.mxu0 %v1370_v41  ;;  %v1374_v20 = vpop.permute.xlu1 %1373 }
 0x2d4   : > { %v1372_v18 = vpop.permute.xlu0 %1371 }
 0x2d6   : > { %4782 = vmatpush3.bf16.xpose.msra.mxu1 %v1107_v19  ;;  %4808 = vmatpush3.bf16.msra.mxu0 %v1370_v41  ;;  %v6462_v19 = vld [vmem:[%s8089_s1 + $0x70] sm:$0xff] }
 0x2d7   : > { %5138 = vmatprep.subr.msk.bf16.mxu1 %vm1069_vm2, %v1064_v11  ;;  %4809 = vmatprep.subr.bf16.mxu0 %v1372_v18  ;;  %v1378_v23 = vpop.permute.xlu1 %1377  ;;  %8135 = vst [vmem:[#allocation6_spill] sm:$0xff] %v6462_v19 }
 0x2d8   : > { %v1376_v61 = vpop.permute.xlu0 %1375 }
 0x2da   : > { %4810 = vmatpush3.bf16.msra.mxu0 %v1372_v18 }
 0x2db   : > { %4811 = vmatprep.subr.bf16.mxu0 %v1374_v20  ;;  %v1382_v6 = vpop.permute.xlu1 %1381 }
 0x2dc   : > { %v6331_v22 = vpop.permute.xlu0 %1512 }
 0x2de   : > { %4784 = vmatpush3.bf16.xpose.msra.mxu1 %v1110_v21  ;;  %4812 = vmatpush3.bf16.msra.mxu0 %v1374_v20 }
 0x2df   : > { %5139 = vmatprep.subr.msk.bf16.mxu1 %vm1069_vm2, %v1066_v14  ;;  %4813 = vmatprep.subr.bf16.mxu0 %v1376_v61  ;;  %v6449_v14 = vld [vmem:[%s8089_s1 + $0x40] sm:$0xff] }
 0x2e0   : > { %v1380_v25 = vpop.permute.xlu0 %1379 }
 0x2e2   : > { %4814 = vmatpush3.bf16.msra.mxu0 %v1376_v61 }
 0x2e3   : > { %4815 = vmatprep.subr.bf16.mxu0 %v1378_v23 }
 0x2e6   : > { %4786 = vmatpush3.bf16.xpose.msra.mxu1 %v1113_v24  ;;  %4816 = vmatpush3.bf16.msra.mxu0 %v1378_v23  ;;  %v6471_v23 = vld [vmem:[%s8089_s1 + $0x60] sm:$0xff] }
 0x2e7   : > { %5140 = vmatprep.subr.msk.bf16.mxu1 %vm1069_vm2, %v1068_v13  ;;  %4817 = vmatprep.subr.bf16.mxu0 %v1380_v25  ;;  %8136 = vst [vmem:[#allocation7_spill] sm:$0xff] %v6471_v23 }
 0x2ea   : > { %4818 = vmatpush3.bf16.msra.mxu0 %v1380_v25  ;;  %v6485_v25 = vld [vmem:[%s8089_s1 + $0x78] sm:$0xff] }
 0x2eb   : > { %4819 = vmatprep.subr.bf16.mxu0 %v1382_v6  ;;  %8137 = vst [vmem:[#allocation8_spill] sm:$0xff] %v6485_v25 }
 0x2ee   : > { %4788 = vmatpush3.bf16.xpose.msra.mxu1 %v1116_v29  ;;  %4820 = vmatpush3.bf16.msra.mxu0 %v1382_v6  ;;  %v6493_v29 = vld [vmem:[%s8089_s1 + $0x68] sm:$0xff] }
 0x2ef   : > { %5141 = vmatprep.subr.msk.bf16.mxu0 %vm1069_vm2, %v6331_v22  ;;  %8138 = vst [vmem:[#allocation9_spill] sm:$0xff] %v6493_v29 }
 0x2f5   : > { %4790 = vmatmul.mubr.msk.bf16.vlgmr.msra.gmra.mrb[0].mxu1 %vm1069_vm2, %v6260_v28 }
 0x2f6   : > { %4793 = vmatprep.mubr.msk.bf16.mxu1 %vm1069_vm2, %v6276_v46 }
 0x2fd   : > { %4794 = vmatmul.mubr.msk.bf16.gmra.mrb[4].mxu1 %vm1069_vm2, %v6274_v16 }
 0x2fe   : > { %4797 = vmatprep.mubr.msk.bf16.mxu1 %vm1069_vm2, %v6288_v58 }
 0x305   : > { %4798 = vmatmul.mubr.msk.bf16.gmra.mrb[8].mxu1 %vm1069_vm2, %v6286_v57 }
 0x306   : > { %4801 = vmatprep.mubr.msk.bf16.mxu1 %vm1069_vm2, %v6302_v45 }
 0x30d   : > { %4802 = vmatmul.mubr.msk.bf16.gmra.mrb[12].mxu1 %vm1069_vm2, %v6298_v60 }
 0x3c8   : > { %v4791_v31 = vpop.f32.mrb[0].mxu1 }
 0x3c9   : > { %v6358_v34 = vadd.f32 %v4791_v31, %v6355_v30  ;;  %v1152_v35 = vpop.f32.mrb[1].mxu1 }
 0x3ca   : > { %v4792_v42 = vpop.f32.mrb[2].mxu1  ;;  %v6375_v50 = vadd.f32 %v1152_v35, %v6368_v32  ;;  %v6500_v35 = vpop.permute.xlu1 %1514 }
 0x3cb   : > { %1219 = vmax.xlane.f32.xlu0 %v6358_v34  ;;  %v1155_v48 = vpop.f32.mrb[3].mxu1  ;;  %v6390_v17 = vadd.f32 %v4792_v42, %v6380_v36 }
 0x3cc   : > { %v6372_v49 = vadd.f32 %v1155_v48, %v6363_v7 }
 0x3ce   : > { %1217 = vmax.xlane.f32.xlu1 %v6372_v49 }
 0x3cf   : > { %1215 = vmax.xlane.f32.xlu0 %v6375_v50 }
 0x3d0   : > { %v4795_v54 = vpop.f32.mrb[4].mxu1 }
 0x3d1   : > { %v1168_v52 = vpop.f32.mrb[5].mxu1  ;;  %v6407_v3 = vadd.f32 %v4795_v54, %v6395_v62 }
 0x3d2   : > { %v4796_v40 = vpop.f32.mrb[6].mxu1  ;;  %v6425_v9 = vadd.f32 %v1168_v52, %v6413_v4 }
 0x3d3   : > { %v6398_v0 = vadd.f32 %v4796_v40, %v6387_v56  ;;  %v1171_v1 = vpop.f32.mrb[7].mxu1  ;;  %1221 = vmax.xlane.f32.xlu0 %v6390_v17 }
 0x3d4   : > { %v6416_v39 = vadd.f32 %v1171_v1, %v6404_v2 }
 0x3d5   : > { %1229 = vmax.xlane.f32.xlu1 %v6398_v0 }
 0x3d7   : > { %1227 = vmax.xlane.f32.xlu0 %v6407_v3 }
 0x3d8   : > { %v4799_v5 = vpop.f32.mrb[8].mxu1 }
 0x3d9   : > { %v1184_v33 = vpop.f32.mrb[9].mxu1  ;;  %1225 = vmax.xlane.f32.xlu1 %v6416_v39  ;;  %v6443_v13 = vadd.f32 %v4799_v5, %v6431_v53 }
 0x3da   : > { %v4800_v51 = vpop.f32.mrb[10].mxu1  ;;  %v6456_v41 = vadd.f32 %v1184_v33, %v6449_v14 }
 0x3db   : > { %v6434_v10 = vadd.f32 %v4800_v51, %v6422_v8  ;;  %v1187_v11 = vpop.f32.mrb[11].mxu1  ;;  %1223 = vmax.xlane.f32.xlu0 %v6425_v9 }
 0x3dc   : > { %v6452_v15 = vadd.f32 %v1187_v11, %v6440_v12 }
 0x3dd   : > { %1237 = vmax.xlane.f32.xlu1 %v6434_v10 }
 0x3df   : > { %1235 = vmax.xlane.f32.xlu0 %v6443_v13 }
 0x3e0   : > { %v4803_v37 = vpop.f32.mrb[12].mxu1 }
 0x3e1   : > { %v1200_v18 = vpop.f32.mrb[13].mxu1  ;;  %1233 = vmax.xlane.f32.xlu1 %v6452_v15  ;;  %v6466_v21 = vadd.f32 %v4803_v37, %v6462_v19 }
 0x3e2   : > { %v4804_v20 = vpop.f32.mrb[14].mxu1  ;;  %v6475_v24 = vadd.f32 %v1200_v18, %v6471_v23 }
 0x3e3   : > { %v1203_v61 = vpop.f32.mrb[15].mxu1  ;;  %1231 = vmax.xlane.f32.xlu0 %v6456_v41  ;;  %v6488_v6 = vadd.f32 %v4804_v20, %v6485_v25 }
 0x3e4   : > { %v6497_v31 = vadd.f32 %v1203_v61, %v6493_v29 }
 0x3e7   : > { %1243 = vmax.xlane.f32.xlu0 %v6466_v21 }
 0x3eb   : > { %1239 = vmax.xlane.f32.xlu0 %v6475_v24 }
 0x3f2   : > { %1518 = vrot.lane.b32.xlu1 %v6270_v38, %s5873_s0 }
 0x401   : > { %1516 = vrot.lane.b32.xlu0 %v6272_v43, %s5873_s0 }
 0x416   : > { %1245 = vmax.xlane.f32.xlu1 %v6488_v6 }
 0x41a   : > { %1241 = vmax.xlane.f32.xlu1 %v6497_v31 }
 0x458   : > { %v1220_v42 = vpop.xlane.xlu0 %1219 }
 0x459   : > { %v1249_v48 = vsub.f32 %v6358_v34, %v1220_v42 }
 0x45b   : > { %v1267_v54 = vmul.f32 1.442695, %v1249_v48  ;;  %v1218_v52 = vpop.xlane.xlu1 %1217 }
 0x45c   : > { %v1248_v40 = vsub.f32 %v6372_v49, %v1218_v52  ;;  %v1216_v1 = vpop.xlane.xlu0 %1215 }
 0x45d   : > { %5381 = vpow2.f32 %v1267_v54  ;;  %v1247_v5 = vsub.f32 %v6375_v50, %v1216_v1 }
 0x45e   : > { %v1265_v33 = vmul.f32 1.442695, %v1248_v40 }
 0x45f   : > { %v1263_v51 = vmul.f32 1.442695, %v1247_v5 }
 0x460   : > { %5383 = vpow2.f32 %v1265_v33  ;;  %v1222_v11 = vpop.xlane.xlu0 %1221 }
 0x461   : > { %5385 = vpow2.f32 %v1263_v51  ;;  %v1250_v37 = vsub.f32 %v6390_v17, %v1222_v11 }
 0x462   : > { %v1230_v42 = vpop.xlane.xlu1 %1229 }
 0x463   : > { %v1269_v18 = vmul.f32 1.442695, %v1250_v37  ;;  %v1254_v37 = vsub.f32 %v6398_v0, %v1230_v42 }
 0x464   : > { %v1228_v61 = vpop.xlane.xlu0 %1227 }
 0x465   : > { %5387 = vpow2.f32 %v1269_v18  ;;  %v1253_v54 = vsub.f32 %v6407_v3, %v1228_v61  ;;  %v1277_v23 = vmul.f32 1.442695, %v1254_v37 }
 0x466   : > { %v1226_v52 = vpop.xlane.xlu1 %1225 }
 0x467   : > { %v6506_v20 = vpop.eup %5381  ;;  %v1275_v1 = vmul.f32 1.442695, %v1253_v54  ;;  %v1252_v33 = vsub.f32 %v6416_v39, %v1226_v52 }
 0x468   : > { %1299 = vadd.xlane.f32.xlu1 %v6506_v20  ;;  %v1224_v17 = vpop.xlane.xlu0 %1223 }
 0x469   : > { %v1251_v5 = vsub.f32 %v6425_v9, %v1224_v17  ;;  %5389 = vpow2.f32 %v1275_v1  ;;  %v1273_v29 = vmul.f32 1.442695, %v1252_v33 }
 0x46a   : > { %v6509_v34 = vpop.eup %5383  ;;  %v1238_v51 = vpop.xlane.xlu1 %1237 }
 0x46b   : > { %v6511_v49 = vpop.eup %5385  ;;  %1297 = vadd.xlane.f32.xlu0 %v6509_v34  ;;  %v1271_v18 = vmul.f32 1.442695, %v1251_v5  ;;  %v1258_v0 = vsub.f32 %v6434_v10, %v1238_v51 }
 0x46c   : > { %1295 = vadd.xlane.f32.xlu1 %v6511_v49  ;;  %v1236_v48 = vpop.xlane.xlu0 %1235 }
 0x46d   : > { %v1257_v25 = vsub.f32 %v6443_v13, %v1236_v48  ;;  %5391 = vpow2.f32 %v1271_v18 }
 0x46e   : > { %v1234_v19 = vpop.xlane.xlu1 %1233  ;;  %5393 = vpow2.f32 %v1273_v29 }
 0x46f   : > { %v6515_v50 = vpop.eup %5387  ;;  %v1283_v61 = vmul.f32 1.442695, %v1257_v25  ;;  %5395 = vpow2.f32 %v1277_v23  ;;  %v1285_v25 = vmul.f32 1.442695, %v1258_v0 }
 0x470   : > { %1301 = vadd.xlane.f32.xlu1 %v6515_v50  ;;  %v1232_v40 = vpop.xlane.xlu0 %1231 }
 0x471   : > { %v1255_v9 = vsub.f32 %v6456_v41, %v1232_v40  ;;  %5397 = vpow2.f32 %v1283_v61  ;;  %v1256_v41 = vsub.f32 %v6452_v15, %v1234_v19 }
 0x472   : > { %v6533_v13 = vpop.permute.xlu1 %1518 }
 0x473   : > { %v1279_v42 = vmul.f32 1.442695, %v1255_v9  ;;  %v6531_v52 = vpop.eup %5389  ;;  %v1281_v48 = vmul.f32 1.442695, %v1256_v41 }
 0x474   : > { %v1244_v11 = vpop.xlane.xlu0 %1243 }
 0x475   : > { %v1261_v3 = vsub.f32 %v6466_v21, %v1244_v11 }
 0x477   : > { %v1291_v39 = vmul.f32 1.442695, %v1261_v3  ;;  %v6537_v23 = vpop.eup %5391 }
 0x478   : > { %v1240_v17 = vpop.xlane.xlu0 %1239 }
 0x479   : > { %v1259_v54 = vsub.f32 %v6475_v24, %v1240_v17  ;;  %5399 = vpow2.f32 %v1291_v39  ;;  %v6539_v24 = vpop.eup %5393 }
 0x47a   : > { %5401 = vpow2.f32 %v1279_v42  ;;  %v6544_v1 = vpop.eup %5395 }
 0x47b   : > { %v1287_v21 = vmul.f32 1.442695, %v1259_v54  ;;  %v6546_v15 = vpop.eup %5397 }
 0x47c   : > { %v1517_v61 = vpop.permute.xlu0 %1516 }
 0x47d   : > { %5403 = vpow2.f32 %v1287_v21 }
 0x47e   : > { %5405 = vpow2.f32 %v1285_v25 }
 0x481   : > { %1520 = vrot.lane.b32.xlu0 %v6284_v26, %s5873_s0  ;;  %1522 = vrot.lane.b32.xlu1 %v6282_v55, %s5873_s0 }
 0x483   : > { %v6551_v33 = vpop.eup %5399 }
 0x484   : > { %v6553_v51 = vpop.eup %5401 }
 0x487   : > { %v6557_v11 = vpop.eup %5403 }
 0x488   : > { %v6559_v37 = vpop.eup %5405 }
 0x4a0   : > { %1307 = vadd.xlane.f32.xlu0 %v6531_v52 }
 0x4a3   : > { %v1246_v29 = vpop.xlane.xlu1 %1245 }
 0x4a4   : > { %v1262_v10 = vsub.f32 %v6488_v6, %v1246_v29  ;;  %1303 = vadd.xlane.f32.xlu0 %v6537_v23 }
 0x4a5   : > { %1305 = vadd.xlane.f32.xlu1 %v6539_v24 }
 0x4a6   : > { %v1293_v40 = vmul.f32 1.442695, %v1262_v10 }
 0x4a7   : > { %v1242_v5 = vpop.xlane.xlu1 %1241 }
 0x4a8   : > { %5407 = vpow2.f32 %v1293_v40  ;;  %v1260_v19 = vsub.f32 %v6497_v31, %v1242_v5  ;;  %1309 = vadd.xlane.f32.xlu0 %v6544_v1 }
 0x4a9   : > { %1315 = vadd.xlane.f32.xlu1 %v6546_v15  ;;  %5409 = vpow2.f32 %v1281_v48 }
 0x4aa   : > { %v1289_v6 = vmul.f32 1.442695, %v1260_v19  ;;  %v1553_v19 = vsel %vm1069_vm2, %v6331_v22, 0 }
 0x4ac   : > { %1323 = vadd.xlane.f32.xlu0 %v6551_v33  ;;  %5411 = vpow2.f32 %v1289_v6 }
 0x4ad   : > { %1311 = vadd.xlane.f32.xlu1 %v6553_v51 }
 0x4b0   : > { %1319 = vadd.xlane.f32.xlu0 %v6557_v11 }
 0x4b1   : > { %1317 = vadd.xlane.f32.xlu1 %v6559_v37 }
 0x4b2   : > { %v6563_v31 = vpop.eup %5407 }
 0x4b3   : > { %v6565_v18 = vpop.eup %5409 }
 0x4b4   : > { %1325 = vadd.xlane.f32.xlu0 %v6563_v31 }
 0x4b5   : > { %1313 = vadd.xlane.f32.xlu1 %v6565_v18 }
 0x4b6   : > { %v6569_v3 = vpop.eup %5411 }
 0x4b9   : > { %1321 = vadd.xlane.f32.xlu1 %v6569_v3 }
 0x4ca   : > { %1526 = vrot.lane.b32.xlu1 %v6294_v27, %s5873_s0  ;;  %1524 = vrot.lane.b32.xlu0 %v6296_v44, %s5873_s0  ;;  %s5876_s0 = smov 80  }
 0x4ce   : > { %1498 = vrot.lane.b32.xlu1 %v6260_v28, %s5874_s28  ;;  %1496 = vrot.lane.b32.xlu0 %v6264_v59, %s5874_s28 }
 0x4d2   : > { %1502 = vrot.lane.b32.xlu1 %v6274_v16, %s5874_s28  ;;  %1500 = vrot.lane.b32.xlu0 %v6276_v46, %s5874_s28 }
 0x4d6   : > { %1506 = vrot.lane.b32.xlu1 %v6286_v57, %s5874_s28  ;;  %1504 = vrot.lane.b32.xlu0 %v6288_v58, %s5874_s28 }
 0x4da   : > { %1510 = vrot.lane.b32.xlu1 %v6298_v60, %s5874_s28  ;;  %1508 = vrot.lane.b32.xlu0 %v6302_v45, %s5874_s28  ;;  %s3097_s28 = scalar_lea.vmem %s8093_s5, %s6182_s22 }
 0x4de   : > { %1827 = vrot.lane.b32.xlu1 %v6256_v63, %s5875_s29  ;;  %1825 = vrot.lane.b32.xlu0 %v6258_v47, %s5875_s29 }
 0x4e2   : > { %1831 = vrot.lane.b32.xlu1 %v6270_v38, %s5875_s29  ;;  %1829 = vrot.lane.b32.xlu0 %v6272_v43, %s5875_s29 }
 0x4e6   : > { %1835 = vrot.lane.b32.xlu1 %v6282_v55, %s5875_s29  ;;  %1833 = vrot.lane.b32.xlu0 %v6284_v26, %s5875_s29 }
 0x4ea   : > { %1839 = vrot.lane.b32.xlu1 %v6294_v27, %s5875_s29  ;;  %1837 = vrot.lane.b32.xlu0 %v6296_v44, %s5875_s29  ;;  %s5884_s29 = smov 24  }
 0x4ee   : > { %1964 = vrot.lane.b32.xlu1 %v6256_v63, %s5876_s0  ;;  %1962 = vrot.lane.b32.xlu0 %v6258_v47, %s5876_s0 }
 0x4f5   : > { %v1300_v9 = vpop.xlane.xlu1 %1299 }
 0x4f8   : > { %v1298_v17 = vpop.xlane.xlu0 %1297 }
 0x4f9   : > { %5413 = vrcp.f32 %v1298_v17  ;;  %v1296_v39 = vpop.xlane.xlu1 %1295 }
 0x4fa   : > { %5415 = vrcp.f32 %v1296_v39 }
 0x4fb   : > { %5417 = vrcp.f32 %v1300_v9 }
 0x4fc   : > { %v1521_v22 = vpop.permute.xlu0 %1520 }
 0x4fd   : > { %v1302_v54 = vpop.xlane.xlu1 %1301 }
 0x4fe   : > { %5419 = vrcp.f32 %v1302_v54 }
 0x503   : > { %v5414_v0 = vpop.eup %5413 }
 0x504   : > { %v5416_v42 = vpop.eup %5415  ;;  %v1330_v21 = vmul.f32 %v5414_v0, %v6509_v34  ;;  %v1556_v34 = vsel %vm1069_vm2, %v6500_v35, 0 }
 0x505   : > { %v1328_v25 = vmul.f32 %v5416_v42, %v6511_v49  ;;  %v5418_v41 = vpop.eup %5417  ;;  %v1562_v49 = vsel %vm1069_vm2, %v6533_v13, 0 }
 0x506   : > { %v1332_v48 = vmul.f32 %v5418_v41, %v6506_v20  ;;  %v1559_v20 = vsel %vm1069_vm2, %v1517_v61, 0 }
 0x507   : > { %v1359_v29 = vpack.c.bf16 %v1330_v21, %v1328_v25 }
 0x508   : > { %v5420_v10 = vpop.eup %5419 }
 0x509   : > { %v1334_v40 = vmul.f32 %v5420_v10, %v6515_v50  ;;  %4821 = vmatprep.mubr.bf16.mxu0 %v1359_v29  ;;  %v1565_v50 = vsel %vm1069_vm2, %v1521_v22, 0 }
 0x50b   : > { %v1360_v5 = vpack.c.bf16 %v1334_v40, %v1332_v48 }
 0x50d   : > { %4822 = vmatmul.mubr.bf16.vlgmr.msra.gmra.mrb[16].mxu0 %v1360_v5 }
 0x50e   : > { %4838 = vmatpush3.bf16.xpose.msra.mxu0 %v1553_v19 }
 0x50f   : > { %5142 = vmatprep.subr.msk.bf16.mxu0 %vm1069_vm2, %v6500_v35  ;;  %v1523_v35 = vpop.permute.xlu1 %1522 }
 0x510   : > { %v1568_v17 = vsel %vm1069_vm2, %v1523_v35, 0 }
 0x516   : > { %4840 = vmatpush3.bf16.xpose.msra.mxu0 %v1556_v34 }
 0x517   : > { %5143 = vmatprep.subr.msk.bf16.mxu0 %vm1069_vm2, %v1517_v61 }
 0x51e   : > { %4842 = vmatpush3.bf16.xpose.msra.mxu0 %v1559_v20 }
 0x51f   : > { %5144 = vmatprep.subr.msk.bf16.mxu0 %vm1069_vm2, %v6533_v13 }
 0x526   : > { %4844 = vmatpush3.bf16.xpose.msra.mxu0 %v1562_v49 }
 0x527   : > { %5145 = vmatprep.subr.msk.bf16.mxu0 %vm1069_vm2, %v1521_v22 }
 0x52d   : > { %v1308_v6 = vpop.xlane.xlu0 %1307 }
 0x52e   : > { %4846 = vmatpush3.bf16.xpose.msra.mxu0 %v1565_v50 }
 0x52f   : > { %5146 = vmatprep.subr.msk.bf16.mxu0 %vm1069_vm2, %v1523_v35 }
 0x531   : > { %v1304_v9 = vpop.xlane.xlu0 %1303 }
 0x532   : > { %5421 = vrcp.f32 %v1304_v9  ;;  %v1306_v61 = vpop.xlane.xlu1 %1305 }
 0x533   : > { %5423 = vrcp.f32 %v1306_v61 }
 0x534   : > { %5425 = vrcp.f32 %v1308_v6 }
 0x535   : > { %v1310_v39 = vpop.xlane.xlu0 %1309 }
 0x536   : > { %4848 = vmatpush3.bf16.xpose.msra.mxu0 %v1568_v17  ;;  %5427 = vrcp.f32 %v1310_v39  ;;  %v1316_v13 = vpop.xlane.xlu1 %1315 }
 0x539   : > { %v1324_v54 = vpop.xlane.xlu0 %1323 }
 0x53a   : > { %v1312_v0 = vpop.xlane.xlu1 %1311 }
 0x53c   : > { %v5422_v42 = vpop.eup %5421 }
 0x53d   : > { %v5424_v21 = vpop.eup %5423  ;;  %v1320_v25 = vpop.xlane.xlu0 %1319  ;;  %v1336_v41 = vmul.f32 %v5422_v42, %v6537_v23 }
 0x53e   : > { %v5426_v29 = vpop.eup %5425  ;;  %v1318_v10 = vpop.xlane.xlu1 %1317  ;;  %v1338_v48 = vmul.f32 %v5424_v21, %v6539_v24 }
 0x53f   : > { %5429 = vrcp.f32 %v1318_v10  ;;  %v1340_v34 = vmul.f32 %v5426_v29, %v6531_v52 }
 0x540   : > { %v5428_v40 = vpop.eup %5427  ;;  %v1361_v5 = vpack.c.bf16 %v1338_v48, %v1336_v41  ;;  %5431 = vrcp.f32 %v1312_v0 }
 0x541   : > { %v1326_v19 = vpop.xlane.xlu0 %1325  ;;  %v1342_v20 = vmul.f32 %v5428_v40, %v6544_v1  ;;  %5433 = vrcp.f32 %v1316_v13 }
 0x542   : > { %v1314_v49 = vpop.xlane.xlu1 %1313  ;;  %4825 = vmatprep.mubr.bf16.mxu0 %v1361_v5 }
 0x543   : > { %5435 = vrcp.f32 %v1314_v49  ;;  %v1362_v22 = vpack.c.bf16 %v1342_v20, %v1340_v34 }
 0x544   : > { %5437 = vrcp.f32 %v1320_v25 }
 0x545   : > { %4826 = vmatmul.mubr.bf16.gmra.mrb[20].mxu0 %v1362_v22  ;;  %v1525_v23 = vpop.permute.xlu0 %1524 }
 0x546   : > { %v1322_v50 = vpop.xlane.xlu1 %1321  ;;  %5147 = vmatprep.subr.msk.bf16.mxu0 %vm1069_vm2, %v1525_v23  ;;  %v1571_v24 = vsel %vm1069_vm2, %v1525_v23, 0 }
 0x547   : > { %5439 = vrcp.f32 %v1322_v50  ;;  %4850 = vmatpush3.bf16.xpose.msra.mxu0 %v1571_v24 }
 0x548   : > { %5441 = vrcp.f32 %v1326_v19 }
 0x549   : > { %v1497_v6 = vpop.permute.xlu0 %1496  ;;  %v5430_v52 = vpop.eup %5429  ;;  %5443 = vrcp.f32 %v1324_v54 }
 0x54a   : > { %v1527_v1 = vpop.permute.xlu1 %1526  ;;  %v5432_v35 = vpop.eup %5431  ;;  %v1350_v39 = vmul.f32 %v5430_v52, %v6559_v37 }
 0x54b   : > { %5148 = vmatprep.subr.msk.bf16.mxu0 %vm1069_vm2, %v1527_v1  ;;  %v5434_v9 = vpop.eup %5433  ;;  %v1574_v0 = vsel %vm1069_vm2, %v1527_v1, 0  ;;  %v1344_v42 = vmul.f32 %v5432_v35, %v6553_v51 }
 0x54c   : > { %v1348_v54 = vmul.f32 %v5434_v9, %v6546_v15 }
 0x54d   : > { %v5436_v61 = vpop.eup %5435  ;;  %v1501_v17 = vpop.permute.xlu0 %1500 }
 0x54e   : > { %v1499_v13 = vpop.permute.xlu1 %1498  ;;  %v1346_v21 = vmul.f32 %v5436_v61, %v6565_v18  ;;  %v5438_v25 = vpop.eup %5437  ;;  %v1364_v48 = vpack.c.bf16 %v1350_v39, %v1348_v54 }
 0x54f   : > { %4852 = vmatpush3.bf16.xpose.msra.mxu0 %v1574_v0  ;;  %v1352_v37 = vmul.f32 %v5438_v25, %v6557_v11 }
 0x550   : > { %v1363_v41 = vpack.c.bf16 %v1346_v21, %v1344_v42 }
 0x551   : > { %v5440_v29 = vpop.eup %5439  ;;  %v1505_v10 = vpop.permute.xlu0 %1504 }
 0x552   : > { %v5442_v40 = vpop.eup %5441  ;;  %v1503_v5 = vpop.permute.xlu1 %1502  ;;  %4829 = vmatprep.mubr.bf16.mxu0 %v1363_v41  ;;  %v1354_v19 = vmul.f32 %v5440_v29, %v6569_v3 }
 0x553   : > { %4830 = vmatmul.mubr.bf16.gmra.mrb[24].mxu0 %v1364_v48  ;;  %v5444_v34 = vpop.eup %5443  ;;  %v1358_v18 = vmul.f32 %v5442_v40, %v6563_v31 }
 0x554   : > { %v1365_v51 = vpack.c.bf16 %v1354_v19, %v1352_v37  ;;  %v1356_v15 = vmul.f32 %v5444_v34, %v6551_v33 }
 0x555   : > { %v1509_v20 = vpop.permute.xlu0 %1508 }
 0x556   : > { %v1507_v49 = vpop.permute.xlu1 %1506  ;;  %4833 = vmatprep.mubr.bf16.mxu0 %v1365_v51  ;;  %v1366_v23 = vpack.c.bf16 %v1358_v18, %v1356_v15 }
 0x559   : > { %v1826_v22 = vpop.permute.xlu0 %1825 }
 0x55a   : > { %v1511_v50 = vpop.permute.xlu1 %1510  ;;  %4869 = vmatprep.subr.bf16.mxu1 %v1826_v22 }
 0x55b   : > { %4834 = vmatmul.mubr.bf16.gmra.mrb[28].mxu0 %v1366_v23  ;;  %4870 = vmatpush3.bf16.msra.mxu1 %v1826_v22 }
 0x55c   : > { %4853 = vmatprep.mubr.msk.bf16.mxu0 %vm1069_vm2, %v1497_v6 }
 0x55d   : > { %v1830_v3 = vpop.permute.xlu0 %1829 }
 0x55e   : > { %v1828_v11 = vpop.permute.xlu1 %1827 }
 0x55f   : > { %4871 = vmatprep.subr.bf16.mxu1 %v1828_v11 }
 0x560   : > { %4872 = vmatpush3.bf16.msra.mxu1 %v1828_v11 }
 0x561   : > { %4873 = vmatprep.subr.bf16.mxu1 %v1830_v3  ;;  %v1834_v33 = vpop.permute.xlu0 %1833 }
 0x562   : > { %v1832_v31 = vpop.permute.xlu1 %1831 }
 0x563   : > { %4854 = vmatmul.mubr.msk.bf16.vlgmr.msra.gmra.mrb[32].mxu0 %vm1069_vm2, %v1499_v13 }
 0x564   : > { %4857 = vmatprep.mubr.msk.bf16.mxu0 %vm1069_vm2, %v1501_v17  ;;  %4874 = vmatpush3.bf16.msra.mxu1 %v1830_v3 }
 0x565   : > { %4875 = vmatprep.subr.bf16.mxu1 %v1832_v31  ;;  %v1838_v6 = vpop.permute.xlu0 %1837 }
 0x566   : > { %v1836_v24 = vpop.permute.xlu1 %1835 }
 0x568   : > { %4876 = vmatpush3.bf16.msra.mxu1 %v1832_v31 }
 0x569   : > { %4877 = vmatprep.subr.bf16.mxu1 %v1834_v33  ;;  %v6639_v1 = vpop.permute.xlu0 %1962 }
 0x56a   : > { %v1840_v52 = vpop.permute.xlu1 %1839 }
 0x56b   : > { %4858 = vmatmul.mubr.msk.bf16.gmra.mrb[36].mxu0 %vm1069_vm2, %v1503_v5 }
 0x56c   : > { %4861 = vmatprep.mubr.msk.bf16.mxu0 %vm1069_vm2, %v1505_v10  ;;  %4878 = vmatpush3.bf16.msra.mxu1 %v1834_v33 }
 0x56d   : > { %4879 = vmatprep.subr.bf16.mxu1 %v1836_v24 }
 0x570   : > { %4880 = vmatpush3.bf16.msra.mxu1 %v1836_v24 }
 0x571   : > { %4881 = vmatprep.subr.bf16.mxu1 %v1838_v6 }
 0x573   : > { %4862 = vmatmul.mubr.msk.bf16.gmra.mrb[40].mxu0 %vm1069_vm2, %v1507_v49 }
 0x574   : > { %4865 = vmatprep.mubr.msk.bf16.mxu0 %vm1069_vm2, %v1509_v20  ;;  %4882 = vmatpush3.bf16.msra.mxu1 %v1838_v6 }
 0x575   : > { %4883 = vmatprep.subr.bf16.mxu1 %v1840_v52 }
 0x578   : > { %4884 = vmatpush3.bf16.msra.mxu1 %v1840_v52 }
 0x579   : > { %5149 = vmatprep.subr.msk.bf16.mxu1 %vm1069_vm2, %v6639_v1 }
 0x57b   : > { %4866 = vmatmul.mubr.msk.bf16.gmra.mrb[44].mxu0 %vm1069_vm2, %v1511_v50 }
 0x5e0   : > { %v6644_v35 = vpop.f32.mrb[16].mxu0 }
 0x5e1   : > { %8139 = vst [vmem:[#allocation10_spill] sm:$0xff] %v6644_v35  ;;  %v6646_v9 = vpop.f32.mrb[17].mxu0 }
 0x5e2   : > { %8140 = vst [vmem:[#allocation11_spill] sm:$0xff] %v6646_v9  ;;  %v6648_v61 = vpop.f32.mrb[18].mxu0 }
 0x5e3   : > { %8141 = vst [vmem:[#allocation12_spill] sm:$0xff] %v6648_v61  ;;  %v6650_v17 = vpop.f32.mrb[19].mxu0 }
 0x5e4   : > { %8142 = vst [vmem:[#allocation13_spill] sm:$0xff] %v6650_v17 }
 0x618   : > { %v6652_v39 = vpop.f32.mrb[20].mxu0 }
 0x619   : > { %8143 = vst [vmem:[#allocation14_spill] sm:$0xff] %v6652_v39  ;;  %v6654_v13 = vpop.f32.mrb[21].mxu0  ;;  %v7021_v39 = vld [vmem:[%s8089_s1 + $0x40] sm:$0xff] }
 0x61a   : > { %8144 = vst [vmem:[#allocation15_spill] sm:$0xff] %v6654_v13  ;;  %v6656_v0 = vpop.f32.mrb[22].mxu0 }
 0x61b   : > { %8145 = vst [vmem:[#allocation16_spill] sm:$0xff] %v6656_v0  ;;  %v6658_v42 = vpop.f32.mrb[23].mxu0 }
 0x61c   : > { %8146 = vst [vmem:[#allocation17_spill] sm:$0xff] %v6658_v42  ;;  %v7012_v42 = vld [vmem:[%s8089_s1 + $0x48] sm:$0xff] }
 0x626   : > { %v6660_v21 = vpop.f32.mrb[24].mxu0 }
 0x627   : > { %8147 = vst [vmem:[#allocation18_spill] sm:$0xff] %v6660_v21  ;;  %v6662_v25 = vpop.f32.mrb[25].mxu0 }
 0x628   : > { %8148 = vst [vmem:[#allocation19_spill] sm:$0xff] %v6662_v25  ;;  %v6664_v54 = vpop.f32.mrb[26].mxu0 }
 0x629   : > { %8149 = vst [vmem:[#allocation20_spill] sm:$0xff] %v6664_v54  ;;  %v6666_v41 = vpop.f32.mrb[27].mxu0 }
 0x62a   : > { %8150 = vst [vmem:[#allocation21_spill] sm:$0xff] %v6666_v41 }
 0x62e   : > { %v6668_v29 = vpop.f32.mrb[28].mxu0 }
 0x62f   : > { %8151 = vst [vmem:[#allocation22_spill] sm:$0xff] %v6668_v29  ;;  %v6670_v10 = vpop.f32.mrb[29].mxu0 }
 0x630   : > { %8152 = vst [vmem:[#allocation23_spill] sm:$0xff] %v6670_v10  ;;  %v6672_v48 = vpop.f32.mrb[30].mxu0 }
 0x631   : > { %8153 = vst [vmem:[#allocation24_spill] sm:$0xff] %v6672_v48  ;;  %v6674_v40 = vpop.f32.mrb[31].mxu0 }
 0x632   : > { %8154 = vst [vmem:[#allocation25_spill] sm:$0xff] %v6674_v40 }
 0x636   : > { %v4855_v5 = vpop.f32.mrb[32].mxu0 }
 0x637   : > { %v1619_v37 = vadd.f32 %v4855_v5, %v6355_v30  ;;  %v1610_v19 = vpop.f32.mrb[33].mxu0 }
 0x638   : > { %v4856_v34 = vpop.f32.mrb[34].mxu0  ;;  %v1611_v18 = vadd.f32 %v1610_v19, %v6368_v32 }
 0x639   : > { %1677 = vmax.xlane.f32.xlu0 %v1619_v37  ;;  %v1613_v51 = vpop.f32.mrb[35].mxu0  ;;  %v1622_v15 = vadd.f32 %v4856_v34, %v6380_v36 }
 0x63a   : > { %v1614_v20 = vadd.f32 %v1613_v51, %v6363_v7  ;;  %v8158_v51 = vld [vmem:[#allocation9_spill] sm:$0xff] }
 0x63c   : > { %1675 = vmax.xlane.f32.xlu1 %v1614_v20 }
 0x63d   : > { %1673 = vmax.xlane.f32.xlu0 %v1611_v18 }
 0x63e   : > { %v4859_v49 = vpop.f32.mrb[36].mxu0 }
 0x63f   : > { %v1626_v22 = vpop.f32.mrb[37].mxu0  ;;  %v6684_v11 = vadd.f32 %v4859_v49, %v6395_v62 }
 0x640   : > { %v4860_v23 = vpop.f32.mrb[38].mxu0  ;;  %v6692_v36 = vadd.f32 %v1626_v22, %v6413_v4  ;;  %v6732_v22 = vpop.permute.xlu1 %1964 }
 0x641   : > { %v6681_v50 = vadd.f32 %v4860_v23, %v6387_v56  ;;  %1679 = vmax.xlane.f32.xlu0 %v1622_v15  ;;  %v1629_v30 = vpop.f32.mrb[39].mxu0 }
 0x642   : > { %v6688_v7 = vadd.f32 %v1629_v30, %v6404_v2 }
 0x643   : > { %1687 = vmax.xlane.f32.xlu1 %v6681_v50 }
 0x645   : > { %1685 = vmax.xlane.f32.xlu0 %v6684_v11 }
 0x646   : > { %v4863_v32 = vpop.f32.mrb[40].mxu0 }
 0x647   : > { %1683 = vmax.xlane.f32.xlu1 %v6688_v7  ;;  %v1642_v56 = vpop.f32.mrb[41].mxu0  ;;  %v6700_v33 = vadd.f32 %v4863_v32, %v6431_v53  ;;  %v8155_v53 = vld [vmem:[#allocation6_spill] sm:$0xff] }
 0x648   : > { %v4864_v3 = vpop.f32.mrb[42].mxu0  ;;  %v6708_v24 = vadd.f32 %v1642_v56, %v6449_v14  ;;  %v8157_v14 = vld [vmem:[#allocation8_spill] sm:$0xff] }
 0x649   : > { %v6696_v31 = vadd.f32 %v4864_v3, %v6422_v8  ;;  %1681 = vmax.xlane.f32.xlu0 %v6692_v36  ;;  %v1645_v62 = vpop.f32.mrb[43].mxu0 }
 0x64a   : > { %v6704_v2 = vadd.f32 %v1645_v62, %v6440_v12  ;;  %v8156_v12 = vld [vmem:[#allocation7_spill] sm:$0xff] }
 0x64b   : > { %1695 = vmax.xlane.f32.xlu1 %v6696_v31 }
 0x64d   : > { %1693 = vmax.xlane.f32.xlu0 %v6700_v33 }
 0x64e   : > { %v4867_v4 = vpop.f32.mrb[44].mxu0 }
 0x64f   : > { %1691 = vmax.xlane.f32.xlu1 %v6704_v2  ;;  %v1658_v8 = vpop.f32.mrb[45].mxu0  ;;  %v6713_v5 = vadd.f32 %v4867_v4, %v8155_v53 }
 0x650   : > { %v4868_v6 = vpop.f32.mrb[46].mxu0  ;;  %v6717_v19 = vadd.f32 %v1658_v8, %v8156_v12 }
 0x651   : > { %1689 = vmax.xlane.f32.xlu0 %v6708_v24  ;;  %v1661_v52 = vpop.f32.mrb[47].mxu0  ;;  %v6725_v34 = vadd.f32 %v4868_v6, %v8157_v14 }
 0x652   : > { %v6729_v49 = vadd.f32 %v1661_v52, %v8158_v51 }
 0x655   : > { %1701 = vmax.xlane.f32.xlu0 %v6713_v5 }
 0x659   : > { %1697 = vmax.xlane.f32.xlu0 %v6717_v19 }
 0x660   : > { %1968 = vrot.lane.b32.xlu1 %v6270_v38, %s5876_s0 }
 0x66f   : > { %1966 = vrot.lane.b32.xlu0 %v6272_v43, %s5876_s0 }
 0x684   : > { %1703 = vmax.xlane.f32.xlu1 %v6725_v34 }
 0x688   : > { %1699 = vmax.xlane.f32.xlu1 %v6729_v49 }
 0x6c6   : > { %v1678_v23 = vpop.xlane.xlu0 %1677 }
 0x6c7   : > { %v1707_v30 = vsub.f32 %v1619_v37, %v1678_v23 }
 0x6c9   : > { %v1725_v32 = vmul.f32 1.442695, %v1707_v30  ;;  %v1676_v56 = vpop.xlane.xlu1 %1675 }
 0x6ca   : > { %v1706_v3 = vsub.f32 %v1614_v20, %v1676_v56  ;;  %v1674_v62 = vpop.xlane.xlu0 %1673 }
 0x6cb   : > { %5445 = vpow2.f32 %v1725_v32  ;;  %v1705_v4 = vsub.f32 %v1611_v18, %v1674_v62 }
 0x6cc   : > { %v1723_v8 = vmul.f32 1.442695, %v1706_v3 }
 0x6cd   : > { %v1721_v6 = vmul.f32 1.442695, %v1705_v4 }
 0x6ce   : > { %5447 = vpow2.f32 %v1723_v8  ;;  %v1680_v53 = vpop.xlane.xlu0 %1679 }
 0x6cf   : > { %5449 = vpow2.f32 %v1721_v6  ;;  %v1708_v12 = vsub.f32 %v1622_v15, %v1680_v53 }
 0x6d0   : > { %v1688_v23 = vpop.xlane.xlu1 %1687 }
 0x6d1   : > { %v1727_v52 = vmul.f32 1.442695, %v1708_v12  ;;  %v1712_v12 = vsub.f32 %v6681_v50, %v1688_v23 }
 0x6d2   : > { %v1686_v18 = vpop.xlane.xlu0 %1685 }
 0x6d3   : > { %5451 = vpow2.f32 %v1727_v52  ;;  %v1711_v32 = vsub.f32 %v6684_v11, %v1686_v18  ;;  %v1735_v29 = vmul.f32 1.442695, %v1712_v12 }
 0x6d4   : > { %v1684_v56 = vpop.xlane.xlu1 %1683 }
 0x6d5   : > { %v6734_v14 = vpop.eup %5445  ;;  %v1733_v62 = vmul.f32 1.442695, %v1711_v32  ;;  %v1710_v8 = vsub.f32 %v6688_v7, %v1684_v56 }
 0x6d6   : > { %1757 = vadd.xlane.f32.xlu1 %v6734_v14  ;;  %v1682_v15 = vpop.xlane.xlu0 %1681 }
 0x6d7   : > { %v1709_v4 = vsub.f32 %v6692_v36, %v1682_v15  ;;  %5453 = vpow2.f32 %v1733_v62  ;;  %v1731_v10 = vmul.f32 1.442695, %v1710_v8 }
 0x6d8   : > { %v6737_v51 = vpop.eup %5447  ;;  %v1696_v6 = vpop.xlane.xlu1 %1695 }
 0x6d9   : > { %v6739_v37 = vpop.eup %5449  ;;  %1755 = vadd.xlane.f32.xlu0 %v6737_v51  ;;  %v1729_v52 = vmul.f32 1.442695, %v1709_v4  ;;  %v1716_v50 = vsub.f32 %v6696_v31, %v1696_v6 }
 0x6da   : > { %1753 = vadd.xlane.f32.xlu1 %v6739_v37  ;;  %v1694_v30 = vpop.xlane.xlu0 %1693 }
 0x6db   : > { %v1715_v40 = vsub.f32 %v6700_v33, %v1694_v30  ;;  %5455 = vpow2.f32 %v1729_v52 }
 0x6dc   : > { %v1692_v48 = vpop.xlane.xlu1 %1691  ;;  %5457 = vpow2.f32 %v1731_v10 }
 0x6dd   : > { %v6743_v20 = vpop.eup %5451  ;;  %v1741_v18 = vmul.f32 1.442695, %v1715_v40  ;;  %5459 = vpow2.f32 %v1735_v29  ;;  %v1743_v40 = vmul.f32 1.442695, %v1716_v50 }
 0x6de   : > { %1759 = vadd.xlane.f32.xlu1 %v6743_v20  ;;  %v1690_v3 = vpop.xlane.xlu0 %1689 }
 0x6df   : > { %v1713_v36 = vsub.f32 %v6708_v24, %v1690_v3  ;;  %5461 = vpow2.f32 %v1741_v18  ;;  %v1714_v24 = vsub.f32 %v6704_v2, %v1692_v48 }
 0x6e0   : > { %v6761_v33 = vpop.permute.xlu1 %1968 }
 0x6e1   : > { %v1737_v23 = vmul.f32 1.442695, %v1713_v36  ;;  %v6759_v56 = vpop.eup %5453  ;;  %v1739_v30 = vmul.f32 1.442695, %v1714_v24 }
 0x6e2   : > { %v1702_v53 = vpop.xlane.xlu0 %1701 }
 0x6e3   : > { %v1719_v11 = vsub.f32 %v6713_v5, %v1702_v53 }
 0x6e5   : > { %v1749_v7 = vmul.f32 1.442695, %v1719_v11  ;;  %v6765_v29 = vpop.eup %5455 }
 0x6e6   : > { %v1698_v15 = vpop.xlane.xlu0 %1697 }
 0x6e7   : > { %v1717_v32 = vsub.f32 %v6717_v19, %v1698_v15  ;;  %5463 = vpow2.f32 %v1749_v7  ;;  %v6767_v19 = vpop.eup %5457 }
 0x6e8   : > { %5465 = vpow2.f32 %v1737_v23  ;;  %v6772_v62 = vpop.eup %5459 }
 0x6e9   : > { %v1745_v10 = vmul.f32 1.442695, %v1717_v32  ;;  %v6774_v48 = vpop.eup %5461 }
 0x6ea   : > { %v1967_v18 = vpop.permute.xlu0 %1966 }
 0x6eb   : > { %5467 = vpow2.f32 %v1745_v10 }
 0x6ec   : > { %5469 = vpow2.f32 %v1743_v40 }
 0x6ef   : > { %1970 = vrot.lane.b32.xlu0 %v6284_v26, %s5876_s0  ;;  %1972 = vrot.lane.b32.xlu1 %v6282_v55, %s5876_s0 }
 0x6f1   : > { %v6779_v8 = vpop.eup %5463 }
 0x6f2   : > { %v6781_v6 = vpop.eup %5465 }
 0x6f5   : > { %v6785_v53 = vpop.eup %5467 }
 0x6f6   : > { %v6787_v12 = vpop.eup %5469 }
 0x70e   : > { %1765 = vadd.xlane.f32.xlu0 %v6759_v56 }
 0x711   : > { %v1704_v5 = vpop.xlane.xlu1 %1703 }
 0x712   : > { %v1720_v31 = vsub.f32 %v6725_v34, %v1704_v5  ;;  %1761 = vadd.xlane.f32.xlu0 %v6765_v29 }
 0x713   : > { %1763 = vadd.xlane.f32.xlu1 %v6767_v19 }
 0x714   : > { %v1751_v3 = vmul.f32 1.442695, %v1720_v31 }
 0x715   : > { %v1700_v4 = vpop.xlane.xlu1 %1699 }
 0x716   : > { %5471 = vpow2.f32 %v1751_v3  ;;  %v1718_v2 = vsub.f32 %v6729_v49, %v1700_v4  ;;  %1767 = vadd.xlane.f32.xlu0 %v6772_v62 }
 0x717   : > { %1773 = vadd.xlane.f32.xlu1 %v6774_v48  ;;  %5473 = vpow2.f32 %v1739_v30 }
 0x718   : > { %v1747_v34 = vmul.f32 1.442695, %v1718_v2  ;;  %v2003_v2 = vsel %vm1069_vm2, %v6639_v1, 0 }
 0x71a   : > { %1781 = vadd.xlane.f32.xlu0 %v6779_v8  ;;  %5475 = vpow2.f32 %v1747_v34 }
 0x71b   : > { %1769 = vadd.xlane.f32.xlu1 %v6781_v6 }
 0x71e   : > { %1777 = vadd.xlane.f32.xlu0 %v6785_v53 }
 0x71f   : > { %1775 = vadd.xlane.f32.xlu1 %v6787_v12 }
 0x720   : > { %v6791_v49 = vpop.eup %5471 }
 0x721   : > { %v6793_v52 = vpop.eup %5473 }
 0x722   : > { %1783 = vadd.xlane.f32.xlu0 %v6791_v49 }
 0x723   : > { %1771 = vadd.xlane.f32.xlu1 %v6793_v52 }
 0x724   : > { %v6797_v11 = vpop.eup %5475 }
 0x727   : > { %1779 = vadd.xlane.f32.xlu1 %v6797_v11 }
 0x738   : > { %1976 = vrot.lane.b32.xlu1 %v6294_v27, %s5876_s0  ;;  %1974 = vrot.lane.b32.xlu0 %v6296_v44, %s5876_s0  ;;  %s5880_s0 = smov 104  }
 0x73c   : > { %1948 = vrot.lane.b32.xlu1 %v6260_v28, %s5877_s30  ;;  %1946 = vrot.lane.b32.xlu0 %v6264_v59, %s5877_s30 }
 0x740   : > { %1952 = vrot.lane.b32.xlu1 %v6274_v16, %s5877_s30  ;;  %1950 = vrot.lane.b32.xlu0 %v6276_v46, %s5877_s30 }
 0x744   : > { %1956 = vrot.lane.b32.xlu1 %v6286_v57, %s5877_s30  ;;  %1954 = vrot.lane.b32.xlu0 %v6288_v58, %s5877_s30 }
 0x748   : > { %1960 = vrot.lane.b32.xlu1 %v6298_v60, %s5877_s30  ;;  %1958 = vrot.lane.b32.xlu0 %v6302_v45, %s5877_s30  ;;  %s5881_s30 = smov 40  }
 0x74c   : > { %2277 = vrot.lane.b32.xlu1 %v6256_v63, %s5878_s17  ;;  %2275 = vrot.lane.b32.xlu0 %v6258_v47, %s5878_s17 }
 0x750   : > { %2281 = vrot.lane.b32.xlu1 %v6270_v38, %s5878_s17  ;;  %2279 = vrot.lane.b32.xlu0 %v6272_v43, %s5878_s17 }
 0x754   : > { %2285 = vrot.lane.b32.xlu1 %v6282_v55, %s5878_s17  ;;  %2283 = vrot.lane.b32.xlu0 %v6284_v26, %s5878_s17 }
 0x758   : > { %2289 = vrot.lane.b32.xlu1 %v6294_v27, %s5878_s17  ;;  %2287 = vrot.lane.b32.xlu0 %v6296_v44, %s5878_s17  ;;  %s5883_s17 = smov 16  }
 0x75c   : > { %2414 = vrot.lane.b32.xlu1 %v6256_v63, %s5879_s18  ;;  %2412 = vrot.lane.b32.xlu0 %v6258_v47, %s5879_s18 }
 0x763   : > { %v1758_v36 = vpop.xlane.xlu1 %1757 }
 0x766   : > { %v1756_v15 = vpop.xlane.xlu0 %1755 }
 0x767   : > { %5477 = vrcp.f32 %v1756_v15  ;;  %v1754_v7 = vpop.xlane.xlu1 %1753 }
 0x768   : > { %5479 = vrcp.f32 %v1754_v7 }
 0x769   : > { %5481 = vrcp.f32 %v1758_v36 }
 0x76a   : > { %v1971_v1 = vpop.permute.xlu0 %1970 }
 0x76b   : > { %v1760_v32 = vpop.xlane.xlu1 %1759 }
 0x76c   : > { %5483 = vrcp.f32 %v1760_v32 }
 0x771   : > { %v5478_v50 = vpop.eup %5477 }
 0x772   : > { %v5480_v23 = vpop.eup %5479  ;;  %v1788_v10 = vmul.f32 %v5478_v50, %v6737_v51  ;;  %v2006_v51 = vsel %vm1069_vm2, %v6732_v22, 0 }
 0x773   : > { %v1786_v40 = vmul.f32 %v5480_v23, %v6739_v37  ;;  %v5482_v24 = vpop.eup %5481  ;;  %v2012_v37 = vsel %vm1069_vm2, %v6761_v33, 0 }
 0x774   : > { %v1790_v30 = vmul.f32 %v5482_v24, %v6734_v14  ;;  %v2009_v14 = vsel %vm1069_vm2, %v1967_v18, 0 }
 0x775   : > { %v1817_v5 = vpack.c.bf16 %v1788_v10, %v1786_v40 }
 0x776   : > { %v5484_v31 = vpop.eup %5483 }
 0x777   : > { %v1792_v3 = vmul.f32 %v5484_v31, %v6743_v20  ;;  %4885 = vmatprep.mubr.bf16.mxu1 %v1817_v5  ;;  %v2015_v20 = vsel %vm1069_vm2, %v1971_v1, 0 }
 0x779   : > { %v1818_v4 = vpack.c.bf16 %v1792_v3, %v1790_v30 }
 0x77b   : > { %4886 = vmatmul.mubr.bf16.vlgmr.msra.gmra.mrb[16].mxu1 %v1818_v4 }
 0x77c   : > { %4902 = vmatpush3.bf16.xpose.msra.mxu1 %v2003_v2 }
 0x77d   : > { %5150 = vmatprep.subr.msk.bf16.mxu1 %vm1069_vm2, %v6732_v22  ;;  %v1973_v22 = vpop.permute.xlu1 %1972 }
 0x77e   : > { %v2018_v15 = vsel %vm1069_vm2, %v1973_v22, 0 }
 0x784   : > { %4904 = vmatpush3.bf16.xpose.msra.mxu1 %v2006_v51 }
 0x785   : > { %5151 = vmatprep.subr.msk.bf16.mxu1 %vm1069_vm2, %v1967_v18 }
 0x78c   : > { %4906 = vmatpush3.bf16.xpose.msra.mxu1 %v2009_v14 }
 0x78d   : > { %5152 = vmatprep.subr.msk.bf16.mxu1 %vm1069_vm2, %v6761_v33 }
 0x794   : > { %4908 = vmatpush3.bf16.xpose.msra.mxu1 %v2012_v37 }
 0x795   : > { %5153 = vmatprep.subr.msk.bf16.mxu1 %vm1069_vm2, %v1971_v1 }
 0x79b   : > { %v1766_v34 = vpop.xlane.xlu0 %1765 }
 0x79c   : > { %4910 = vmatpush3.bf16.xpose.msra.mxu1 %v2015_v20 }
 0x79d   : > { %5154 = vmatprep.subr.msk.bf16.mxu1 %vm1069_vm2, %v1973_v22 }
 0x79f   : > { %v1762_v36 = vpop.xlane.xlu0 %1761 }
 0x7a0   : > { %5485 = vrcp.f32 %v1762_v36  ;;  %v1764_v18 = vpop.xlane.xlu1 %1763 }
 0x7a1   : > { %5487 = vrcp.f32 %v1764_v18 }
 0x7a2   : > { %5489 = vrcp.f32 %v1766_v34 }
 0x7a3   : > { %v1768_v7 = vpop.xlane.xlu0 %1767 }
 0x7a4   : > { %4912 = vmatpush3.bf16.xpose.msra.mxu1 %v2018_v15  ;;  %5491 = vrcp.f32 %v1768_v7  ;;  %v1774_v33 = vpop.xlane.xlu1 %1773 }
 0x7a7   : > { %v1782_v32 = vpop.xlane.xlu0 %1781 }
 0x7a8   : > { %v1770_v50 = vpop.xlane.xlu1 %1769 }
 0x7aa   : > { %v5486_v23 = vpop.eup %5485 }
 0x7ab   : > { %v5488_v10 = vpop.eup %5487  ;;  %v1778_v40 = vpop.xlane.xlu0 %1777  ;;  %v1794_v24 = vmul.f32 %v5486_v23, %v6765_v29 }
 0x7ac   : > { %v5490_v5 = vpop.eup %5489  ;;  %v1776_v31 = vpop.xlane.xlu1 %1775  ;;  %v1796_v30 = vmul.f32 %v5488_v10, %v6767_v19 }
 0x7ad   : > { %5493 = vrcp.f32 %v1776_v31  ;;  %v1798_v51 = vmul.f32 %v5490_v5, %v6759_v56 }
 0x7ae   : > { %v5492_v3 = vpop.eup %5491  ;;  %v1819_v4 = vpack.c.bf16 %v1796_v30, %v1794_v24  ;;  %5495 = vrcp.f32 %v1770_v50 }
 0x7af   : > { %v1784_v2 = vpop.xlane.xlu0 %1783  ;;  %v1800_v14 = vmul.f32 %v5492_v3, %v6772_v62  ;;  %5497 = vrcp.f32 %v1774_v33 }
 0x7b0   : > { %v1772_v37 = vpop.xlane.xlu1 %1771  ;;  %4889 = vmatprep.mubr.bf16.mxu1 %v1819_v4 }
 0x7b1   : > { %5499 = vrcp.f32 %v1772_v37  ;;  %v1820_v1 = vpack.c.bf16 %v1800_v14, %v1798_v51 }
 0x7b2   : > { %5501 = vrcp.f32 %v1778_v40 }
 0x7b3   : > { %4890 = vmatmul.mubr.bf16.gmra.mrb[20].mxu1 %v1820_v1  ;;  %v1975_v29 = vpop.permute.xlu0 %1974 }
 0x7b4   : > { %v1780_v20 = vpop.xlane.xlu1 %1779  ;;  %5155 = vmatprep.subr.msk.bf16.mxu1 %vm1069_vm2, %v1975_v29  ;;  %v2021_v19 = vsel %vm1069_vm2, %v1975_v29, 0 }
 0x7b5   : > { %5503 = vrcp.f32 %v1780_v20  ;;  %4914 = vmatpush3.bf16.xpose.msra.mxu1 %v2021_v19 }
 0x7b6   : > { %5505 = vrcp.f32 %v1784_v2 }
 0x7b7   : > { %v1947_v34 = vpop.permute.xlu0 %1946  ;;  %v5494_v56 = vpop.eup %5493  ;;  %5507 = vrcp.f32 %v1782_v32 }
 0x7b8   : > { %v1977_v62 = vpop.permute.xlu1 %1976  ;;  %v5496_v22 = vpop.eup %5495  ;;  %v1808_v7 = vmul.f32 %v5494_v56, %v6787_v12 }
 0x7b9   : > { %5156 = vmatprep.subr.msk.bf16.mxu1 %vm1069_vm2, %v1977_v62  ;;  %v5498_v36 = vpop.eup %5497  ;;  %v2024_v50 = vsel %vm1069_vm2, %v1977_v62, 0  ;;  %v1802_v23 = vmul.f32 %v5496_v22, %v6781_v6 }
 0x7ba   : > { %v1806_v32 = vmul.f32 %v5498_v36, %v6774_v48 }
 0x7bb   : > { %v5500_v18 = vpop.eup %5499  ;;  %v1951_v15 = vpop.permute.xlu0 %1950 }
 0x7bc   : > { %v1949_v33 = vpop.permute.xlu1 %1948  ;;  %v1804_v10 = vmul.f32 %v5500_v18, %v6793_v52  ;;  %v5502_v40 = vpop.eup %5501  ;;  %v1822_v30 = vpack.c.bf16 %v1808_v7, %v1806_v32 }
 0x7bd   : > { %4916 = vmatpush3.bf16.xpose.msra.mxu1 %v2024_v50  ;;  %v1810_v12 = vmul.f32 %v5502_v40, %v6785_v53 }
 0x7be   : > { %v1821_v24 = vpack.c.bf16 %v1804_v10, %v1802_v23 }
 0x7bf   : > { %v5504_v5 = vpop.eup %5503  ;;  %v1955_v31 = vpop.permute.xlu0 %1954 }
 0x7c0   : > { %v5506_v3 = vpop.eup %5505  ;;  %v1953_v4 = vpop.permute.xlu1 %1952  ;;  %4893 = vmatprep.mubr.bf16.mxu1 %v1821_v24  ;;  %v1812_v2 = vmul.f32 %v5504_v5, %v6797_v11 }
 0x7c1   : > { %4894 = vmatmul.mubr.bf16.gmra.mrb[24].mxu1 %v1822_v30  ;;  %v5508_v51 = vpop.eup %5507  ;;  %v1816_v52 = vmul.f32 %v5506_v3, %v6791_v49  ;;  %v6976_v3 = vld [vmem:[%s8089_s1 + $0x28] sm:$0xff] }
 0x7c2   : > { %v1823_v6 = vpack.c.bf16 %v1812_v2, %v1810_v12  ;;  %v1814_v48 = vmul.f32 %v5508_v51, %v6779_v8 }
 0x7c3   : > { %v1959_v14 = vpop.permute.xlu0 %1958 }
 0x7c4   : > { %v1957_v37 = vpop.permute.xlu1 %1956  ;;  %4897 = vmatprep.mubr.bf16.mxu1 %v1823_v6  ;;  %v1824_v29 = vpack.c.bf16 %v1816_v52, %v1814_v48 }
 0x7c7   : > { %v2276_v1 = vpop.permute.xlu0 %2275 }
 0x7c8   : > { %v1961_v20 = vpop.permute.xlu1 %1960  ;;  %4933 = vmatprep.subr.bf16.mxu0 %v2276_v1 }
 0x7c9   : > { %4898 = vmatmul.mubr.bf16.gmra.mrb[28].mxu1 %v1824_v29  ;;  %4934 = vmatpush3.bf16.msra.mxu0 %v2276_v1  ;;  %v6923_v1 = vld [vmem:[%s8089_s1 + $0x10] sm:$0xff] }
 0x7ca   : > { %4917 = vmatprep.mubr.msk.bf16.mxu1 %vm1069_vm2, %v1947_v34 }
 0x7cb   : > { %v2280_v11 = vpop.permute.xlu0 %2279 }
 0x7cc   : > { %v2278_v53 = vpop.permute.xlu1 %2277 }
 0x7cd   : > { %4935 = vmatprep.subr.bf16.mxu0 %v2278_v53 }
 0x7ce   : > { %4936 = vmatpush3.bf16.msra.mxu0 %v2278_v53 }
 0x7cf   : > { %4937 = vmatprep.subr.bf16.mxu0 %v2280_v11  ;;  %v2284_v8 = vpop.permute.xlu0 %2283 }
 0x7d0   : > { %v2282_v49 = vpop.permute.xlu1 %2281 }
 0x7d1   : > { %4918 = vmatmul.mubr.msk.bf16.vlgmr.msra.gmra.mrb[32].mxu1 %vm1069_vm2, %v1949_v33  ;;  %v6967_v33 = vld [vmem:[%s8089_s1 + $0x30] sm:$0xff] }
 0x7d2   : > { %4921 = vmatprep.mubr.msk.bf16.mxu1 %vm1069_vm2, %v1951_v15  ;;  %4938 = vmatpush3.bf16.msra.mxu0 %v2280_v11  ;;  %v6985_v15 = vld [vmem:[%s8089_s1 + $0x20] sm:$0xff] }
 0x7d3   : > { %4939 = vmatprep.subr.bf16.mxu0 %v2282_v49  ;;  %v2288_v34 = vpop.permute.xlu0 %2287 }
 0x7d4   : > { %v2286_v19 = vpop.permute.xlu1 %2285 }
 0x7d6   : > { %4940 = vmatpush3.bf16.msra.mxu0 %v2282_v49  ;;  %v6932_v49 = vld [vmem:[%s8089_s1 + $0x8] sm:$0xff] }
 0x7d7   : > { %4941 = vmatprep.subr.bf16.mxu0 %v2284_v8  ;;  %v6867_v62 = vpop.permute.xlu0 %2412 }
 0x7d8   : > { %v2290_v56 = vpop.permute.xlu1 %2289 }
 0x7d9   : > { %4922 = vmatmul.mubr.msk.bf16.gmra.mrb[36].mxu1 %vm1069_vm2, %v1953_v4 }
 0x7da   : > { %4925 = vmatprep.mubr.msk.bf16.mxu1 %vm1069_vm2, %v1955_v31  ;;  %4942 = vmatpush3.bf16.msra.mxu0 %v2284_v8 }
 0x7db   : > { %4943 = vmatprep.subr.bf16.mxu0 %v2286_v19 }
 0x7de   : > { %4944 = vmatpush3.bf16.msra.mxu0 %v2286_v19  ;;  %v6940_v19 = vld [vmem:[%s8089_s1] sm:$0xff] }
 0x7df   : > { %4945 = vmatprep.subr.bf16.mxu0 %v2288_v34 }
 0x7e1   : > { %4926 = vmatmul.mubr.msk.bf16.gmra.mrb[40].mxu1 %vm1069_vm2, %v1957_v37 }
 0x7e2   : > { %4929 = vmatprep.mubr.msk.bf16.mxu1 %vm1069_vm2, %v1959_v14  ;;  %4946 = vmatpush3.bf16.msra.mxu0 %v2288_v34 }
 0x7e3   : > { %4947 = vmatprep.subr.bf16.mxu0 %v2290_v56 }
 0x7e6   : > { %4948 = vmatpush3.bf16.msra.mxu0 %v2290_v56 }
 0x7e7   : > { %5157 = vmatprep.subr.msk.bf16.mxu0 %vm1069_vm2, %v6867_v62 }
 0x7e9   : > { %4930 = vmatmul.mubr.msk.bf16.gmra.mrb[44].mxu1 %vm1069_vm2, %v1961_v20 }
 0x84e   : > { %v6872_v22 = vpop.f32.mrb[16].mxu1 }
 0x84f   : > { %8159 = vst [vmem:[#allocation6_spill] sm:$0xff] %v6872_v22  ;;  %v6874_v36 = vpop.f32.mrb[17].mxu1 }
 0x850   : > { %8160 = vst [vmem:[#allocation7_spill] sm:$0xff] %v6874_v36  ;;  %v6876_v18 = vpop.f32.mrb[18].mxu1 }
 0x851   : > { %8161 = vst [vmem:[#allocation8_spill] sm:$0xff] %v6876_v18  ;;  %v6880_v7 = vpop.f32.mrb[19].mxu1 }
 0x852   : > { %8162 = vst [vmem:[#allocation9_spill] sm:$0xff] %v6880_v7 }
 0x886   : > { %v6884_v50 = vpop.f32.mrb[20].mxu1 }
 0x887   : > { %8163 = vst [vmem:[#allocation26_spill] sm:$0xff] %v6884_v50  ;;  %v6886_v23 = vpop.f32.mrb[21].mxu1 }
 0x888   : > { %8164 = vst [vmem:[#allocation27_spill] sm:$0xff] %v6886_v23  ;;  %v6888_v10 = vpop.f32.mrb[22].mxu1 }
 0x889   : > { %8165 = vst [vmem:[#allocation28_spill] sm:$0xff] %v6888_v10  ;;  %v6892_v32 = vpop.f32.mrb[23].mxu1 }
 0x88a   : > { %8166 = vst [vmem:[#allocation29_spill] sm:$0xff] %v6892_v32 }
 0x894   : > { %v6896_v5 = vpop.f32.mrb[24].mxu1 }
 0x895   : > { %8167 = vst [vmem:[#allocation30_spill] sm:$0xff] %v6896_v5  ;;  %v6898_v31 = vpop.f32.mrb[25].mxu1 }
 0x896   : > { %8168 = vst [vmem:[#allocation31_spill] sm:$0xff] %v6898_v31  ;;  %v6900_v30 = vpop.f32.mrb[26].mxu1 }
 0x897   : > { %8169 = vst [vmem:[#allocation32_spill] sm:$0xff] %v6900_v30  ;;  %v6904_v4 = vpop.f32.mrb[27].mxu1 }
 0x898   : > { %8170 = vst [vmem:[#allocation33_spill] sm:$0xff] %v6904_v4 }
 0x89c   : > { %v6908_v2 = vpop.f32.mrb[28].mxu1 }
 0x89d   : > { %8171 = vst [vmem:[#allocation34_spill] sm:$0xff] %v6908_v2  ;;  %v6910_v51 = vpop.f32.mrb[29].mxu1 }
 0x89e   : > { %8172 = vst [vmem:[#allocation35_spill] sm:$0xff] %v6910_v51  ;;  %v6912_v6 = vpop.f32.mrb[30].mxu1 }
 0x89f   : > { %8173 = vst [vmem:[#allocation36_spill] sm:$0xff] %v6912_v6  ;;  %v6916_v52 = vpop.f32.mrb[31].mxu1  ;;  %v7068_v6 = vpop.permute.xlu1 %2414 }
 0x8a0   : > { %8174 = vst [vmem:[#allocation37_spill] sm:$0xff] %v6916_v52 }
 0x8a4   : > { %v4919_v48 = vpop.f32.mrb[32].mxu1 }
 0x8a5   : > { %v6926_v29 = vadd.f32 %v6923_v1, %v4919_v48  ;;  %v2060_v20 = vpop.f32.mrb[33].mxu1  ;;  %v6950_v48 = vld [vmem:[%s8089_s1 + $0x18] sm:$0xff] }
 0x8a6   : > { %v4920_v53 = vpop.f32.mrb[34].mxu1  ;;  %v6943_v34 = vadd.f32 %v6940_v19, %v2060_v20  ;;  %v6958_v20 = vld [vmem:[%s8089_s1 + $0x38] sm:$0xff] }
 0x8a7   : > { %2127 = vmax.xlane.f32.xlu0 %v6926_v29  ;;  %v2063_v11 = vpop.f32.mrb[35].mxu1 }
 0x8a8   : > { %v6935_v8 = vadd.f32 %v6932_v49, %v2063_v11  ;;  %v6953_v11 = vadd.f32 %v6950_v48, %v4920_v53 }
 0x8aa   : > { %2125 = vmax.xlane.f32.xlu1 %v6935_v8 }
 0x8ab   : > { %2123 = vmax.xlane.f32.xlu0 %v6943_v34 }
 0x8ac   : > { %v4923_v56 = vpop.f32.mrb[36].mxu1 }
 0x8ad   : > { %v2076_v37 = vpop.f32.mrb[37].mxu1  ;;  %v6970_v53 = vadd.f32 %v6967_v33, %v4923_v56 }
 0x8ae   : > { %v4924_v14 = vpop.f32.mrb[38].mxu1  ;;  %v6988_v56 = vadd.f32 %v6985_v15, %v2076_v37  ;;  %v7003_v37 = vld [vmem:[%s8089_s1 + $0x50] sm:$0xff] }
 0x8af   : > { %v6961_v12 = vadd.f32 %v6958_v20, %v4924_v14  ;;  %2129 = vmax.xlane.f32.xlu0 %v6953_v11  ;;  %v2079_v24 = vpop.f32.mrb[39].mxu1 }
 0x8b0   : > { %v6979_v14 = vadd.f32 %v6976_v3, %v2079_v24  ;;  %v6994_v24 = vld [vmem:[%s8089_s1 + $0x58] sm:$0xff] }
 0x8b1   : > { %2137 = vmax.xlane.f32.xlu1 %v6961_v12 }
 0x8b3   : > { %2135 = vmax.xlane.f32.xlu0 %v6970_v53 }
 0x8b4   : > { %v4927_v40 = vpop.f32.mrb[40].mxu1 }
 0x8b5   : > { %2133 = vmax.xlane.f32.xlu1 %v6979_v14  ;;  %v2092_v25 = vpop.f32.mrb[41].mxu1  ;;  %v7006_v13 = vadd.f32 %v7003_v37, %v4927_v40 }
 0x8b6   : > { %v4928_v41 = vpop.f32.mrb[42].mxu1  ;;  %v7024_v40 = vadd.f32 %v7021_v39, %v2092_v25  ;;  %v7040_v25 = vld [vmem:[%s8089_s1 + $0x60] sm:$0xff] }
 0x8b7   : > { %v6997_v21 = vadd.f32 %v6994_v24, %v4928_v41  ;;  %2131 = vmax.xlane.f32.xlu0 %v6988_v56  ;;  %v2095_v54 = vpop.f32.mrb[43].mxu1 }
 0x8b8   : > { %v7015_v41 = vadd.f32 %v7012_v42, %v2095_v54  ;;  %v7031_v54 = vld [vmem:[%s8089_s1 + $0x70] sm:$0xff] }
 0x8b9   : > { %2145 = vmax.xlane.f32.xlu1 %v6997_v21 }
 0x8bb   : > { %2143 = vmax.xlane.f32.xlu0 %v7006_v13 }
 0x8bc   : > { %v4931_v0 = vpop.f32.mrb[44].mxu1 }
 0x8bd   : > { %2141 = vmax.xlane.f32.xlu1 %v7015_v41  ;;  %v2108_v9 = vpop.f32.mrb[45].mxu1  ;;  %v7034_v61 = vadd.f32 %v7031_v54, %v4931_v0  ;;  %v7053_v0 = vld [vmem:[%s8089_s1 + $0x78] sm:$0xff] }
 0x8be   : > { %v4932_v17 = vpop.f32.mrb[46].mxu1  ;;  %v7043_v51 = vadd.f32 %v7040_v25, %v2108_v9  ;;  %8175 = vst [vmem:[#allocation38_spill] sm:$0xff] %v7053_v0  ;;  %v7062_v9 = vld [vmem:[%s8089_s1 + $0x68] sm:$0xff] }
 0x8bf   : > { %2139 = vmax.xlane.f32.xlu0 %v7024_v40  ;;  %v2111_v35 = vpop.f32.mrb[47].mxu1  ;;  %v7056_v52 = vadd.f32 %v7053_v0, %v4932_v17  ;;  %8176 = vst [vmem:[#allocation39_spill] sm:$0xff] %v7062_v9 }
 0x8c0   : > { %v7065_v2 = vadd.f32 %v7062_v9, %v2111_v35 }
 0x8c3   : > { %2151 = vmax.xlane.f32.xlu0 %v7034_v61 }
 0x8c7   : > { %2147 = vmax.xlane.f32.xlu0 %v7043_v51 }
 0x8ce   : > { %2418 = vrot.lane.b32.xlu1 %v6270_v38, %s5879_s18 }
 0x8dd   : > { %2416 = vrot.lane.b32.xlu0 %v6272_v43, %s5879_s18 }
 0x8f2   : > { %2153 = vmax.xlane.f32.xlu1 %v7056_v52 }
 0x8f6   : > { %2149 = vmax.xlane.f32.xlu1 %v7065_v2 }
 0x934   : > { %v2128_v31 = vpop.xlane.xlu0 %2127 }
 0x935   : > { %v2157_v4 = vsub.f32 %v6926_v29, %v2128_v31 }
 0x937   : > { %v2175_v23 = vmul.f32 1.442695, %v2157_v4  ;;  %v2126_v17 = vpop.xlane.xlu1 %2125 }
 0x938   : > { %v2156_v32 = vsub.f32 %v6935_v8, %v2126_v17  ;;  %v2124_v36 = vpop.xlane.xlu0 %2123 }
 0x939   : > { %5509 = vpow2.f32 %v2175_v23  ;;  %v2155_v7 = vsub.f32 %v6943_v34, %v2124_v36 }
 0x93a   : > { %v2173_v5 = vmul.f32 1.442695, %v2156_v32 }
 0x93b   : > { %v2171_v30 = vmul.f32 1.442695, %v2155_v7 }
 0x93c   : > { %5511 = vpow2.f32 %v2173_v5  ;;  %v2130_v35 = vpop.xlane.xlu0 %2129 }
 0x93d   : > { %5513 = vpow2.f32 %v2171_v30  ;;  %v2158_v50 = vsub.f32 %v6953_v11, %v2130_v35 }
 0x93e   : > { %v2138_v23 = vpop.xlane.xlu1 %2137 }
 0x93f   : > { %v2177_v10 = vmul.f32 1.442695, %v2158_v50  ;;  %v2162_v35 = vsub.f32 %v6961_v12, %v2138_v23 }
 0x940   : > { %v2136_v7 = vpop.xlane.xlu0 %2135 }
 0x941   : > { %5515 = vpow2.f32 %v2177_v10  ;;  %v2161_v32 = vsub.f32 %v6970_v53, %v2136_v7  ;;  %v2185_v0 = vmul.f32 1.442695, %v2162_v35 }
 0x942   : > { %v2134_v5 = vpop.xlane.xlu1 %2133 }
 0x943   : > { %v7074_v22 = vpop.eup %5509  ;;  %v2183_v29 = vmul.f32 1.442695, %v2161_v32  ;;  %v2160_v34 = vsub.f32 %v6979_v14, %v2134_v5 }
 0x944   : > { %2207 = vadd.xlane.f32.xlu1 %v7074_v22  ;;  %v2132_v50 = vpop.xlane.xlu0 %2131 }
 0x945   : > { %v2159_v8 = vsub.f32 %v6988_v56, %v2132_v50  ;;  %5517 = vpow2.f32 %v2183_v29  ;;  %v2181_v9 = vmul.f32 1.442695, %v2160_v34 }
 0x946   : > { %v7077_v31 = vpop.eup %5511  ;;  %v2146_v11 = vpop.xlane.xlu1 %2145 }
 0x947   : > { %v7079_v4 = vpop.eup %5513  ;;  %2205 = vadd.xlane.f32.xlu0 %v7077_v31  ;;  %v2179_v18 = vmul.f32 1.442695, %v2159_v8  ;;  %v2166_v12 = vsub.f32 %v6997_v21, %v2146_v11 }
 0x948   : > { %2203 = vadd.xlane.f32.xlu1 %v7079_v4  ;;  %v2144_v10 = vpop.xlane.xlu0 %2143 }
 0x949   : > { %5519 = vpow2.f32 %v2179_v18 }
 0x94a   : > { %v2142_v38 = vpop.xlane.xlu1 %2141  ;;  %5521 = vpow2.f32 %v2181_v9 }
 0x94b   : > { %v7083_v36 = vpop.eup %5515  ;;  %5523 = vpow2.f32 %v2185_v0  ;;  %v2164_v18 = vsub.f32 %v7015_v41, %v2142_v38 }
 0x94c   : > { %2209 = vadd.xlane.f32.xlu1 %v7083_v36  ;;  %v2140_v30 = vpop.xlane.xlu0 %2139 }
 0x94d   : > { %v2163_v56 = vsub.f32 %v7024_v40, %v2140_v30  ;;  %v2189_v9 = vmul.f32 1.442695, %v2164_v18 }
 0x94f   : > { %v2187_v23 = vmul.f32 1.442695, %v2163_v56  ;;  %v7099_v5 = vpop.eup %5517 }
 0x950   : > { %v2152_v17 = vpop.xlane.xlu0 %2151 }
 0x951   : > { %v2169_v53 = vsub.f32 %v7034_v61, %v2152_v17 }
 0x953   : > { %v2199_v14 = vmul.f32 1.442695, %v2169_v53  ;;  %v7105_v40 = vpop.eup %5519 }
 0x954   : > { %v2148_v50 = vpop.xlane.xlu0 %2147 }
 0x955   : > { %v2167_v32 = vsub.f32 %v7043_v51, %v2148_v50  ;;  %v7107_v51 = vpop.eup %5521 }
 0x956   : > { %v7112_v30 = vpop.eup %5523 }
 0x957   : > { %v2195_v61 = vmul.f32 1.442695, %v2167_v32  ;;  %v2453_v32 = vsel %vm1069_vm2, %v6867_v62, 0 }
 0x95d   : > { %2420 = vrot.lane.b32.xlu0 %v6284_v26, %s5879_s18  ;;  %2422 = vrot.lane.b32.xlu1 %v6282_v55, %s5879_s18  ;;  %v2165_v55 = vsub.f32 %v7006_v13, %v2144_v10  ;;  %v7101_v13 = vpop.permute.xlu1 %2418 }
 0x95f   : > { %v2191_v7 = vmul.f32 1.442695, %v2165_v55  ;;  %v2193_v55 = vmul.f32 1.442695, %v2166_v12 }
 0x961   : > { %5525 = vpow2.f32 %v2191_v7 }
 0x962   : > { %5527 = vpow2.f32 %v2199_v14 }
 0x963   : > { %5529 = vpow2.f32 %v2187_v23 }
 0x964   : > { %5531 = vpow2.f32 %v2195_v61 }
 0x965   : > { %5533 = vpow2.f32 %v2193_v55 }
 0x96b   : > { %v7114_v38 = vpop.eup %5525 }
 0x96c   : > { %v7119_v8 = vpop.eup %5527 }
 0x96d   : > { %v7121_v34 = vpop.eup %5529 }
 0x96e   : > { %v7125_v11 = vpop.eup %5531 }
 0x96f   : > { %v7127_v17 = vpop.eup %5533 }
 0x97c   : > { %2215 = vadd.xlane.f32.xlu0 %v7099_v5 }
 0x97f   : > { %v2154_v0 = vpop.xlane.xlu1 %2153 }
 0x980   : > { %v2170_v21 = vsub.f32 %v7056_v52, %v2154_v0  ;;  %2211 = vadd.xlane.f32.xlu0 %v7105_v40 }
 0x981   : > { %2213 = vadd.xlane.f32.xlu1 %v7107_v51 }
 0x982   : > { %v2201_v10 = vmul.f32 1.442695, %v2170_v21 }
 0x983   : > { %v2150_v29 = vpop.xlane.xlu1 %2149 }
 0x984   : > { %5535 = vpow2.f32 %v2201_v10  ;;  %v2168_v41 = vsub.f32 %v7065_v2, %v2150_v29  ;;  %2217 = vadd.xlane.f32.xlu0 %v7112_v30 }
 0x985   : > { %2223 = vadd.xlane.f32.xlu1 %v7114_v38  ;;  %5537 = vpow2.f32 %v2189_v9 }
 0x986   : > { %v2197_v52 = vmul.f32 1.442695, %v2168_v41 }
 0x988   : > { %2231 = vadd.xlane.f32.xlu0 %v7119_v8  ;;  %5539 = vpow2.f32 %v2197_v52 }
 0x989   : > { %2219 = vadd.xlane.f32.xlu1 %v7121_v34 }
 0x98c   : > { %2227 = vadd.xlane.f32.xlu0 %v7125_v11 }
 0x98d   : > { %2225 = vadd.xlane.f32.xlu1 %v7127_v17 }
 0x98e   : > { %v7131_v2 = vpop.eup %5535 }
 0x98f   : > { %v7133_v35 = vpop.eup %5537 }
 0x990   : > { %2233 = vadd.xlane.f32.xlu0 %v7131_v2 }
 0x991   : > { %2221 = vadd.xlane.f32.xlu1 %v7133_v35 }
 0x992   : > { %v7137_v53 = vpop.eup %5539 }
 0x995   : > { %2229 = vadd.xlane.f32.xlu1 %v7137_v53 }
 0x9a6   : > { %2426 = vrot.lane.b32.xlu1 %v6294_v27, %s5879_s18  ;;  %2424 = vrot.lane.b32.xlu0 %v6296_v44, %s5879_s18  ;;  %s5882_s18 = smov 8  }
 0x9aa   : > { %2398 = vrot.lane.b32.xlu1 %v6260_v28, %s5880_s0  ;;  %2396 = vrot.lane.b32.xlu0 %v6264_v59, %s5880_s0  ;;  %v2417_v28 = vpop.permute.xlu0 %2416 }
 0x9ae   : > { %2402 = vrot.lane.b32.xlu1 %v6274_v16, %s5880_s0  ;;  %2400 = vrot.lane.b32.xlu0 %v6276_v46, %s5880_s0 }
 0x9b2   : > { %2406 = vrot.lane.b32.xlu1 %v6286_v57, %s5880_s0  ;;  %2404 = vrot.lane.b32.xlu0 %v6288_v58, %s5880_s0 }
 0x9b6   : > { %2410 = vrot.lane.b32.xlu1 %v6298_v60, %s5880_s0  ;;  %2408 = vrot.lane.b32.xlu0 %v6302_v45, %s5880_s0  ;;  %s3545_s0 = scalar_lea.vmem %s8098_s10, %s5853_s21 }
 0x9ba   : > { %2727 = vrot.lane.b32.xlu1 %v6256_v63, %s5881_s30  ;;  %2725 = vrot.lane.b32.xlu0 %v6258_v47, %s5881_s30 }
 0x9be   : > { %2729 = vrot.lane.b32.xlu0 %v6272_v43, %s5881_s30 }
 0x9d1   : > { %v2208_v59 = vpop.xlane.xlu1 %2207 }
 0x9d4   : > { %v2206_v16 = vpop.xlane.xlu0 %2205 }
 0x9d5   : > { %5541 = vrcp.f32 %v2206_v16  ;;  %v2204_v46 = vpop.xlane.xlu1 %2203 }
 0x9d6   : > { %5543 = vrcp.f32 %v2204_v46 }
 0x9d7   : > { %5545 = vrcp.f32 %v2208_v59 }
 0x9d8   : > { %v2421_v62 = vpop.permute.xlu0 %2420 }
 0x9d9   : > { %v2210_v57 = vpop.xlane.xlu1 %2209 }
 0x9da   : > { %5547 = vrcp.f32 %v2210_v57 }
 0x9df   : > { %v5542_v58 = vpop.eup %5541 }
 0x9e0   : > { %v5544_v60 = vpop.eup %5543  ;;  %v2238_v45 = vmul.f32 %v5542_v58, %v7077_v31  ;;  %v2456_v31 = vsel %vm1069_vm2, %v7068_v6, 0 }
 0x9e1   : > { %v2236_v63 = vmul.f32 %v5544_v60, %v7079_v4  ;;  %v5546_v7 = vpop.eup %5545  ;;  %v2462_v4 = vsel %vm1069_vm2, %v7101_v13, 0 }
 0x9e2   : > { %v2240_v43 = vmul.f32 %v5546_v7, %v7074_v22  ;;  %v2459_v22 = vsel %vm1069_vm2, %v2417_v28, 0 }
 0x9e3   : > { %v2267_v47 = vpack.c.bf16 %v2238_v45, %v2236_v63 }
 0x9e4   : > { %v5548_v56 = vpop.eup %5547 }
 0x9e5   : > { %v2242_v50 = vmul.f32 %v5548_v56, %v7083_v36  ;;  %4949 = vmatprep.mubr.bf16.mxu0 %v2267_v47  ;;  %v2465_v36 = vsel %vm1069_vm2, %v2421_v62, 0 }
 0x9e7   : > { %v2268_v14 = vpack.c.bf16 %v2242_v50, %v2240_v43 }
 0x9e9   : > { %4950 = vmatmul.mubr.bf16.vlgmr.msra.gmra.mrb[48].mxu0 %v2268_v14 }
 0x9ea   : > { %4966 = vmatpush3.bf16.xpose.msra.mxu0 %v2453_v32 }
 0x9eb   : > { %5158 = vmatprep.subr.msk.bf16.mxu0 %vm1069_vm2, %v7068_v6  ;;  %v2423_v6 = vpop.permute.xlu1 %2422 }
 0x9ec   : > { %v2468_v55 = vsel %vm1069_vm2, %v2423_v6, 0 }
 0x9f2   : > { %4968 = vmatpush3.bf16.xpose.msra.mxu0 %v2456_v31 }
 0x9f3   : > { %5159 = vmatprep.subr.msk.bf16.mxu0 %vm1069_vm2, %v2417_v28 }
 0x9fa   : > { %4970 = vmatpush3.bf16.xpose.msra.mxu0 %v2459_v22 }
 0x9fb   : > { %5160 = vmatprep.subr.msk.bf16.mxu0 %vm1069_vm2, %v7101_v13 }
 0xa02   : > { %4972 = vmatpush3.bf16.xpose.msra.mxu0 %v2462_v4 }
 0xa03   : > { %5161 = vmatprep.subr.msk.bf16.mxu0 %vm1069_vm2, %v2421_v62 }
 0xa09   : > { %v2216_v12 = vpop.xlane.xlu0 %2215 }
 0xa0a   : > { %4974 = vmatpush3.bf16.xpose.msra.mxu0 %v2465_v36 }
 0xa0b   : > { %5162 = vmatprep.subr.msk.bf16.mxu0 %vm1069_vm2, %v2423_v6 }
 0xa0d   : > { %v2212_v23 = vpop.xlane.xlu0 %2211 }
 0xa0e   : > { %5549 = vrcp.f32 %v2212_v23  ;;  %v2214_v61 = vpop.xlane.xlu1 %2213 }
 0xa0f   : > { %5551 = vrcp.f32 %v2214_v61 }
 0xa10   : > { %5553 = vrcp.f32 %v2216_v12 }
 0xa11   : > { %v2218_v18 = vpop.xlane.xlu0 %2217 }
 0xa12   : > { %4976 = vmatpush3.bf16.xpose.msra.mxu0 %v2468_v55  ;;  %5555 = vrcp.f32 %v2218_v18  ;;  %v2224_v13 = vpop.xlane.xlu1 %2223 }
 0xa15   : > { %v2232_v0 = vpop.xlane.xlu0 %2231 }
 0xa16   : > { %v2220_v21 = vpop.xlane.xlu1 %2219 }
 0xa18   : > { %v5550_v9 = vpop.eup %5549 }
 0xa19   : > { %v5552_v10 = vpop.eup %5551  ;;  %v2228_v29 = vpop.xlane.xlu0 %2227  ;;  %v2244_v41 = vmul.f32 %v5550_v9, %v7105_v40 }
 0xa1a   : > { %v5554_v52 = vpop.eup %5553  ;;  %v2226_v28 = vpop.xlane.xlu1 %2225  ;;  %v2246_v59 = vmul.f32 %v5552_v10, %v7107_v51 }
 0xa1b   : > { %5557 = vrcp.f32 %v2226_v28  ;;  %v2248_v58 = vmul.f32 %v5554_v52, %v7099_v5 }
 0xa1c   : > { %v5556_v16 = vpop.eup %5555  ;;  %v2269_v46 = vpack.c.bf16 %v2246_v59, %v2244_v41  ;;  %5559 = vrcp.f32 %v2220_v21 }
 0xa1d   : > { %v2234_v57 = vpop.xlane.xlu0 %2233  ;;  %v2250_v60 = vmul.f32 %v5556_v16, %v7112_v30  ;;  %5561 = vrcp.f32 %v2224_v13 }
 0xa1e   : > { %v2222_v45 = vpop.xlane.xlu1 %2221  ;;  %4953 = vmatprep.mubr.bf16.mxu0 %v2269_v46 }
 0xa1f   : > { %5563 = vrcp.f32 %v2222_v45  ;;  %v2270_v63 = vpack.c.bf16 %v2250_v60, %v2248_v58 }
 0xa20   : > { %5565 = vrcp.f32 %v2228_v29 }
 0xa21   : > { %4954 = vmatmul.mubr.bf16.gmra.mrb[52].mxu0 %v2270_v63  ;;  %v2425_v40 = vpop.permute.xlu0 %2424 }
 0xa22   : > { %v2230_v7 = vpop.xlane.xlu1 %2229  ;;  %5163 = vmatprep.subr.msk.bf16.mxu0 %vm1069_vm2, %v2425_v40  ;;  %v2471_v51 = vsel %vm1069_vm2, %v2425_v40, 0 }
 0xa23   : > { %5567 = vrcp.f32 %v2230_v7  ;;  %4978 = vmatpush3.bf16.xpose.msra.mxu0 %v2471_v51 }
 0xa24   : > { %5569 = vrcp.f32 %v2234_v57 }
 0xa25   : > { %v2397_v47 = vpop.permute.xlu0 %2396  ;;  %v5558_v5 = vpop.eup %5557  ;;  %5571 = vrcp.f32 %v2232_v0 }
 0xa26   : > { %v2427_v30 = vpop.permute.xlu1 %2426  ;;  %v5560_v56 = vpop.eup %5559  ;;  %v2258_v32 = vmul.f32 %v5558_v5, %v7127_v17 }
 0xa27   : > { %5164 = vmatprep.subr.msk.bf16.mxu0 %vm1069_vm2, %v2427_v30  ;;  %v5562_v43 = vpop.eup %5561  ;;  %v2474_v22 = vsel %vm1069_vm2, %v2427_v30, 0  ;;  %v2252_v4 = vmul.f32 %v5560_v56, %v7121_v34 }
 0xa28   : > { %v2256_v12 = vmul.f32 %v5562_v43, %v7114_v38 }
 0xa29   : > { %v5564_v50 = vpop.eup %5563  ;;  %v2401_v14 = vpop.permute.xlu0 %2400 }
 0xa2a   : > { %v2399_v31 = vpop.permute.xlu1 %2398  ;;  %v2254_v62 = vmul.f32 %v5564_v50, %v7133_v35  ;;  %v5566_v36 = vpop.eup %5565  ;;  %v2272_v55 = vpack.c.bf16 %v2258_v32, %v2256_v12 }
 0xa2b   : > { %4980 = vmatpush3.bf16.xpose.msra.mxu0 %v2474_v22  ;;  %v2260_v17 = vmul.f32 %v5566_v36, %v7125_v11 }
 0xa2c   : > { %v2271_v6 = vpack.c.bf16 %v2254_v62, %v2252_v4 }
 0xa2d   : > { %v5568_v23 = vpop.eup %5567  ;;  %v2405_v61 = vpop.permute.xlu0 %2404 }
 0xa2e   : > { %v5570_v18 = vpop.eup %5569  ;;  %v2403_v13 = vpop.permute.xlu1 %2402  ;;  %4957 = vmatprep.mubr.bf16.mxu0 %v2271_v6  ;;  %v2262_v0 = vmul.f32 %v5568_v23, %v7137_v53 }
 0xa2f   : > { %4958 = vmatmul.mubr.bf16.gmra.mrb[56].mxu0 %v2272_v55  ;;  %v5572_v21 = vpop.eup %5571  ;;  %v2266_v35 = vmul.f32 %v5570_v18, %v7131_v2 }
 0xa30   : > { %v2273_v34 = vpack.c.bf16 %v2262_v0, %v2260_v17  ;;  %v2264_v38 = vmul.f32 %v5572_v21, %v7119_v8 }
 0xa31   : > { %v2409_v9 = vpop.permute.xlu0 %2408 }
 0xa32   : > { %v2407_v10 = vpop.permute.xlu1 %2406  ;;  %4961 = vmatprep.mubr.bf16.mxu0 %v2273_v34  ;;  %v2274_v41 = vpack.c.bf16 %v2266_v35, %v2264_v38 }
 0xa35   : > { %v2726_v29 = vpop.permute.xlu0 %2725 }
 0xa36   : > { %v2411_v52 = vpop.permute.xlu1 %2410  ;;  %4997 = vmatprep.subr.bf16.mxu0 %v2726_v29  ;;  %5113 = vmatprep.subr.bf16.mxu1 %v2726_v29 }
 0xa37   : > { %4962 = vmatmul.mubr.bf16.gmra.mrb[60].mxu0 %v2274_v41  ;;  %5121 = vmatpush3.bf16.msra.mxu1 %v2726_v29 }
 0xa38   : > { %4981 = vmatprep.mubr.msk.bf16.mxu0 %vm1069_vm2, %v2397_v47 }
 0xa39   : > { %v2730_v53 = vpop.permute.xlu0 %2729 }
 0xa3a   : > { %v2728_v11 = vpop.permute.xlu1 %2727 }
 0xa3b   : > { %5114 = vmatprep.subr.bf16.mxu1 %v2728_v11 }
 0xa3c   : > { %5122 = vmatpush3.bf16.msra.mxu1 %v2728_v11 }
 0xa3d   : > { %5115 = vmatprep.subr.bf16.mxu1 %v2730_v53 }
 0xa3f   : > { %4982 = vmatmul.mubr.msk.bf16.vlgmr.msra.gmra.mrb[64].mxu0 %vm1069_vm2, %v2399_v31 }
 0xa40   : > { %4998 = vmatpush3.bf16.msra.mxu0 %v2726_v29  ;;  %4985 = vmatprep.mubr.msk.bf16.mxu0 %vm1069_vm2, %v2401_v14 }
 0xa41   : > { %4999 = vmatprep.subr.bf16.mxu0 %v2728_v11  ;;  %5123 = vmatpush3.bf16.msra.mxu1 %v2730_v53 }
 0xa44   : > { %5000 = vmatpush3.bf16.msra.mxu0 %v2728_v11 }
 0xa45   : > { %5001 = vmatprep.subr.bf16.mxu0 %v2730_v53 }
 0xa47   : > { %4986 = vmatmul.mubr.msk.bf16.gmra.mrb[68].mxu0 %vm1069_vm2, %v2403_v13 }
 0xa48   : > { %5002 = vmatpush3.bf16.msra.mxu0 %v2730_v53  ;;  %4989 = vmatprep.mubr.msk.bf16.mxu0 %vm1069_vm2, %v2405_v61 }
 0xa4f   : > { %4990 = vmatmul.mubr.msk.bf16.gmra.mrb[72].mxu0 %vm1069_vm2, %v2407_v10 }
 0xa50   : > { %4993 = vmatprep.mubr.msk.bf16.mxu0 %vm1069_vm2, %v2409_v9 }
 0xa57   : > { %4994 = vmatmul.mubr.msk.bf16.gmra.mrb[76].mxu0 %vm1069_vm2, %v2411_v52 }
 0xabc   : > { %v7202_v8 = vpop.f32.mrb[48].mxu0 }
 0xabd   : > { %v7204_v2 = vpop.f32.mrb[49].mxu0 }
 0xabe   : > { %v7206_v28 = vpop.f32.mrb[50].mxu0 }
 0xabf   : > { %v5234_v59 = vpack.i.bf16 %v7206_v28, %v7202_v8  ;;  %v7210_v16 = vpop.f32.mrb[51].mxu0  ;;  %v8187_v28 = vld [vmem:[#allocation32_spill] sm:$0xff] }
 0xac0   : > { %v5229_v46 = vpack.i.bf16 %v7210_v16, %v7204_v2 }
 0xaf4   : > { %v7214_v57 = vpop.f32.mrb[52].mxu0 }
 0xaf5   : > { %v7216_v58 = vpop.f32.mrb[53].mxu0 }
 0xaf6   : > { %v7218_v60 = vpop.f32.mrb[54].mxu0 }
 0xaf7   : > { %v5254_v45 = vpack.i.bf16 %v7218_v60, %v7214_v57  ;;  %v7222_v63 = vpop.f32.mrb[55].mxu0  ;;  %v8190_v57 = vld [vmem:[#allocation9_spill] sm:$0xff]  ;;  %v8191_v60 = vld [vmem:[#allocation7_spill] sm:$0xff] }
 0xaf8   : > { %v5249_v40 = vpack.i.bf16 %v7222_v63, %v7216_v58 }
 0xb02   : > { %v7226_v7 = vpop.f32.mrb[56].mxu0 }
 0xb03   : > { %v7228_v51 = vpop.f32.mrb[57].mxu0 }
 0xb04   : > { %v7230_v47 = vpop.f32.mrb[58].mxu0 }
 0xb05   : > { %v5284_v5 = vpack.i.bf16 %v7230_v47, %v7226_v7  ;;  %v7234_v30 = vpop.f32.mrb[59].mxu0  ;;  %v8203_v7 = vld [vmem:[#allocation35_spill] sm:$0xff] }
 0xb06   : > { %v5279_v56 = vpack.i.bf16 %v7234_v30, %v7228_v51 }
 0xb0a   : > { %v7238_v43 = vpop.f32.mrb[60].mxu0 }
 0xb0b   : > { %v7240_v50 = vpop.f32.mrb[61].mxu0 }
 0xb0c   : > { %v7242_v14 = vpop.f32.mrb[62].mxu0 }
 0xb0d   : > { %v5324_v32 = vpack.i.bf16 %v7242_v14, %v7238_v43  ;;  %v7246_v31 = vpop.f32.mrb[63].mxu0 }
 0xb0e   : > { %v5319_v22 = vpack.i.bf16 %v7246_v31, %v7240_v50 }
 0xb12   : > { %v4983_v4 = vpop.f32.mrb[64].mxu0 }
 0xb13   : > { %v2519_v62 = vadd.f32 %v6923_v1, %v4983_v4  ;;  %v2510_v36 = vpop.f32.mrb[65].mxu0 }
 0xb14   : > { %v4984_v12 = vpop.f32.mrb[66].mxu0  ;;  %v2511_v61 = vadd.f32 %v6940_v19, %v2510_v36 }
 0xb15   : > { %2577 = vmax.xlane.f32.xlu0 %v2519_v62  ;;  %v2513_v6 = vpop.f32.mrb[67].mxu0  ;;  %v2522_v18 = vadd.f32 %v6950_v48, %v4984_v12 }
 0xb16   : > { %v2514_v23 = vadd.f32 %v6932_v49, %v2513_v6 }
 0xb18   : > { %2575 = vmax.xlane.f32.xlu1 %v2514_v23 }
 0xb19   : > { %2573 = vmax.xlane.f32.xlu0 %v2511_v61 }
 0xb1a   : > { %v4987_v55 = vpop.f32.mrb[68].mxu0 }
 0xb1b   : > { %v2526_v13 = vpop.f32.mrb[69].mxu0  ;;  %v2535_v21 = vadd.f32 %v6967_v33, %v4987_v55 }
 0xb1c   : > { %v4988_v17 = vpop.f32.mrb[70].mxu0  ;;  %v2527_v34 = vadd.f32 %v6985_v15, %v2526_v13 }
 0xb1d   : > { %v7255_v0 = vadd.f32 %v6958_v20, %v4988_v17  ;;  %2579 = vmax.xlane.f32.xlu0 %v2522_v18  ;;  %v2529_v1 = vpop.f32.mrb[71].mxu0 }
 0xb1e   : > { %v2530_v49 = vadd.f32 %v6976_v3, %v2529_v1 }
 0xb1f   : > { %2587 = vmax.xlane.f32.xlu1 %v7255_v0 }
 0xb21   : > { %2585 = vmax.xlane.f32.xlu0 %v2535_v21 }
 0xb22   : > { %v4991_v19 = vpop.f32.mrb[72].mxu0 }
 0xb23   : > { %2583 = vmax.xlane.f32.xlu1 %v2530_v49  ;;  %v2542_v9 = vpop.f32.mrb[73].mxu0  ;;  %v2551_v10 = vadd.f32 %v7003_v37, %v4991_v19  ;;  %v8178_v37 = vld [vmem:[#allocation38_spill] sm:$0xff] }
 0xb24   : > { %v4992_v48 = vpop.f32.mrb[74].mxu0  ;;  %v7270_v38 = vadd.f32 %v7021_v39, %v2542_v9  ;;  %v8177_v39 = vld [vmem:[#allocation4_spill] sm:$0xff] }
 0xb25   : > { %v7262_v35 = vadd.f32 %v6994_v24, %v4992_v48  ;;  %2581 = vmax.xlane.f32.xlu0 %v2527_v34  ;;  %v2545_v20 = vpop.f32.mrb[75].mxu0 }
 0xb26   : > { %v7267_v33 = vadd.f32 %v7012_v42, %v2545_v20 }
 0xb27   : > { %2595 = vmax.xlane.f32.xlu1 %v7262_v35 }
 0xb29   : > { %2593 = vmax.xlane.f32.xlu0 %v2551_v10 }
 0xb2a   : > { %v4995_v3 = vpop.f32.mrb[76].mxu0 }
 0xb2b   : > { %2591 = vmax.xlane.f32.xlu1 %v7267_v33  ;;  %v2558_v15 = vpop.f32.mrb[77].mxu0  ;;  %v7275_v41 = vadd.f32 %v7031_v54, %v4995_v3  ;;  %v8179_v54 = vld [vmem:[#allocation39_spill] sm:$0xff] }
 0xb2c   : > { %v4996_v29 = vpop.f32.mrb[78].mxu0  ;;  %v7279_v42 = vadd.f32 %v7040_v25, %v2558_v15  ;;  %v8180_v25 = vld [vmem:[#allocation5_spill] sm:$0xff] }
 0xb2d   : > { %2589 = vmax.xlane.f32.xlu0 %v7270_v38  ;;  %v2561_v24 = vpop.f32.mrb[79].mxu0  ;;  %v7287_v52 = vadd.f32 %v8178_v37, %v4996_v29 }
 0xb2e   : > { %v7291_v11 = vadd.f32 %v8179_v54, %v2561_v24 }
 0xb31   : > { %2601 = vmax.xlane.f32.xlu0 %v7275_v41 }
 0xb35   : > { %2597 = vmax.xlane.f32.xlu0 %v7279_v42 }
 0xb3c   : > { %2733 = vrot.lane.b32.xlu1 %v6284_v26, %s5881_s30 }
 0xb4b   : > { %2731 = vrot.lane.b32.xlu0 %v8177_v39, %s5881_s30 }
 0xb60   : > { %2603 = vmax.xlane.f32.xlu1 %v7287_v52 }
 0xb64   : > { %2599 = vmax.xlane.f32.xlu1 %v7291_v11 }
 0xb75   : > { %2735 = vrot.lane.b32.xlu1 %v8180_v25, %s5881_s30 }
 0xba2   : > { %v2578_v53 = vpop.xlane.xlu0 %2577 }
 0xba3   : > { %v2607_v4 = vsub.f32 %v2519_v62, %v2578_v53 }
 0xba5   : > { %v2625_v36 = vmul.f32 1.442695, %v2607_v4  ;;  %v2576_v12 = vpop.xlane.xlu1 %2575 }
 0xba6   : > { %v2574_v26 = vpop.xlane.xlu0 %2573  ;;  %v2606_v13 = vsub.f32 %v2514_v23, %v2576_v12 }
 0xba7   : > { %5573 = vpow2.f32 %v2625_v36  ;;  %v2605_v6 = vsub.f32 %v2511_v61, %v2574_v26 }
 0xba8   : > { %v2623_v48 = vmul.f32 1.442695, %v2606_v13 }
 0xba9   : > { %v2621_v55 = vmul.f32 1.442695, %v2605_v6 }
 0xbaa   : > { %v2580_v17 = vpop.xlane.xlu0 %2579 }
 0xbab   : > { %5575 = vpow2.f32 %v2621_v55  ;;  %v2608_v1 = vsub.f32 %v2522_v18, %v2580_v17 }
 0xbac   : > { %v2588_v19 = vpop.xlane.xlu1 %2587 }
 0xbad   : > { %v2627_v9 = vmul.f32 1.442695, %v2608_v1  ;;  %v2612_v23 = vsub.f32 %v7255_v0, %v2588_v19 }
 0xbae   : > { %v2586_v20 = vpop.xlane.xlu0 %2585 }
 0xbaf   : > { %5577 = vpow2.f32 %v2627_v9  ;;  %v2611_v3 = vsub.f32 %v2535_v21, %v2586_v20  ;;  %v2635_v53 = vmul.f32 1.442695, %v2612_v23 }
 0xbb0   : > { %v2584_v15 = vpop.xlane.xlu1 %2583  ;;  %5579 = vpow2.f32 %v2623_v48 }
 0xbb1   : > { %v7296_v29 = vpop.eup %5573  ;;  %v2633_v62 = vmul.f32 1.442695, %v2611_v3  ;;  %v2610_v24 = vsub.f32 %v2530_v49, %v2584_v15 }
 0xbb2   : > { %2657 = vadd.xlane.f32.xlu1 %v7296_v29  ;;  %v2582_v61 = vpop.xlane.xlu0 %2581 }
 0xbb3   : > { %5581 = vpow2.f32 %v2633_v62  ;;  %v2631_v39 = vmul.f32 1.442695, %v2610_v24  ;;  %v2609_v18 = vsub.f32 %v2527_v34, %v2582_v61 }
 0xbb4   : > { %v2596_v25 = vpop.xlane.xlu1 %2595 }
 0xbb5   : > { %v7300_v37 = vpop.eup %5575  ;;  %v2629_v54 = vmul.f32 1.442695, %v2609_v18  ;;  %5583 = vpow2.f32 %v2631_v39  ;;  %v2616_v36 = vsub.f32 %v7262_v35, %v2596_v25  ;;  %v8182_v25 = vld [vmem:[#allocation6_spill] sm:$0xff] }
 0xbb6   : > { %2653 = vadd.xlane.f32.xlu1 %v7300_v37  ;;  %v2594_v21 = vpop.xlane.xlu0 %2593 }
 0xbb7   : > { %5585 = vpow2.f32 %v2629_v54  ;;  %v2615_v49 = vsub.f32 %v2551_v10, %v2594_v21  ;;  %v2643_v17 = vmul.f32 1.442695, %v2616_v36  ;;  %v8181_v54 = vld [vmem:[#allocation8_spill] sm:$0xff]  ;;  %v8185_v36 = vld [vmem:[#allocation26_spill] sm:$0xff] }
 0xbb8   : > { %5587 = vpow2.f32 %v2635_v53  ;;  %v2592_v34 = vpop.xlane.xlu1 %2591  ;;  %v8183_v21 = vpack.i.bf16 %v8181_v54, %v8182_v25 }
 0xbb9   : > { %v7303_v4 = vpop.eup %5577  ;;  %v2641_v26 = vmul.f32 1.442695, %v2615_v49  ;;  %v2614_v10 = vsub.f32 %v7267_v33, %v2592_v34  ;;  %v8184_v49 = vld [vmem:[#allocation28_spill] sm:$0xff] }
 0xbba   : > { %2659 = vadd.xlane.f32.xlu1 %v7303_v4  ;;  %v2590_v0 = vpop.xlane.xlu0 %2589  ;;  %v7308_v6 = vpop.eup %5579 }
 0xbbb   : > { %v2613_v12 = vsub.f32 %v7270_v38, %v2590_v0  ;;  %5589 = vpow2.f32 %v2641_v26  ;;  %v2639_v48 = vmul.f32 1.442695, %v2614_v10  ;;  %v8186_v26 = vpack.i.bf16 %v8184_v49, %v8185_v36  ;;  %v8197_v10 = vld [vmem:[#allocation31_spill] sm:$0xff] }
 0xbbc   : > { %v2734_v24 = vpop.permute.xlu1 %2733 }
 0xbbd   : > { %v7310_v55 = vpop.eup %5581  ;;  %v2637_v13 = vmul.f32 1.442695, %v2613_v12  ;;  %v8194_v12 = vld [vmem:[#allocation27_spill] sm:$0xff] }
 0xbbe   : > { %2655 = vadd.xlane.f32.xlu1 %v7308_v6  ;;  %2665 = vadd.xlane.f32.xlu0 %v7310_v55  ;;  %v2602_v35 = vpop.xlane.xlu0 %2601 }
 0xbbf   : > { %5591 = vpow2.f32 %v2637_v13  ;;  %v2619_v1 = vsub.f32 %v7275_v41, %v2602_v35  ;;  %v7316_v19 = vpop.eup %5583 }
 0xbc0   : > { %5593 = vpow2.f32 %v2643_v17  ;;  %v8196_v17 = vld [vmem:[#allocation33_spill] sm:$0xff] }
 0xbc1   : > { %v7318_v38 = vpop.eup %5585  ;;  %v2649_v9 = vmul.f32 1.442695, %v2619_v1  ;;  %v8198_v35 = vpack.i.bf16 %v8196_v17, %v8197_v10 }
 0xbc2   : > { %2663 = vadd.xlane.f32.xlu1 %v7316_v19  ;;  %2661 = vadd.xlane.f32.xlu0 %v7318_v38  ;;  %v2598_v33 = vpop.xlane.xlu0 %2597  ;;  %v7323_v3 = vpop.eup %5587 }
 0xbc3   : > { %5595 = vpow2.f32 %v2649_v9  ;;  %v2617_v20 = vsub.f32 %v7279_v42, %v2598_v33 }
 0xbc4   : > { %5597 = vpow2.f32 %v2639_v48 }
 0xbc5   : > { %v2645_v15 = vmul.f32 1.442695, %v2617_v20  ;;  %v7326_v62 = vpop.eup %5589 }
 0xbc6   : > { %2667 = vadd.xlane.f32.xlu0 %v7323_v3  ;;  %v2732_v41 = vpop.permute.xlu0 %2731 }
 0xbc7   : > { %5599 = vpow2.f32 %v2645_v15  ;;  %5003 = vmatprep.subr.bf16.mxu0 %v2732_v41  ;;  %5116 = vmatprep.subr.bf16.mxu1 %v2732_v41 }
 0xbc8   : > { %5004 = vmatpush3.bf16.msra.mxu0 %v2732_v41  ;;  %5124 = vmatpush3.bf16.msra.mxu1 %v2732_v41 }
 0xbc9   : > { %v7328_v61 = vpop.eup %5591  ;;  %5005 = vmatprep.subr.bf16.mxu0 %v2734_v24  ;;  %5117 = vmatprep.subr.bf16.mxu1 %v2734_v24 }
 0xbca   : > { %2673 = vadd.xlane.f32.xlu0 %v7326_v62  ;;  %2669 = vadd.xlane.f32.xlu1 %v7328_v61  ;;  %v7332_v42 = vpop.eup %5593 }
 0xbcc   : > { %5006 = vmatpush3.bf16.msra.mxu0 %v2734_v24  ;;  %5125 = vmatpush3.bf16.msra.mxu1 %v2734_v24 }
 0xbcd   : > { %v7334_v23 = vpop.eup %5595 }
 0xbce   : > { %2675 = vadd.xlane.f32.xlu0 %v7332_v42  ;;  %2681 = vadd.xlane.f32.xlu1 %v7334_v23  ;;  %v7338_v39 = vpop.eup %5597 }
 0xbd1   : > { %v7340_v18 = vpop.eup %5599 }
 0xbd2   : > { %2671 = vadd.xlane.f32.xlu0 %v7338_v39  ;;  %2677 = vadd.xlane.f32.xlu1 %v7340_v18 }
 0xbe3   : > { %2739 = vrot.lane.b32.xlu1 %v6294_v27, %s5881_s30 }
 0xbe7   : > { %5225 = vrot.lane.b32.xlu1 %v8183_v21, %s5882_s18 }
 0xbe8   : > { %2737 = vrot.lane.b32.xlu0 %v6296_v44, %s5881_s30 }
 0xbeb   : > { %5230 = vrot.lane.b32.xlu1 %v5229_v46, %s5883_s17 }
 0xbed   : > { %v2604_v53 = vpop.xlane.xlu1 %2603 }
 0xbee   : > { %v2620_v8 = vsub.f32 %v7287_v52, %v2604_v53  ;;  %v8193_v52 = vld [vmem:[#allocation29_spill] sm:$0xff] }
 0xbef   : > { %5235 = vrot.lane.b32.xlu1 %v5234_v59, %s5883_s17  ;;  %v8188_v59 = vld [vmem:[#allocation30_spill] sm:$0xff]  ;;  %v8195_v13 = vpack.i.bf16 %v8193_v52, %v8194_v12 }
 0xbf0   : > { %v8189_v16 = vpack.i.bf16 %v8187_v28, %v8188_v59  ;;  %v2651_v46 = vmul.f32 1.442695, %v2620_v8 }
 0xbf1   : > { %v2600_v27 = vpop.xlane.xlu1 %2599 }
 0xbf2   : > { %v2618_v44 = vsub.f32 %v7291_v11, %v2600_v27 }
 0xbf3   : > { %5245 = vrot.lane.b32.xlu1 %v8186_v26, %s5882_s18 }
 0xbf4   : > { %v2647_v2 = vmul.f32 1.442695, %v2618_v44 }
 0xbf5   : > { %v2736_v0 = vpop.permute.xlu1 %2735 }
 0xbf6   : > { %5007 = vmatprep.subr.bf16.mxu0 %v2736_v0  ;;  %5118 = vmatprep.subr.bf16.mxu1 %v2736_v0  ;;  %5601 = vpow2.f32 %v2647_v2 }
 0xbf7   : > { %5255 = vrot.lane.b32.xlu1 %v5254_v45, %s5883_s17  ;;  %5008 = vmatpush3.bf16.msra.mxu0 %v2736_v0  ;;  %5603 = vpow2.f32 %v2651_v46  ;;  %v8192_v45 = vpack.i.bf16 %v8190_v57, %v8191_v60 }
 0xbf8   : > { %5126 = vmatpush3.bf16.msra.mxu1 %v2736_v0 }
 0xbfb   : > { %5265 = vrot.lane.b32.xlu1 %v8189_v16, %s5882_s18 }
 0xc00   : > { %v7374_v11 = vpop.eup %5601 }
 0xc01   : > { %v7377_v34 = vpop.eup %5603 }
 0xc07   : > { %2679 = vadd.xlane.f32.xlu0 %v7374_v11 }
 0xc0b   : > { %2683 = vadd.xlane.f32.xlu0 %v7377_v34 }
 0xc21   : > { %5220 = vrot.lane.b32.xlu0 %v8192_v45, %s5882_s18 }
 0xc25   : > { %5240 = vrot.lane.b32.xlu0 %v8195_v13, %s5882_s18 }
 0xc29   : > { %5250 = vrot.lane.b32.xlu0 %v5249_v40, %s5883_s17 }
 0xc2d   : > { %5260 = vrot.lane.b32.xlu0 %v8198_v35, %s5882_s18 }
 0xc3f   : > { %v2658_v1 = vpop.xlane.xlu1 %2657 }
 0xc43   : > { %v2654_v9 = vpop.xlane.xlu1 %2653 }
 0xc44   : > { %5605 = vrcp.f32 %v2654_v9 }
 0xc47   : > { %v2660_v48 = vpop.xlane.xlu1 %2659 }
 0xc4b   : > { %v2656_v33 = vpop.xlane.xlu1 %2655  ;;  %v2666_v20 = vpop.xlane.xlu0 %2665 }
 0xc4c   : > { %5607 = vrcp.f32 %v2656_v33 }
 0xc4e   : > { %v5606_v54 = vpop.eup %5605 }
 0xc4f   : > { %v2664_v15 = vpop.xlane.xlu1 %2663  ;;  %v2662_v41 = vpop.xlane.xlu0 %2661  ;;  %v2686_v25 = vmul.f32 %v5606_v54, %v7300_v37 }
 0xc50   : > { %5609 = vrcp.f32 %v2664_v15 }
 0xc51   : > { %5611 = vrcp.f32 %v2662_v41 }
 0xc52   : > { %5613 = vrcp.f32 %v2660_v48 }
 0xc53   : > { %v2668_v24 = vpop.xlane.xlu0 %2667 }
 0xc54   : > { %5615 = vrcp.f32 %v2668_v24 }
 0xc55   : > { %5617 = vrcp.f32 %v2658_v1 }
 0xc56   : > { %v5608_v58 = vpop.eup %5607  ;;  %5619 = vrcp.f32 %v2666_v20 }
 0xc57   : > { %v2670_v63 = vpop.xlane.xlu1 %2669  ;;  %v2674_v40 = vpop.xlane.xlu0 %2673  ;;  %v2688_v21 = vmul.f32 %v5608_v58, %v7308_v6 }
 0xc58   : > { %5621 = vrcp.f32 %v2670_v63  ;;  %v5341_v63 = vld [vmem:[%s3097_s28] sm:$0xff]  }
 0xc59   : > { %v2717_v53 = vpack.c.bf16 %v2688_v21, %v2686_v25 }
 0xc5a   : > { %v5610_v27 = vpop.eup %5609 }
 0xc5b   : > { %v5612_v49 = vpop.eup %5611  ;;  %5013 = vmatprep.mubr.bf16.mxu0 %v2717_v53  ;;  %v2682_v36 = vpop.xlane.xlu1 %2681  ;;  %v2696_v44 = vmul.f32 %v5610_v27, %v7316_v19 }
 0xc5c   : > { %v2676_v26 = vpop.xlane.xlu0 %2675  ;;  %v2694_v0 = vmul.f32 %v5612_v49, %v7318_v38  ;;  %v5614_v6 = vpop.eup %5613 }
 0xc5d   : > { %5623 = vrcp.f32 %v2676_v26  ;;  %v2692_v19 = vmul.f32 %v5614_v6, %v7303_v4 }
 0xc5e   : > { %v2719_v8 = vpack.c.bf16 %v2696_v44, %v2694_v0  ;;  %v5616_v28 = vpop.eup %5615 }
 0xc5f   : > { %v2678_v2 = vpop.xlane.xlu1 %2677  ;;  %v5618_v16 = vpop.eup %5617  ;;  %v2700_v38 = vmul.f32 %v5616_v28, %v7323_v3 }
 0xc60   : > { %v2672_v37 = vpop.xlane.xlu0 %2671  ;;  %5017 = vmatprep.mubr.bf16.mxu1 %v2719_v8  ;;  %v5620_v46 = vpop.eup %5619  ;;  %v2690_v60 = vmul.f32 %v5618_v16, %v7296_v29  ;;  %v8200_v16 = vld [vmem:[#allocation34_spill] sm:$0xff] }
 0xc61   : > { %5625 = vrcp.f32 %v2672_v37  ;;  %v2698_v45 = vmul.f32 %v5620_v46, %v7310_v55 }
 0xc62   : > { %5627 = vrcp.f32 %v2674_v40  ;;  %v5622_v52 = vpop.eup %5621  ;;  %v2718_v13 = vpack.c.bf16 %v2692_v19, %v2690_v60 }
 0xc63   : > { %v2740_v57 = vpop.permute.xlu1 %2739  ;;  %v2720_v17 = vpack.c.bf16 %v2700_v38, %v2698_v45  ;;  %v2702_v35 = vmul.f32 %v5622_v52, %v7328_v61  ;;  %5629 = vrcp.f32 %v2678_v2 }
 0xc64   : > { %v2738_v59 = vpop.permute.xlu0 %2737 }
 0xc65   : > { %5009 = vmatprep.subr.bf16.mxu0 %v2738_v59  ;;  %5119 = vmatprep.subr.bf16.mxu1 %v2738_v59 }
 0xc66   : > { %5010 = vmatpush3.bf16.msra.mxu0 %v2738_v59  ;;  %5127 = vmatpush3.bf16.msra.mxu1 %v2738_v59  ;;  %v8199_v59 = vld [vmem:[#allocation36_spill] sm:$0xff] }
 0xc67   : > { %5011 = vmatprep.subr.bf16.mxu0 %v2740_v57  ;;  %5120 = vmatprep.subr.bf16.mxu1 %v2740_v57  ;;  %v5624_v12 = vpop.eup %5623  ;;  %v8201_v46 = vpack.i.bf16 %v8199_v59, %v8200_v16  ;;  %v5226_v60 = vpop.permute.xlu1 %5225 }
 0xc68   : > { %v2708_v9 = vmul.f32 %v5624_v12, %v7332_v42 }
 0xc6a   : > { %5012 = vmatpush3.bf16.msra.mxu0 %v2740_v57  ;;  %5128 = vmatpush3.bf16.msra.mxu1 %v2740_v57  ;;  %v8202_v57 = vld [vmem:[#allocation37_spill] sm:$0xff] }
 0xc6b   : > { %v5626_v10 = vpop.eup %5625  ;;  %5029 = vmatprep.subr.bf16.mxu1 %v5341_v63  ;;  %v8204_v47 = vpack.i.bf16 %v8202_v57, %v8203_v7  ;;  %v5231_v45 = vpop.permute.xlu1 %5230 }
 0xc6c   : > { %v2704_v4 = vmul.f32 %v5626_v10, %v7338_v39  ;;  %v5628_v3 = vpop.eup %5627  ;;  %v5227_v10 = vunpack.i.l.bf16 %v5226_v60 }
 0xc6d   : > { %5014 = vmatmul.mubr.bf16.vlgmr.msra.gmra.mrb[80].mxu0 %v2718_v13  ;;  %5018 = vmatmul.mubr.bf16.vlgmr.msra.gmra.mrb[48].mxu1 %v2720_v17  ;;  %v2706_v29 = vmul.f32 %v5628_v3, %v7326_v62  ;;  %v5630_v20 = vpop.eup %5629  ;;  %v5228_v17 = vunpack.i.h.bf16 %v5226_v60 }
 0xc6e   : > { %v2721_v1 = vpack.c.bf16 %v2704_v4, %v2702_v35  ;;  %v2710_v39 = vmul.f32 %v5630_v20, %v7340_v18  ;;  %5030 = vmatpush3.bf16.msra.mxu1 %v5341_v63  ;;  %v5342_v18 = vld [vmem:[%s3097_s28 + $0x8] sm:$0xff]  }
 0xc6f   : > { %v2722_v55 = vpack.c.bf16 %v2708_v9, %v2706_v29  ;;  %5031 = vmatprep.subr.bf16.mxu1 %v5342_v18  ;;  %v5236_v52 = vpop.permute.xlu1 %5235  ;;  %v8206_v29 = vld [vmem:[#allocation10_spill] sm:$0xff]  ;;  %v8207_v20 = vld [vmem:[#allocation13_spill] sm:$0xff] }
 0xc70   : > { %5021 = vmatprep.mubr.bf16.mxu1 %v2721_v1  ;;  %v5238_v35 = vunpack.i.h.bf16 %v5236_v52  ;;  %v5237_v4 = vunpack.i.l.bf16 %v5236_v52  ;;  %v8205_v1 = vld [vmem:[#allocation12_spill] sm:$0xff] }
 0xc71   : > { %v3041_v9 = vsel %vm1069_vm2, %v8205_v1, %v5228_v17 }
 0xc72   : > { %5032 = vmatpush3.bf16.msra.mxu1 %v5342_v18 }
 0xc73   : > { %v5246_v13 = vpop.permute.xlu1 %5245 }
 0xc74   : > { %v5248_v63 = vunpack.i.h.bf16 %v5246_v13  ;;  %v5247_v18 = vunpack.i.l.bf16 %v5246_v13 }
 0xc75   : > { %5022 = vmatmul.mubr.bf16.gmra.mrb[52].mxu1 %v2722_v55  ;;  %v3040_v55 = vsel %vm1069_vm2, %v8206_v29, %v5227_v10 }
 0xc77   : > { %v5256_v14 = vpop.permute.xlu1 %5255 }
 0xc7b   : > { %v7440_v50 = vpop.permute.xlu1 %5265 }
 0xc7c   : > { %v5267_v10 = vunpack.i.l.bf16 %v7440_v50 }
 0xc94   : > { %v2680_v48 = vpop.xlane.xlu0 %2679 }
 0xc95   : > { %5631 = vrcp.f32 %v2680_v48  ;;  %v5233_v48 = vunpack.i.h.bf16 %v5231_v45 }
 0xc96   : > { %5633 = vrcp.f32 %v2682_v36 }
 0xc98   : > { %v2684_v33 = vpop.xlane.xlu0 %2683 }
 0xc99   : > { %5635 = vrcp.f32 %v2684_v33  ;;  %v5232_v33 = vunpack.i.l.bf16 %v5231_v45  ;;  %v8212_v45 = vld [vmem:[#allocation15_spill] sm:$0xff] }
 0xc9c   : > { %v5221_v12 = vpop.permute.xlu0 %5220 }
 0xc9d   : > { %v5223_v31 = vunpack.i.h.bf16 %v5221_v12 }
 0xc9f   : > { %v5632_v61 = vpop.eup %5631 }
 0xca0   : > { %v2712_v15 = vmul.f32 %v5632_v61, %v7374_v11  ;;  %v5634_v41 = vpop.eup %5633  ;;  %v5241_v43 = vpop.permute.xlu0 %5240  ;;  %v3039_v61 = vsel %vm1069_vm2, %v8207_v20, %v5223_v31 }
 0xca1   : > { %v2714_v62 = vmul.f32 %v5634_v41, %v7334_v23 }
 0xca2   : > { %v2723_v42 = vpack.c.bf16 %v2712_v15, %v2710_v39  ;;  %v8208_v39 = vld [vmem:[#allocation11_spill] sm:$0xff] }
 0xca3   : > { %v5636_v24 = vpop.eup %5635 }
 0xca4   : > { %5025 = vmatprep.mubr.bf16.mxu1 %v2723_v42  ;;  %v2716_v54 = vmul.f32 %v5636_v24, %v7377_v34  ;;  %v3057_v42 = vsel %vm3054_vm3, %v3040_v55, %v5237_v4  ;;  %v3058_v24 = vsel %vm3054_vm3, %v3041_v9, %v5238_v35 }
 0xca6   : > { %v2724_v58 = vpack.c.bf16 %v2716_v54, %v2714_v62 }
 0xca8   : > { %5026 = vmatmul.mubr.bf16.gmra.mrb[56].mxu1 %v2724_v58 }
 0xd40   : > { %v5015_v11 = vpop.f32.mrb[80].mxu0  ;;  %v5019_v40 = vpop.f32.mrb[48].mxu1 }
 0xd41   : > { %v2783_v25 = vpop.f32.mrb[81].mxu0  ;;  %v2799_v21 = vpop.f32.mrb[49].mxu1 }
 0xd42   : > { %v5016_v53 = vpop.f32.mrb[82].mxu0  ;;  %v5020_v23 = vpop.f32.mrb[50].mxu1 }
 0xd43   : > { %v5269_v27 = vpack.i.bf16 %v5016_v53, %v5015_v11  ;;  %v5289_v34 = vpack.i.bf16 %v5020_v23, %v5019_v40  ;;  %v2786_v49 = vpop.f32.mrb[83].mxu0  ;;  %v2802_v36 = vpop.f32.mrb[51].mxu1  ;;  %v3056_v23 = vsel %vm3054_vm3, %v3039_v61, %v5233_v48 }
 0xd44   : > { %v5274_v26 = vpack.i.bf16 %v2786_v49, %v2783_v25  ;;  %v5294_v44 = vpack.i.bf16 %v2802_v36, %v2799_v21 }
 0xd45   : > { %5270 = vrot.lane.b32.xlu1 %v5269_v27, %s5884_s29  ;;  %v5257_v27 = vunpack.i.l.bf16 %v5256_v14 }
 0xd46   : > { %5275 = vrot.lane.b32.xlu0 %v5274_v26, %s5884_s29 }
 0xd48   : > { %v5023_v0 = vpop.f32.mrb[52].mxu1 }
 0xd49   : > { %v2815_v8 = vpop.f32.mrb[53].mxu1  ;;  %5285 = vrot.lane.b32.xlu1 %v5284_v5, %s5883_s17 }
 0xd4a   : > { %v5024_v2 = vpop.f32.mrb[54].mxu1  ;;  %5280 = vrot.lane.b32.xlu0 %v5279_v56, %s5883_s17 }
 0xd4b   : > { %v5309_v37 = vpack.i.bf16 %v5024_v2, %v5023_v0  ;;  %v2818_v6 = vpop.f32.mrb[55].mxu1  ;;  %v5243_v2 = vunpack.i.h.bf16 %v5241_v43 }
 0xd4c   : > { %v5314_v28 = vpack.i.bf16 %v2818_v6, %v2815_v8  ;;  %v8209_v6 = vld [vmem:[#allocation14_spill] sm:$0xff] }
 0xd4d   : > { %5290 = vrot.lane.b32.xlu1 %v5289_v34, %s5884_s29 }
 0xd4e   : > { %5295 = vrot.lane.b32.xlu0 %v5294_v44, %s5884_s29  ;;  %v5258_v44 = vunpack.i.h.bf16 %v5256_v14 }
 0xd51   : > { %5305 = vrot.lane.b32.xlu1 %v8201_v46, %s5882_s18  ;;  %v8210_v46 = vld [vmem:[#allocation16_spill] sm:$0xff] }
 0xd52   : > { %5300 = vrot.lane.b32.xlu0 %v8204_v47, %s5882_s18  ;;  %v3045_v57 = vsel %vm1069_vm2, %v8210_v46, %v5248_v63  ;;  %s3251_s18 = scalar_lea.vmem %s8094_s6, %s5853_s21 }
 0xd55   : > { %5310 = vrot.lane.b32.xlu1 %v5309_v37, %s5884_s29  ;;  %v5242_v37 = vunpack.i.l.bf16 %v5241_v43 }
 0xd56   : > { %5315 = vrot.lane.b32.xlu0 %v5314_v28, %s5884_s29  ;;  %v3044_v28 = vsel %vm1069_vm2, %v8209_v6, %v5247_v18 }
 0xd57   : > { %v3061_v7 = vsel %vm3054_vm3, %v3044_v28, %v5257_v27  ;;  %v3042_v52 = vsel %vm1069_vm2, %v8212_v45, %v5242_v37 }
 0xd59   : > { %5325 = vrot.lane.b32.xlu1 %v5324_v32, %s5883_s17  ;;  %v5251_v32 = vpop.permute.xlu0 %5250 }
 0xd5a   : > { %5320 = vrot.lane.b32.xlu0 %v5319_v22, %s5883_s17  ;;  %v5222_v22 = vunpack.i.l.bf16 %v5221_v12  ;;  %v5253_v59 = vunpack.i.h.bf16 %v5251_v32  ;;  %v5252_v16 = vunpack.i.l.bf16 %v5251_v32  ;;  %s4572_s17 = sshll.u32 %s5853_s21, 5 }
 0xd5b   : > { %s3808_s22 = scalar_lea.vmem %s8099_s11, %s4572_s17  ;;  %s3979_s17 = scalar_lea.vmem %s8100_s12, %s5853_s21 }
 0xd5c   : > { %v3038_v15 = vsel %vm1069_vm2, %v8208_v39, %v5222_v22  ;;  %v3059_v43 = vsel %vm3054_vm3, %v3042_v52, %v5252_v16  ;;  %v8213_v39 = vld [vmem:[#allocation20_spill] sm:$0xff] }
 0xd5d   : > { %v7442_v3 = vpop.permute.xlu0 %5260  ;;  %v3055_v53 = vsel %vm3054_vm3, %v3038_v15, %v5232_v33  ;;  %v8214_v15 = vld [vmem:[#allocation18_spill] sm:$0xff] }
 0xd5e   : > { %v5263_v1 = vunpack.i.h.bf16 %v7442_v3  ;;  %v5262_v9 = vunpack.i.l.bf16 %v7442_v3 }
 0xd7b   : > { %v5027_v51 = vpop.f32.mrb[56].mxu1 }
 0xd7c   : > { %v2831_v5 = vpop.f32.mrb[57].mxu1 }
 0xd7d   : > { %v5028_v30 = vpop.f32.mrb[58].mxu1 }
 0xd7e   : > { %v5334_v56 = vpack.i.bf16 %v5028_v30, %v5027_v51  ;;  %v2834_v19 = vpop.f32.mrb[59].mxu1  ;;  %v3062_v51 = vsel %vm3054_vm3, %v3045_v57, %v5258_v44 }
 0xd7f   : > { %v5329_v38 = vpack.i.bf16 %v2834_v19, %v2831_v5  ;;  %v5268_v5 = vunpack.i.h.bf16 %v7440_v50 }
 0xd80   : > { %5335 = vrot.lane.b32.xlu1 %v5334_v56, %s5884_s29 }
 0xd81   : > { %5330 = vrot.lane.b32.xlu0 %v5329_v38, %s5884_s29  ;;  %v8211_v38 = vld [vmem:[#allocation17_spill] sm:$0xff]  ;;  %v3049_v50 = vsel %vm1069_vm2, %v8213_v39, %v5268_v5  ;;  %s3275_s29 = scalar_lea.vmem %s8095_s7, %s5853_s21 }
 0xd82   : > { %v3043_v60 = vsel %vm1069_vm2, %v8211_v38, %v5243_v2  ;;  %v8220_v38 = vld [vmem:[#allocation23_spill] sm:$0xff] }
 0xd83   : > { %v3060_v14 = vsel %vm3054_vm3, %v3043_v60, %v5253_v59 }
 0xdb7   : > { %v5271_v41 = vpop.permute.xlu1 %5270 }
 0xdb8   : > { %v5273_v62 = vunpack.i.h.bf16 %v5271_v41  ;;  %v5272_v54 = vunpack.i.l.bf16 %v5271_v41  ;;  %v5276_v58 = vpop.permute.xlu0 %5275  ;;  %v3048_v41 = vsel %vm1069_vm2, %v8214_v15, %v5267_v10 }
 0xdb9   : > { %v5278_v11 = vunpack.i.h.bf16 %v5276_v58  ;;  %v5277_v40 = vunpack.i.l.bf16 %v5276_v58 }
 0xdba   : > { %v3075_v25 = vsel %vm3071_vm4, %v3058_v24, %v5273_v62  ;;  %v3074_v21 = vsel %vm3071_vm4, %v3057_v42, %v5272_v54  ;;  %v8215_v24 = vld [vmem:[#allocation21_spill] sm:$0xff]  ;;  %v8216_v62 = vld [vmem:[#allocation19_spill] sm:$0xff] }
 0xdbb   : > { %v3089_v34 = vpack.c.bf16 %v3075_v25, %v3074_v21  ;;  %v3072_v49 = vsel %vm3071_vm4, %v3055_v53, %v5277_v40  ;;  %v3073_v36 = vsel %vm3071_vm4, %v3056_v23, %v5278_v11  ;;  %v5286_v26 = vpop.permute.xlu1 %5285  ;;  %v3047_v3 = vsel %vm1069_vm2, %v8215_v24, %v5263_v1 }
 0xdbc   : > { %v3088_v0 = vpack.c.bf16 %v3073_v36, %v3072_v49  ;;  %v5281_v8 = vpop.permute.xlu0 %5280  ;;  %v5288_v48 = vunpack.i.h.bf16 %v5286_v26  ;;  %v5287_v33 = vunpack.i.l.bf16 %v5286_v26  ;;  %v3046_v54 = vsel %vm1069_vm2, %v8216_v62, %v5262_v9  ;;  %v5752_v62 = vld [vmem:[#allocation2 + $0x18] sm:$0xff] }
 0xdbd   : > { %v5283_v20 = vunpack.i.h.bf16 %v5281_v8  ;;  %v5282_v61 = vunpack.i.l.bf16 %v5281_v8 }
 0xdbe   : > { %5033 = vmatprep.mubr.msk.bf16.mxu1 %vm611_vm1, %v3088_v0  ;;  %v3066_v11 = vsel %vm3054_vm3, %v3049_v50, %v5288_v48  ;;  %v3065_v40 = vsel %vm3054_vm3, %v3048_v41, %v5287_v33  ;;  %v5749_v33 = vld [vmem:[#allocation2 + $0x10] sm:$0xff] }
 0xdbf   : > { %v5291_v47 = vpop.permute.xlu1 %5290  ;;  %5034 = vmatmul.mubr.msk.bf16.vlgmr.msra.gmra.mrb[60].mxu1 %vm611_vm1, %v3089_v34  ;;  %v3063_v53 = vsel %vm3054_vm3, %v3046_v54, %v5282_v61  ;;  %v3064_v23 = vsel %vm3054_vm3, %v3047_v3, %v5283_v20  ;;  %v5750_v61 = vld [vmem:[#allocation2] sm:$0xff] }
 0xdc0   : > { %v5293_v30 = vunpack.i.h.bf16 %v5291_v47  ;;  %v5292_v56 = vunpack.i.l.bf16 %v5291_v47  ;;  %v5296_v19 = vpop.permute.xlu0 %5295 }
 0xdc1   : > { %v5298_v12 = vunpack.i.h.bf16 %v5296_v19  ;;  %v5297_v13 = vunpack.i.l.bf16 %v5296_v19 }
 0xdc2   : > { %v3079_v32 = vsel %vm3071_vm4, %v3062_v51, %v5293_v30  ;;  %v3078_v17 = vsel %vm3071_vm4, %v3061_v7, %v5292_v56  ;;  %v8217_v7 = vld [vmem:[#allocation24_spill] sm:$0xff]  ;;  %v8218_v51 = vld [vmem:[#allocation22_spill] sm:$0xff]  ;;  %v8219_v56 = vld [vmem:[#allocation25_spill] sm:$0xff] }
 0xdc3   : > { %v3091_v31 = vpack.c.bf16 %v3079_v32, %v3078_v17  ;;  %v3076_v22 = vsel %vm3071_vm4, %v3059_v43, %v5297_v13  ;;  %v3077_v35 = vsel %vm3071_vm4, %v3060_v14, %v5298_v12  ;;  %v5306_v4 = vpop.permute.xlu1 %5305 }
 0xdc4   : > { %v3090_v29 = vpack.c.bf16 %v3077_v35, %v3076_v22  ;;  %v5301_v55 = vpop.permute.xlu0 %5300  ;;  %v5308_v8 = vunpack.i.h.bf16 %v5306_v4  ;;  %v5307_v2 = vunpack.i.l.bf16 %v5306_v4 }
 0xdc5   : > { %v5303_v6 = vunpack.i.h.bf16 %v5301_v55  ;;  %v5302_v28 = vunpack.i.l.bf16 %v5301_v55  ;;  %v7524_v55 = vld [vmem:[%s3251_s18] ss:$0 sm:$0xff]  ;;  %s3277_s18 = scalar_lea.vmem %s8096_s8, %s5853_s21 }
 0xdc6   : > { %5037 = vmatprep.mubr.msk.bf16.mxu1 %vm611_vm1, %v3090_v29  ;;  %v3053_v47 = vsel %vm1069_vm2, %v8217_v7, %v5308_v8  ;;  %v3052_v5 = vsel %vm1069_vm2, %v8218_v51, %v5307_v2  ;;  %v5757_v7 = vld [vmem:[#allocation2 + $0x40] sm:$0xff] }
 0xdc7   : > { %v5311_v42 = vpop.permute.xlu1 %5310  ;;  %5038 = vmatmul.mubr.msk.bf16.gmra.mrb[64].mxu1 %vm611_vm1, %v3091_v31  ;;  %v3051_v19 = vsel %vm1069_vm2, %v8219_v56, %v5303_v6  ;;  %v3050_v60 = vsel %vm1069_vm2, %v8220_v38, %v5302_v28  ;;  %v5758_v56 = vld [vmem:[#allocation2 + $0x58] sm:$0xff]  ;;  %v5759_v38 = vld [vmem:[#allocation2 + $0x48] sm:$0xff] }
 0xdc8   : > { %v5313_v58 = vunpack.i.h.bf16 %v5311_v42  ;;  %v5312_v63 = vunpack.i.l.bf16 %v5311_v42  ;;  %v5316_v18 = vpop.permute.xlu0 %5315  ;;  %v5751_v42 = vld [vmem:[#allocation2 + $0x8] sm:$0xff] }
 0xdc9   : > { %v5318_v25 = vunpack.i.h.bf16 %v5316_v18  ;;  %v5317_v21 = vunpack.i.l.bf16 %v5316_v18 }
 0xdca   : > { %v3082_v27 = vsel %vm3071_vm4, %v3065_v40, %v5312_v63  ;;  %v3083_v34 = vsel %vm3071_vm4, %v3066_v11, %v5313_v58 }
 0xdcb   : > { %v3093_v49 = vpack.c.bf16 %v3083_v34, %v3082_v27  ;;  %v3080_v36 = vsel %vm3071_vm4, %v3063_v53, %v5317_v21  ;;  %v3081_v26 = vsel %vm3071_vm4, %v3064_v23, %v5318_v25  ;;  %v5326_v0 = vpop.permute.xlu1 %5325  ;;  %v5753_v21 = vld [vmem:[#allocation2 + $0x20] sm:$0xff] }
 0xdcc   : > { %v3092_v44 = vpack.c.bf16 %v3081_v26, %v3080_v36  ;;  %v5321_v37 = vpop.permute.xlu0 %5320  ;;  %v5328_v59 = vunpack.i.h.bf16 %v5326_v0  ;;  %v5327_v16 = vunpack.i.l.bf16 %v5326_v0  ;;  %v5755_v26 = vld [vmem:[#allocation2 + $0x28] sm:$0xff]  ;;  %v5756_v0 = vld [vmem:[#allocation2 + $0x30] sm:$0xff] }
 0xdcd   : > { %v5323_v46 = vunpack.i.h.bf16 %v5321_v37  ;;  %v5322_v57 = vunpack.i.l.bf16 %v5321_v37 }
 0xdce   : > { %5041 = vmatprep.mubr.msk.bf16.mxu1 %vm611_vm1, %v3092_v44  ;;  %v3069_v13 = vsel %vm3054_vm3, %v3052_v5, %v5327_v16  ;;  %v3070_v43 = vsel %vm3054_vm3, %v3053_v47, %v5328_v59 }
 0xdcf   : > { %5042 = vmatmul.mubr.msk.bf16.gmra.mrb[68].mxu1 %vm611_vm1, %v3093_v49  ;;  %v3067_v17 = vsel %vm3054_vm3, %v3050_v60, %v5322_v57  ;;  %v3068_v10 = vsel %vm3054_vm3, %v3051_v19, %v5323_v46  ;;  %v5754_v49 = vld [vmem:[#allocation2 + $0x38] sm:$0xff] }
 0xdf2   : > { %v5336_v30 = vpop.permute.xlu1 %5335 }
 0xdf3   : > { %v5338_v45 = vunpack.i.h.bf16 %v5336_v30  ;;  %v5337_v52 = vunpack.i.l.bf16 %v5336_v30  ;;  %v5331_v12 = vpop.permute.xlu0 %5330 }
 0xdf4   : > { %v5333_v14 = vunpack.i.h.bf16 %v5331_v12  ;;  %v5332_v32 = vunpack.i.l.bf16 %v5331_v12 }
 0xdf5   : > { %v3087_v31 = vsel %vm3071_vm4, %v3070_v43, %v5338_v45  ;;  %v3086_v22 = vsel %vm3071_vm4, %v3069_v13, %v5337_v52  ;;  %v5760_v52 = vld [vmem:[#allocation2 + $0x50] sm:$0xff] }
 0xdf6   : > { %v3095_v35 = vpack.c.bf16 %v3087_v31, %v3086_v22  ;;  %v3084_v4 = vsel %vm3071_vm4, %v3067_v17, %v5332_v32  ;;  %v3085_v1 = vsel %vm3071_vm4, %v3068_v10, %v5333_v14 }
 0xdf7   : > { %v3094_v9 = vpack.c.bf16 %v3085_v1, %v3084_v4  ;;  %v5761_v1 = vld [vmem:[#allocation2 + $0x70] sm:$0xff] }
 0xdf9   : > { %5045 = vmatprep.mubr.msk.bf16.mxu1 %vm611_vm1, %v3094_v9 }
 0xdfa   : > { %5046 = vmatmul.mubr.msk.bf16.gmra.mrb[72].mxu1 %vm611_vm1, %v3095_v35 }
 0xe92   : > { %v5035_v29 = vpop.f32.mrb[60].mxu1 }
 0xe93   : > { %v3172_v48 = vpop.f32.mrb[61].mxu1  ;;  %v3237_v20 = vadd.f32 %v5749_v33, %v5035_v29 }
 0xe94   : > { %v3235_v39 = vadd.f32 %v5750_v61, %v3172_v48  ;;  %v5036_v50 = vpop.f32.mrb[62].mxu1  ;;  %v5762_v48 = vld [vmem:[#allocation2 + $0x60] sm:$0xff] }
 0xe95   : > { %v3175_v15 = vpop.f32.mrb[63].mxu1  ;;  %v7530_v3 = vadd.f32 %v7524_v55, %v3237_v20  ;;  %v3238_v54 = vadd.f32 %v5752_v62, %v5036_v50 }
 0xe96   : > { %v7527_v41 = vadd.f32 %v7524_v55, %v3235_v39  ;;  %v3236_v24 = vadd.f32 %v5751_v42, %v3175_v15  ;;  %v5763_v39 = vld [vmem:[#allocation2 + $0x78] sm:$0xff] }
 0xe97   : > { %v7540_v25 = vadd.f32 %v7524_v55, %v3238_v54  ;;  %v3285_v27 = vsel %vm611_vm1, %v7530_v3, 0.0 }
 0xe98   : > { %v7533_v58 = vadd.f32 %v7524_v55, %v3236_v24  ;;  %v3279_v63 = vsel %vm611_vm1, %v7527_v41, 0.0  ;;  %v5764_v24 = vld [vmem:[#allocation2 + $0x68] sm:$0xff] }
 0xe99   : > { %3280 = vadd.xlane.f32.xlu0 %v3279_v63  ;;  %v3288_v6 = vsel %vm611_vm1, %v7540_v25, 0.0 }
 0xe9a   : > { %v5039_v18 = vpop.f32.mrb[64].mxu1  ;;  %v3282_v11 = vsel %vm611_vm1, %v7533_v58, 0.0 }
 0xe9b   : > { %3283 = vadd.xlane.f32.xlu1 %v3282_v11  ;;  %v3188_v40 = vpop.f32.mrb[65].mxu1  ;;  %v3241_v8 = vadd.f32 %v5756_v0, %v5039_v18 }
 0xe9c   : > { %v3239_v53 = vadd.f32 %v5753_v21, %v3188_v40  ;;  %v5040_v23 = vpop.f32.mrb[66].mxu1 }
 0xe9d   : > { %3286 = vadd.xlane.f32.xlu0 %v3285_v27  ;;  %v3191_v34 = vpop.f32.mrb[67].mxu1  ;;  %v3242_v36 = vadd.f32 %v5754_v49, %v5040_v23  ;;  %v7558_v57 = vadd.f32 %v7524_v55, %v3241_v8 }
 0xe9e   : > { %v3240_v44 = vadd.f32 %v5755_v26, %v3191_v34  ;;  %v7545_v2 = vadd.f32 %v7524_v55, %v3239_v53 }
 0xe9f   : > { %v7553_v28 = vadd.f32 %v7524_v55, %v3242_v36  ;;  %v3297_v14 = vsel %vm611_vm1, %v7558_v57, 0.0 }
 0xea0   : > { %v7548_v37 = vadd.f32 %v7524_v55, %v3240_v44  ;;  %v3291_v5 = vsel %vm611_vm1, %v7545_v2, 0.0 }
 0xea1   : > { %3289 = vadd.xlane.f32.xlu0 %v3288_v6  ;;  %v3300_v45 = vsel %vm611_vm1, %v7553_v28, 0.0 }
 0xea2   : > { %v5043_v59 = vpop.f32.mrb[68].mxu1  ;;  %v3294_v16 = vsel %vm611_vm1, %v7548_v37, 0.0 }
 0xea3   : > { %3295 = vadd.xlane.f32.xlu1 %v3294_v16  ;;  %v3204_v46 = vpop.f32.mrb[69].mxu1  ;;  %v3245_v12 = vadd.f32 %v5760_v52, %v5043_v59 }
 0xea4   : > { %v3243_v47 = vadd.f32 %v5757_v7, %v3204_v46  ;;  %v5044_v51 = vpop.f32.mrb[70].mxu1 }
 0xea5   : > { %3292 = vadd.xlane.f32.xlu0 %v3291_v5  ;;  %v3207_v30 = vpop.f32.mrb[71].mxu1  ;;  %v3246_v19 = vadd.f32 %v5758_v56, %v5044_v51  ;;  %v7578_v10 = vadd.f32 %v7524_v55, %v3245_v12 }
 0xea6   : > { %v3244_v60 = vadd.f32 %v5759_v38, %v3207_v30  ;;  %v7565_v13 = vadd.f32 %v7524_v55, %v3243_v47 }
 0xea7   : > { %3301 = vadd.xlane.f32.xlu1 %v3300_v45  ;;  %v7573_v32 = vadd.f32 %v7524_v55, %v3246_v19  ;;  %v3309_v35 = vsel %vm611_vm1, %v7578_v10, 0.0 }
 0xea8   : > { %v7568_v43 = vadd.f32 %v7524_v55, %v3244_v60  ;;  %v3303_v31 = vsel %vm611_vm1, %v7565_v13, 0.0 }
 0xea9   : > { %3298 = vadd.xlane.f32.xlu0 %v3297_v14  ;;  %v3312_v22 = vsel %vm611_vm1, %v7573_v32, 0.0 }
 0xeaa   : > { %v3306_v17 = vsel %vm611_vm1, %v7568_v43, 0.0 }
 0xeab   : > { %3307 = vadd.xlane.f32.xlu1 %v3306_v17 }
 0xead   : > { %3304 = vadd.xlane.f32.xlu0 %v3303_v31 }
 0xeaf   : > { %3313 = vadd.xlane.f32.xlu1 %v3312_v22 }
 0xeb1   : > { %3310 = vadd.xlane.f32.xlu0 %v3309_v35 }
 0xecd   : > { %v5047_v4 = vpop.f32.mrb[72].mxu1 }
 0xece   : > { %v3249_v9 = vadd.f32 %v5761_v1, %v5047_v4  ;;  %v3220_v29 = vpop.f32.mrb[73].mxu1 }
 0xecf   : > { %v3247_v33 = vadd.f32 %v5762_v48, %v3220_v29  ;;  %v5048_v20 = vpop.f32.mrb[74].mxu1 }
 0xed0   : > { %v7587_v61 = vadd.f32 %v7524_v55, %v3249_v9  ;;  %v3250_v50 = vadd.f32 %v5763_v39, %v5048_v20  ;;  %v3223_v15 = vpop.f32.mrb[75].mxu1 }
 0xed1   : > { %v7590_v42 = vadd.f32 %v7524_v55, %v3247_v33  ;;  %v3248_v62 = vadd.f32 %v5764_v24, %v3223_v15 }
 0xed2   : > { %v7593_v54 = vadd.f32 %v7524_v55, %v3250_v50  ;;  %v3321_v40 = vsel %vm611_vm1, %v7587_v61, 0.0 }
 0xed3   : > { %v7596_v63 = vadd.f32 %v7524_v55, %v3248_v62  ;;  %v3315_v18 = vsel %vm611_vm1, %v7590_v42, 0.0 }
 0xed4   : > { %3316 = vadd.xlane.f32.xlu0 %v3315_v18  ;;  %v3324_v21 = vsel %vm611_vm1, %v7593_v54, 0.0 }
 0xed5   : > { %v3318_v11 = vsel %vm611_vm1, %v7596_v63, 0.0 }
 0xed6   : > { %3319 = vadd.xlane.f32.xlu1 %v3318_v11 }
 0xed8   : > { %3322 = vadd.xlane.f32.xlu0 %v3321_v40 }
 0xeda   : > { %3325 = vadd.xlane.f32.xlu1 %v3324_v21 }
 0xf26   : > { %v3281_v53 = vpop.xlane.xlu0 %3280 }
 0xf27   : > { %v3327_v23 = vmul.f32 0.03125, %v3281_v53 }
 0xf28   : > { %v3284_v55 = vpop.xlane.xlu1 %3283 }
 0xf29   : > { %v7607_v27 = vsub.f32 %v7527_v41, %v3327_v23  ;;  %v3328_v34 = vmul.f32 0.03125, %v3284_v55 }
 0xf2a   : > { %v3287_v49 = vpop.xlane.xlu0 %3286 }
 0xf2b   : > { %v7610_v36 = vsub.f32 %v7533_v58, %v3328_v34  ;;  %v3329_v26 = vmul.f32 0.03125, %v3287_v49  ;;  %v3359_v44 = vmul.f32 %v7607_v27, %v7607_v27 }
 0xf2d   : > { %v7615_v0 = vsub.f32 %v7530_v3, %v3329_v26  ;;  %v3375_v8 = vsel %vm611_vm1, %v3359_v44, 0.0  ;;  %v3360_v6 = vmul.f32 %v7610_v36, %v7610_v36 }
 0xf2e   : > { %v3290_v59 = vpop.xlane.xlu0 %3289  ;;  %3376 = vadd.xlane.f32.xlu0 %v3375_v8 }
 0xf2f   : > { %v3330_v16 = vmul.f32 0.03125, %v3290_v59  ;;  %v3378_v46 = vsel %vm611_vm1, %v3360_v6, 0.0  ;;  %v3361_v7 = vmul.f32 %v7615_v0, %v7615_v0 }
 0xf30   : > { %v3296_v47 = vpop.xlane.xlu1 %3295  ;;  %3379 = vadd.xlane.f32.xlu1 %v3378_v46 }
 0xf31   : > { %v7624_v51 = vsub.f32 %v7540_v25, %v3330_v16  ;;  %v3332_v5 = vmul.f32 0.03125, %v3296_v47  ;;  %v3381_v30 = vsel %vm611_vm1, %v3361_v7, 0.0  ;;  %v5343_v7 = vld [vmem:[%s3540_s20] sm:$0xff]   ;;  %v5344_v47 = vld [vmem:[%s3540_s20 + $0x8] sm:$0xff]  }
 0xf32   : > { %v3293_v56 = vpop.xlane.xlu0 %3292  ;;  %3382 = vadd.xlane.f32.xlu0 %v3381_v30  ;;  %5049 = vmatprep.subr.bf16.mxu0 %v5343_v7 }
 0xf33   : > { %v7628_v19 = vsub.f32 %v7548_v37, %v3332_v5  ;;  %v3331_v38 = vmul.f32 0.03125, %v3293_v56  ;;  %v3362_v60 = vmul.f32 %v7624_v51, %v7624_v51  ;;  %5050 = vmatpush3.bf16.msra.mxu0 %v5343_v7 }
 0xf34   : > { %v3302_v45 = vpop.xlane.xlu1 %3301  ;;  %5051 = vmatprep.subr.bf16.mxu0 %v5344_v47 }
 0xf35   : > { %v7633_v52 = vsub.f32 %v7545_v2, %v3331_v38  ;;  %v3334_v12 = vmul.f32 0.03125, %v3302_v45  ;;  %v3384_v14 = vsel %vm611_vm1, %v3362_v60, 0.0  ;;  %v3364_v17 = vmul.f32 %v7628_v19, %v7628_v19 }
 0xf36   : > { %v3299_v31 = vpop.xlane.xlu0 %3298  ;;  %3385 = vadd.xlane.f32.xlu1 %v3384_v14 }
 0xf37   : > { %v7639_v22 = vsub.f32 %v7553_v28, %v3334_v12  ;;  %v3333_v35 = vmul.f32 0.03125, %v3299_v31  ;;  %v3363_v4 = vmul.f32 %v7633_v52, %v7633_v52  ;;  %v3390_v9 = vsel %vm611_vm1, %v3364_v17, 0.0  ;;  %5052 = vmatpush3.bf16.msra.mxu0 %v5344_v47 }
 0xf38   : > { %v3308_v1 = vpop.xlane.xlu1 %3307 }
 0xf39   : > { %v7645_v29 = vsub.f32 %v7558_v57, %v3333_v35  ;;  %v3336_v48 = vmul.f32 0.03125, %v3308_v1  ;;  %v3387_v33 = vsel %vm611_vm1, %v3363_v4, 0.0  ;;  %v3366_v20 = vmul.f32 %v7639_v22, %v7639_v22 }
 0xf3a   : > { %v3305_v39 = vpop.xlane.xlu0 %3304  ;;  %3388 = vadd.xlane.f32.xlu0 %v3387_v33  ;;  %3391 = vadd.xlane.f32.xlu1 %v3390_v9 }
 0xf3b   : > { %v7651_v50 = vsub.f32 %v7568_v43, %v3336_v48  ;;  %v3335_v15 = vmul.f32 0.03125, %v3305_v39  ;;  %v3365_v24 = vmul.f32 %v7645_v29, %v7645_v29  ;;  %v3396_v18 = vsel %vm611_vm1, %v3366_v20, 0.0 }
 0xf3c   : > { %v3314_v62 = vpop.xlane.xlu1 %3313 }
 0xf3d   : > { %v7657_v11 = vsub.f32 %v7565_v13, %v3335_v15  ;;  %v3338_v40 = vmul.f32 0.03125, %v3314_v62  ;;  %v3393_v21 = vsel %vm611_vm1, %v3365_v24, 0.0  ;;  %v3368_v53 = vmul.f32 %v7651_v50, %v7651_v50 }
 0xf3e   : > { %v3311_v23 = vpop.xlane.xlu0 %3310  ;;  %3394 = vadd.xlane.f32.xlu0 %v3393_v21  ;;  %3397 = vadd.xlane.f32.xlu1 %v3396_v18 }
 0xf3f   : > { %v7663_v55 = vsub.f32 %v7573_v32, %v3338_v40  ;;  %v3337_v34 = vmul.f32 0.03125, %v3311_v23  ;;  %v3367_v49 = vmul.f32 %v7657_v11, %v7657_v11  ;;  %v3402_v8 = vsel %vm611_vm1, %v3368_v53, 0.0 }
 0xf41   : > { %v7668_v26 = vsub.f32 %v7578_v10, %v3337_v34  ;;  %v3399_v44 = vsel %vm611_vm1, %v3367_v49, 0.0  ;;  %v3370_v6 = vmul.f32 %v7663_v55, %v7663_v55 }
 0xf42   : > { %3400 = vadd.xlane.f32.xlu0 %v3399_v44  ;;  %3403 = vadd.xlane.f32.xlu1 %v3402_v8 }
 0xf43   : > { %v3369_v59 = vmul.f32 %v7668_v26, %v7668_v26  ;;  %v3408_v46 = vsel %vm611_vm1, %v3370_v6, 0.0 }
 0xf45   : > { %v3405_v16 = vsel %vm611_vm1, %v3369_v59, 0.0 }
 0xf46   : > { %3406 = vadd.xlane.f32.xlu0 %v3405_v16  ;;  %3409 = vadd.xlane.f32.xlu1 %v3408_v46 }
 0xf61   : > { %v3317_v5 = vpop.xlane.xlu0 %3316 }
 0xf62   : > { %v3339_v30 = vmul.f32 0.03125, %v3317_v5 }
 0xf63   : > { %v3320_v56 = vpop.xlane.xlu1 %3319 }
 0xf64   : > { %v7683_v38 = vsub.f32 %v7590_v42, %v3339_v30  ;;  %v3340_v60 = vmul.f32 0.03125, %v3320_v56  ;;  %v7710_v30 = vld [vmem:[%s3275_s29] ss:$0 sm:$0xff] }
 0xf65   : > { %v3323_v45 = vpop.xlane.xlu0 %3322 }
 0xf66   : > { %v7686_v12 = vsub.f32 %v7596_v63, %v3340_v60  ;;  %v3341_v14 = vmul.f32 0.03125, %v3323_v45  ;;  %v3371_v17 = vmul.f32 %v7683_v38, %v7683_v38 }
 0xf67   : > { %v3326_v31 = vpop.xlane.xlu1 %3325 }
 0xf68   : > { %v7691_v35 = vsub.f32 %v7587_v61, %v3341_v14  ;;  %v3342_v4 = vmul.f32 0.03125, %v3326_v31  ;;  %v3411_v1 = vsel %vm611_vm1, %v3371_v17, 0.0  ;;  %v3372_v9 = vmul.f32 %v7686_v12, %v7686_v12 }
 0xf69   : > { %3412 = vadd.xlane.f32.xlu0 %v3411_v1 }
 0xf6a   : > { %v7697_v48 = vsub.f32 %v7593_v54, %v3342_v4  ;;  %v3414_v33 = vsel %vm611_vm1, %v3372_v9, 0.0  ;;  %v3373_v20 = vmul.f32 %v7691_v35, %v7691_v35 }
 0xf6b   : > { %3415 = vadd.xlane.f32.xlu1 %v3414_v33 }
 0xf6c   : > { %v3417_v39 = vsel %vm611_vm1, %v3373_v20, 0.0  ;;  %v3374_v15 = vmul.f32 %v7697_v48, %v7697_v48 }
 0xf6d   : > { %3418 = vadd.xlane.f32.xlu0 %v3417_v39 }
 0xf6e   : > { %v3420_v24 = vsel %vm611_vm1, %v3374_v15, 0.0 }
 0xf6f   : > { %3421 = vadd.xlane.f32.xlu1 %v3420_v24  ;;  %v7719_v24 = vld [vmem:[%s3277_s18] ss:$0 sm:$0xff] }
 0xfbb   : > { %v3377_v62 = vpop.xlane.xlu0 %3376 }
 0xfbc   : > { %v3423_v18 = vmul.f32 0.03125, %v3377_v62 }
 0xfbd   : > { %v3380_v40 = vpop.xlane.xlu1 %3379 }
 0xfbe   : > { %v3439_v21 = vadd.f32 1e-05, %v3423_v18  ;;  %v3424_v53 = vmul.f32 0.03125, %v3380_v40 }
 0xfbf   : > { %v3383_v23 = vpop.xlane.xlu0 %3382 }
 0xfc0   : > { %5637 = vrsqrt.f32 %v3439_v21  ;;  %v3440_v34 = vadd.f32 1e-05, %v3424_v53  ;;  %v3425_v49 = vmul.f32 0.03125, %v3383_v23 }
 0xfc2   : > { %5639 = vrsqrt.f32 %v3440_v34  ;;  %v3441_v44 = vadd.f32 1e-05, %v3425_v49 }
 0xfc3   : > { %v3386_v8 = vpop.xlane.xlu1 %3385 }
 0xfc4   : > { %5641 = vrsqrt.f32 %v3441_v44  ;;  %v3426_v6 = vmul.f32 0.03125, %v3386_v8 }
 0xfc6   : > { %v3442_v59 = vadd.f32 1e-05, %v3426_v6 }
 0xfc7   : > { %v3389_v16 = vpop.xlane.xlu0 %3388  ;;  %v3392_v46 = vpop.xlane.xlu1 %3391 }
 0xfc8   : > { %5643 = vrsqrt.f32 %v3442_v59  ;;  %v3427_v7 = vmul.f32 0.03125, %v3389_v16  ;;  %v3428_v47 = vmul.f32 0.03125, %v3392_v46 }
 0xfca   : > { %v5638_v5 = vpop.eup %5637  ;;  %v3443_v56 = vadd.f32 1e-05, %v3427_v7  ;;  %v3444_v60 = vadd.f32 1e-05, %v3428_v47 }
 0xfcb   : > { %v3471_v45 = vmul.f32 %v5638_v5, %v7607_v27  ;;  %v3395_v14 = vpop.xlane.xlu0 %3394  ;;  %v3398_v17 = vpop.xlane.xlu1 %3397 }
 0xfcc   : > { %v5640_v31 = vpop.eup %5639  ;;  %5645 = vrsqrt.f32 %v3443_v56  ;;  %v3429_v4 = vmul.f32 0.03125, %v3395_v14  ;;  %v3430_v1 = vmul.f32 0.03125, %v3398_v17 }
 0xfcd   : > { %v3472_v9 = vmul.f32 %v5640_v31, %v7610_v36  ;;  %5647 = vrsqrt.f32 %v3444_v60  ;;  %v3493_v33 = vmul.f32 %v7710_v30, %v3471_v45 }
 0xfce   : > { %v5642_v20 = vpop.eup %5641  ;;  %v3445_v39 = vadd.f32 1e-05, %v3429_v4  ;;  %v3446_v15 = vadd.f32 1e-05, %v3430_v1 }
 0xfcf   : > { %v3473_v27 = vmul.f32 %v5642_v20, %v7615_v0  ;;  %v3401_v62 = vpop.xlane.xlu0 %3400  ;;  %v3404_v18 = vpop.xlane.xlu1 %3403  ;;  %v3494_v40 = vmul.f32 %v7710_v30, %v3472_v9  ;;  %v3515_v36 = vadd.f32 %v7719_v24, %v3493_v33 }
 0xfd0   : > { %5649 = vrsqrt.f32 %v3445_v39  ;;  %v3431_v21 = vmul.f32 0.03125, %v3401_v62  ;;  %v3432_v53 = vmul.f32 0.03125, %v3404_v18 }
 0xfd1   : > { %5651 = vrsqrt.f32 %v3446_v15  ;;  %v3516_v23 = vadd.f32 %v7719_v24, %v3494_v40  ;;  %v3495_v8 = vmul.f32 %v7710_v30, %v3473_v27 }
 0xfd2   : > { %v5644_v34 = vpop.eup %5643  ;;  %v3447_v49 = vadd.f32 1e-05, %v3431_v21  ;;  %v3448_v44 = vadd.f32 1e-05, %v3432_v53 }
 0xfd3   : > { %v3474_v6 = vmul.f32 %v5644_v34, %v7624_v51  ;;  %v3407_v0 = vpop.xlane.xlu0 %3406  ;;  %v3410_v59 = vpop.xlane.xlu1 %3409  ;;  %v3531_v16 = vpack.c.bf16 %v3516_v23, %v3515_v36  ;;  %v3517_v17 = vadd.f32 %v7719_v24, %v3495_v8 }
 0xfd4   : > { %5653 = vrsqrt.f32 %v3447_v49  ;;  %v3433_v46 = vmul.f32 0.03125, %v3407_v0  ;;  %v3434_v7 = vmul.f32 0.03125, %v3410_v59 }
 0xfd5   : > { %v3496_v47 = vmul.f32 %v7710_v30, %v3474_v6  ;;  %5655 = vrsqrt.f32 %v3448_v44  ;;  %5053 = vmatprep.mubr.msk.bf16.mxu0 %vm611_vm1, %v3531_v16 }
 0xfd6   : > { %v5646_v5 = vpop.eup %5645  ;;  %v3449_v56 = vadd.f32 1e-05, %v3433_v46  ;;  %v3450_v60 = vadd.f32 1e-05, %v3434_v7 }
 0xfd7   : > { %v5648_v45 = vpop.eup %5647  ;;  %v3475_v14 = vmul.f32 %v5646_v5, %v7633_v52  ;;  %v3518_v51 = vadd.f32 %v7719_v24, %v3496_v47 }
 0xfd8   : > { %v3476_v31 = vmul.f32 %v5648_v45, %v7628_v19  ;;  %5657 = vrsqrt.f32 %v3449_v56 }
 0xfd9   : > { %5659 = vrsqrt.f32 %v3450_v60  ;;  %v3532_v4 = vpack.c.bf16 %v3518_v51, %v3517_v17  ;;  %v3497_v1 = vmul.f32 %v7710_v30, %v3475_v14 }
 0xfda   : > { %v5650_v9 = vpop.eup %5649  ;;  %v3498_v33 = vmul.f32 %v7710_v30, %v3476_v31 }
 0xfdb   : > { %v5652_v20 = vpop.eup %5651  ;;  %v3477_v39 = vmul.f32 %v5650_v9, %v7645_v29  ;;  %5054 = vmatmul.mubr.msk.bf16.vlgmr.msra.gmra.mrb[84].mxu0 %vm611_vm1, %v3532_v4  ;;  %v3519_v52 = vadd.f32 %v7719_v24, %v3497_v1 }
 0xfdc   : > { %v3478_v15 = vmul.f32 %v5652_v20, %v7639_v22  ;;  %v3520_v27 = vadd.f32 %v7719_v24, %v3498_v33 }
 0xfdd   : > { %v3499_v19 = vmul.f32 %v7710_v30, %v3477_v39 }
 0xfde   : > { %v5654_v62 = vpop.eup %5653  ;;  %v3533_v18 = vpack.c.bf16 %v3520_v27, %v3519_v52  ;;  %v3500_v40 = vmul.f32 %v7710_v30, %v3478_v15 }
 0xfdf   : > { %v5656_v21 = vpop.eup %5655  ;;  %v3479_v53 = vmul.f32 %v5654_v62, %v7657_v11  ;;  %v3521_v36 = vadd.f32 %v7719_v24, %v3499_v19 }
 0xfe0   : > { %v3480_v29 = vmul.f32 %v5656_v21, %v7651_v50  ;;  %5057 = vmatprep.mubr.msk.bf16.mxu0 %vm611_vm1, %v3533_v18  ;;  %v3522_v23 = vadd.f32 %v7719_v24, %v3500_v40 }
 0xfe1   : > { %v3501_v22 = vmul.f32 %v7710_v30, %v3479_v53 }
 0xfe2   : > { %v5658_v34 = vpop.eup %5657  ;;  %v3534_v49 = vpack.c.bf16 %v3522_v23, %v3521_v36  ;;  %v3502_v44 = vmul.f32 %v7710_v30, %v3480_v29 }
 0xfe3   : > { %v5660_v8 = vpop.eup %5659  ;;  %v3481_v6 = vmul.f32 %v5658_v34, %v7668_v26  ;;  %v3523_v0 = vadd.f32 %v7719_v24, %v3501_v22  ;;  %v5346_v22 = vld [vmem:[%s3808_s22 + $0x8] sm:$0xff]   ;;  %v5348_v34 = vld [vmem:[%s3808_s22 + $0x18] sm:$0xff]  }
 0xfe4   : > { %v3482_v11 = vmul.f32 %v5660_v8, %v7663_v55  ;;  %5058 = vmatmul.mubr.msk.bf16.gmra.mrb[88].mxu0 %vm611_vm1, %v3534_v49  ;;  %v3524_v50 = vadd.f32 %v7719_v24, %v3502_v44 }
 0xfe5   : > { %v3503_v59 = vmul.f32 %v7710_v30, %v3481_v6 }
 0xfe6   : > { %v3535_v16 = vpack.c.bf16 %v3524_v50, %v3523_v0  ;;  %v3504_v46 = vmul.f32 %v7710_v30, %v3482_v11 }
 0xfe7   : > { %v3525_v7 = vadd.f32 %v7719_v24, %v3503_v59 }
 0xfe8   : > { %5061 = vmatprep.mubr.msk.bf16.mxu0 %vm611_vm1, %v3535_v16  ;;  %v3526_v47 = vadd.f32 %v7719_v24, %v3504_v46 }
 0xfea   : > { %v3536_v26 = vpack.c.bf16 %v3526_v47, %v3525_v7 }
 0xfec   : > { %5062 = vmatmul.mubr.msk.bf16.gmra.mrb[92].mxu0 %vm611_vm1, %v3536_v26 }
 0xff6   : > { %v3413_v5 = vpop.xlane.xlu0 %3412 }
 0xff7   : > { %v3435_v55 = vmul.f32 0.03125, %v3413_v5 }
 0xff8   : > { %v3416_v56 = vpop.xlane.xlu1 %3415 }
 0xff9   : > { %v3451_v60 = vadd.f32 1e-05, %v3435_v55  ;;  %v3436_v45 = vmul.f32 0.03125, %v3416_v56 }
 0xffa   : > { %v3419_v14 = vpop.xlane.xlu0 %3418 }
 0xffb   : > { %5661 = vrsqrt.f32 %v3451_v60  ;;  %v3452_v17 = vadd.f32 1e-05, %v3436_v45  ;;  %v3437_v51 = vmul.f32 0.03125, %v3419_v14 }
 0xffc   : > { %v3422_v31 = vpop.xlane.xlu1 %3421 }
 0xffd   : > { %5663 = vrsqrt.f32 %v3452_v17  ;;  %v3453_v4 = vadd.f32 1e-05, %v3437_v51  ;;  %v3438_v1 = vmul.f32 0.03125, %v3422_v31 }
 0xfff   : > { %5665 = vrsqrt.f32 %v3453_v4  ;;  %v3454_v9 = vadd.f32 1e-05, %v3438_v1 }
0x1001   : > { %5667 = vrsqrt.f32 %v3454_v9 }
0x1005   : > { %v5662_v33 = vpop.eup %5661 }
0x1006   : > { %v3483_v20 = vmul.f32 %v5662_v33, %v7683_v38 }
0x1007   : > { %v5664_v39 = vpop.eup %5663 }
0x1008   : > { %v3484_v52 = vmul.f32 %v5664_v39, %v7686_v12  ;;  %v3505_v15 = vmul.f32 %v7710_v30, %v3483_v20 }
0x1009   : > { %v5666_v27 = vpop.eup %5665 }
0x100a   : > { %v3485_v19 = vmul.f32 %v5666_v27, %v7691_v35  ;;  %v3506_v62 = vmul.f32 %v7710_v30, %v3484_v52  ;;  %v3527_v21 = vadd.f32 %v7719_v24, %v3505_v15 }
0x100b   : > { %v5668_v18 = vpop.eup %5667 }
0x100c   : > { %v3486_v40 = vmul.f32 %v5668_v18, %v7697_v48  ;;  %v3528_v53 = vadd.f32 %v7719_v24, %v3506_v62  ;;  %v3507_v38 = vmul.f32 %v7710_v30, %v3485_v19  ;;  %v5345_v48 = vld [vmem:[%s3808_s22] sm:$0xff]  }
0x100d   : > { %5069 = vmatprep.subr.bf16.mxu1 %v5345_v48 }
0x100e   : > { %v3537_v36 = vpack.c.bf16 %v3528_v53, %v3527_v21  ;;  %v3508_v12 = vmul.f32 %v7710_v30, %v3486_v40  ;;  %v3529_v29 = vadd.f32 %v7719_v24, %v3507_v38  ;;  %5070 = vmatpush3.bf16.msra.mxu1 %v5345_v48  ;;  %v5347_v30 = vld [vmem:[%s3808_s22 + $0x10] sm:$0xff]  }
0x100f   : > { %5071 = vmatprep.subr.bf16.mxu1 %v5346_v22 }
0x1010   : > { %5065 = vmatprep.mubr.msk.bf16.mxu0 %vm611_vm1, %v3537_v36  ;;  %v3530_v35 = vadd.f32 %v7719_v24, %v3508_v12  ;;  %v7782_v24 = vld [vmem:[%s3545_s0] ss:$0 sm:$0xff] }
0x1012   : > { %v3538_v23 = vpack.c.bf16 %v3530_v35, %v3529_v29  ;;  %5072 = vmatpush3.bf16.msra.mxu1 %v5346_v22 }
0x1013   : > { %5073 = vmatprep.subr.bf16.mxu1 %v5347_v30 }
0x1014   : > { %5066 = vmatmul.mubr.msk.bf16.gmra.mrb[96].mxu0 %vm611_vm1, %v3538_v23 }
0x1016   : > { %5074 = vmatpush3.bf16.msra.mxu1 %v5347_v30 }
0x1017   : > { %5075 = vmatprep.subr.bf16.mxu1 %v5348_v34 }
0x101a   : > { %5076 = vmatpush3.bf16.msra.mxu1 %v5348_v34 }
0x10ae   : > { %v5055_v49 = vpop.f32.mrb[84].mxu0 }
0x10af   : > { %v7785_v44 = vadd.f32 %v5055_v49, %v7782_v24  ;;  %v3623_v8 = vpop.f32.mrb[85].mxu0 }
0x10b0   : > { %v7788_v6 = vadd.f32 %v7782_v24, %v3623_v8  ;;  %v5056_v0 = vpop.f32.mrb[86].mxu0 }
0x10b1   : > { %v4509_v11 = vmul.f32 -1.442695, %v7785_v44  ;;  %v7792_v50 = vadd.f32 %v5056_v0, %v7782_v24  ;;  %v3626_v59 = vpop.f32.mrb[87].mxu0 }
0x10b2   : > { %v4507_v16 = vmul.f32 -1.442695, %v7788_v6  ;;  %v7796_v46 = vadd.f32 %v7782_v24, %v3626_v59 }
0x10b3   : > { %5669 = vpow2.f32 %v4509_v11  ;;  %v4510_v7 = vmul.f32 -1.442695, %v7792_v50 }
0x10b4   : > { %5671 = vpow2.f32 %v4507_v16  ;;  %v4508_v47 = vmul.f32 -1.442695, %v7796_v46 }
0x10b5   : > { %5673 = vpow2.f32 %v4510_v7 }
0x10b6   : > { %5675 = vpow2.f32 %v4508_v47 }
0x10b7   : > { %v5059_v26 = vpop.f32.mrb[88].mxu0 }
0x10b8   : > { %v7801_v5 = vadd.f32 %v5059_v26, %v7782_v24  ;;  %v3639_v55 = vpop.f32.mrb[89].mxu0 }
0x10b9   : > { %v7804_v56 = vadd.f32 %v7782_v24, %v3639_v55  ;;  %v5060_v60 = vpop.f32.mrb[90].mxu0 }
0x10ba   : > { %v4513_v45 = vmul.f32 -1.442695, %v7801_v5  ;;  %v7808_v14 = vadd.f32 %v5060_v60, %v7782_v24  ;;  %v3642_v17 = vpop.f32.mrb[91].mxu0 }
0x10bb   : > { %v4511_v51 = vmul.f32 -1.442695, %v7804_v56  ;;  %v7812_v31 = vadd.f32 %v7782_v24, %v3642_v17 }
0x10bc   : > { %5677 = vpow2.f32 %v4513_v45  ;;  %v4514_v4 = vmul.f32 -1.442695, %v7808_v14 }
0x10bd   : > { %v5670_v1 = vpop.eup %5669  ;;  %5679 = vpow2.f32 %v4511_v51  ;;  %v4512_v9 = vmul.f32 -1.442695, %v7812_v31 }
0x10be   : > { %v5672_v33 = vpop.eup %5671  ;;  %v3736_v20 = vadd.f32 1.0, %v5670_v1  ;;  %5681 = vpow2.f32 %v4514_v4 }
0x10bf   : > { %v5674_v39 = vpop.eup %5673  ;;  %v3734_v52 = vadd.f32 1.0, %v5672_v33  ;;  %5683 = vpow2.f32 %v4512_v9  ;;  %v5063_v15 = vpop.f32.mrb[92].mxu0 }
0x10c0   : > { %v5676_v27 = vpop.eup %5675  ;;  %5685 = vrcp.f32 %v3736_v20  ;;  %v3737_v19 = vadd.f32 1.0, %v5674_v39  ;;  %v7817_v62 = vadd.f32 %v5063_v15, %v7782_v24  ;;  %v3655_v18 = vpop.f32.mrb[93].mxu0 }
0x10c1   : > { %5687 = vrcp.f32 %v3734_v52  ;;  %v3735_v40 = vadd.f32 1.0, %v5676_v27  ;;  %v7820_v21 = vadd.f32 %v7782_v24, %v3655_v18  ;;  %v5064_v53 = vpop.f32.mrb[94].mxu0 }
0x10c2   : > { %5689 = vrcp.f32 %v3737_v19  ;;  %v4517_v38 = vmul.f32 -1.442695, %v7817_v62  ;;  %v7824_v36 = vadd.f32 %v5064_v53, %v7782_v24  ;;  %v3658_v12 = vpop.f32.mrb[95].mxu0 }
0x10c3   : > { %5691 = vrcp.f32 %v3735_v40  ;;  %v4515_v29 = vmul.f32 -1.442695, %v7820_v21  ;;  %v7828_v35 = vadd.f32 %v7782_v24, %v3658_v12 }
0x10c4   : > { %5693 = vpow2.f32 %v4517_v38  ;;  %v4518_v23 = vmul.f32 -1.442695, %v7824_v36 }
0x10c5   : > { %5695 = vpow2.f32 %v4515_v29  ;;  %v4516_v48 = vmul.f32 -1.442695, %v7828_v35 }
0x10c6   : > { %v5678_v22 = vpop.eup %5677  ;;  %5697 = vpow2.f32 %v4518_v23 }
0x10c7   : > { %v5680_v30 = vpop.eup %5679  ;;  %v3740_v34 = vadd.f32 1.0, %v5678_v22  ;;  %5699 = vpow2.f32 %v4516_v48 }
0x10c8   : > { %v5682_v49 = vpop.eup %5681  ;;  %v3738_v8 = vadd.f32 1.0, %v5680_v30 }
0x10c9   : > { %v5684_v0 = vpop.eup %5683  ;;  %5701 = vrcp.f32 %v3740_v34  ;;  %v3741_v11 = vadd.f32 1.0, %v5682_v49 }
0x10ca   : > { %v5686_v59 = vpop.eup %5685  ;;  %5703 = vrcp.f32 %v3738_v8  ;;  %v3739_v16 = vadd.f32 1.0, %v5684_v0 }
0x10cb   : > { %v5688_v7 = vpop.eup %5687  ;;  %5705 = vrcp.f32 %v3741_v11  ;;  %v3784_v55 = vmul.f32 %v5686_v59, %v7785_v44 }
0x10cc   : > { %v5690_v47 = vpop.eup %5689  ;;  %5707 = vrcp.f32 %v3739_v16  ;;  %v3782_v17 = vmul.f32 %v5688_v7, %v7788_v6 }
0x10cd   : > { %v5692_v26 = vpop.eup %5691  ;;  %v3785_v60 = vmul.f32 %v5690_v47, %v7792_v50 }
0x10ce   : > { %v5694_v45 = vpop.eup %5693  ;;  %v3783_v51 = vmul.f32 %v5692_v26, %v7796_v46 }
0x10cf   : > { %v5696_v4 = vpop.eup %5695  ;;  %v3799_v1 = vpack.c.bf16 %v3785_v60, %v3784_v55  ;;  %v3744_v9 = vadd.f32 1.0, %v5694_v45 }
0x10d0   : > { %v5698_v33 = vpop.eup %5697  ;;  %v3798_v20 = vpack.c.bf16 %v3783_v51, %v3782_v17  ;;  %v3742_v39 = vadd.f32 1.0, %v5696_v4 }
0x10d1   : > { %v5700_v52 = vpop.eup %5699  ;;  %5709 = vrcp.f32 %v3744_v9  ;;  %v3745_v15 = vadd.f32 1.0, %v5698_v33 }
0x10d2   : > { %5711 = vrcp.f32 %v3742_v39  ;;  %v3743_v27 = vadd.f32 1.0, %v5700_v52  ;;  %5077 = vmatprep.mubr.msk.bf16.mxu1 %vm3841_vm5, %v3798_v20 }
0x10d3   : > { %v5702_v44 = vpop.eup %5701  ;;  %5713 = vrcp.f32 %v3745_v15  ;;  %5078 = vmatmul.mubr.msk.bf16.vlgmr.msra.gmra.mrb[76].mxu1 %vm3841_vm5, %v3799_v1 }
0x10d4   : > { %v5704_v6 = vpop.eup %5703  ;;  %5715 = vrcp.f32 %v3743_v27  ;;  %v3788_v19 = vmul.f32 %v5702_v44, %v7801_v5 }
0x10d5   : > { %v5706_v50 = vpop.eup %5705  ;;  %v3786_v40 = vmul.f32 %v5704_v6, %v7804_v56 }
0x10d6   : > { %v5708_v46 = vpop.eup %5707  ;;  %v3789_v18 = vmul.f32 %v5706_v50, %v7808_v14 }
0x10d7   : > { %v3787_v53 = vmul.f32 %v5708_v46, %v7812_v31  ;;  %v4537_v46 = vld [vmem:[%s3979_s17] ss:$0 sm:$0xff] }
0x10d8   : > { %v3801_v38 = vpack.c.bf16 %v3789_v18, %v3788_v19 }
0x10d9   : > { %v3800_v12 = vpack.c.bf16 %v3787_v53, %v3786_v40 }
0x10db   : > { %v5710_v29 = vpop.eup %5709  ;;  %5081 = vmatprep.mubr.msk.bf16.mxu1 %vm3841_vm5, %v3800_v12 }
0x10dc   : > { %v5712_v23 = vpop.eup %5711  ;;  %5082 = vmatmul.mubr.msk.bf16.gmra.mrb[80].mxu1 %vm3841_vm5, %v3801_v38  ;;  %v3792_v30 = vmul.f32 %v5710_v29, %v7817_v62 }
0x10dd   : > { %v5714_v48 = vpop.eup %5713  ;;  %v3790_v14 = vmul.f32 %v5712_v23, %v7820_v21 }
0x10de   : > { %v5716_v22 = vpop.eup %5715  ;;  %v3793_v5 = vmul.f32 %v5714_v48, %v7824_v36 }
0x10df   : > { %v3791_v56 = vmul.f32 %v5716_v22, %v7828_v35 }
0x10e0   : > { %v3803_v34 = vpack.c.bf16 %v3793_v5, %v3792_v30 }
0x10e1   : > { %v3802_v31 = vpack.c.bf16 %v3791_v56, %v3790_v14 }
0x10e3   : > { %5085 = vmatprep.mubr.msk.bf16.mxu1 %vm3841_vm5, %v3802_v31 }
0x10e4   : > { %5086 = vmatmul.mubr.msk.bf16.gmra.mrb[84].mxu1 %vm3841_vm5, %v3803_v34 }
0x10e7   : > { %v5067_v49 = vpop.f32.mrb[96].mxu0 }
0x10e8   : > { %v3680_v8 = vadd.f32 %v5067_v49, %v7782_v24  ;;  %v3671_v0 = vpop.f32.mrb[97].mxu0 }
0x10e9   : > { %v3672_v11 = vadd.f32 %v7782_v24, %v3671_v0  ;;  %v5068_v59 = vpop.f32.mrb[98].mxu0 }
0x10ea   : > { %v4521_v62 = vmul.f32 -1.442695, %v3680_v8  ;;  %v3683_v36 = vadd.f32 %v5068_v59, %v7782_v24  ;;  %v3674_v16 = vpop.f32.mrb[99].mxu0 }
0x10eb   : > { %v4519_v21 = vmul.f32 -1.442695, %v3672_v11  ;;  %v3675_v35 = vadd.f32 %v7782_v24, %v3674_v16 }
0x10ec   : > { %5717 = vpow2.f32 %v4521_v62  ;;  %v4522_v7 = vmul.f32 -1.442695, %v3683_v36 }
0x10ed   : > { %5719 = vpow2.f32 %v4519_v21  ;;  %v4520_v47 = vmul.f32 -1.442695, %v3675_v35 }
0x10ee   : > { %5721 = vpow2.f32 %v4522_v7 }
0x10ef   : > { %5723 = vpow2.f32 %v4520_v47 }
0x10f6   : > { %v5718_v26 = vpop.eup %5717 }
0x10f7   : > { %v5720_v55 = vpop.eup %5719  ;;  %v3748_v60 = vadd.f32 1.0, %v5718_v26 }
0x10f8   : > { %v5722_v45 = vpop.eup %5721  ;;  %v3746_v17 = vadd.f32 1.0, %v5720_v55 }
0x10f9   : > { %v5724_v51 = vpop.eup %5723  ;;  %5725 = vrcp.f32 %v3748_v60  ;;  %v3749_v4 = vadd.f32 1.0, %v5722_v45 }
0x10fa   : > { %5727 = vrcp.f32 %v3746_v17  ;;  %v3747_v1 = vadd.f32 1.0, %v5724_v51 }
0x10fb   : > { %5729 = vrcp.f32 %v3749_v4 }
0x10fc   : > { %5731 = vrcp.f32 %v3747_v1 }
0x1103   : > { %v5726_v24 = vpop.eup %5725 }
0x1104   : > { %v5728_v9 = vpop.eup %5727  ;;  %v3796_v39 = vmul.f32 %v5726_v24, %v3680_v8 }
0x1105   : > { %v5730_v33 = vpop.eup %5729  ;;  %v3794_v15 = vmul.f32 %v5728_v9, %v3672_v11 }
0x1106   : > { %v5732_v20 = vpop.eup %5731  ;;  %v3797_v52 = vmul.f32 %v5730_v33, %v3683_v36 }
0x1107   : > { %v3795_v27 = vmul.f32 %v5732_v20, %v3675_v35 }
0x1108   : > { %v3805_v44 = vpack.c.bf16 %v3797_v52, %v3796_v39  ;;  %v7938_v52 = vld [vmem:[%s8102_s14] ss:$0 sm:$0xff] (!%p4538_p7) }
0x1109   : > { %v3804_v6 = vpack.c.bf16 %v3795_v27, %v3794_v15  ;;  %v7943_v27 = vld [vmem:[%s8103_s15] ss:$0 sm:$0xff] (!%p4538_p7) }
0x110b   : > { %5089 = vmatprep.mubr.msk.bf16.mxu1 %vm3841_vm5, %v3804_v6 }
0x110c   : > { %5090 = vmatmul.mubr.msk.bf16.gmra.mrb[88].mxu1 %vm3841_vm5, %v3805_v44 }
0x11a6   : > { %v5079_v50 = vpop.f32.mrb[76].mxu1 }
0x11a7   : > { %v3965_v19 = vadd.f32 %v5079_v50, %v7530_v3  ;;  %v3900_v18 = vpop.f32.mrb[77].mxu1 }
0x11a8   : > { %v3963_v40 = vadd.f32 %v3900_v18, %v7527_v41  ;;  %v5080_v53 = vpop.f32.mrb[78].mxu1 }
0x11a9   : > { %v7862_v38 = vadd.f32 %v4537_v46, %v3965_v19  ;;  %v3966_v12 = vadd.f32 %v5080_v53, %v7540_v25  ;;  %v3903_v29 = vpop.f32.mrb[79].mxu1 }
0x11aa   : > { %v7865_v23 = vadd.f32 %v4537_v46, %v3963_v40  ;;  %v3964_v48 = vadd.f32 %v3903_v29, %v7533_v58 }
0x11ab   : > { %4005 = vst.msk [vmem:[#allocation2 + $0x10] sm:$0xff] %vm611_vm1, %v7862_v38  ;;  %v7870_v22 = vadd.f32 %v4537_v46, %v3966_v12 }
0x11ac   : > { %4003 = vst.msk [vmem:[#allocation2] sm:$0xff] %vm611_vm1, %v7865_v23  ;;  %v7874_v3 = vadd.f32 %v4537_v46, %v3964_v48 }
0x11ad   : > { %4006 = vst.msk [vmem:[#allocation2 + $0x18] sm:$0xff] %vm611_vm1, %v7870_v22  ;;  %v4024_v1 = vpack.c.bf16 (!%p4538_p7), %v7870_v22, %v7862_v38 }
0x11ae   : > { %4004 = vst.msk [vmem:[#allocation2 + $0x8] sm:$0xff] %vm611_vm1, %v7874_v3 }
0x11af   : > { %v5083_v41 = vpop.f32.mrb[80].mxu1 }
0x11b0   : > { %v3969_v25 = vadd.f32 %v5083_v41, %v7558_v57  ;;  %v3916_v58 = vpop.f32.mrb[81].mxu1 }
0x11b1   : > { %v3967_v30 = vadd.f32 %v3916_v58, %v7545_v2  ;;  %v5084_v5 = vpop.f32.mrb[82].mxu1 }
0x11b2   : > { %v7882_v14 = vadd.f32 %v4537_v46, %v3969_v25  ;;  %v3970_v56 = vadd.f32 %v5084_v5, %v7553_v28  ;;  %v3919_v34 = vpop.f32.mrb[83].mxu1 }
0x11b3   : > { %v7885_v31 = vadd.f32 %v4537_v46, %v3967_v30  ;;  %v3968_v49 = vadd.f32 %v3919_v34, %v7548_v37 }
0x11b4   : > { %4009 = vst.msk [vmem:[#allocation2 + $0x30] sm:$0xff] %vm611_vm1, %v7882_v14  ;;  %v7890_v8 = vadd.f32 %v4537_v46, %v3970_v56 }
0x11b5   : > { %4007 = vst.msk [vmem:[#allocation2 + $0x20] sm:$0xff] %vm611_vm1, %v7885_v31  ;;  %v3992_v57 = vadd.f32 %v4537_v46, %v3968_v49 }
0x11b6   : > { %4010 = vst.msk [vmem:[#allocation2 + $0x38] sm:$0xff] %vm611_vm1, %v7890_v8  ;;  %v4026_v20 = vpack.c.bf16 (!%p4538_p7), %v7890_v8, %v7882_v14 }
0x11b7   : > { %4008 = vst.msk [vmem:[#allocation2 + $0x28] sm:$0xff] %vm611_vm1, %v3992_v57  ;;  %v5087_v2 = vpop.f32.mrb[84].mxu1  ;;  %v4025_v9 = vpack.c.bf16 (!%p4538_p7), %v3992_v57, %v7885_v31 }
0x11b8   : > { %v3973_v28 = vadd.f32 %v5087_v2, %v7578_v10  ;;  %v3932_v0 = vpop.f32.mrb[85].mxu1 }
0x11b9   : > { %v3971_v37 = vadd.f32 %v3932_v0, %v7565_v13  ;;  %v5088_v11 = vpop.f32.mrb[86].mxu1 }
0x11ba   : > { %v3997_v59 = vadd.f32 %v4537_v46, %v3973_v28  ;;  %v3974_v62 = vadd.f32 %v5088_v11, %v7573_v32  ;;  %v3935_v36 = vpop.f32.mrb[87].mxu1 }
0x11bb   : > { %v3995_v16 = vadd.f32 %v4537_v46, %v3971_v37  ;;  %v3972_v21 = vadd.f32 %v3935_v36, %v7568_v43 }
0x11bc   : > { %4013 = vst.msk [vmem:[#allocation2 + $0x50] sm:$0xff] %vm611_vm1, %v3997_v59  ;;  %v3998_v35 = vadd.f32 %v4537_v46, %v3974_v62 }
0x11bd   : > { %4011 = vst.msk [vmem:[#allocation2 + $0x40] sm:$0xff] %vm611_vm1, %v3995_v16  ;;  %v3996_v7 = vadd.f32 %v4537_v46, %v3972_v21 }
0x11be   : > { %4014 = vst.msk [vmem:[#allocation2 + $0x58] sm:$0xff] %vm611_vm1, %v3998_v35  ;;  %v4028_v24 = vpack.c.bf16 (!%p4538_p7), %v3998_v35, %v3997_v59 }
0x11bf   : > { %4012 = vst.msk [vmem:[#allocation2 + $0x48] sm:$0xff] %vm611_vm1, %v3996_v7 }
0x11df   : > { %v5091_v10 = vpop.f32.mrb[88].mxu1 }
0x11e0   : > { %v3977_v13 = vadd.f32 %v5091_v10, %v7587_v61  ;;  %v3948_v47 = vpop.f32.mrb[89].mxu1  ;;  %v5765_v61 = vld [vmem:[%s8101_s13] sm:$0xff] (!%p4538_p7)  }
0x11e1   : > { %v3975_v32 = vadd.f32 %v3948_v47, %v7590_v42  ;;  %v5092_v26 = vpop.f32.mrb[90].mxu1  ;;  %4022 = sbr.rel (%p4538_p7) target bundleno = 4858 (0x12fa), region = 92  ;;  %v5766_v42 = vld [vmem:[%s8101_s13 + $0x8] sm:$0xff] (!%p4538_p7)   ;;  %5093 = vmatprep.subr.bf16.mxu0 (!%p4538_p7), %v5765_v61  ;;  %5129 = vmatprep.subr.bf16.mxu1 (!%p4538_p7), %v5765_v61 }
0x11e2   : > { %v4001_v55 = vadd.f32 %v4537_v46, %v3977_v13  ;;  %v3978_v43 = vadd.f32 %v5092_v26, %v7593_v54  ;;  %v3951_v60 = vpop.f32.mrb[91].mxu1  ;;  %v4023_v54 = vpack.c.bf16 (!%p4538_p7), %v7874_v3, %v7865_v23  ;;  %5094 = vmatpush3.bf16.msra.mxu0 (!%p4538_p7), %v5765_v61  ;;  %5131 = vmatpush3.bf16.msra.mxu1 (!%p4538_p7), %v5765_v61 }
0x11e3   : > { %v3999_v45 = vadd.f32 %v4537_v46, %v3975_v32  ;;  %v3976_v17 = vadd.f32 %v3951_v60, %v7596_v63  ;;  %v4027_v63 = vpack.c.bf16 (!%p4538_p7), %v3996_v7, %v3995_v16  ;;  %5095 = vmatprep.subr.bf16.mxu0 (!%p4538_p7), %v5766_v42  ;;  %5130 = vmatprep.subr.bf16.mxu1 (!%p4538_p7), %v5766_v42 }
0x11e4   : > { %4017 = vst.msk [vmem:[#allocation2 + $0x70] sm:$0xff] %vm611_vm1, %v4001_v55  ;;  %v4002_v51 = vadd.f32 %v4537_v46, %v3978_v43  ;;  %5097 = vmatprep.mubr.msk.bf16.mxu0 (!%p4538_p7), %vm611_vm1, %v4023_v54 }
0x11e5   : > { %4015 = vst.msk [vmem:[#allocation2 + $0x60] sm:$0xff] %vm611_vm1, %v3999_v45  ;;  %v4000_v4 = vadd.f32 %v4537_v46, %v3976_v17  ;;  %5105 = vmatprep.mubr.msk.bf16.mxu1 (!%p4538_p7), %vm611_vm1, %v4027_v63 }
0x11e6   : > { %4018 = vst.msk [vmem:[#allocation2 + $0x78] sm:$0xff] %vm611_vm1, %v4002_v51  ;;  %5096 = vmatpush3.bf16.msra.mxu0 (!%p4538_p7), %v5766_v42  ;;  %5132 = vmatpush3.bf16.msra.mxu1 (!%p4538_p7), %v5766_v42  ;;  %v4030_v39 = vpack.c.bf16 (!%p4538_p7), %v4002_v51, %v4001_v55 }
0x11e7   : > { %4016 = vst.msk [vmem:[#allocation2 + $0x68] sm:$0xff] %vm611_vm1, %v4000_v4  ;;  %v4029_v33 = vpack.c.bf16 (!%p4538_p7), %v4000_v4, %v3999_v45 }
0x11e9   : > { %5098 = vmatmul.mubr.msk.bf16.vlgmr.msra.gmra.mrb[0].mxu0 %vm611_vm1, %v4024_v1  ;;  %5106 = vmatmul.mubr.msk.bf16.vlgmr.msra.gmra.mrb[0].mxu1 %vm611_vm1, %v4028_v24 }
0x11ea   : > { %5101 = vmatprep.mubr.msk.bf16.mxu0 %vm611_vm1, %v4025_v9  ;;  %5109 = vmatprep.mubr.msk.bf16.mxu1 %vm611_vm1, %v4029_v33 }
0x11f1   : > { %5102 = vmatmul.mubr.msk.bf16.gmra.mrb[4].mxu0 %vm611_vm1, %v4026_v20  ;;  %5110 = vmatmul.mubr.msk.bf16.gmra.mrb[4].mxu1 %vm611_vm1, %v4030_v39 }
0x12bc   : > { %v5099_v15 = vpop.f32.mrb[0].mxu0  ;;  %v5107_v44 = vpop.f32.mrb[0].mxu1 }
0x12bd   : > { %v4177_v6 = vmul.f32 %v5099_v15, %v7938_v52  ;;  %v4185_v50 = vmul.f32 %v5107_v44, %v7938_v52  ;;  %v4105_v46 = vpop.f32.mrb[1].mxu0  ;;  %v4137_v19 = vpop.f32.mrb[1].mxu1 }
0x12be   : > { %v4175_v18 = vmul.f32 %v7938_v52, %v4105_v46  ;;  %v4183_v40 = vmul.f32 %v7938_v52, %v4137_v19  ;;  %v5100_v53 = vpop.f32.mrb[2].mxu0  ;;  %v5108_v38 = vpop.f32.mrb[2].mxu1 }
0x12bf   : > { %v7950_v12 = vadd.f32 %v7943_v27, %v4177_v6  ;;  %v7953_v29 = vadd.f32 %v7943_v27, %v4185_v50  ;;  %v4178_v23 = vmul.f32 %v5100_v53, %v7938_v52  ;;  %v4186_v48 = vmul.f32 %v5108_v38, %v7938_v52  ;;  %v4108_v22 = vpop.f32.mrb[3].mxu0  ;;  %v4140_v3 = vpop.f32.mrb[3].mxu1 }
0x12c0   : > { %v7958_v41 = vadd.f32 %v7943_v27, %v4175_v18  ;;  %v7961_v25 = vadd.f32 %v7943_v27, %v4183_v40  ;;  %v4176_v58 = vmul.f32 %v7938_v52, %v4108_v22  ;;  %v4184_v30 = vmul.f32 %v7938_v52, %v4140_v3 }
0x12c1   : > { %v4553_v5 = vmul.f32 -1.442695, %v7950_v12  ;;  %v4561_v14 = vmul.f32 -1.442695, %v7953_v29  ;;  %v7968_v56 = vadd.f32 %v7943_v27, %v4178_v23  ;;  %v7971_v34 = vadd.f32 %v7943_v27, %v4186_v48 }
0x12c2   : > { %v4551_v31 = vmul.f32 -1.442695, %v7958_v41  ;;  %v4559_v49 = vmul.f32 -1.442695, %v7961_v25  ;;  %v7976_v8 = vadd.f32 %v7943_v27, %v4176_v58  ;;  %v7979_v57 = vadd.f32 %v7943_v27, %v4184_v30 }
0x12c3   : > { %5767 = vpow2.f32 %v4553_v5  ;;  %v4554_v2 = vmul.f32 -1.442695, %v7968_v56  ;;  %v4562_v28 = vmul.f32 -1.442695, %v7971_v34 }
0x12c4   : > { %5769 = vpow2.f32 %v4561_v14  ;;  %v5103_v0 = vpop.f32.mrb[4].mxu0  ;;  %v5111_v37 = vpop.f32.mrb[4].mxu1  ;;  %v4552_v11 = vmul.f32 -1.442695, %v7976_v8  ;;  %v4560_v21 = vmul.f32 -1.442695, %v7979_v57 }
0x12c5   : > { %5771 = vpow2.f32 %v4551_v31  ;;  %v4181_v59 = vmul.f32 %v5103_v0, %v7938_v52  ;;  %v4189_v62 = vmul.f32 %v5111_v37, %v7938_v52  ;;  %v4121_v36 = vpop.f32.mrb[5].mxu0  ;;  %v4153_v16 = vpop.f32.mrb[5].mxu1 }
0x12c6   : > { %5773 = vpow2.f32 %v4559_v49  ;;  %v4179_v35 = vmul.f32 %v7938_v52, %v4121_v36  ;;  %v4187_v7 = vmul.f32 %v7938_v52, %v4153_v16  ;;  %v5104_v10 = vpop.f32.mrb[6].mxu0  ;;  %v5112_v13 = vpop.f32.mrb[6].mxu1 }
0x12c7   : > { %5775 = vpow2.f32 %v4554_v2  ;;  %v7990_v47 = vadd.f32 %v7943_v27, %v4181_v59  ;;  %v7993_v32 = vadd.f32 %v7943_v27, %v4189_v62  ;;  %v4182_v26 = vmul.f32 %v5104_v10, %v7938_v52  ;;  %v4124_v55 = vpop.f32.mrb[7].mxu0  ;;  %v4156_v43 = vpop.f32.mrb[7].mxu1 }
0x12c8   : > { %5777 = vpow2.f32 %v4562_v28  ;;  %v7997_v60 = vadd.f32 %v7943_v27, %v4179_v35  ;;  %v8000_v45 = vadd.f32 %v7943_v27, %v4187_v7  ;;  %v4190_v6 = vmul.f32 %v5112_v13, %v7938_v52 }
0x12c9   : > { %5779 = vpow2.f32 %v4552_v11  ;;  %v4557_v17 = vmul.f32 -1.442695, %v7990_v47  ;;  %v4565_v51 = vmul.f32 -1.442695, %v7993_v32  ;;  %v8005_v4 = vadd.f32 %v7943_v27, %v4182_v26 }
0x12ca   : > { %5781 = vpow2.f32 %v4560_v21  ;;  %v4555_v61 = vmul.f32 -1.442695, %v7997_v60  ;;  %v4563_v42 = vmul.f32 -1.442695, %v8000_v45  ;;  %v4180_v19 = vmul.f32 %v7938_v52, %v4124_v55 }
0x12cb   : > { %5783 = vpow2.f32 %v4557_v17  ;;  %v4558_v54 = vmul.f32 -1.442695, %v8005_v4  ;;  %v4188_v53 = vmul.f32 %v7938_v52, %v4156_v43  ;;  %v8014_v3 = vadd.f32 %v7943_v27, %v4190_v6 }
0x12cc   : > { %5785 = vpow2.f32 %v4565_v51  ;;  %v8017_v5 = vadd.f32 %v7943_v27, %v4180_v19 }
0x12cd   : > { %v5768_v63 = vpop.eup %5767  ;;  %5787 = vpow2.f32 %v4555_v61  ;;  %v8020_v52 = vadd.f32 %v7943_v27, %v4188_v53  ;;  %v4566_v37 = vmul.f32 -1.442695, %v8014_v3 }
0x12ce   : > { %v5770_v1 = vpop.eup %5769  ;;  %v4264_v24 = vadd.f32 1.0, %v5768_v63  ;;  %5789 = vpow2.f32 %v4563_v42  ;;  %v4556_v62 = vmul.f32 -1.442695, %v8017_v5 }
0x12cf   : > { %v5772_v9 = vpop.eup %5771  ;;  %v4272_v33 = vadd.f32 1.0, %v5770_v1  ;;  %5791 = vpow2.f32 %v4558_v54  ;;  %v4564_v16 = vmul.f32 -1.442695, %v8020_v52 }
0x12d0   : > { %v5774_v20 = vpop.eup %5773  ;;  %5793 = vrcp.f32 %v4264_v24  ;;  %v4262_v39 = vadd.f32 1.0, %v5772_v9 }
0x12d1   : > { %v5776_v15 = vpop.eup %5775  ;;  %5795 = vrcp.f32 %v4272_v33  ;;  %v4270_v44 = vadd.f32 1.0, %v5774_v20 }
0x12d2   : > { %v5778_v50 = vpop.eup %5777  ;;  %5797 = vrcp.f32 %v4262_v39  ;;  %v4265_v46 = vadd.f32 1.0, %v5776_v15 }
0x12d3   : > { %v5780_v18 = vpop.eup %5779  ;;  %5799 = vrcp.f32 %v4270_v44  ;;  %v4273_v40 = vadd.f32 1.0, %v5778_v50 }
0x12d4   : > { %v5782_v38 = vpop.eup %5781  ;;  %5801 = vrcp.f32 %v4265_v46  ;;  %v4263_v23 = vadd.f32 1.0, %v5780_v18 }
0x12d5   : > { %v5784_v48 = vpop.eup %5783  ;;  %5803 = vrcp.f32 %v4273_v40  ;;  %v4271_v22 = vadd.f32 1.0, %v5782_v38 }
0x12d6   : > { %v5786_v58 = vpop.eup %5785  ;;  %5805 = vrcp.f32 %v4263_v23  ;;  %v4268_v30 = vadd.f32 1.0, %v5784_v48 }
0x12d7   : > { %v5788_v14 = vpop.eup %5787  ;;  %5807 = vrcp.f32 %v4271_v22  ;;  %v4276_v31 = vadd.f32 1.0, %v5786_v58 }
0x12d8   : > { %v5790_v49 = vpop.eup %5789  ;;  %5809 = vrcp.f32 %v4268_v30  ;;  %v4266_v2 = vadd.f32 1.0, %v5788_v14 }
0x12d9   : > { %v5792_v28 = vpop.eup %5791  ;;  %5811 = vrcp.f32 %v4276_v31  ;;  %v4274_v0 = vadd.f32 1.0, %v5790_v49 }
0x12da   : > { %v5794_v11 = vpop.eup %5793  ;;  %5813 = vrcp.f32 %v4266_v2  ;;  %v4269_v59 = vadd.f32 1.0, %v5792_v28 }
0x12db   : > { %v5796_v36 = vpop.eup %5795  ;;  %v4312_v27 = vmul.f32 %v5794_v11, %v7950_v12  ;;  %5815 = vrcp.f32 %v4274_v0 }
0x12dc   : > { %v5798_v21 = vpop.eup %5797  ;;  %v4320_v35 = vmul.f32 %v5796_v36, %v7953_v29  ;;  %5817 = vrcp.f32 %v4269_v59 }
0x12dd   : > { %v5800_v7 = vpop.eup %5799  ;;  %4328 = vst.msk [vmem:[%s6010_s23 + $0x10] sm:$0xff] %vm1069_vm2, %v4312_v27  ;;  %v4310_v10 = vmul.f32 %v5798_v21, %v7958_v41  ;;  %5819 = vpow2.f32 %v4566_v37 }
0x12de   : > { %v5802_v13 = vpop.eup %5801  ;;  %4336 = vst.msk [vmem:[%s6010_s23 + $0x50] sm:$0xff] %vm1069_vm2, %v4320_v35  ;;  %v4318_v12 = vmul.f32 %v5800_v7, %v7961_v25  ;;  %5821 = vpow2.f32 %v4556_v62 }
0x12df   : > { %v5804_v26 = vpop.eup %5803  ;;  %4326 = vst.msk [vmem:[%s6010_s23] sm:$0xff] %vm1069_vm2, %v4310_v10  ;;  %v4313_v29 = vmul.f32 %v5802_v13, %v7968_v56  ;;  %5823 = vpow2.f32 %v4564_v16 }
0x12e0   : > { %v5806_v55 = vpop.eup %5805  ;;  %4334 = vst.msk [vmem:[%s6010_s23 + $0x40] sm:$0xff] %vm1069_vm2, %v4318_v12  ;;  %v4321_v41 = vmul.f32 %v5804_v26, %v7971_v34 }
0x12e1   : > { %v5808_v43 = vpop.eup %5807  ;;  %4329 = vst.msk [vmem:[%s6010_s23 + $0x18] sm:$0xff] %vm1069_vm2, %v4313_v29  ;;  %v4311_v25 = vmul.f32 %v5806_v55, %v7976_v8 }
0x12e2   : > { %v5810_v17 = vpop.eup %5809  ;;  %4337 = vst.msk [vmem:[%s6010_s23 + $0x58] sm:$0xff] %vm1069_vm2, %v4321_v41  ;;  %v4319_v51 = vmul.f32 %v5808_v43, %v7979_v57 }
0x12e3   : > { %v5812_v56 = vpop.eup %5811  ;;  %4327 = vst.msk [vmem:[%s6010_s23 + $0x8] sm:$0xff] %vm1069_vm2, %v4311_v25  ;;  %v4316_v61 = vmul.f32 %v5810_v17, %v7990_v47 }
0x12e4   : > { %v5814_v42 = vpop.eup %5813  ;;  %4335 = vst.msk [vmem:[%s6010_s23 + $0x48] sm:$0xff] %vm1069_vm2, %v4319_v51  ;;  %v4324_v34 = vmul.f32 %v5812_v56, %v7993_v32 }
0x12e5   : > { %v5816_v54 = vpop.eup %5815  ;;  %4332 = vst.msk [vmem:[%s6010_s23 + $0x30] sm:$0xff] %vm1069_vm2, %v4316_v61  ;;  %v4314_v8 = vmul.f32 %v5814_v42, %v7997_v60 }
0x12e6   : > { %v5818_v63 = vpop.eup %5817  ;;  %4340 = vst.msk [vmem:[%s6010_s23 + $0x70] sm:$0xff] %vm1069_vm2, %v4324_v34  ;;  %v4322_v57 = vmul.f32 %v5816_v54, %v8000_v45 }
0x12e7   : > { %v5820_v1 = vpop.eup %5819  ;;  %4330 = vst.msk [vmem:[%s6010_s23 + $0x20] sm:$0xff] %vm1069_vm2, %v4314_v8  ;;  %v4317_v47 = vmul.f32 %v5818_v63, %v8005_v4 }
0x12e8   : > { %v5822_v24 = vpop.eup %5821  ;;  %4338 = vst.msk [vmem:[%s6010_s23 + $0x60] sm:$0xff] %vm1069_vm2, %v4322_v57  ;;  %v4277_v32 = vadd.f32 1.0, %v5820_v1 }
0x12e9   : > { %v5824_v9 = vpop.eup %5823  ;;  %4333 = vst.msk [vmem:[%s6010_s23 + $0x38] sm:$0xff] %vm1069_vm2, %v4317_v47  ;;  %v4267_v60 = vadd.f32 1.0, %v5822_v24 }
0x12ea   : > { %5825 = vrcp.f32 %v4277_v32  ;;  %v4275_v33 = vadd.f32 1.0, %v5824_v9 }
0x12eb   : > { %5827 = vrcp.f32 %v4267_v60 }
0x12ec   : > { %5829 = vrcp.f32 %v4275_v33 }
0x12f4   : > { %v5826_v45 = vpop.eup %5825 }
0x12f5   : > { %v5828_v20 = vpop.eup %5827  ;;  %v4325_v39 = vmul.f32 %v5826_v45, %v8014_v3 }
0x12f6   : > { %v5830_v4 = vpop.eup %5829  ;;  %v4315_v15 = vmul.f32 %v5828_v20, %v8017_v5 }
0x12f7   : > { %4341 = vst.msk [vmem:[%s6010_s23 + $0x78] sm:$0xff] %vm1069_vm2, %v4325_v39  ;;  %v4323_v44 = vmul.f32 %v5830_v4, %v8020_v52 }
0x12f8   : > { %4331 = vst.msk [vmem:[%s6010_s23 + $0x28] sm:$0xff] %vm1069_vm2, %v4315_v15 }
0x12f9   : > { %4339 = vst.msk [vmem:[%s6010_s23 + $0x68] sm:$0xff] %vm1069_vm2, %v4323_v44 }
0x12fa PF: > { %s26_s25 = sadd.s32 1, %s5869_s25   ;;  %s8221_s21 = sld [smem:[#allocation3_spill]] }
0x12fb   : > { %p23_p8 = scmp.ge.s32.totalorder %s26_s25, 6   ;;  %s8222_s22 = smov %s5865_s24 }
0x12fc   : > { %s8223_s23 = smov %s8226_s26  ;;  %s8224_s24 = smov %s8230_s27 }
0x12fd   :  { %25 = sbr.rel (!%p23_p8) target bundleno = 3 (0x3), region = 133 }

// kernel: mobilevit_block_forward.5
= control target key start
LH: loop header
LB: loop body
LE: loop exit
PB: predicated region body
PF: predicated region fallthrough
CT: control target
= control target key end

     0   :  { %s1613_s21 = smov 0   ;;  %s1615_s22 = smov 0   ;;  %s1954_s0 = inlined_call_operand.vmem [shape: bf16[2,128,216], index: 0, kind: input, shape index: {}]   ;;  %s1955_s1 = inlined_call_operand.vmem [shape: bf16[2,128,216], index: 1, kind: input, shape index: {}]   ;;  %s1956_s2 = inlined_call_operand.vmem [shape: bf16[216,8], index: 2, kind: input, shape index: {}]   ;;  %s1957_s3 = inlined_call_operand.vmem [shape: bf16[216,8], index: 3, kind: input, shape index: {}]   ;;  %s1958_s4 = inlined_call_operand.vmem [shape: f32[1,8], index: 4, kind: input, shape index: {}]   ;;  %s1959_s5 = inlined_call_operand.vmem [shape: f32[1,8], index: 5, kind: input, shape index: {}]   ;;  %s1960_s6 = inlined_call_operand.vmem [shape: f32[2,128,8], index: 6, kind: output, shape index: {}]  }
   0x1   :  { %s1617_s23 = smov 0  }
   0x2 LB: > { %s28_s24 = sadd.s32 1, %s1571_s22  ;;  %p1266_p0 = scmp.ge.s32.totalorder %s1575_s23, 1  ;;  %s1575_s23 = sphi %s1617_s23, %s16_s23   ;;  %s1571_s22 = sphi %s1615_s22, %s1962_s22   ;;  %s1567_s21 = sphi %s1613_s21, %s1961_s21  }
   0x3   : > { %p30_p1 = scmp.ge.s32.totalorder %s28_s24, 2  ;;  %p252_p2 = scmp.lt.s32.totalorder %s1575_s23, 3 }
   0x5   : > { %s1964_s24 = smov (%p30_p1, %s28_s24), 0  ;;  %p253_p3 = pnand %p1266_p0, %p252_p2 }
   0x6   : > { %v1413_v0 = vld [vmem:[%s1957_s3] sm:$0xff] (!%p253_p3)   ;;  %v1577_v1 = vmov (!%p253_p3), 0   ;;  %v1415_v3 = vld [vmem:[%s1957_s3 + $0x8] sm:$0xff] (!%p253_p3)   ;;  %v1417_v5 = vld [vmem:[%s1957_s3 + $0x10] sm:$0xff] (!%p253_p3)   ;;  %p302_p4 = scmp.lt.s32.totalorder (!%p253_p3), %s1567_s21, 1  ;;  %vm573_vm0 = vcmask (!%p253_p3), 719872  }
   0x7   : > { %256 = sbr.rel (%p253_p3) target bundleno = 369 (0x171), region = 44  ;;  %602 = vmatprep.subr.bf16.mxu1 (!%p253_p3), %v1577_v1  ;;  %879 = vmatprep.subr.bf16.mxu0 (!%p253_p3), %v1577_v1  ;;  %v1414_v2 = vld [vmem:[%s1956_s2] sm:$0xff] (!%p253_p3)   ;;  %v1416_v4 = vld [vmem:[%s1956_s2 + $0x8] sm:$0xff] (!%p253_p3)   ;;  %v1418_v6 = vld [vmem:[%s1956_s2 + $0x10] sm:$0xff] (!%p253_p3)   ;;  %vm598_vm1 = vcmask (!%p253_p3), 1043456   ;;  %vm1134_vm2 = vcmask (!%p253_p3), 64512  }
   0x8   : > { %603 = vmatpush1.bf16.msra.mxu1 (!%p253_p3), %v1413_v0  ;;  %880 = vmatpush1.bf16.msra.mxu0 (!%p253_p3), %v1414_v2  ;;  %v1419_v7 = vld [vmem:[%s1957_s3 + $0x18] sm:$0xff] (!%p253_p3)   ;;  %v1421_v9 = vld [vmem:[%s1957_s3 + $0x20] sm:$0xff] (!%p253_p3)   ;;  %v1423_v11 = vld [vmem:[%s1957_s3 + $0x28] sm:$0xff] (!%p253_p3)  }
   0x9   : > { %604 = vmatprep.subr.bf16.mxu1 (!%p253_p3), %v1577_v1  ;;  %881 = vmatprep.subr.bf16.mxu0 (!%p253_p3), %v1577_v1  ;;  %v1420_v8 = vld [vmem:[%s1956_s2 + $0x18] sm:$0xff] (!%p253_p3)   ;;  %v1422_v10 = vld [vmem:[%s1956_s2 + $0x20] sm:$0xff] (!%p253_p3)   ;;  %v1424_v12 = vld [vmem:[%s1956_s2 + $0x28] sm:$0xff] (!%p253_p3)  }
   0xa   : > { %v1425_v13 = vld [vmem:[%s1957_s3 + $0x30] sm:$0xff] (!%p253_p3)   ;;  %v1427_v15 = vld [vmem:[%s1957_s3 + $0x38] sm:$0xff] (!%p253_p3)   ;;  %v1429_v19 = vld [vmem:[%s1957_s3 + $0x40] sm:$0xff] (!%p253_p3)  }
   0xb   : > { %v1426_v14 = vld [vmem:[%s1956_s2 + $0x30] sm:$0xff] (!%p253_p3)   ;;  %v1428_v16 = vld [vmem:[%s1956_s2 + $0x38] sm:$0xff] (!%p253_p3)   ;;  %v1430_v20 = vld [vmem:[%s1956_s2 + $0x40] sm:$0xff] (!%p253_p3)  }
   0xc   : > { %605 = vmatpush1.bf16.msra.mxu1 (!%p253_p3), %v1415_v3  ;;  %882 = vmatpush1.bf16.msra.mxu0 (!%p253_p3), %v1416_v4  ;;  %v1431_v21 = vld [vmem:[%s1957_s3 + $0x48] sm:$0xff] (!%p253_p3)   ;;  %v1433_v23 = vld [vmem:[%s1957_s3 + $0x50] sm:$0xff] (!%p253_p3)   ;;  %v1435_v25 = vld [vmem:[%s1957_s3 + $0x58] sm:$0xff] (!%p253_p3)  }
   0xd   : > { %606 = vmatprep.subr.bf16.mxu1 (!%p253_p3), %v1577_v1  ;;  %883 = vmatprep.subr.bf16.mxu0 (!%p253_p3), %v1577_v1  ;;  %v1432_v22 = vld [vmem:[%s1956_s2 + $0x48] sm:$0xff] (!%p253_p3)   ;;  %v1434_v24 = vld [vmem:[%s1956_s2 + $0x50] sm:$0xff] (!%p253_p3)   ;;  %v1436_v26 = vld [vmem:[%s1956_s2 + $0x58] sm:$0xff] (!%p253_p3)  }
   0xe   : > { %s1966_s21 = smov (!%p302_p4, %s1567_s21), 1  ;;  %v1437_v27 = vld [vmem:[%s1957_s3 + $0x60] sm:$0xff]   ;;  %v1439_v29 = vld [vmem:[%s1957_s3 + $0x68] ss:$0 sps:$4 sm:$0xff]  }
   0xf   : > { %s1686_s7 = sshll.u32 %s1966_s21, 7  ;;  %v1438_v28 = vld [vmem:[%s1956_s2 + $0x60] sm:$0xff]   ;;  %v1440_v30 = vld [vmem:[%s1956_s2 + $0x68] ss:$0 sps:$4 sm:$0xff]   ;;  %v600_v31 = vsel %vm598_vm1, %v1439_v29, 0 }
  0x10   : > { %607 = vmatpush1.bf16.msra.mxu1 %v1417_v5  ;;  %884 = vmatpush1.bf16.msra.mxu0 %v1418_v6  ;;  %s1697_s12 = scalar_lea.vmem %s1955_s1, %s1686_s7  ;;  %s1706_s16 = scalar_lea.vmem %s1954_s0, %s1686_s7  ;;  %v877_v32 = vsel %vm598_vm1, %v1440_v30, 0  ;;  %v1817_v6 = vld [vmem:[%s1959_s5] ss:$0 sm:$0xff] }
  0x11   : > { %608 = vmatprep.subr.bf16.mxu1 %v1577_v1  ;;  %885 = vmatprep.subr.bf16.mxu0 %v1577_v1  ;;  %v1443_v17 = vld [vmem:[%s1697_s12 + $0x4] ss:$8 sps:$4 sm:$0xff]   ;;  %v1441_v33 = vld [vmem:[%s1697_s12] ss:$8 sps:$4 sm:$0xff]   ;;  %v1447_v35 = vld [vmem:[%s1697_s12 + $0x14] ss:$8 sps:$4 sm:$0xff]   ;;  %s1862_s10 = scalar_lea.vmem %s1960_s6, %s1686_s7 }
  0x12   : > { %v1446_v18 = vld [vmem:[%s1706_s16 + $0x4] ss:$8 sps:$4 sm:$0xff]   ;;  %1303 = vmatprep.mubr.msk.bf16.mxu1 %vm573_vm0, %v1443_v17  ;;  %v1444_v34 = vld [vmem:[%s1706_s16] ss:$8 sps:$4 sm:$0xff]   ;;  %v1449_v36 = vld [vmem:[%s1706_s16 + $0x14] ss:$8 sps:$4 sm:$0xff]  }
  0x13   : > { %1341 = vmatprep.mubr.msk.bf16.mxu0 %vm573_vm0, %v1446_v18  ;;  %v1451_v37 = vld [vmem:[%s1697_s12 + $0x10] ss:$8 sps:$4 sm:$0xff]   ;;  %v1453_v39 = vld [vmem:[%s1697_s12 + $0x24] ss:$8 sps:$4 sm:$0xff]   ;;  %v1457_v41 = vld [vmem:[%s1697_s12 + $0x20] ss:$8 sps:$4 sm:$0xff]  }
  0x14   : > { %609 = vmatpush1.bf16.msra.mxu1 %v1419_v7  ;;  %886 = vmatpush1.bf16.msra.mxu0 %v1420_v8  ;;  %v1452_v38 = vld [vmem:[%s1706_s16 + $0x10] ss:$8 sps:$4 sm:$0xff]   ;;  %v1455_v40 = vld [vmem:[%s1706_s16 + $0x24] ss:$8 sps:$4 sm:$0xff]   ;;  %v1458_v42 = vld [vmem:[%s1706_s16 + $0x20] ss:$8 sps:$4 sm:$0xff]  }
  0x15   : > { %610 = vmatprep.subr.bf16.mxu1 %v1577_v1  ;;  %887 = vmatprep.subr.bf16.mxu0 %v1577_v1  ;;  %v1459_v43 = vld [vmem:[%s1697_s12 + $0x34] ss:$8 sps:$4 sm:$0xff]   ;;  %v1463_v45 = vld [vmem:[%s1697_s12 + $0x30] ss:$8 sps:$4 sm:$0xff]   ;;  %v1465_v47 = vld [vmem:[%s1697_s12 + $0x44] ss:$8 sps:$4 sm:$0xff]  }
  0x16   : > { %v1461_v44 = vld [vmem:[%s1706_s16 + $0x34] ss:$8 sps:$4 sm:$0xff]   ;;  %v1464_v46 = vld [vmem:[%s1706_s16 + $0x30] ss:$8 sps:$4 sm:$0xff]   ;;  %v1467_v48 = vld [vmem:[%s1706_s16 + $0x44] ss:$8 sps:$4 sm:$0xff]  }
  0x17   : > { %v1469_v49 = vld [vmem:[%s1697_s12 + $0x40] ss:$8 sps:$4 sm:$0xff]   ;;  %v1471_v51 = vld [vmem:[%s1697_s12 + $0x54] ss:$8 sps:$4 sm:$0xff]   ;;  %v1475_v53 = vld [vmem:[%s1697_s12 + $0x50] ss:$8 sps:$4 sm:$0xff]  }
  0x18   : > { %611 = vmatpush1.bf16.msra.mxu1 %v1421_v9  ;;  %888 = vmatpush1.bf16.msra.mxu0 %v1422_v10  ;;  %v1470_v50 = vld [vmem:[%s1706_s16 + $0x40] ss:$8 sps:$4 sm:$0xff]   ;;  %v1473_v52 = vld [vmem:[%s1706_s16 + $0x54] ss:$8 sps:$4 sm:$0xff]   ;;  %v1476_v54 = vld [vmem:[%s1706_s16 + $0x50] ss:$8 sps:$4 sm:$0xff]  }
  0x19   : > { %612 = vmatprep.subr.bf16.mxu1 %v1577_v1  ;;  %889 = vmatprep.subr.bf16.mxu0 %v1577_v1  ;;  %v1477_v55 = vld [vmem:[%s1697_s12 + $0x64] ss:$8 sps:$4 sm:$0xff]   ;;  %v1481_v57 = vld [vmem:[%s1697_s12 + $0x60] ss:$8 sps:$4 sm:$0xff]   ;;  %v1483_v59 = vld [vmem:[%s1697_s12 + $0x74] ss:$8 sps:$4 sm:$0xff]  }
  0x1a   : > { %v1479_v56 = vld [vmem:[%s1706_s16 + $0x64] ss:$8 sps:$4 sm:$0xff]   ;;  %v1482_v58 = vld [vmem:[%s1706_s16 + $0x60] ss:$8 sps:$4 sm:$0xff]   ;;  %v1485_v60 = vld [vmem:[%s1706_s16 + $0x74] ss:$8 sps:$4 sm:$0xff]  }
  0x1b   : > { %v1487_v61 = vld [vmem:[%s1697_s12 + $0x70] ss:$8 sps:$4 sm:$0xff]  }
  0x1c   : > { %613 = vmatpush1.bf16.msra.mxu1 %v1423_v11  ;;  %890 = vmatpush1.bf16.msra.mxu0 %v1424_v12  ;;  %v1488_v62 = vld [vmem:[%s1706_s16 + $0x70] ss:$8 sps:$4 sm:$0xff]  }
  0x1d   : > { %614 = vmatprep.subr.bf16.mxu1 %v1577_v1  ;;  %891 = vmatprep.subr.bf16.mxu0 %v1577_v1 }
  0x20   : > { %615 = vmatpush1.bf16.msra.mxu1 %v1425_v13  ;;  %892 = vmatpush1.bf16.msra.mxu0 %v1426_v14 }
  0x21   : > { %616 = vmatprep.subr.bf16.mxu1 %v1577_v1  ;;  %893 = vmatprep.subr.bf16.mxu0 %v1577_v1 }
  0x24   : > { %617 = vmatpush1.bf16.msra.mxu1 %v1427_v15  ;;  %894 = vmatpush1.bf16.msra.mxu0 %v1428_v16 }
  0x25   : > { %618 = vmatprep.subr.bf16.mxu1 %v1577_v1  ;;  %895 = vmatprep.subr.bf16.mxu0 %v1577_v1 }
  0x28   : > { %619 = vmatpush1.bf16.msra.mxu1 %v1429_v19  ;;  %896 = vmatpush1.bf16.msra.mxu0 %v1430_v20 }
  0x29   : > { %620 = vmatprep.subr.bf16.mxu1 %v1577_v1  ;;  %897 = vmatprep.subr.bf16.mxu0 %v1577_v1 }
  0x2c   : > { %621 = vmatpush1.bf16.msra.mxu1 %v1431_v21  ;;  %898 = vmatpush1.bf16.msra.mxu0 %v1432_v22 }
  0x2d   : > { %622 = vmatprep.subr.bf16.mxu1 %v1577_v1  ;;  %899 = vmatprep.subr.bf16.mxu0 %v1577_v1 }
  0x30   : > { %623 = vmatpush1.bf16.msra.mxu1 %v1433_v23  ;;  %900 = vmatpush1.bf16.msra.mxu0 %v1434_v24 }
  0x31   : > { %624 = vmatprep.subr.bf16.mxu1 %v1577_v1  ;;  %901 = vmatprep.subr.bf16.mxu0 %v1577_v1 }
  0x34   : > { %625 = vmatpush1.bf16.msra.mxu1 %v1435_v25  ;;  %902 = vmatpush1.bf16.msra.mxu0 %v1436_v26 }
  0x35   : > { %626 = vmatprep.subr.bf16.mxu1 %v1577_v1  ;;  %903 = vmatprep.subr.bf16.mxu0 %v1577_v1 }
  0x38   : > { %627 = vmatpush1.bf16.msra.mxu1 %v1437_v27  ;;  %904 = vmatpush1.bf16.msra.mxu0 %v1438_v28 }
  0x39   : > { %628 = vmatprep.subr.bf16.mxu1 %v1577_v1  ;;  %905 = vmatprep.subr.bf16.mxu0 %v1577_v1  ;;  %v1812_v1 = vld [vmem:[%s1958_s4] ss:$0 sm:$0xff] }
  0x3c   : > { %629 = vmatpush1.bf16.msra.mxu1 %v600_v31  ;;  %906 = vmatpush1.bf16.msra.mxu0 %v877_v32 }
  0x3f   : > { %635 = vmatmul.mubr.bf16.vlgmr.msra.gmra.mrb[0].mxu1 %v1441_v33  ;;  %912 = vmatmul.mubr.bf16.vlgmr.msra.gmra.mrb[0].mxu0 %v1444_v34 }
  0x40   : > { %1304 = vmatprep.mubr.msk.bf16.mxu1 %vm573_vm0, %v1447_v35  ;;  %1342 = vmatprep.mubr.msk.bf16.mxu0 %vm573_vm0, %v1449_v36 }
  0x47   : > { %643 = vmatmul.mubr.bf16.gmra.mrb[4].mxu1 %v1451_v37  ;;  %920 = vmatmul.mubr.bf16.gmra.mrb[4].mxu0 %v1452_v38 }
  0x48   : > { %1305 = vmatprep.mubr.msk.bf16.mxu1 %vm573_vm0, %v1453_v39  ;;  %1343 = vmatprep.mubr.msk.bf16.mxu0 %vm573_vm0, %v1455_v40 }
  0x4f   : > { %651 = vmatmul.mubr.bf16.gmra.mrb[8].mxu1 %v1457_v41  ;;  %928 = vmatmul.mubr.bf16.gmra.mrb[8].mxu0 %v1458_v42 }
  0x50   : > { %1306 = vmatprep.mubr.msk.bf16.mxu1 %vm573_vm0, %v1459_v43  ;;  %1344 = vmatprep.mubr.msk.bf16.mxu0 %vm573_vm0, %v1461_v44 }
  0x57   : > { %659 = vmatmul.mubr.bf16.gmra.mrb[12].mxu1 %v1463_v45  ;;  %936 = vmatmul.mubr.bf16.gmra.mrb[12].mxu0 %v1464_v46 }
  0x58   : > { %1307 = vmatprep.mubr.msk.bf16.mxu1 %vm573_vm0, %v1465_v47  ;;  %1345 = vmatprep.mubr.msk.bf16.mxu0 %vm573_vm0, %v1467_v48 }
  0x5f   : > { %667 = vmatmul.mubr.bf16.gmra.mrb[16].mxu1 %v1469_v49  ;;  %944 = vmatmul.mubr.bf16.gmra.mrb[16].mxu0 %v1470_v50 }
  0x60   : > { %1308 = vmatprep.mubr.msk.bf16.mxu1 %vm573_vm0, %v1471_v51  ;;  %1346 = vmatprep.mubr.msk.bf16.mxu0 %vm573_vm0, %v1473_v52 }
  0x67   : > { %675 = vmatmul.mubr.bf16.gmra.mrb[20].mxu1 %v1475_v53  ;;  %952 = vmatmul.mubr.bf16.gmra.mrb[20].mxu0 %v1476_v54 }
  0x68   : > { %1309 = vmatprep.mubr.msk.bf16.mxu1 %vm573_vm0, %v1477_v55  ;;  %1347 = vmatprep.mubr.msk.bf16.mxu0 %vm573_vm0, %v1479_v56 }
  0x6f   : > { %683 = vmatmul.mubr.bf16.gmra.mrb[24].mxu1 %v1481_v57  ;;  %960 = vmatmul.mubr.bf16.gmra.mrb[24].mxu0 %v1482_v58 }
  0x70   : > { %1310 = vmatprep.mubr.msk.bf16.mxu1 %vm573_vm0, %v1483_v59  ;;  %1348 = vmatprep.mubr.msk.bf16.mxu0 %vm573_vm0, %v1485_v60 }
  0x77   : > { %691 = vmatmul.mubr.bf16.gmra.mrb[28].mxu1 %v1487_v61  ;;  %968 = vmatmul.mubr.bf16.gmra.mrb[28].mxu0 %v1488_v62 }
 0x112   : > { %v636_v63 = vpop.f32.mrb[0].mxu1  ;;  %v913_v0 = vpop.f32.mrb[0].mxu0 }
 0x113   : > { %v638_v2 = vpop.f32.mrb[1].mxu1  ;;  %v914_v3 = vadd.f32 %v913_v0, %v636_v63  ;;  %v915_v4 = vpop.f32.mrb[1].mxu0 }
 0x114   : > { %v639_v5 = vpop.f32.mrb[2].mxu1  ;;  %v916_v7 = vpop.f32.mrb[2].mxu0 }
 0x115   : > { %v641_v8 = vpop.f32.mrb[3].mxu1  ;;  %v983_v9 = vmul.f32 %v1812_v1, %v914_v3  ;;  %v917_v10 = vadd.f32 %v916_v7, %v639_v5  ;;  %v918_v11 = vpop.f32.mrb[3].mxu0 }
 0x117   : > { %v1821_v12 = vadd.f32 %v1817_v6, %v983_v9  ;;  %v984_v13 = vmul.f32 %v1812_v1, %v917_v10 }
 0x119   : > { %v1351_v14 = vmul.f32 -1.442695, %v1821_v12  ;;  %v1826_v15 = vadd.f32 %v1817_v6, %v984_v13 }
 0x11a   : > { %v644_v16 = vpop.f32.mrb[4].mxu1  ;;  %v921_v17 = vpop.f32.mrb[4].mxu0 }
 0x11b   : > { %v646_v18 = vpop.f32.mrb[5].mxu1  ;;  %1489 = vpow2.f32 %v1351_v14  ;;  %v1352_v19 = vmul.f32 -1.442695, %v1826_v15  ;;  %v922_v20 = vadd.f32 %v921_v17, %v644_v16  ;;  %v923_v21 = vpop.f32.mrb[5].mxu0 }
 0x11c   : > { %v647_v22 = vpop.f32.mrb[6].mxu1  ;;  %v924_v23 = vpop.f32.mrb[6].mxu0 }
 0x11d   : > { %v649_v24 = vpop.f32.mrb[7].mxu1  ;;  %1491 = vpow2.f32 %v1352_v19  ;;  %v985_v25 = vmul.f32 %v1812_v1, %v922_v20  ;;  %v925_v26 = vadd.f32 %v924_v23, %v647_v22  ;;  %v926_v27 = vpop.f32.mrb[7].mxu0 }
 0x11f   : > { %v1831_v28 = vadd.f32 %v1817_v6, %v985_v25  ;;  %v986_v29 = vmul.f32 %v1812_v1, %v925_v26 }
 0x121   : > { %v1353_v30 = vmul.f32 -1.442695, %v1831_v28  ;;  %v1836_v31 = vadd.f32 %v1817_v6, %v986_v29 }
 0x122   : > { %v652_v32 = vpop.f32.mrb[8].mxu1  ;;  %v929_v33 = vpop.f32.mrb[8].mxu0 }
 0x123   : > { %v654_v34 = vpop.f32.mrb[9].mxu1  ;;  %1493 = vpow2.f32 %v1353_v30  ;;  %v1354_v35 = vmul.f32 -1.442695, %v1836_v31  ;;  %v930_v36 = vadd.f32 %v929_v33, %v652_v32  ;;  %v931_v37 = vpop.f32.mrb[9].mxu0 }
 0x124   : > { %v655_v38 = vpop.f32.mrb[10].mxu1  ;;  %v932_v39 = vpop.f32.mrb[10].mxu0 }
 0x125   : > { %v657_v40 = vpop.f32.mrb[11].mxu1  ;;  %v1490_v41 = vpop.eup %1489  ;;  %1495 = vpow2.f32 %v1354_v35  ;;  %v987_v42 = vmul.f32 %v1812_v1, %v930_v36  ;;  %v933_v43 = vadd.f32 %v932_v39, %v655_v38 }
 0x126   : > { %v934_v44 = vpop.f32.mrb[11].mxu0  ;;  %v1070_v45 = vadd.f32 1.0, %v1490_v41 }
 0x127   : > { %v1492_v46 = vpop.eup %1491  ;;  %v1841_v47 = vadd.f32 %v1817_v6, %v987_v42  ;;  %v988_v48 = vmul.f32 %v1812_v1, %v933_v43 }
 0x128   : > { %1497 = vrcp.f32 %v1070_v45  ;;  %v1071_v49 = vadd.f32 1.0, %v1492_v46 }
 0x129   : > { %v1355_v50 = vmul.f32 -1.442695, %v1841_v47  ;;  %v1846_v51 = vadd.f32 %v1817_v6, %v988_v48 }
 0x12a   : > { %v660_v52 = vpop.f32.mrb[12].mxu1  ;;  %1499 = vrcp.f32 %v1071_v49  ;;  %v937_v53 = vpop.f32.mrb[12].mxu0 }
 0x12b   : > { %v662_v54 = vpop.f32.mrb[13].mxu1  ;;  %1501 = vpow2.f32 %v1355_v50  ;;  %v1356_v55 = vmul.f32 -1.442695, %v1846_v51  ;;  %v938_v56 = vadd.f32 %v937_v53, %v660_v52  ;;  %v939_v57 = vpop.f32.mrb[13].mxu0 }
 0x12c   : > { %v663_v58 = vpop.f32.mrb[14].mxu1  ;;  %v940_v59 = vpop.f32.mrb[14].mxu0 }
 0x12d   : > { %v665_v60 = vpop.f32.mrb[15].mxu1  ;;  %v1494_v61 = vpop.eup %1493  ;;  %1503 = vpow2.f32 %v1356_v55  ;;  %v989_v62 = vmul.f32 %v1812_v1, %v938_v56  ;;  %v941_v63 = vadd.f32 %v940_v59, %v663_v58 }
 0x12e   : > { %v942_v0 = vpop.f32.mrb[15].mxu0  ;;  %v1072_v2 = vadd.f32 1.0, %v1494_v61 }
 0x12f   : > { %v1496_v3 = vpop.eup %1495  ;;  %v1851_v4 = vadd.f32 %v1817_v6, %v989_v62  ;;  %v990_v5 = vmul.f32 %v1812_v1, %v941_v63 }
 0x130   : > { %1505 = vrcp.f32 %v1072_v2  ;;  %v1073_v7 = vadd.f32 1.0, %v1496_v3 }
 0x131   : > { %v1357_v8 = vmul.f32 -1.442695, %v1851_v4  ;;  %v1856_v9 = vadd.f32 %v1817_v6, %v990_v5 }
 0x132   : > { %v668_v10 = vpop.f32.mrb[16].mxu1  ;;  %v1498_v11 = vpop.eup %1497  ;;  %1507 = vrcp.f32 %v1073_v7 }
 0x133   : > { %v945_v13 = vpop.f32.mrb[16].mxu0  ;;  %v670_v14 = vpop.f32.mrb[17].mxu1  ;;  %v1118_v16 = vmul.f32 %v1498_v11, %v1821_v12  ;;  %1509 = vpow2.f32 %v1357_v8  ;;  %v1358_v17 = vmul.f32 -1.442695, %v1856_v9 }
 0x134   : > { %v946_v18 = vadd.f32 %v945_v13, %v668_v10  ;;  %v947_v19 = vpop.f32.mrb[17].mxu0  ;;  %v671_v20 = vpop.f32.mrb[18].mxu1 }
 0x135   : > { %v1500_v21 = vpop.eup %1499  ;;  %v948_v22 = vpop.f32.mrb[18].mxu0  ;;  %1135 = vst.msk [vmem:[%s1862_s10] sm:$0xff] %vm1134_vm2, %v1118_v16  ;;  %1511 = vpow2.f32 %v1358_v17 }
 0x136   : > { %v673_v23 = vpop.f32.mrb[19].mxu1  ;;  %v1502_v24 = vpop.eup %1501  ;;  %v1119_v25 = vmul.f32 %v1500_v21, %v1826_v15  ;;  %v991_v26 = vmul.f32 %v1812_v1, %v946_v18  ;;  %v949_v27 = vadd.f32 %v948_v22, %v671_v20 }
 0x137   : > { %v950_v12 = vpop.f32.mrb[19].mxu0  ;;  %v1074_v29 = vadd.f32 1.0, %v1502_v24  ;;  %v1504_v30 = vpop.eup %1503 }
 0x138   : > { %1136 = vst.msk [vmem:[%s1862_s10 + $0x8] sm:$0xff] %vm1134_vm2, %v1119_v25  ;;  %v1873_v32 = vadd.f32 %v1817_v6, %v991_v26  ;;  %v992_v33 = vmul.f32 %v1812_v1, %v949_v27  ;;  %v1075_v34 = vadd.f32 1.0, %v1504_v30 }
 0x139   : > { %1513 = vrcp.f32 %v1074_v29 }
 0x13a   : > { %v1359_v35 = vmul.f32 -1.442695, %v1873_v32  ;;  %v1878_v15 = vadd.f32 %v1817_v6, %v992_v33  ;;  %v676_v36 = vpop.f32.mrb[20].mxu1  ;;  %v1506_v37 = vpop.eup %1505  ;;  %1515 = vrcp.f32 %v1075_v34 }
 0x13b   : > { %v953_v38 = vpop.f32.mrb[20].mxu0  ;;  %v678_v39 = vpop.f32.mrb[21].mxu1  ;;  %v1120_v40 = vmul.f32 %v1506_v37, %v1831_v28 }
 0x13c   : > { %1517 = vpow2.f32 %v1359_v35  ;;  %v1360_v41 = vmul.f32 -1.442695, %v1878_v15  ;;  %v954_v42 = vadd.f32 %v953_v38, %v676_v36  ;;  %v955_v43 = vpop.f32.mrb[21].mxu0  ;;  %v679_v44 = vpop.f32.mrb[22].mxu1 }
 0x13d   : > { %v1508_v45 = vpop.eup %1507  ;;  %v956_v46 = vpop.f32.mrb[22].mxu0  ;;  %1137 = vst.msk [vmem:[%s1862_s10 + $0x10] sm:$0xff] %vm1134_vm2, %v1120_v40 }
 0x13e   : > { %v681_v48 = vpop.f32.mrb[23].mxu1  ;;  %v1510_v49 = vpop.eup %1509  ;;  %v1121_v50 = vmul.f32 %v1508_v45, %v1836_v31  ;;  %1519 = vpow2.f32 %v1360_v41  ;;  %v993_v52 = vmul.f32 %v1812_v1, %v954_v42  ;;  %v957_v53 = vadd.f32 %v956_v46, %v679_v44 }
 0x13f   : > { %v958_v28 = vpop.f32.mrb[23].mxu0  ;;  %v1076_v54 = vadd.f32 1.0, %v1510_v49  ;;  %v1512_v55 = vpop.eup %1511 }
 0x140   : > { %1138 = vst.msk [vmem:[%s1862_s10 + $0x18] sm:$0xff] %vm1134_vm2, %v1121_v50  ;;  %v1889_v56 = vadd.f32 %v1817_v6, %v993_v52  ;;  %v994_v57 = vmul.f32 %v1812_v1, %v957_v53  ;;  %v1077_v58 = vadd.f32 1.0, %v1512_v55 }
 0x141   : > { %1521 = vrcp.f32 %v1076_v54 }
 0x142   : > { %v1361_v59 = vmul.f32 -1.442695, %v1889_v56  ;;  %v1894_v31 = vadd.f32 %v1817_v6, %v994_v57  ;;  %v684_v60 = vpop.f32.mrb[24].mxu1  ;;  %1523 = vrcp.f32 %v1077_v58  ;;  %v961_v62 = vpop.f32.mrb[24].mxu0 }
 0x143   : > { %v1514_v61 = vpop.eup %1513  ;;  %v686_v63 = vpop.f32.mrb[25].mxu1  ;;  %v962_v3 = vadd.f32 %v961_v62, %v684_v60 }
 0x144   : > { %v1122_v0 = vmul.f32 %v1514_v61, %v1841_v47  ;;  %1525 = vpow2.f32 %v1361_v59  ;;  %v1362_v2 = vmul.f32 -1.442695, %v1894_v31  ;;  %v963_v5 = vpop.f32.mrb[25].mxu0  ;;  %v687_v7 = vpop.f32.mrb[26].mxu1 }
 0x145   : > { %v1516_v8 = vpop.eup %1515  ;;  %v964_v10 = vpop.f32.mrb[26].mxu0  ;;  %v995_v16 = vmul.f32 %v1812_v1, %v962_v3 }
 0x146   : > { %v689_v11 = vpop.f32.mrb[27].mxu1  ;;  %v1518_v13 = vpop.eup %1517  ;;  %1139 = vst.msk [vmem:[%s1862_s10 + $0x20] sm:$0xff] %vm1134_vm2, %v1122_v0  ;;  %v1123_v14 = vmul.f32 %v1516_v8, %v1846_v51  ;;  %1527 = vpow2.f32 %v1362_v2  ;;  %v965_v17 = vadd.f32 %v964_v10, %v687_v7 }
 0x147   : > { %v966_v47 = vpop.f32.mrb[27].mxu0  ;;  %v1078_v18 = vadd.f32 1.0, %v1518_v13  ;;  %v1905_v20 = vadd.f32 %v1817_v6, %v995_v16 }
 0x148   : > { %v1520_v19 = vpop.eup %1519  ;;  %1140 = vst.msk [vmem:[%s1862_s10 + $0x28] sm:$0xff] %vm1134_vm2, %v1123_v14  ;;  %v996_v21 = vmul.f32 %v1812_v1, %v965_v17 }
 0x149   : > { %1529 = vrcp.f32 %v1078_v18  ;;  %v1079_v22 = vadd.f32 1.0, %v1520_v19  ;;  %v1363_v23 = vmul.f32 -1.442695, %v1905_v20 }
 0x14a   : > { %v1910_v51 = vadd.f32 %v1817_v6, %v996_v21  ;;  %v692_v24 = vpop.f32.mrb[28].mxu1  ;;  %v969_v26 = vpop.f32.mrb[28].mxu0 }
 0x14b   : > { %v1522_v25 = vpop.eup %1521  ;;  %1531 = vrcp.f32 %v1079_v22  ;;  %v694_v27 = vpop.f32.mrb[29].mxu1  ;;  %v970_v30 = vadd.f32 %v969_v26, %v692_v24 }
 0x14c   : > { %v1124_v12 = vmul.f32 %v1522_v25, %v1851_v4  ;;  %1533 = vpow2.f32 %v1363_v23  ;;  %v1364_v29 = vmul.f32 -1.442695, %v1910_v51  ;;  %v971_v33 = vpop.f32.mrb[29].mxu0  ;;  %v695_v34 = vpop.f32.mrb[30].mxu1 }
 0x14d   : > { %v1524_v35 = vpop.eup %1523  ;;  %v972_v36 = vpop.f32.mrb[30].mxu0  ;;  %v997_v40 = vmul.f32 %v1812_v1, %v970_v30 }
 0x14e   : > { %v697_v37 = vpop.f32.mrb[31].mxu1  ;;  %v1526_v38 = vpop.eup %1525  ;;  %1141 = vst.msk [vmem:[%s1862_s10 + $0x30] sm:$0xff] %vm1134_vm2, %v1124_v12  ;;  %v1125_v39 = vmul.f32 %v1524_v35, %v1856_v9  ;;  %1535 = vpow2.f32 %v1364_v29  ;;  %v973_v41 = vadd.f32 %v972_v36, %v695_v34 }
 0x14f   : > { %v974_v4 = vpop.f32.mrb[31].mxu0  ;;  %v1080_v42 = vadd.f32 1.0, %v1526_v38  ;;  %v1020_v44 = vadd.f32 %v1817_v6, %v997_v40 }
 0x150   : > { %v1528_v43 = vpop.eup %1527  ;;  %1142 = vst.msk [vmem:[%s1862_s10 + $0x38] sm:$0xff] %vm1134_vm2, %v1125_v39  ;;  %v998_v45 = vmul.f32 %v1812_v1, %v973_v41 }
 0x151   : > { %1537 = vrcp.f32 %v1080_v42  ;;  %v1081_v46 = vadd.f32 1.0, %v1528_v43  ;;  %v1365_v48 = vmul.f32 -1.442695, %v1020_v44 }
 0x152   : > { %v1021_v9 = vadd.f32 %v1817_v6, %v998_v45 }
 0x153   : > { %v1530_v49 = vpop.eup %1529  ;;  %1539 = vrcp.f32 %v1081_v46 }
 0x154   : > { %v1126_v50 = vmul.f32 %v1530_v49, %v1873_v32  ;;  %1541 = vpow2.f32 %v1365_v48  ;;  %v1366_v52 = vmul.f32 -1.442695, %v1021_v9 }
 0x155   : > { %v1532_v53 = vpop.eup %1531 }
 0x156   : > { %v1534_v28 = vpop.eup %1533  ;;  %1143 = vst.msk [vmem:[%s1862_s10 + $0x40] sm:$0xff] %vm1134_vm2, %v1126_v50  ;;  %v1127_v54 = vmul.f32 %v1532_v53, %v1878_v15  ;;  %1543 = vpow2.f32 %v1366_v52 }
 0x157   : > { %v1082_v1 = vadd.f32 1.0, %v1534_v28 }
 0x158   : > { %v1536_v55 = vpop.eup %1535  ;;  %1144 = vst.msk [vmem:[%s1862_s10 + $0x48] sm:$0xff] %vm1134_vm2, %v1127_v54 }
 0x159   : > { %1545 = vrcp.f32 %v1082_v1  ;;  %v1083_v6 = vadd.f32 1.0, %v1536_v55 }
 0x15b   : > { %v1538_v57 = vpop.eup %1537  ;;  %1547 = vrcp.f32 %v1083_v6 }
 0x15c   : > { %v1128_v32 = vmul.f32 %v1538_v57, %v1889_v56 }
 0x15d   : > { %v1540_v58 = vpop.eup %1539 }
 0x15e   : > { %v1542_v59 = vpop.eup %1541  ;;  %1145 = vst.msk [vmem:[%s1862_s10 + $0x50] sm:$0xff] %vm1134_vm2, %v1128_v32  ;;  %v1129_v15 = vmul.f32 %v1540_v58, %v1894_v31 }
 0x15f   : > { %v1084_v60 = vadd.f32 1.0, %v1542_v59 }
 0x160   : > { %v1544_v61 = vpop.eup %1543  ;;  %1146 = vst.msk [vmem:[%s1862_s10 + $0x58] sm:$0xff] %vm1134_vm2, %v1129_v15 }
 0x161   : > { %1549 = vrcp.f32 %v1084_v60  ;;  %v1085_v62 = vadd.f32 1.0, %v1544_v61 }
 0x163   : > { %v1546_v63 = vpop.eup %1545  ;;  %1551 = vrcp.f32 %v1085_v62 }
 0x164   : > { %v1130_v0 = vmul.f32 %v1546_v63, %v1905_v20 }
 0x165   : > { %v1548_v56 = vpop.eup %1547 }
 0x166   : > { %1147 = vst.msk [vmem:[%s1862_s10 + $0x60] sm:$0xff] %vm1134_vm2, %v1130_v0  ;;  %v1131_v2 = vmul.f32 %v1548_v56, %v1910_v51 }
 0x168   : > { %1148 = vst.msk [vmem:[%s1862_s10 + $0x68] sm:$0xff] %vm1134_vm2, %v1131_v2 }
 0x16b   : > { %v1550_v31 = vpop.eup %1549 }
 0x16c   : > { %v1132_v3 = vmul.f32 %v1550_v31, %v1020_v44 }
 0x16d   : > { %v1552_v5 = vpop.eup %1551 }
 0x16e   : > { %1149 = vst.msk [vmem:[%s1862_s10 + $0x70] sm:$0xff] %vm1134_vm2, %v1132_v3  ;;  %v1133_v7 = vmul.f32 %v1552_v5, %v1021_v9 }
 0x170   : > { %1150 = vst.msk [vmem:[%s1862_s10 + $0x78] sm:$0xff] %vm1134_vm2, %v1133_v7 }
 0x171 PF: > { %s16_s23 = sadd.s32 1, %s1575_s23   ;;  %s1961_s21 = smov %s1571_s22 }
 0x172   : > { %p13_p5 = scmp.ge.s32.totalorder %s16_s23, 4   ;;  %s1962_s22 = smov %s1964_s24 }
 0x174   :  { %15 = sbr.rel (!%p13_p5) target bundleno = 2 (0x2), region = 77 }

</bundles_post_ra>
